<compile_context>
chip_gen: v5e
topology: v5e:2x2
jax: 0.10.0
libtpu: 0.0.40
codegen_flags: <defaults>
</compile_context>

<pallas_src>
import jax
import jax.numpy as jnp
from jax.experimental import pallas as pl
from jax.experimental.pallas import tpu as pltpu


HIDDEN = 1024
IN_FEATURES = 288


def _fused_actor_critic_kernel(x_ref,
                               w1_ref, b1_ref,
                               aw2_ref, ab2_ref, cw2_ref, cb2_ref,
                               w3_ref, b3_ref,
                               o_ref):
    """Fused actor+critic forward for one batch tile.

    Layer 1 and layer 3 are merged across heads (single MXU pass each);
    layer 2 stays per-head because its inputs differ. Weights are bf16,
    all accumulation is f32 on the MXU, biases/tanh in f32, hidden
    activations re-quantized to bf16 exactly once.
    """
    x = x_ref[...].astype(jnp.bfloat16)                       # (tm, 288)

    # ---- layer 1 (merged actor|critic): (tm,288) @ (288,2048) ----
    h1 = jnp.tanh(
        jnp.dot(x, w1_ref[...], preferred_element_type=jnp.float32)
        + b1_ref[...]).astype(jnp.bfloat16)                   # (tm, 2048)
    a_h1 = h1[:, :HIDDEN]
    c_h1 = h1[:, HIDDEN:]

    # ---- layer 2 (per head; inputs differ) ----
    a_h2 = jnp.tanh(
        jnp.dot(a_h1, aw2_ref[...], preferred_element_type=jnp.float32)
        + ab2_ref[...]).astype(jnp.bfloat16)                  # (tm, 1024)
    c_h2 = jnp.tanh(
        jnp.dot(c_h1, cw2_ref[...], preferred_element_type=jnp.float32)
        + cb2_ref[...]).astype(jnp.bfloat16)                  # (tm, 1024)

    # ---- layer 3 (merged): one (2048, action_dim+1) weight, one dot ----
    h2 = jnp.concatenate([a_h2, c_h2], axis=-1)               # (tm, 2048)
    out = (jnp.dot(h2, w3_ref[...], preferred_element_type=jnp.float32)
           + b3_ref[...])                                     # (tm, action_dim+1)
    o_ref[...] = out.astype(o_ref.dtype)


def _tile_defaults():
    """Generation-dependent batch-tile size and scoped-VMEM cap.

    v5e/v6e: 128 MiB physical VMEM -> tm up to 1024, 64 MiB cap.
    v7x (or unknown): 64 MiB physical -> tm up to 512, 32 MiB cap.
    """
    try:
        info = pltpu.get_tpu_info()
        vmem_phys = getattr(info, "vmem_capacity_bytes", 64 << 20)
    except Exception:
        vmem_phys = 64 << 20
    if vmem_phys >= (128 << 20):
        return 1024, 64 << 20
    return 512, 32 << 20


def fused_actor_critic(obs, params):
    """Run both MLP heads in one pallas_call.

    Returns a (B, action_dim + 1) f32 array: columns [0, action_dim) hold the
    actor mean, column action_dim holds the critic value.
    """
    w1, b1, aw2, ab2, cw2, cb2, w3, b3 = params
    batch = obs.shape[0]
    out_real = w3.shape[1]                       # action_dim + 1

    tm_max, vmem_limit = _tile_defaults()
    tm = batch if batch <= tm_max else tm_max
    grid = (pl.cdiv(batch, tm),)

    weight_args = (w1, b1, aw2, ab2, cw2, cb2, w3, b3)
    # Weights/biases live at a constant block index -> fetched once, never
    # re-DMA'd across batch tiles. After the W3 shrink the whole (double
    # buffered) weight set fits comfortably under the scoped-VMEM cap, so we
    # skip per-spec single-buffering (pl.Buffered(1)) and keep the default.
    in_specs = [pl.BlockSpec((tm, IN_FEATURES), lambda i: (i, 0))]
    in_specs += [pl.BlockSpec(w.shape, lambda i: (0, 0)) for w in weight_args]

    return pl.pallas_call(
        _fused_actor_critic_kernel,
        out_shape=jax.ShapeDtypeStruct((batch, out_real), jnp.float32),
        grid=grid,
        in_specs=in_specs,
        out_specs=pl.BlockSpec((tm, out_real), lambda i: (i, 0)),
        compiler_params=pltpu.CompilerParams(
            dimension_semantics=("parallel",),   # batch tiles shard across TCs
            vmem_limit_bytes=vmem_limit,
        ),
    )(obs, *weight_args)


def _init_linear(key, fan_in, fan_out):
    """PyTorch nn.Linear default init: U(-1/sqrt(fan_in), 1/sqrt(fan_in)).
    Weight is returned as (fan_in, fan_out) (transposed vs PyTorch storage)."""
    k_w, k_b = jax.random.split(key)
    bound = 1.0 / jnp.sqrt(jnp.float32(fan_in))
    w = jax.random.uniform(
        k_w, (fan_in, fan_out), dtype=jnp.float32, minval=-bound, maxval=bound)
    b = jax.random.uniform(
        k_b, (1, fan_out), dtype=jnp.float32, minval=-bound, maxval=bound)
    return w, b


class PallasModel:
    """JAX/Pallas port of the PyTorch actor-critic Model."""

    def __init__(self, action_dim, action_std_init, key):
        self.action_dim = action_dim
        self.action_var = jnp.full(
            (action_dim,), action_std_init * action_std_init, dtype=jnp.float32)
        # Constant covariance: diag(action_var).unsqueeze(0) -- hoisted here
        # so it is not rebuilt on every forward call.
        self.cov_mat = jnp.diag(self.action_var)[None, :, :]

        keys = jax.random.split(key, 6)
        # actor: 288 -> 1024 -> 1024 -> action_dim
        a_w1, a_b1 = _init_linear(keys[0], IN_FEATURES, HIDDEN)
        a_w2, a_b2 = _init_linear(keys[1], HIDDEN, HIDDEN)
        a_w3, a_b3 = _init_linear(keys[2], HIDDEN, action_dim)
        # critic: 288 -> 1024 -> 1024 -> 1
        c_w1, c_b1 = _init_linear(keys[3], IN_FEATURES, HIDDEN)
        c_w2, c_b2 = _init_linear(keys[4], HIDDEN, HIDDEN)
        c_w3, c_b3 = _init_linear(keys[5], HIDDEN, 1)

        # Merge layer-1 across heads: (288, 2048) weight, (1, 2048) bias.
        w1 = jnp.concatenate([a_w1, c_w1], axis=1)
        b1 = jnp.concatenate([a_b1, c_b1], axis=1)

        # Merge layer-3 across heads into one (2048, action_dim+1) matrix:
        # actor rows feed columns [0, action_dim), critic rows feed column
        # action_dim. No 128-wide zero padding is ever stored or streamed.
        out_real = action_dim + 1
        w3 = jnp.zeros((2 * HIDDEN, out_real), jnp.float32)
        w3 = w3.at[:HIDDEN, :action_dim].set(a_w3)
        w3 = w3.at[HIDDEN:, action_dim].set(c_w3[:, 0])
        b3 = jnp.concatenate([a_b3, c_b3], axis=1)            # (1, action_dim+1)

        bf16 = jnp.bfloat16
        # Weights stream as bf16 (intentional precision change vs the f32
        # PyTorch model; f32 accumulation in-kernel). Biases stay f32.
        self.params = (
            w1.astype(bf16), b1,
            a_w2.astype(bf16), a_b2, c_w2.astype(bf16), c_b2,
            w3.astype(bf16), b3,
        )

    def set_action_std(self, new_action_std):
        self.action_var = jnp.full(
            (self.action_dim,), new_action_std * new_action_std, dtype=jnp.float32)
        self.cov_mat = jnp.diag(self.action_var)[None, :, :]

    def forward(self, obs):
        fused = fused_actor_critic(obs, self.params)
        action_mean = fused[:, :self.action_dim]
        value = fused[:, self.action_dim]
        # TODO(synk): torch.distributions.MultivariateNormal has no Pallas
        # equivalent; return its parameters (mean, covariance) plus the value.
        return action_mean, self.cov_mat, value


def _reference_forward(model, obs):
    """Pure-JAX reference with identical mixed precision (bf16 weights and
    hidden activations, f32 accumulation) for correctness checking."""
    w1, b1, aw2, ab2, cw2, cb2, w3, b3 = model.params
    x = obs.astype(jnp.bfloat16)
    h1 = jnp.tanh(jnp.dot(x, w1, preferred_element_type=jnp.float32)
                  + b1).astype(jnp.bfloat16)
    a_h1, c_h1 = h1[:, :HIDDEN], h1[:, HIDDEN:]
    a_h2 = jnp.tanh(jnp.dot(a_h1, aw2, preferred_element_type=jnp.float32)
                    + ab2).astype(jnp.bfloat16)
    c_h2 = jnp.tanh(jnp.dot(c_h1, cw2, preferred_element_type=jnp.float32)
                    + cb2).astype(jnp.bfloat16)
    h2 = jnp.concatenate([a_h2, c_h2], axis=-1)
    out = jnp.dot(h2, w3, preferred_element_type=jnp.float32) + b3
    return out[:, :model.action_dim], out[:, model.action_dim]


if __name__ == "__main__":
    key = jax.random.PRNGKey(0)
    k_params, k_obs = jax.random.split(key)

    batch = 8
    action_dim = 2  # racetrack continuous control (steering, throttle)
    model = PallasModel(action_dim=action_dim, action_std_init=0.6, key=k_params)

    obs = jax.random.normal(k_obs, (batch, IN_FEATURES), dtype=jnp.float32)

    action_mean, cov_mat, value = model.forward(obs)
    action_mean = jax.block_until_ready(action_mean)
    cov_mat = jax.block_until_ready(cov_mat)
    value = jax.block_until_ready(value)

    # Sanity check against a pure-JAX reference with the same mixed precision.
    ref_mean, ref_value = _reference_forward(model, obs)
    assert action_mean.shape == (batch, action_dim)
    assert cov_mat.shape == (1, action_dim, action_dim)
    assert value.shape == (batch,)
    assert jnp.allclose(action_mean, ref_mean, atol=2e-3, rtol=2e-3)
    assert jnp.allclose(value, ref_value, atol=2e-3, rtol=2e-3)

    print("KERNEL_OK")
</pallas_src>

<mosaic_0001>
module attributes {stable_mosaic.version = 11 : i64} {
  func.func @_fused_actor_critic_kernel(%arg0: i32, %arg1: memref<8x288xf32, #tpu.memory_space<vmem>>, %arg2: memref<288x2048xbf16, #tpu.memory_space<vmem>>, %arg3: memref<1x2048xf32, #tpu.memory_space<vmem>>, %arg4: memref<1024x1024xbf16, #tpu.memory_space<vmem>>, %arg5: memref<1x1024xf32, #tpu.memory_space<vmem>>, %arg6: memref<1024x1024xbf16, #tpu.memory_space<vmem>>, %arg7: memref<1x1024xf32, #tpu.memory_space<vmem>>, %arg8: memref<2048x3xbf16, #tpu.memory_space<vmem>>, %arg9: memref<1x3xf32, #tpu.memory_space<vmem>>, %arg10: memref<8x3xf32, #tpu.memory_space<vmem>>) attributes {dimension_semantics = [#tpu.dimension_semantics<parallel>], iteration_bounds = array<i64: 1>, scalar_prefetch = 0 : i64, scratch_operands = 0 : i64, tpu.core_type = #tpu.core_type<tc>, window_params = [{transform_indices = @transform_0, window_bounds = array<i64: 8, 288>}, {pipeline_mode = #tpu.pipeline_mode<synchronous>, transform_indices = @transform_1, window_bounds = array<i64: 288, 2048>}, {pipeline_mode = #tpu.pipeline_mode<synchronous>, transform_indices = @transform_2, window_bounds = array<i64: 1, 2048>}, {pipeline_mode = #tpu.pipeline_mode<synchronous>, transform_indices = @transform_3, window_bounds = array<i64: 1024, 1024>}, {pipeline_mode = #tpu.pipeline_mode<synchronous>, transform_indices = @transform_4, window_bounds = array<i64: 1, 1024>}, {pipeline_mode = #tpu.pipeline_mode<synchronous>, transform_indices = @transform_5, window_bounds = array<i64: 1024, 1024>}, {pipeline_mode = #tpu.pipeline_mode<synchronous>, transform_indices = @transform_6, window_bounds = array<i64: 1, 1024>}, {pipeline_mode = #tpu.pipeline_mode<synchronous>, transform_indices = @transform_7, window_bounds = array<i64: 2048, 3>}, {pipeline_mode = #tpu.pipeline_mode<synchronous>, transform_indices = @transform_8, window_bounds = array<i64: 1, 3>}, {transform_indices = @transform_9, window_bounds = array<i64: 8, 3>}]} {
    %c0 = arith.constant 0 : index
    %c0_0 = arith.constant 0 : index
    %0 = vector.load %arg1[%c0, %c0_0] : memref<8x288xf32, #tpu.memory_space<vmem>>, vector<8x288xf32>
    %1 = arith.truncf %0 : vector<8x288xf32> to vector<8x288xbf16>
    %c0_1 = arith.constant 0 : index
    %c0_2 = arith.constant 0 : index
    %2 = vector.load %arg2[%c0_1, %c0_2] : memref<288x2048xbf16, #tpu.memory_space<vmem>>, vector<288x2048xbf16>
    %cst = arith.constant dense<0.000000e+00> : vector<8x2048xf32>
    %3 = tpu.matmul %1, %2, %cst {dimension_numbers = #tpu.dot_dimension_numbers<[1], [0], [0], [1], [0, 0, 1, 1], [], []>} : vector<8x288xbf16>, vector<288x2048xbf16>, vector<8x2048xf32> -> vector<8x2048xf32>
    %c0_3 = arith.constant 0 : index
    %c0_4 = arith.constant 0 : index
    %4 = vector.load %arg3[%c0_3, %c0_4] : memref<1x2048xf32, #tpu.memory_space<vmem>>, vector<1x2048xf32>
    %5 = vector.broadcast %4 : vector<1x2048xf32> to vector<8x2048xf32>
    %6 = arith.addf %3, %5 : vector<8x2048xf32>
    %7 = math.tanh %6 : vector<8x2048xf32>
    %8 = arith.truncf %7 : vector<8x2048xf32> to vector<8x2048xbf16>
    %9 = vector.extract_strided_slice %8 {offsets = [0, 0], sizes = [8, 1024], strides = [1, 1]} : vector<8x2048xbf16> to vector<8x1024xbf16>
    %10 = vector.extract_strided_slice %8 {offsets = [0, 1024], sizes = [8, 1024], strides = [1, 1]} : vector<8x2048xbf16> to vector<8x1024xbf16>
    %c0_5 = arith.constant 0 : index
    %c0_6 = arith.constant 0 : index
    %11 = vector.load %arg4[%c0_5, %c0_6] : memref<1024x1024xbf16, #tpu.memory_space<vmem>>, vector<1024x1024xbf16>
    %cst_7 = arith.constant dense<0.000000e+00> : vector<8x1024xf32>
    %12 = tpu.matmul %9, %11, %cst_7 {dimension_numbers = #tpu.dot_dimension_numbers<[1], [0], [0], [1], [0, 0, 1, 1], [], []>} : vector<8x1024xbf16>, vector<1024x1024xbf16>, vector<8x1024xf32> -> vector<8x1024xf32>
    %c0_8 = arith.constant 0 : index
    %c0_9 = arith.constant 0 : index
    %13 = vector.load %arg5[%c0_8, %c0_9] : memref<1x1024xf32, #tpu.memory_space<vmem>>, vector<1x1024xf32>
    %14 = vector.broadcast %13 : vector<1x1024xf32> to vector<8x1024xf32>
    %15 = arith.addf %12, %14 : vector<8x1024xf32>
    %16 = math.tanh %15 : vector<8x1024xf32>
    %17 = arith.truncf %16 : vector<8x1024xf32> to vector<8x1024xbf16>
    %c0_10 = arith.constant 0 : index
    %c0_11 = arith.constant 0 : index
    %18 = vector.load %arg6[%c0_10, %c0_11] : memref<1024x1024xbf16, #tpu.memory_space<vmem>>, vector<1024x1024xbf16>
    %cst_12 = arith.constant dense<0.000000e+00> : vector<8x1024xf32>
    %19 = tpu.matmul %10, %18, %cst_12 {dimension_numbers = #tpu.dot_dimension_numbers<[1], [0], [0], [1], [0, 0, 1, 1], [], []>} : vector<8x1024xbf16>, vector<1024x1024xbf16>, vector<8x1024xf32> -> vector<8x1024xf32>
    %c0_13 = arith.constant 0 : index
    %c0_14 = arith.constant 0 : index
    %20 = vector.load %arg7[%c0_13, %c0_14] : memref<1x1024xf32, #tpu.memory_space<vmem>>, vector<1x1024xf32>
    %21 = vector.broadcast %20 : vector<1x1024xf32> to vector<8x1024xf32>
    %22 = arith.addf %19, %21 : vector<8x1024xf32>
    %23 = math.tanh %22 : vector<8x1024xf32>
    %24 = arith.truncf %23 : vector<8x1024xf32> to vector<8x1024xbf16>
    %25 = tpu.concatenate %17, %24 in 1 : vector<8x1024xbf16>, vector<8x1024xbf16> -> vector<8x2048xbf16>
    %c0_15 = arith.constant 0 : index
    %c0_16 = arith.constant 0 : index
    %26 = vector.load %arg8[%c0_15, %c0_16] : memref<2048x3xbf16, #tpu.memory_space<vmem>>, vector<2048x3xbf16>
    %cst_17 = arith.constant dense<0.000000e+00> : vector<8x3xf32>
    %27 = tpu.matmul %25, %26, %cst_17 {dimension_numbers = #tpu.dot_dimension_numbers<[1], [0], [0], [1], [0, 0, 1, 1], [], []>} : vector<8x2048xbf16>, vector<2048x3xbf16>, vector<8x3xf32> -> vector<8x3xf32>
    %c0_18 = arith.constant 0 : index
    %c0_19 = arith.constant 0 : index
    %28 = vector.load %arg9[%c0_18, %c0_19] : memref<1x3xf32, #tpu.memory_space<vmem>>, vector<1x3xf32>
    %29 = vector.broadcast %28 : vector<1x3xf32> to vector<8x3xf32>
    %30 = arith.addf %27, %29 : vector<8x3xf32>
    %c0_20 = arith.constant 0 : index
    %c0_21 = arith.constant 0 : index
    %31 = vector.load %arg10[%c0_20, %c0_21] : memref<8x3xf32, #tpu.memory_space<vmem>>, vector<8x3xf32>
    tpu.vector_store %arg10[%c0_20, %c0_21], %30 {strides = array<i32>} : memref<8x3xf32, #tpu.memory_space<vmem>>, vector<8x3xf32>,
    return
  }
  func.func @transform_0(%arg0: i32) -> (i32, i32) {
    %c0_i32 = arith.constant 0 : i32
    %c0_i32_0 = arith.constant 0 : i32
    return %arg0, %c0_i32 : i32, i32
  }
  func.func @transform_1(%arg0: i32) -> (i32, i32) {
    %c0_i32 = arith.constant 0 : i32
    %c0_i32_0 = arith.constant 0 : i32
    %c0_i32_1 = arith.constant 0 : i32
    return %c0_i32, %c0_i32_0 : i32, i32
  }
  func.func @transform_2(%arg0: i32) -> (i32, i32) {
    %c0_i32 = arith.constant 0 : i32
    %c0_i32_0 = arith.constant 0 : i32
    %c0_i32_1 = arith.constant 0 : i32
    return %c0_i32, %c0_i32_0 : i32, i32
  }
  func.func @transform_3(%arg0: i32) -> (i32, i32) {
    %c0_i32 = arith.constant 0 : i32
    %c0_i32_0 = arith.constant 0 : i32
    %c0_i32_1 = arith.constant 0 : i32
    return %c0_i32, %c0_i32_0 : i32, i32
  }
  func.func @transform_4(%arg0: i32) -> (i32, i32) {
    %c0_i32 = arith.constant 0 : i32
    %c0_i32_0 = arith.constant 0 : i32
    %c0_i32_1 = arith.constant 0 : i32
    return %c0_i32, %c0_i32_0 : i32, i32
  }
  func.func @transform_5(%arg0: i32) -> (i32, i32) {
    %c0_i32 = arith.constant 0 : i32
    %c0_i32_0 = arith.constant 0 : i32
    %c0_i32_1 = arith.constant 0 : i32
    return %c0_i32, %c0_i32_0 : i32, i32
  }
  func.func @transform_6(%arg0: i32) -> (i32, i32) {
    %c0_i32 = arith.constant 0 : i32
    %c0_i32_0 = arith.constant 0 : i32
    %c0_i32_1 = arith.constant 0 : i32
    return %c0_i32, %c0_i32_0 : i32, i32
  }
  func.func @transform_7(%arg0: i32) -> (i32, i32) {
    %c0_i32 = arith.constant 0 : i32
    %c0_i32_0 = arith.constant 0 : i32
    %c0_i32_1 = arith.constant 0 : i32
    return %c0_i32, %c0_i32_0 : i32, i32
  }
  func.func @transform_8(%arg0: i32) -> (i32, i32) {
    %c0_i32 = arith.constant 0 : i32
    %c0_i32_0 = arith.constant 0 : i32
    %c0_i32_1 = arith.constant 0 : i32
    return %c0_i32, %c0_i32_0 : i32, i32
  }
  func.func @transform_9(%arg0: i32) -> (i32, i32) {
    %c0_i32 = arith.constant 0 : i32
    %c0_i32_0 = arith.constant 0 : i32
    return %arg0, %c0_i32 : i32, i32
  }
}

</mosaic_0001>

<bundles_post_ra>
// kernel: tpu_custom_call.1
= control target key start
LH: loop header
LB: loop body
LE: loop exit
PB: predicated region body
PF: predicated region fallthrough
CT: control target
= control target key end

     0   :  { %14 = vsyncpa [#allocation3], 0  ;;  %s20235_s0 = inlined_call_operand.hbm [shape: f32[8,288], index: 0, kind: input, shape index: {}]   ;;  %s20236_s1 = inlined_call_operand.hbm [shape: bf16[288,2048], index: 1, kind: input, shape index: {}]   ;;  %s20237_s2 = inlined_call_operand.hbm [shape: f32[1,2048], index: 2, kind: input, shape index: {}]   ;;  %s20238_s3 = inlined_call_operand.hbm [shape: bf16[1024,1024], index: 3, kind: input, shape index: {}]   ;;  %s20239_s4 = inlined_call_operand.hbm [shape: f32[1,1024], index: 4, kind: input, shape index: {}]   ;;  %s20240_s5 = inlined_call_operand.hbm [shape: bf16[1024,1024], index: 5, kind: input, shape index: {}]   ;;  %s20241_s6 = inlined_call_operand.hbm [shape: f32[1,1024], index: 6, kind: input, shape index: {}]   ;;  %s20242_s7 = inlined_call_operand.vmem [shape: bf16[2048,3], index: 7, kind: input, shape index: {}]   ;;  %s20243_s8 = inlined_call_operand.hbm [shape: f32[1,3], index: 8, kind: input, shape index: {}]   ;;  %s20244_s9 = inlined_call_operand.vmem [shape: f32[8,3], index: 9, kind: output, shape index: {}]  }
   0x1   :  { %15 = vsyncpa [#allocation5], 0 }
   0x2   :  { %16 = vsyncpa [#allocation8], 0 }
   0x3   :  { %17 = vsyncpa [#allocation11], 0  ;;  %s34_s11 = sshll.u32 %s20236_s1, 4  ;;  %s35_s11 = int_to_ptr.hbm [resolvable:$true] %s34_s11 }
   0x4   :  { %18 = vsyncpa [#allocation14], 0  ;;  %s19300_s12 = smov [#allocation4]   ;;  %s58_s16 = sshll.u32 %s20238_s3, 4  ;;  %s59_s16 = int_to_ptr.hbm [resolvable:$true] %s58_s16 }
   0x5   :  { %s36_s13 = sshll.u32 %s19300_s12, 4  ;;  %s19301_s17 = smov 1024   ;;  %s37_s13 = int_to_ptr.vmem [resolvable:$true] %s36_s13 }
   0x6   :  { %s19302_s18 = smov 64   ;;  %s19303_s19 = smov [#allocation7]  }
   0x7   :  { %42 = dma.hbm_to_vmem [thread:$0]  %s35_s11, 36864, %s37_s13, [#allocation5], %s19301_s17, %s19301_s17, %s19302_s18  }
   0x8   :  { %s60_s20 = sshll.u32 %s19303_s19, 4  ;;  %s19304_s21 = smov 512   ;;  %s61_s20 = int_to_ptr.vmem [resolvable:$true] %s60_s20 }
   0x9   :  { %s19305_s22 = smov 32   ;;  %s82_s24 = sshll.u32 %s20240_s5, 4  ;;  %s83_s24 = int_to_ptr.hbm [resolvable:$true] %s82_s24 }
   0xa   :  { %66 = dma.hbm_to_vmem [thread:$0]  %s59_s16, 65536, %s61_s20, [#allocation8], %s19304_s21, %s19304_s21, %s19305_s22  }
   0xb   :  { %s19306_s25 = smov [#allocation10]   ;;  %s24_s28 = sshll.u32 %s20235_s0, 4  ;;  %s25_s28 = int_to_ptr.hbm [resolvable:$true] %s24_s28 }
   0xc   :  { %s84_s26 = sshll.u32 %s19306_s25, 4  ;;  %s19307_s29 = smov [#allocation2]   ;;  %s85_s26 = int_to_ptr.vmem [resolvable:$true] %s84_s26 }
   0xd   :  { %90 = dma.hbm_to_vmem [thread:$0]  %s83_s24, 65536, %s85_s26, [#allocation11], %s19304_s21, %s19304_s21, %s19305_s22  }
   0xe   :  { %s26_s30 = sshll.u32 %s19307_s29, 4  ;;  %s48_s12 = sshll.u32 %s20237_s2, 4  ;;  %s27_s30 = int_to_ptr.vmem [resolvable:$true] %s26_s30  ;;  %s49_s12 = int_to_ptr.hbm [resolvable:$true] %s48_s12 }
   0xf   :  { %29 = dma.hbm_to_vmem [thread:$0]  %s25_s28, 384, %s27_s30, [#allocation3]  }
  0x10   :  { %s72_s14 = sshll.u32 %s20239_s4, 4  ;;  %s19308_s15 = smov [#allocation6]   ;;  %s73_s14 = int_to_ptr.hbm [resolvable:$true] %s72_s14 }
  0x11   :  { %s50_s16 = sshll.u32 %s19308_s15, 4  ;;  %s19309_s0 = smov [#allocation9]   ;;  %s51_s16 = int_to_ptr.vmem [resolvable:$true] %s50_s16 }
  0x12   :  { %53 = dma.hbm_to_vmem [thread:$0]  %s49_s12, 256, %s51_s16, [#allocation5]  }
  0x13   :  { %s74_s17 = sshll.u32 %s19309_s0, 4  ;;  %s96_s20 = sshll.u32 %s20241_s6, 4  ;;  %s75_s17 = int_to_ptr.vmem [resolvable:$true] %s74_s17  ;;  %s97_s20 = int_to_ptr.hbm [resolvable:$true] %s96_s20 }
  0x14   :  { %77 = dma.hbm_to_vmem [thread:$0]  %s73_s14, 128, %s75_s17, [#allocation8]  }
  0x15   :  { %s109_s22 = sshll.u32 %s20243_s8, 4  ;;  %s19310_s1 = smov [#allocation12]   ;;  %s110_s22 = int_to_ptr.hbm [resolvable:$true] %s109_s22 }
  0x16   :  { %s98_s4 = sshll.u32 %s19310_s1, 4  ;;  %s19311_s23 = smov [#allocation13]   ;;  %s99_s4 = int_to_ptr.vmem [resolvable:$true] %s98_s4 }
  0x17   :  { %101 = dma.hbm_to_vmem [thread:$0]  %s97_s20, 128, %s99_s4, [#allocation11]  }
  0x18   :  { %s111_s24 = sshll.u32 %s19311_s23, 4  ;;  %s112_s24 = int_to_ptr.vmem [resolvable:$true] %s111_s24 }
  0x19   :  { %114 = dma.hbm_to_vmem [thread:$0]  %s110_s22, 16, %s112_s24, [#allocation14]  }
  0x1a   :  { %19290 = dma.done.wait [#allocation3], 384  }
  0x1b   :  { %19291 = vsyncadd [#allocation3], 4294966912 }
  0x1c   :  { %19292 = dma.done.wait [#allocation5], 37120  }
  0x1d   :  { %19293 = vsyncadd [#allocation5], 4294930176 }
  0x1e   :  { %19294 = dma.done.wait [#allocation8], 65664  }
  0x1f   :  { %19295 = vsyncadd [#allocation8], 4294901632 }
  0x20   :  { %19296 = dma.done.wait [#allocation11], 65664  }
  0x21   :  { %19297 = vsyncadd [#allocation11], 4294901632 }
  0x22   :  { %19298 = dma.done.wait [#allocation14], 16  }
  0x23   :  { %19299 = vsyncadd [#allocation14], 4294967280  ;;  %v12247_v0 = vld [vmem:[#allocation4 + $0x380] sm:$0xf]  ;;  %v17813_v9 = vld [vmem:[#allocation4 + $0x784] sm:$0xf] }
  0x24   :  { %v17693_v1 = vld [vmem:[#allocation4 + $0x3bc] sm:$0xf0]  ;;  %v12761_v10 = vld [vmem:[#allocation4 + $0x7c0] sm:$0xf0]  ;;  %v150_v63 = vld [vmem:[#allocation2 + $0x10] sm:$0xff]  ;;  %vm1918_vm0 = vcmask 261120  }
  0x25   :  { %v12759_v2 = vld [vmem:[#allocation4 + $0x780] sm:$0xf]  ;;  %v12248_v3 = vor.u32 %v17693_v1, %v12247_v0  ;;  %v12764_v12 = vor.u32 %v17813_v9, %v12761_v10  ;;  %v17797_v20 = vld [vmem:[#allocation4 + $0x704] sm:$0xf]  ;;  %vm11786_vm1 = vcmask 23552  }
  0x26   :  { %v17821_v4 = vld [vmem:[#allocation4 + $0x7bc] sm:$0xf0]  ;;  %v12697_v22 = vld [vmem:[#allocation4 + $0x740] sm:$0xf0] }
  0x27   :  { %v12887_v5 = vld [vmem:[#allocation4 + $0x880] sm:$0xf]  ;;  %v12760_v7 = vor.u32 %v17821_v4, %v12759_v2  ;;  %1922 = vmatpush.bf16.msra.mxu0 %v12248_v3  ;;  %1974 = vmatpush.bf16.msra.mxu2 %v12764_v12  ;;  %v17685_v23 = vld [vmem:[#allocation4 + $0x384] sm:$0xf]  ;;  %v12700_v25 = vor.u32 %v17797_v20, %v12697_v22 }
  0x28   :  { %v17853_v6 = vld [vmem:[#allocation4 + $0x8bc] sm:$0xf0]  ;;  %v12249_v24 = vld [vmem:[#allocation4 + $0x3c0] sm:$0xf0] }
  0x29   :  { %v12888_v8 = vor.u32 %v17853_v6, %v12887_v5  ;;  %v12183_v11 = vld [vmem:[#allocation4 + $0x300] sm:$0xf]  ;;  %1935 = vmatpush.bf16.msra.mxu1 %v12760_v7  ;;  %v12252_v26 = vor.u32 %v17685_v23, %v12249_v24  ;;  %v17781_v32 = vld [vmem:[#allocation4 + $0x684] sm:$0xf]  ;;  %v19386_v5 = vpack.c.bf16 %v150_v63, %v150_v63  ;;  %v17814_v63 = vld [vmem:[#allocation4 + $0x78c] sm:$0xf] }
  0x2a   :  { %v17677_v13 = vld [vmem:[#allocation4 + $0x33c] sm:$0xf0]  ;;  %v12633_v33 = vld [vmem:[#allocation4 + $0x6c0] sm:$0xf0] }
  0x2b   :  { %v12695_v14 = vld [vmem:[#allocation4 + $0x700] sm:$0xf]  ;;  %1954 = vmatpush.bf16.msra.mxu3 %v12888_v8  ;;  %v12184_v16 = vor.u32 %v17677_v13, %v12183_v11  ;;  %v17669_v35 = vld [vmem:[#allocation4 + $0x304] sm:$0xf]  ;;  %1975 = vmatpush.bf16.msra.mxu2 %v12700_v25  ;;  %v12636_v38 = vor.u32 %v17781_v32, %v12633_v33 }
  0x2c   :  { %v17805_v15 = vld [vmem:[#allocation4 + $0x73c] sm:$0xf0]  ;;  %v12185_v36 = vld [vmem:[#allocation4 + $0x340] sm:$0xf0] }
  0x2d   :  { %v12696_v17 = vor.u32 %v17805_v15, %v12695_v14  ;;  %v12823_v18 = vld [vmem:[#allocation4 + $0x800] sm:$0xf]  ;;  %1923 = vmatpush.bf16.msra.mxu0 %v12184_v16  ;;  %v12188_v39 = vor.u32 %v17669_v35, %v12185_v36  ;;  %v17765_v43 = vld [vmem:[#allocation4 + $0x604] sm:$0xf]  ;;  %v12255_v35 = vld [vmem:[#allocation4 + $0x388] sm:$0xf] }
  0x2e   :  { %v17837_v19 = vld [vmem:[#allocation4 + $0x83c] sm:$0xf0]  ;;  %v12569_v44 = vld [vmem:[#allocation4 + $0x640] sm:$0xf0]  ;;  %v17694_v36 = vld [vmem:[#allocation4 + $0x3c4] sm:$0xf0] }
  0x2f   :  { %v12824_v21 = vor.u32 %v17837_v19, %v12823_v18  ;;  %v12119_v27 = vld [vmem:[#allocation4 + $0x280] sm:$0xf]  ;;  %1936 = vmatpush.bf16.msra.mxu1 %v12696_v17  ;;  %v17653_v45 = vld [vmem:[#allocation4 + $0x284] sm:$0xf]  ;;  %1976 = vmatpush.bf16.msra.mxu2 %v12636_v38  ;;  %v12572_v51 = vor.u32 %v17765_v43, %v12569_v44  ;;  %v12895_v38 = vld [vmem:[#allocation4 + $0x888] sm:$0xf] }
  0x30   :  { %v17661_v28 = vld [vmem:[#allocation4 + $0x2bc] sm:$0xf0]  ;;  %v12121_v47 = vld [vmem:[#allocation4 + $0x2c0] sm:$0xf0]  ;;  %v149_v43 = vld [vmem:[#allocation2 + $0x8] sm:$0xff] }
  0x31   :  { %v12631_v29 = vld [vmem:[#allocation4 + $0x680] sm:$0xf]  ;;  %v12120_v30 = vor.u32 %v17661_v28, %v12119_v27  ;;  %1955 = vmatpush.bf16.msra.mxu3 %v12824_v21  ;;  %v12124_v52 = vor.u32 %v17653_v45, %v12121_v47  ;;  %v17749_v55 = vld [vmem:[#allocation4 + $0x584] sm:$0xf] }
  0x32   :  { %v17789_v31 = vld [vmem:[#allocation4 + $0x6bc] sm:$0xf0]  ;;  %v12505_v56 = vld [vmem:[#allocation4 + $0x5c0] sm:$0xf0] }
  0x33   :  { %v12632_v34 = vor.u32 %v17789_v31, %v12631_v29  ;;  %v12055_v37 = vld [vmem:[#allocation4 + $0x200] sm:$0xf]  ;;  %1924 = vmatpush.bf16.msra.mxu0 %v12120_v30  ;;  %v17637_v57 = vld [vmem:[#allocation4 + $0x204] sm:$0xf]  ;;  %1977 = vmatpush.bf16.msra.mxu2 %v12572_v51  ;;  %v12508_v0 = vor.u32 %v17749_v55, %v12505_v56  ;;  %v12256_v51 = vor.u32 %v17694_v36, %v12255_v35  ;;  %v12257_v55 = vld [vmem:[#allocation4 + $0x3c8] sm:$0xf0] }
  0x34   :  { %v17645_v40 = vld [vmem:[#allocation4 + $0x23c] sm:$0xf0]  ;;  %v12057_v58 = vld [vmem:[#allocation4 + $0x240] sm:$0xf0]  ;;  %12949 = vmatmul.msk.bf16.vlgmr.msra.gmra.mxu3 %vm1918_vm0, %v19386_v5  ;;  %v17630_v35 = vld [vmem:[#allocation4 + $0x1c4] sm:$0xf0] }
  0x35   :  { %1961 = vmatpush.bf16.msrb.mxu3 %v12252_v26  ;;  %v12567_v41 = vld [vmem:[#allocation4 + $0x600] sm:$0xf]  ;;  %v12056_v46 = vor.u32 %v17645_v40, %v12055_v37  ;;  %1937 = vmatpush.bf16.msra.mxu1 %v12632_v34  ;;  %v12060_v1 = vor.u32 %v17637_v57, %v12057_v58  ;;  %v17733_v4 = vld [vmem:[#allocation4 + $0x504] sm:$0xf]  ;;  %v148_v40 = vld [vmem:[#allocation2] sm:$0xff] }
  0x36   :  { %v17773_v42 = vld [vmem:[#allocation4 + $0x63c] sm:$0xf0]  ;;  %v12441_v6 = vld [vmem:[#allocation4 + $0x540] sm:$0xf0]  ;;  %v19390_v56 = vpack.c.bf16 %v148_v40, %v148_v40  ;;  %v12831_v57 = vld [vmem:[#allocation4 + $0x808] sm:$0xf] }
  0x37   :  { %v12568_v48 = vor.u32 %v17773_v42, %v12567_v41  ;;  %v11991_v49 = vld [vmem:[#allocation4 + $0x180] sm:$0xf]  ;;  %1925 = vmatpush.bf16.msra.mxu0 %v12056_v46  ;;  %v17621_v7 = vld [vmem:[#allocation4 + $0x184] sm:$0xf]  ;;  %1978 = vmatpush.bf16.msra.mxu2 %v12508_v0  ;;  %v12444_v13 = vor.u32 %v17733_v4, %v12441_v6  ;;  %v17838_v58 = vld [vmem:[#allocation4 + $0x844] sm:$0xf0] }
  0x38   :  { %v17629_v50 = vld [vmem:[#allocation4 + $0x1bc] sm:$0xf0]  ;;  %v11993_v8 = vld [vmem:[#allocation4 + $0x1c0] sm:$0xf0]  ;;  %v12769_v0 = vld [vmem:[#allocation4 + $0x7c8] sm:$0xf0]  ;;  %v12832_v4 = vor.u32 %v17838_v58, %v12831_v57 }
  0x39   :  { %1962 = vmatpush.bf16.msrb.mxu3 %v12188_v39  ;;  %v12503_v53 = vld [vmem:[#allocation4 + $0x580] sm:$0xf]  ;;  %v11992_v59 = vor.u32 %v17629_v50, %v11991_v49  ;;  %1938 = vmatpush.bf16.msra.mxu1 %v12568_v48  ;;  %v11996_v14 = vor.u32 %v17621_v7, %v11993_v8  ;;  %v17717_v17 = vld [vmem:[#allocation4 + $0x484] sm:$0xf]  ;;  %v17854_v39 = vld [vmem:[#allocation4 + $0x8c4] sm:$0xf0] }
  0x3a   :  { %v17757_v54 = vld [vmem:[#allocation4 + $0x5bc] sm:$0xf0]  ;;  %v12377_v18 = vld [vmem:[#allocation4 + $0x4c0] sm:$0xf0]  ;;  %v12191_v50 = vld [vmem:[#allocation4 + $0x308] sm:$0xf] }
  0x3b   :  { %v12504_v60 = vor.u32 %v17757_v54, %v12503_v53  ;;  %v11927_v61 = vld [vmem:[#allocation4 + $0x100] sm:$0xf]  ;;  %1926 = vmatpush.bf16.msra.mxu0 %v11992_v59  ;;  %v17605_v19 = vld [vmem:[#allocation4 + $0x104] sm:$0xf]  ;;  %1979 = vmatpush.bf16.msra.mxu2 %v12444_v13  ;;  %v12380_v29 = vor.u32 %v17717_v17, %v12377_v18  ;;  %v17678_v53 = vld [vmem:[#allocation4 + $0x344] sm:$0xf0] }
  0x3c   :  { %v17613_v62 = vld [vmem:[#allocation4 + $0x13c] sm:$0xf0]  ;;  %v11929_v20 = vld [vmem:[#allocation4 + $0x140] sm:$0xf0]  ;;  %v17686_v54 = vld [vmem:[#allocation4 + $0x38c] sm:$0xf] }
  0x3d   :  { %1963 = vmatpush.bf16.msrb.mxu3 %v12124_v52  ;;  %v12439_v2 = vld [vmem:[#allocation4 + $0x500] sm:$0xf]  ;;  %v11928_v9 = vor.u32 %v17613_v62, %v11927_v61  ;;  %1939 = vmatpush.bf16.msra.mxu1 %v12504_v60  ;;  %v17701_v27 = vld [vmem:[#allocation4 + $0x404] sm:$0xf]  ;;  %v11932_v30 = vor.u32 %v17605_v19, %v11929_v20  ;;  %v12896_v52 = vor.u32 %v17854_v39, %v12895_v38  ;;  %v12767_v59 = vld [vmem:[#allocation4 + $0x788] sm:$0xf] }
  0x3e   :  { %v17741_v3 = vld [vmem:[#allocation4 + $0x53c] sm:$0xf0]  ;;  %v12313_v28 = vld [vmem:[#allocation4 + $0x440] sm:$0xf0]  ;;  %v19392_v60 = vpack.c.bf16 %v149_v43, %v149_v43  ;;  %v17822_v62 = vld [vmem:[#allocation4 + $0x7c4] sm:$0xf0] }
  0x3f   :  { %v12440_v10 = vor.u32 %v17741_v3, %v12439_v2  ;;  %v11863_v11 = vld [vmem:[#allocation4 + $0x80] sm:$0xf]  ;;  %1927 = vmatpush.bf16.msra.mxu0 %v11928_v9  ;;  %v17589_v31 = vld [vmem:[#allocation4 + $0x84] sm:$0xf]  ;;  %1980 = vmatpush.bf16.msra.mxu2 %v12380_v29  ;;  %v12316_v46 = vor.u32 %v17701_v27, %v12313_v28  ;;  %v12260_v2 = vor.u32 %v17686_v54, %v12257_v55  ;;  %v17670_v6 = vld [vmem:[#allocation4 + $0x30c] sm:$0xf] }
  0x40   :  { %v17597_v12 = vld [vmem:[#allocation4 + $0xbc] sm:$0xf0]  ;;  %v17845_v32 = vld [vmem:[#allocation4 + $0x884] sm:$0xf]  ;;  %v12192_v3 = vor.u32 %v17678_v53, %v12191_v50  ;;  %v12193_v7 = vld [vmem:[#allocation4 + $0x348] sm:$0xf0]  ;;  %v12768_v8 = vor.u32 %v17822_v62, %v12767_v59  ;;  %v12772_v9 = vor.u32 %v17814_v63, %v12769_v0 }
  0x41   :  { %1964 = vmatpush.bf16.msrb.mxu3 %v12060_v1  ;;  %v12375_v15 = vld [vmem:[#allocation4 + $0x480] sm:$0xf]  ;;  %v11864_v21 = vor.u32 %v17597_v12, %v11863_v11  ;;  %1940 = vmatpush.bf16.msra.mxu1 %v12440_v10  ;;  %v12889_v33 = vld [vmem:[#allocation4 + $0x8c0] sm:$0xf0]  ;;  %v12127_v10 = vld [vmem:[#allocation4 + $0x288] sm:$0xf] }
  0x42   :  { %v17725_v16 = vld [vmem:[#allocation4 + $0x4bc] sm:$0xf0]  ;;  %v11865_v34 = vld [vmem:[#allocation4 + $0xc0] sm:$0xf0]  ;;  %v12892_v42 = vor.u32 %v17845_v32, %v12889_v33  ;;  %v17662_v11 = vld [vmem:[#allocation4 + $0x2c4] sm:$0xf0] }
  0x43   :  { %v11799_v22 = vld [vmem:[#allocation4] sm:$0xf]  ;;  %v12376_v25 = vor.u32 %v17725_v16, %v12375_v15  ;;  %1928 = vmatpush.bf16.msra.mxu0 %v11864_v21  ;;  %v17573_v44 = vld [vmem:[#allocation4 + $0x4] sm:$0xf]  ;;  %v11868_v47 = vor.u32 %v17589_v31, %v11865_v34  ;;  %1981 = vmatpush.bf16.msra.mxu2 %v12316_v46  ;;  %v12703_v12 = vld [vmem:[#allocation4 + $0x708] sm:$0xf]  ;;  %v12196_v16 = vor.u32 %v17670_v6, %v12193_v7 }
  0x44   :  { %v17581_v23 = vld [vmem:[#allocation4 + $0x3c] sm:$0xf0]  ;;  %v11801_v45 = vld [vmem:[#allocation4 + $0x40] sm:$0xf0]  ;;  %v17806_v13 = vld [vmem:[#allocation4 + $0x744] sm:$0xf0]  ;;  %v12128_v17 = vor.u32 %v17662_v11, %v12127_v10 }
  0x45   :  { %v12311_v24 = vld [vmem:[#allocation4 + $0x400] sm:$0xf]  ;;  %1965 = vmatpush.bf16.msrb.mxu3 %v11996_v14  ;;  %v11800_v37 = vor.u32 %v17581_v23, %v11799_v22  ;;  %1941 = vmatpush.bf16.msra.mxu1 %v12376_v25  ;;  %v17829_v48 = vld [vmem:[#allocation4 + $0x804] sm:$0xf]  ;;  %v11804_v1 = vor.u32 %v17573_v44, %v11801_v45  ;;  %v17798_v14 = vld [vmem:[#allocation4 + $0x70c] sm:$0xf]  ;;  %v12704_v20 = vor.u32 %v17806_v13, %v12703_v12 }
  0x46   :  { %v17709_v26 = vld [vmem:[#allocation4 + $0x43c] sm:$0xf0]  ;;  %v12825_v49 = vld [vmem:[#allocation4 + $0x840] sm:$0xf0]  ;;  %1982 = vmatmul.bf16.vlgmr.msra.gmra.mxu2 %v19392_v60  ;;  %v12705_v15 = vld [vmem:[#allocation4 + $0x748] sm:$0xf0] }
  0x47   :  { %v12312_v41 = vor.u32 %v17709_v26, %v12311_v24  ;;  %1929 = vmatpush.bf16.msra.mxu0 %v11800_v37  ;;  %v12828_v61 = vor.u32 %v17829_v48, %v12825_v49  ;;  %2032 = vmatpush.bf16.msrb.mxu2 %v12896_v52  ;;  %v17654_v18 = vld [vmem:[#allocation4 + $0x28c] sm:$0xf]  ;;  %v12708_v21 = vor.u32 %v17798_v14, %v12705_v15  ;;  %v12063_v22 = vld [vmem:[#allocation4 + $0x208] sm:$0xf] }
  0x48   :  { %v12129_v19 = vld [vmem:[#allocation4 + $0x2c8] sm:$0xf0]  ;;  %v17646_v23 = vld [vmem:[#allocation4 + $0x244] sm:$0xf0] }
  0x49   :  { %1966 = vmatpush.bf16.msrb.mxu3 %v11932_v30  ;;  %1942 = vmatpush.bf16.msra.mxu1 %v12312_v41  ;;  %v12639_v24 = vld [vmem:[#allocation4 + $0x688] sm:$0xf]  ;;  %v17782_v26 = vld [vmem:[#allocation4 + $0x68c] sm:$0xf]  ;;  %v12132_v28 = vor.u32 %v17654_v18, %v12129_v19  ;;  %v12064_v29 = vor.u32 %v17646_v23, %v12063_v22 }
  0x4a   :  { %1930 = vmatmul.bf16.vlgmr.msra.gmra.mxu0 %v19390_v56  ;;  %v17790_v25 = vld [vmem:[#allocation4 + $0x6c4] sm:$0xf0]  ;;  %v12641_v27 = vld [vmem:[#allocation4 + $0x6c8] sm:$0xf0] }
  0x4b   :  { %1993 = vmatpush.bf16.msrb.mxu0 %v12892_v42  ;;  %2033 = vmatpush.bf16.msrb.mxu2 %v12832_v4  ;;  %v17638_v30 = vld [vmem:[#allocation4 + $0x20c] sm:$0xf]  ;;  %v12640_v32 = vor.u32 %v17790_v25, %v12639_v24  ;;  %v12644_v33 = vor.u32 %v17782_v26, %v12641_v27  ;;  %v11999_v34 = vld [vmem:[#allocation4 + $0x188] sm:$0xf]  ;;  %v12775_v25 = vld [vmem:[#allocation4 + $0x790] sm:$0xf] }
  0x4c   :  { %1943 = vmatmul.bf16.vlgmr.msra.gmra.mxu1 %v19392_v60  ;;  %v12065_v31 = vld [vmem:[#allocation4 + $0x248] sm:$0xf0]  ;;  %v12575_v36 = vld [vmem:[#allocation4 + $0x608] sm:$0xf]  ;;  %v12000_v41 = vor.u32 %v17630_v35, %v11999_v34  ;;  %v17823_v26 = vld [vmem:[#allocation4 + $0x7cc] sm:$0xf0] }
  0x4d   :  { %1967 = vmatpush.bf16.msrb.mxu3 %v11868_v47  ;;  %2000 = vmatpush.bf16.msrb.mxu1 %v12256_v51  ;;  %v17774_v37 = vld [vmem:[#allocation4 + $0x644] sm:$0xf0]  ;;  %v17766_v38 = vld [vmem:[#allocation4 + $0x60c] sm:$0xf]  ;;  %v12068_v40 = vor.u32 %v17638_v30, %v12065_v31  ;;  %v12265_v34 = vld [vmem:[#allocation4 + $0x3d0] sm:$0xf0]  ;;  %v12776_v35 = vor.u32 %v17823_v26, %v12775_v25 }
  0x4e   :  { %v12577_v39 = vld [vmem:[#allocation4 + $0x648] sm:$0xf0]  ;;  %v12576_v44 = vor.u32 %v17774_v37, %v12575_v36  ;;  %v11935_v46 = vld [vmem:[#allocation4 + $0x108] sm:$0xf]  ;;  %v17799_v25 = vld [vmem:[#allocation4 + $0x714] sm:$0xf] }
  0x4f   :  { %1994 = vmatpush.bf16.msrb.mxu0 %v12828_v61  ;;  %2052 = vmatpush.bf16.msra.mxu2 %v12772_v9  ;;  %v17622_v42 = vld [vmem:[#allocation4 + $0x18c] sm:$0xf]  ;;  %v12580_v45 = vor.u32 %v17766_v38, %v12577_v39  ;;  %v17614_v47 = vld [vmem:[#allocation4 + $0x144] sm:$0xf0]  ;;  %v12713_v26 = vld [vmem:[#allocation4 + $0x750] sm:$0xf0] }
  0x50   :  { %v12001_v43 = vld [vmem:[#allocation4 + $0x1c8] sm:$0xf0]  ;;  %v12511_v48 = vld [vmem:[#allocation4 + $0x588] sm:$0xf]  ;;  %v11936_v53 = vor.u32 %v17614_v47, %v11935_v46  ;;  %v17855_v46 = vld [vmem:[#allocation4 + $0x8cc] sm:$0xf0] }
  0x51   :  { %1968 = vmatpush.bf16.msrb.mxu3 %v11804_v1  ;;  %2001 = vmatpush.bf16.msrb.mxu1 %v12192_v3  ;;  %v17758_v49 = vld [vmem:[#allocation4 + $0x5c4] sm:$0xf0]  ;;  %v17750_v50 = vld [vmem:[#allocation4 + $0x58c] sm:$0xf]  ;;  %v12004_v52 = vor.u32 %v17622_v42, %v12001_v43  ;;  %v17679_v47 = vld [vmem:[#allocation4 + $0x34c] sm:$0xf0] }
  0x52   :  { %v12513_v51 = vld [vmem:[#allocation4 + $0x5c8] sm:$0xf0]  ;;  %v12512_v57 = vor.u32 %v17758_v49, %v12511_v48  ;;  %v11871_v59 = vld [vmem:[#allocation4 + $0x88] sm:$0xf]  ;;  %v17671_v48 = vld [vmem:[#allocation4 + $0x314] sm:$0xf] }
  0x53   :  { %2039 = vmatpush.bf16.msra.mxu0 %v12260_v2  ;;  %2053 = vmatpush.bf16.msra.mxu2 %v12708_v21  ;;  %v17606_v54 = vld [vmem:[#allocation4 + $0x10c] sm:$0xf]  ;;  %v12516_v58 = vor.u32 %v17750_v50, %v12513_v51  ;;  %v17598_v61 = vld [vmem:[#allocation4 + $0xc4] sm:$0xf0]  ;;  %v12201_v49 = vld [vmem:[#allocation4 + $0x350] sm:$0xf0] }
  0x54   :  { %1969 = vmatmul.bf16.vlgmr.msrb.gmra.mxu3 %v19390_v56  ;;  %v11937_v55 = vld [vmem:[#allocation4 + $0x148] sm:$0xf0]  ;;  %v12447_v62 = vld [vmem:[#allocation4 + $0x508] sm:$0xf]  ;;  %v11872_v3 = vor.u32 %v17598_v61, %v11871_v59  ;;  %v12839_v59 = vld [vmem:[#allocation4 + $0x810] sm:$0xf] }
  0x55   :  { %2013 = vmatpush.bf16.msra.mxu3 %v12768_v8  ;;  %2002 = vmatpush.bf16.msrb.mxu1 %v12128_v17  ;;  %v17742_v63 = vld [vmem:[#allocation4 + $0x544] sm:$0xf0]  ;;  %v17734_v0 = vld [vmem:[#allocation4 + $0x50c] sm:$0xf]  ;;  %v11940_v2 = vor.u32 %v17606_v54, %v11937_v55  ;;  %v17839_v61 = vld [vmem:[#allocation4 + $0x84c] sm:$0xf0] }
  0x56   :  { %12951 = vmatmul.msk.bf16.vlgmr.msrb.gmra.mxu2 %vm1918_vm0, %v19386_v5  ;;  %v12449_v1 = vld [vmem:[#allocation4 + $0x548] sm:$0xf0]  ;;  %v12448_v7 = vor.u32 %v17742_v63, %v12447_v62  ;;  %v11807_v9 = vld [vmem:[#allocation4 + $0x8] sm:$0xf]  ;;  %v17663_v62 = vld [vmem:[#allocation4 + $0x2cc] sm:$0xf0] }
  0x57   :  { %2040 = vmatpush.bf16.msra.mxu0 %v12196_v16  ;;  %2054 = vmatpush.bf16.msra.mxu2 %v12644_v33  ;;  %v17590_v4 = vld [vmem:[#allocation4 + $0x8c] sm:$0xf]  ;;  %v12452_v8 = vor.u32 %v17734_v0, %v12449_v1  ;;  %v17582_v10 = vld [vmem:[#allocation4 + $0x44] sm:$0xf0]  ;;  %v17687_v33 = vld [vmem:[#allocation4 + $0x394] sm:$0xf] }
  0x58   :  { %v11873_v6 = vld [vmem:[#allocation4 + $0xc8] sm:$0xf0]  ;;  %v12383_v11 = vld [vmem:[#allocation4 + $0x488] sm:$0xf]  ;;  %v11808_v18 = vor.u32 %v17582_v10, %v11807_v9  ;;  %v12268_v43 = vor.u32 %v17687_v33, %v12265_v34  ;;  %v17655_v63 = vld [vmem:[#allocation4 + $0x294] sm:$0xf] }
  0x59   :  { %2014 = vmatpush.bf16.msra.mxu3 %v12704_v20  ;;  %2003 = vmatpush.bf16.msrb.mxu1 %v12064_v29  ;;  %v17726_v12 = vld [vmem:[#allocation4 + $0x4c4] sm:$0xf0]  ;;  %v17718_v13 = vld [vmem:[#allocation4 + $0x48c] sm:$0xf]  ;;  %v11876_v15 = vor.u32 %v17590_v4, %v11873_v6  ;;  %v12263_v29 = vld [vmem:[#allocation4 + $0x390] sm:$0xf]  ;;  %v12840_v4 = vor.u32 %v17839_v61, %v12839_v59 }
  0x5a   :  { %12950 = vmatmul.msk.bf16.vlgmr.msrb.gmra.mxu0 %vm1918_vm0, %v19386_v5  ;;  %v12385_v14 = vld [vmem:[#allocation4 + $0x4c8] sm:$0xf0]  ;;  %v12319_v19 = vld [vmem:[#allocation4 + $0x408] sm:$0xf]  ;;  %v12384_v22 = vor.u32 %v17726_v12, %v12383_v11  ;;  %v12137_v0 = vld [vmem:[#allocation4 + $0x2d0] sm:$0xf0] }
  0x5b   :  { %2041 = vmatpush.bf16.msra.mxu0 %v12132_v28  ;;  %2055 = vmatpush.bf16.msra.mxu2 %v12580_v45  ;;  %v17846_v16 = vld [vmem:[#allocation4 + $0x88c] sm:$0xf]  ;;  %v12388_v23 = vor.u32 %v17718_v13, %v12385_v14  ;;  %v17710_v24 = vld [vmem:[#allocation4 + $0x444] sm:$0xf0]  ;;  %v12903_v45 = vld [vmem:[#allocation4 + $0x890] sm:$0xf] }
  0x5c   :  { %v12897_v17 = vld [vmem:[#allocation4 + $0x8c8] sm:$0xf0]  ;;  %v12320_v38 = vor.u32 %v17710_v24, %v12319_v19  ;;  %v12904_v54 = vor.u32 %v17855_v46, %v12903_v45  ;;  %v17647_v9 = vld [vmem:[#allocation4 + $0x24c] sm:$0xf0]  ;;  %v17639_v10 = vld [vmem:[#allocation4 + $0x214] sm:$0xf] }
  0x5d   :  { %2015 = vmatpush.bf16.msra.mxu3 %v12640_v32  ;;  %2004 = vmatpush.bf16.msrb.mxu1 %v12000_v41  ;;  %v17574_v20 = vld [vmem:[#allocation4 + $0xc] sm:$0xf]  ;;  %v12900_v30 = vor.u32 %v17846_v16, %v12897_v17  ;;  %v17695_v32 = vld [vmem:[#allocation4 + $0x3cc] sm:$0xf0]  ;;  %v12073_v11 = vld [vmem:[#allocation4 + $0x250] sm:$0xf0] }
  0x5e   :  { %v11809_v21 = vld [vmem:[#allocation4 + $0x48] sm:$0xf0]  ;;  %v17807_v41 = vld [vmem:[#allocation4 + $0x74c] sm:$0xf0]  ;;  %v12264_v42 = vor.u32 %v17695_v32, %v12263_v29  ;;  %v17815_v13 = vld [vmem:[#allocation4 + $0x794] sm:$0xf] }
  0x5f   :  { %2042 = vmatpush.bf16.msra.mxu0 %v12068_v40  ;;  %2056 = vmatpush.bf16.msra.mxu2 %v12516_v58  ;;  %v17702_v27 = vld [vmem:[#allocation4 + $0x40c] sm:$0xf]  ;;  %v11812_v31 = vor.u32 %v17574_v20, %v11809_v21  ;;  %v12711_v40 = vld [vmem:[#allocation4 + $0x710] sm:$0xf]  ;;  %v12777_v14 = vld [vmem:[#allocation4 + $0x7d0] sm:$0xf0] }
  0x60   :  { %v12321_v28 = vld [vmem:[#allocation4 + $0x448] sm:$0xf0]  ;;  %v12712_v51 = vor.u32 %v17807_v41, %v12711_v40  ;;  %v12135_v58 = vld [vmem:[#allocation4 + $0x290] sm:$0xf]  ;;  %v17623_v21 = vld [vmem:[#allocation4 + $0x194] sm:$0xf] }
  0x61   :  { %2016 = vmatpush.bf16.msra.mxu3 %v12576_v44  ;;  %2005 = vmatpush.bf16.msrb.mxu1 %v11936_v53  ;;  %v17830_v36 = vld [vmem:[#allocation4 + $0x80c] sm:$0xf]  ;;  %v12324_v39 = vor.u32 %v17702_v27, %v12321_v28  ;;  %v12199_v44 = vld [vmem:[#allocation4 + $0x310] sm:$0xf]  ;;  %v12136_v6 = vor.u32 %v17663_v62, %v12135_v58  ;;  %v17607_v33 = vld [vmem:[#allocation4 + $0x114] sm:$0xf] }
  0x62   :  { %v12833_v37 = vld [vmem:[#allocation4 + $0x848] sm:$0xf0]  ;;  %v17791_v53 = vld [vmem:[#allocation4 + $0x6cc] sm:$0xf0]  ;;  %v12200_v55 = vor.u32 %v17679_v47, %v12199_v44  ;;  %v11945_v34 = vld [vmem:[#allocation4 + $0x150] sm:$0xf0] }
  0x63   :  { %2043 = vmatpush.bf16.msra.mxu0 %v12004_v52  ;;  %2057 = vmatpush.bf16.msra.mxu2 %v12452_v8  ;;  %v12836_v50 = vor.u32 %v17830_v36, %v12833_v37  ;;  %v12647_v52 = vld [vmem:[#allocation4 + $0x690] sm:$0xf]  ;;  %v17783_v37 = vld [vmem:[#allocation4 + $0x694] sm:$0xf]  ;;  %v12271_v58 = vld [vmem:[#allocation4 + $0x398] sm:$0xf] }
  0x64   :  { %v12648_v1 = vor.u32 %v17791_v53, %v12647_v52  ;;  %v12071_v8 = vld [vmem:[#allocation4 + $0x210] sm:$0xf]  ;;  %v17591_v45 = vld [vmem:[#allocation4 + $0x94] sm:$0xf]  ;;  %v17696_v59 = vld [vmem:[#allocation4 + $0x3d4] sm:$0xf0] }
  0x65   :  { %2017 = vmatpush.bf16.msra.mxu3 %v12512_v57  ;;  %2006 = vmatpush.bf16.msrb.mxu1 %v11872_v3  ;;  %v12204_v57 = vor.u32 %v17671_v48, %v12201_v49  ;;  %v17775_v3 = vld [vmem:[#allocation4 + $0x64c] sm:$0xf0]  ;;  %v12072_v17 = vor.u32 %v17647_v9, %v12071_v8  ;;  %v11881_v46 = vld [vmem:[#allocation4 + $0xd0] sm:$0xf0]  ;;  %v12272_v8 = vor.u32 %v17696_v59, %v12271_v58 }
  0x66   :  { %v17759_v16 = vld [vmem:[#allocation4 + $0x5cc] sm:$0xf0]  ;;  %v17767_v49 = vld [vmem:[#allocation4 + $0x614] sm:$0xf] }
  0x67   :  { %2044 = vmatpush.bf16.msra.mxu0 %v11940_v2  ;;  %2058 = vmatpush.bf16.msra.mxu2 %v12388_v23  ;;  %v12583_v2 = vld [vmem:[#allocation4 + $0x610] sm:$0xf]  ;;  %v12780_v23 = vor.u32 %v17815_v13, %v12777_v14  ;;  %v17575_v61 = vld [vmem:[#allocation4 + $0x14] sm:$0xf] }
  0x68   :  { %v12584_v12 = vor.u32 %v17775_v3, %v12583_v2  ;;  %v12007_v19 = vld [vmem:[#allocation4 + $0x190] sm:$0xf]  ;;  %v11817_v62 = vld [vmem:[#allocation4 + $0x50] sm:$0xf0]  ;;  %v12911_v3 = vld [vmem:[#allocation4 + $0x898] sm:$0xf] }
  0x69   :  { %2018 = vmatpush.bf16.msra.mxu3 %v12448_v7  ;;  %2007 = vmatpush.bf16.msrb.mxu1 %v11808_v18  ;;  %v12140_v7 = vor.u32 %v17655_v63, %v12137_v0  ;;  %v12076_v18 = vor.u32 %v17639_v10, %v12073_v11  ;;  %v17631_v20 = vld [vmem:[#allocation4 + $0x1cc] sm:$0xf0]  ;;  %v17847_v63 = vld [vmem:[#allocation4 + $0x894] sm:$0xf]  ;;  %v11820_v10 = vor.u32 %v17575_v61, %v11817_v62 }
  0x6a   :  { %v12455_v27 = vld [vmem:[#allocation4 + $0x510] sm:$0xf]  ;;  %v12008_v29 = vor.u32 %v17631_v20, %v12007_v19  ;;  %v12905_v2 = vld [vmem:[#allocation4 + $0x8d0] sm:$0xf0]  ;;  %v12847_v19 = vld [vmem:[#allocation4 + $0x818] sm:$0xf] }
  0x6b   :  { %2045 = vmatpush.bf16.msra.mxu0 %v11876_v15  ;;  %2059 = vmatpush.bf16.msra.mxu2 %v12324_v39  ;;  %v12519_v15 = vld [vmem:[#allocation4 + $0x590] sm:$0xf]  ;;  %v12908_v11 = vor.u32 %v17847_v63, %v12905_v2  ;;  %v17735_v13 = vld [vmem:[#allocation4 + $0x514] sm:$0xf]  ;;  %v17840_v20 = vld [vmem:[#allocation4 + $0x854] sm:$0xf0] }
  0x6c   :  { %2008 = vmatmul.bf16.vlgmr.msrb.gmra.mxu1 %v19390_v56  ;;  %v12520_v24 = vor.u32 %v17759_v16, %v12519_v15  ;;  %v17743_v28 = vld [vmem:[#allocation4 + $0x54c] sm:$0xf0]  ;;  %v17831_v14 = vld [vmem:[#allocation4 + $0x814] sm:$0xf]  ;;  %v12207_v15 = vld [vmem:[#allocation4 + $0x318] sm:$0xf] }
  0x6d   :  { %2019 = vmatpush.bf16.msra.mxu3 %v12384_v22  ;;  %2071 = vmatpush.bf16.msra.mxu1 %v12900_v30  ;;  %v12009_v22 = vld [vmem:[#allocation4 + $0x1d0] sm:$0xf0]  ;;  %v17615_v32 = vld [vmem:[#allocation4 + $0x14c] sm:$0xf0]  ;;  %v12456_v36 = vor.u32 %v17743_v28, %v12455_v27  ;;  %v17680_v16 = vld [vmem:[#allocation4 + $0x354] sm:$0xf0]  ;;  %v12848_v28 = vor.u32 %v17840_v20, %v12847_v19 }
  0x6e   :  { %2060 = vmatmul.bf16.vlgmr.msra.gmra.mxu2 %v19392_v60  ;;  %v12012_v30 = vor.u32 %v17623_v21, %v12009_v22  ;;  %v12391_v39 = vld [vmem:[#allocation4 + $0x490] sm:$0xf]  ;;  %v12457_v21 = vld [vmem:[#allocation4 + $0x550] sm:$0xf0]  ;;  %v12783_v22 = vld [vmem:[#allocation4 + $0x798] sm:$0xf] }
  0x6f   :  { %2046 = vmatpush.bf16.msra.mxu0 %v11812_v31  ;;  %2117 = vmatpush.bf16.msrb.mxu2 %v12268_v43  ;;  %v11943_v31 = vld [vmem:[#allocation4 + $0x110] sm:$0xf]  ;;  %v12591_v63 = vld [vmem:[#allocation4 + $0x618] sm:$0xf] }
  0x70   :  { %v17727_v40 = vld [vmem:[#allocation4 + $0x4cc] sm:$0xf0]  ;;  %v11944_v41 = vor.u32 %v17615_v32, %v11943_v31  ;;  %v12460_v31 = vor.u32 %v17735_v13, %v12457_v21  ;;  %v17760_v13 = vld [vmem:[#allocation4 + $0x5d4] sm:$0xf0] }
  0x71   :  { %2020 = vmatpush.bf16.msra.mxu3 %v12320_v38  ;;  %2072 = vmatpush.bf16.msra.mxu1 %v12836_v50  ;;  %v12649_v38 = vld [vmem:[#allocation4 + $0x6d0] sm:$0xf0]  ;;  %v11879_v43 = vld [vmem:[#allocation4 + $0x90] sm:$0xf]  ;;  %v12392_v48 = vor.u32 %v17727_v40, %v12391_v39  ;;  %v17800_v39 = vld [vmem:[#allocation4 + $0x71c] sm:$0xf] }
  0x72   :  { %2047 = vmatmul.bf16.vlgmr.msra.gmra.mxu0 %v19390_v56  ;;  %v17599_v44 = vld [vmem:[#allocation4 + $0xcc] sm:$0xf0]  ;;  %v12652_v47 = vor.u32 %v17783_v37, %v12649_v38  ;;  %v12585_v50 = vld [vmem:[#allocation4 + $0x650] sm:$0xf0]  ;;  %v17808_v37 = vld [vmem:[#allocation4 + $0x754] sm:$0xf0] }
  0x73   :  { %2091 = vmatpush.bf16.msrb.mxu0 %v12776_v35  ;;  %2118 = vmatpush.bf16.msrb.mxu2 %v12204_v57  ;;  %v12716_v35 = vor.u32 %v17799_v25, %v12713_v26  ;;  %v12327_v52 = vld [vmem:[#allocation4 + $0x410] sm:$0xf]  ;;  %v12588_v0 = vor.u32 %v17767_v49, %v12585_v50  ;;  %v17816_v25 = vld [vmem:[#allocation4 + $0x79c] sm:$0xf]  ;;  %v17792_v49 = vld [vmem:[#allocation4 + $0x6d4] sm:$0xf0] }
  0x74   :  { %2021 = vmatmul.bf16.vlgmr.msra.gmra.mxu3 %v19392_v60  ;;  %v17711_v53 = vld [vmem:[#allocation4 + $0x44c] sm:$0xf0]  ;;  %v12785_v26 = vld [vmem:[#allocation4 + $0x7d8] sm:$0xf0]  ;;  %v11887_v20 = vld [vmem:[#allocation4 + $0x98] sm:$0xf] }
  0x75   :  { %2078 = vmatpush.bf16.msrb.mxu3 %v12264_v42  ;;  %2110 = vmatpush.bf16.msrb.mxu1 %v12904_v54  ;;  %v11948_v42 = vor.u32 %v17607_v33, %v11945_v34  ;;  %v11880_v54 = vor.u32 %v17599_v44, %v11879_v43  ;;  %v17583_v57 = vld [vmem:[#allocation4 + $0x4c] sm:$0xf0]  ;;  %v17719_v33 = vld [vmem:[#allocation4 + $0x494] sm:$0xf]  ;;  %v12788_v34 = vor.u32 %v17816_v25, %v12785_v26  ;;  %v12721_v40 = vld [vmem:[#allocation4 + $0x758] sm:$0xf0] }
  0x76   :  { %v17688_v50 = vld [vmem:[#allocation4 + $0x39c] sm:$0xf]  ;;  %v17600_v21 = vld [vmem:[#allocation4 + $0xd4] sm:$0xf0] }
  0x77   :  { %2092 = vmatpush.bf16.msrb.mxu0 %v12712_v51  ;;  %2119 = vmatpush.bf16.msrb.mxu2 %v12140_v7  ;;  %v11815_v51 = vld [vmem:[#allocation4 + $0x10] sm:$0xf]  ;;  %v12521_v7 = vld [vmem:[#allocation4 + $0x5d0] sm:$0xf0]  ;;  %v17744_v25 = vld [vmem:[#allocation4 + $0x554] sm:$0xf0] }
  0x78   :  { %v11816_v9 = vor.u32 %v17583_v57, %v11815_v51  ;;  %v17632_v57 = vld [vmem:[#allocation4 + $0x1d4] sm:$0xf0]  ;;  %v17640_v26 = vld [vmem:[#allocation4 + $0x21c] sm:$0xf] }
  0x79   :  { %2079 = vmatpush.bf16.msrb.mxu3 %v12200_v55  ;;  %2111 = vmatpush.bf16.msrb.mxu1 %v12840_v4  ;;  %v11884_v55 = vor.u32 %v17591_v45, %v11881_v46  ;;  %v17856_v4 = vld [vmem:[#allocation4 + $0x8d4] sm:$0xf0]  ;;  %v17703_v45 = vld [vmem:[#allocation4 + $0x414] sm:$0xf] }
  0x7a   :  { %v12329_v46 = vld [vmem:[#allocation4 + $0x450] sm:$0xf0] }
  0x7b   :  { %2093 = vmatpush.bf16.msrb.mxu0 %v12648_v1  ;;  %2120 = vmatpush.bf16.msrb.mxu2 %v12076_v18  ;;  %v12328_v1 = vor.u32 %v17711_v53, %v12327_v52  ;;  %v12841_v18 = vld [vmem:[#allocation4 + $0x850] sm:$0xf0]  ;;  %v12273_v52 = vld [vmem:[#allocation4 + $0x3d8] sm:$0xf0]  ;;  %v12332_v58 = vor.u32 %v17703_v45, %v12329_v46 }
  0x7c   :  { %12952 = vmatmul.msk.bf16.vlgmr.msra.gmra.mxu1 %vm1918_vm0, %v19386_v5  ;;  %v12844_v27 = vor.u32 %v17831_v14, %v12841_v18  ;;  %v17784_v53 = vld [vmem:[#allocation4 + $0x69c] sm:$0xf]  ;;  %v12276_v61 = vor.u32 %v17688_v50, %v12273_v52 }
  0x7d   :  { %2080 = vmatpush.bf16.msrb.mxu3 %v12136_v6  ;;  %2130 = vmatpush.bf16.msra.mxu1 %v12780_v23  ;;  %v17751_v6 = vld [vmem:[#allocation4 + $0x594] sm:$0xf]  ;;  %v17824_v23 = vld [vmem:[#allocation4 + $0x7d4] sm:$0xf0]  ;;  %v17656_v14 = vld [vmem:[#allocation4 + $0x29c] sm:$0xf] }
  0x7e   :  { %v12784_v32 = vor.u32 %v17824_v23, %v12783_v22  ;;  %v11953_v52 = vld [vmem:[#allocation4 + $0x158] sm:$0xf0] }
  0x7f   :  { %2094 = vmatpush.bf16.msrb.mxu0 %v12584_v12  ;;  %2121 = vmatpush.bf16.msrb.mxu2 %v12012_v30  ;;  %v12912_v12 = vor.u32 %v17856_v4, %v12911_v3  ;;  %v17664_v30 = vld [vmem:[#allocation4 + $0x2d4] sm:$0xf0]  ;;  %v12209_v3 = vld [vmem:[#allocation4 + $0x358] sm:$0xf0] }
  0x80   :  { %v17768_v4 = vld [vmem:[#allocation4 + $0x61c] sm:$0xf] }
  0x81   :  { %2081 = vmatpush.bf16.msrb.mxu3 %v12072_v17  ;;  %2131 = vmatpush.bf16.msra.mxu1 %v12716_v35  ;;  %v12524_v17 = vor.u32 %v17751_v6, %v12521_v7  ;;  %v12393_v35 = vld [vmem:[#allocation4 + $0x4d0] sm:$0xf0]  ;;  %v12593_v6 = vld [vmem:[#allocation4 + $0x658] sm:$0xf0] }
  0x82   :  { %v12396_v43 = vor.u32 %v17719_v33, %v12393_v35  ;;  %v17584_v33 = vld [vmem:[#allocation4 + $0x54] sm:$0xf0] }
  0x83   :  { %2095 = vmatpush.bf16.msrb.mxu0 %v12520_v24  ;;  %2122 = vmatpush.bf16.msrb.mxu2 %v11948_v42  ;;  %v12208_v24 = vor.u32 %v17680_v16, %v12207_v15  ;;  %v17648_v42 = vld [vmem:[#allocation4 + $0x254] sm:$0xf0]  ;;  %v12145_v15 = vld [vmem:[#allocation4 + $0x2d8] sm:$0xf0] }
  0x84   :  { %v17752_v16 = vld [vmem:[#allocation4 + $0x59c] sm:$0xf]  ;;  %v12148_v22 = vor.u32 %v17656_v14, %v12145_v15  ;;  %v17728_v35 = vld [vmem:[#allocation4 + $0x4d4] sm:$0xf0]  ;;  %v17809_v14 = vld [vmem:[#allocation4 + $0x75c] sm:$0xf0] }
  0x85   :  { %2082 = vmatpush.bf16.msrb.mxu3 %v12008_v29  ;;  %2132 = vmatpush.bf16.msra.mxu1 %v12652_v47  ;;  %v12143_v29 = vld [vmem:[#allocation4 + $0x298] sm:$0xf]  ;;  %v12724_v47 = vor.u32 %v17800_v39, %v12721_v40  ;;  %v17848_v39 = vld [vmem:[#allocation4 + $0x89c] sm:$0xf]  ;;  %v17673_v15 = vld [vmem:[#allocation4 + $0x324] sm:$0xf] }
  0x86   :  { %v12144_v38 = vor.u32 %v17664_v30, %v12143_v29  ;;  %v12465_v29 = vld [vmem:[#allocation4 + $0x558] sm:$0xf0]  ;;  %v11888_v30 = vor.u32 %v17600_v21, %v11887_v20 }
  0x87   :  { %2096 = vmatpush.bf16.msrb.mxu0 %v12456_v36  ;;  %2123 = vmatpush.bf16.msrb.mxu2 %v11884_v55  ;;  %v12719_v36 = vld [vmem:[#allocation4 + $0x718] sm:$0xf]  ;;  %v12913_v40 = vld [vmem:[#allocation4 + $0x8d8] sm:$0xf0] }
  0x88   :  { %v12720_v44 = vor.u32 %v17808_v37, %v12719_v36  ;;  %v12015_v55 = vld [vmem:[#allocation4 + $0x198] sm:$0xf]  ;;  %v12916_v46 = vor.u32 %v17848_v39, %v12913_v40  ;;  %v11825_v21 = vld [vmem:[#allocation4 + $0x58] sm:$0xf0]  ;;  %v17777_v39 = vld [vmem:[#allocation4 + $0x65c] sm:$0xf0] }
  0x89   :  { %2083 = vmatpush.bf16.msrb.mxu3 %v11944_v41  ;;  %2133 = vmatpush.bf16.msra.mxu1 %v12588_v0  ;;  %v12079_v41 = vld [vmem:[#allocation4 + $0x218] sm:$0xf]  ;;  %v12016_v2 = vor.u32 %v17632_v57, %v12015_v55  ;;  %v17704_v55 = vld [vmem:[#allocation4 + $0x41c] sm:$0xf]  ;;  %v12855_v40 = vld [vmem:[#allocation4 + $0x820] sm:$0xf] }
  0x8a   :  { %v12080_v51 = vor.u32 %v17648_v42, %v12079_v41  ;;  %v17776_v0 = vld [vmem:[#allocation4 + $0x654] sm:$0xf0]  ;;  %v12017_v41 = vld [vmem:[#allocation4 + $0x1d8] sm:$0xf0] }
  0x8b   :  { %2097 = vmatpush.bf16.msrb.mxu0 %v12392_v48  ;;  %2124 = vmatpush.bf16.msrb.mxu2 %v11820_v10  ;;  %v12655_v48 = vld [vmem:[#allocation4 + $0x698] sm:$0xf]  ;;  %v12592_v7 = vor.u32 %v17776_v0, %v12591_v63  ;;  %v17720_v42 = vld [vmem:[#allocation4 + $0x49c] sm:$0xf] }
  0x8c   :  { %12953 = vmatmul.msk.bf16.vlgmr.msrb.gmra.mxu1 %vm1918_vm0, %v19386_v5  ;;  %v12656_v59 = vor.u32 %v17792_v49, %v12655_v48  ;;  %v17712_v48 = vld [vmem:[#allocation4 + $0x454] sm:$0xf0]  ;;  %v17608_v49 = vld [vmem:[#allocation4 + $0x11c] sm:$0xf] }
  0x8d   :  { %2084 = vmatpush.bf16.msrb.mxu3 %v11880_v54  ;;  %2134 = vmatpush.bf16.msra.mxu1 %v12524_v17  ;;  %v12657_v54 = vld [vmem:[#allocation4 + $0x6d8] sm:$0xf0] }
  0x8e   :  { %2125 = vmatmul.bf16.vlgmr.msrb.gmra.mxu2 %v19390_v56  ;;  %v12660_v62 = vor.u32 %v17784_v53, %v12657_v54  ;;  %v12529_v17 = vld [vmem:[#allocation4 + $0x5d8] sm:$0xf0] }
  0x8f   :  { %2098 = vmatpush.bf16.msrb.mxu0 %v12328_v1  ;;  %2188 = vmatpush.bf16.msra.mxu2 %v12912_v12  ;;  %v17672_v1 = vld [vmem:[#allocation4 + $0x31c] sm:$0xf]  ;;  %v12527_v12 = vld [vmem:[#allocation4 + $0x598] sm:$0xf]  ;;  %v12532_v23 = vor.u32 %v17752_v16, %v12529_v17  ;;  %v12217_v16 = vld [vmem:[#allocation4 + $0x360] sm:$0xf0] }
  0x90   :  { %v12212_v10 = vor.u32 %v17672_v1, %v12209_v3  ;;  %v12528_v19 = vor.u32 %v17760_v13, %v12527_v12  ;;  %v17832_v53 = vld [vmem:[#allocation4 + $0x81c] sm:$0xf]  ;;  %v17689_v1 = vld [vmem:[#allocation4 + $0x3a4] sm:$0xf]  ;;  %v11956_v3 = vor.u32 %v17608_v49, %v11953_v52  ;;  %v17681_v12 = vld [vmem:[#allocation4 + $0x35c] sm:$0xf0] }
  0x91   :  { %2085 = vmatpush.bf16.msrb.mxu3 %v11816_v9  ;;  %2135 = vmatpush.bf16.msra.mxu1 %v12460_v31  ;;  %v17616_v9 = vld [vmem:[#allocation4 + $0x154] sm:$0xf0]  ;;  %v12849_v54 = vld [vmem:[#allocation4 + $0x858] sm:$0xf0]  ;;  %v12727_v13 = vld [vmem:[#allocation4 + $0x720] sm:$0xf] }
  0x92   :  { %2099 = vmatmul.bf16.vlgmr.msrb.gmra.mxu0 %v19392_v60  ;;  %v11823_v31 = vld [vmem:[#allocation4 + $0x18] sm:$0xf]  ;;  %v12337_v57 = vld [vmem:[#allocation4 + $0x458] sm:$0xf0]  ;;  %v12852_v0 = vor.u32 %v17832_v53, %v12849_v54  ;;  %v12728_v20 = vor.u32 %v17809_v14, %v12727_v13  ;;  %v12535_v52 = vld [vmem:[#allocation4 + $0x5a0] sm:$0xf] }
  0x93   :  { %2156 = vmatpush.bf16.msra.mxu0 %v12272_v8  ;;  %2189 = vmatpush.bf16.msra.mxu2 %v12848_v28  ;;  %v11951_v8 = vld [vmem:[#allocation4 + $0x118] sm:$0xf]  ;;  %v17736_v28 = vld [vmem:[#allocation4 + $0x51c] sm:$0xf]  ;;  %v17761_v53 = vld [vmem:[#allocation4 + $0x5dc] sm:$0xf0] }
  0x94   :  { %2086 = vmatmul.bf16.vlgmr.msrb.gmra.mxu3 %v19390_v56  ;;  %v11952_v18 = vor.u32 %v17616_v9, %v11951_v8  ;;  %v12468_v37 = vor.u32 %v17736_v28, %v12465_v29  ;;  %v17592_v8 = vld [vmem:[#allocation4 + $0x9c] sm:$0xf]  ;;  %v17857_v28 = vld [vmem:[#allocation4 + $0x8dc] sm:$0xf0]  ;;  %v17657_v29 = vld [vmem:[#allocation4 + $0x2a4] sm:$0xf] }
  0x95   :  { %2149 = vmatpush.bf16.msra.mxu3 %v12908_v11  ;;  %2136 = vmatpush.bf16.msra.mxu1 %v12396_v43  ;;  %v12596_v11 = vor.u32 %v17768_v4, %v12593_v6  ;;  %v12401_v43 = vld [vmem:[#allocation4 + $0x4d8] sm:$0xf0]  ;;  %v12340_v4 = vor.u32 %v17704_v55, %v12337_v57  ;;  %v17625_v55 = vld [vmem:[#allocation4 + $0x1a4] sm:$0xf]  ;;  %v17601_v14 = vld [vmem:[#allocation4 + $0xdc] sm:$0xf0] }
  0x96   :  { %v11889_v9 = vld [vmem:[#allocation4 + $0xd8] sm:$0xf0]  ;;  %v12025_v57 = vld [vmem:[#allocation4 + $0x1e0] sm:$0xf0] }
  0x97   :  { %2157 = vmatpush.bf16.msra.mxu0 %v12208_v24  ;;  %2208 = vmatpush.bf16.msrb.mxu2 %v12788_v34  ;;  %v12463_v24 = vld [vmem:[#allocation4 + $0x518] sm:$0xf]  ;;  %v11892_v17 = vor.u32 %v17592_v8, %v11889_v9  ;;  %v17785_v8 = vld [vmem:[#allocation4 + $0x6a4] sm:$0xf] }
  0x98   :  { %v12399_v34 = vld [vmem:[#allocation4 + $0x498] sm:$0xf]  ;;  %v12665_v9 = vld [vmem:[#allocation4 + $0x6e0] sm:$0xf0] }
  0x99   :  { %2150 = vmatpush.bf16.msra.mxu3 %v12844_v27  ;;  %2137 = vmatpush.bf16.msra.mxu1 %v12332_v58  ;;  %v12081_v27 = vld [vmem:[#allocation4 + $0x258] sm:$0xf0]  ;;  %v12400_v45 = vor.u32 %v17728_v35, %v12399_v34  ;;  %v12279_v58 = vld [vmem:[#allocation4 + $0x3a0] sm:$0xf] }
  0x9a   :  { %v12084_v36 = vor.u32 %v17640_v26, %v12081_v27  ;;  %v17793_v26 = vld [vmem:[#allocation4 + $0x6dc] sm:$0xf0] }
  0x9b   :  { %2158 = vmatpush.bf16.msra.mxu0 %v12144_v38  ;;  %2209 = vmatpush.bf16.msrb.mxu2 %v12724_v47  ;;  %v17624_v38 = vld [vmem:[#allocation4 + $0x19c] sm:$0xf]  ;;  %v12335_v47 = vld [vmem:[#allocation4 + $0x418] sm:$0xf]  ;;  %v12919_v27 = vld [vmem:[#allocation4 + $0x8a0] sm:$0xf] }
  0x9c   :  { %2138 = vmatmul.bf16.vlgmr.msra.gmra.mxu1 %v19392_v60  ;;  %v12020_v50 = vor.u32 %v17624_v38, %v12017_v41  ;;  %v12336_v63 = vor.u32 %v17712_v48, %v12335_v47  ;;  %v12087_v34 = vld [vmem:[#allocation4 + $0x220] sm:$0xf] }
  0x9d   :  { %2169 = vmatpush.bf16.msrb.mxu3 %v12784_v32  ;;  %2195 = vmatpush.bf16.msrb.mxu1 %v12276_v61  ;;  %v12464_v32 = vor.u32 %v17744_v25, %v12463_v24  ;;  %v12791_v61 = vld [vmem:[#allocation4 + $0x7a0] sm:$0xf]  ;;  %v12220_v24 = vor.u32 %v17673_v15, %v12217_v16 }
  0x9e   :  { %12955 = vmatmul.msk.bf16.vlgmr.msra.gmra.mxu2 %vm1918_vm0, %v19386_v5  ;;  %v12663_v25 = vld [vmem:[#allocation4 + $0x6a0] sm:$0xf] }
  0x9f   :  { %2159 = vmatpush.bf16.msra.mxu0 %v12080_v51  ;;  %2210 = vmatpush.bf16.msrb.mxu2 %v12660_v62  ;;  %v12404_v51 = vor.u32 %v17720_v42, %v12401_v43  ;;  %v17825_v62 = vld [vmem:[#allocation4 + $0x7dc] sm:$0xf0]  ;;  %v17641_v42 = vld [vmem:[#allocation4 + $0x224] sm:$0xf] }
  0xa0   :  { %v17649_v35 = vld [vmem:[#allocation4 + $0x25c] sm:$0xf0]  ;;  %v12089_v43 = vld [vmem:[#allocation4 + $0x260] sm:$0xf0] }
  0xa1   :  { %2170 = vmatpush.bf16.msrb.mxu3 %v12720_v44  ;;  %2196 = vmatpush.bf16.msrb.mxu1 %v12212_v10  ;;  %v11824_v44 = vor.u32 %v17584_v33, %v11823_v31  ;;  %v12215_v10 = vld [vmem:[#allocation4 + $0x320] sm:$0xf]  ;;  %v12664_v33 = vor.u32 %v17793_v26, %v12663_v25 }
  0xa2   :  { %v12599_v38 = vld [vmem:[#allocation4 + $0x620] sm:$0xf] }
  0xa3   :  { %2160 = vmatpush.bf16.msra.mxu0 %v12016_v2  ;;  %2211 = vmatpush.bf16.msrb.mxu2 %v12596_v11  ;;  %v12281_v2 = vld [vmem:[#allocation4 + $0x3e0] sm:$0xf0]  ;;  %v17841_v41 = vld [vmem:[#allocation4 + $0x85c] sm:$0xf0]  ;;  %v12600_v47 = vor.u32 %v17777_v39, %v12599_v38  ;;  %v12287_v38 = vld [vmem:[#allocation4 + $0x3a8] sm:$0xf] }
  0xa4   :  { %12954 = vmatmul.msk.bf16.vlgmr.msra.gmra.mxu3 %vm1918_vm0, %v19386_v5  ;;  %v12284_v11 = vor.u32 %v17689_v1, %v12281_v2  ;;  %v12023_v48 = vld [vmem:[#allocation4 + $0x1a0] sm:$0xf]  ;;  %v12856_v49 = vor.u32 %v17841_v41, %v12855_v40  ;;  %v17698_v39 = vld [vmem:[#allocation4 + $0x3e4] sm:$0xf0] }
  0xa5   :  { %2171 = vmatpush.bf16.msrb.mxu3 %v12656_v59  ;;  %2197 = vmatpush.bf16.msrb.mxu1 %v12148_v22  ;;  %v17697_v59 = vld [vmem:[#allocation4 + $0x3dc] sm:$0xf0] }
  0xa6   :  { %v12280_v6 = vor.u32 %v17697_v59, %v12279_v58  ;;  %v12151_v22 = vld [vmem:[#allocation4 + $0x2a0] sm:$0xf]  ;;  %v17801_v58 = vld [vmem:[#allocation4 + $0x724] sm:$0xf] }
  0xa7   :  { %2161 = vmatpush.bf16.msra.mxu0 %v11952_v18  ;;  %2212 = vmatpush.bf16.msrb.mxu2 %v12532_v23  ;;  %v17576_v18 = vld [vmem:[#allocation4 + $0x1c] sm:$0xf]  ;;  %v17665_v23 = vld [vmem:[#allocation4 + $0x2dc] sm:$0xf0]  ;;  %v12729_v59 = vld [vmem:[#allocation4 + $0x760] sm:$0xf0] }
  0xa8   :  { %v11828_v31 = vor.u32 %v17576_v18, %v11825_v21  ;;  %v17617_v1 = vld [vmem:[#allocation4 + $0x15c] sm:$0xf0]  ;;  %v17593_v18 = vld [vmem:[#allocation4 + $0xa4] sm:$0xf] }
  0xa9   :  { %2172 = vmatpush.bf16.msrb.mxu3 %v12592_v7  ;;  %2198 = vmatpush.bf16.msrb.mxu1 %v12084_v36  ;;  %v12792_v7 = vor.u32 %v17825_v62, %v12791_v61  ;;  %v12920_v36 = vor.u32 %v17857_v28, %v12919_v27  ;;  %v12536_v62 = vor.u32 %v17761_v53, %v12535_v52  ;;  %v12471_v2 = vld [vmem:[#allocation4 + $0x520] sm:$0xf]  ;;  %v17769_v21 = vld [vmem:[#allocation4 + $0x624] sm:$0xf] }
  0xaa   :  { %v12407_v15 = vld [vmem:[#allocation4 + $0x4a0] sm:$0xf]  ;;  %v12857_v52 = vld [vmem:[#allocation4 + $0x860] sm:$0xf0] }
  0xab   :  { %2162 = vmatpush.bf16.msra.mxu0 %v11888_v30  ;;  %2213 = vmatpush.bf16.msrb.mxu2 %v12468_v37  ;;  %v12153_v30 = vld [vmem:[#allocation4 + $0x2e0] sm:$0xf0]  ;;  %v17729_v16 = vld [vmem:[#allocation4 + $0x4dc] sm:$0xf0] }
  0xac   :  { %v12156_v37 = vor.u32 %v17657_v29, %v12153_v30  ;;  %v12408_v25 = vor.u32 %v17729_v16, %v12407_v15  ;;  %v17585_v26 = vld [vmem:[#allocation4 + $0x5c] sm:$0xf0]  ;;  %v17577_v30 = vld [vmem:[#allocation4 + $0x24] sm:$0xf]  ;;  %v12735_v16 = vld [vmem:[#allocation4 + $0x728] sm:$0xf] }
  0xad   :  { %2173 = vmatpush.bf16.msrb.mxu3 %v12528_v19  ;;  %2199 = vmatpush.bf16.msrb.mxu1 %v12020_v50  ;;  %v12216_v19 = vor.u32 %v17681_v12, %v12215_v10  ;;  %v12092_v50 = vor.u32 %v17641_v42, %v12089_v43  ;;  %v11895_v12 = vld [vmem:[#allocation4 + $0xa0] sm:$0xf]  ;;  %v12927_v42 = vld [vmem:[#allocation4 + $0x8a8] sm:$0xf] }
  0xae   :  { %v12343_v27 = vld [vmem:[#allocation4 + $0x420] sm:$0xf]  ;;  %v17858_v43 = vld [vmem:[#allocation4 + $0x8e4] sm:$0xf0] }
  0xaf   :  { %2163 = vmatpush.bf16.msra.mxu0 %v11824_v44  ;;  %2214 = vmatpush.bf16.msrb.mxu2 %v12404_v51  ;;  %v17817_v44 = vld [vmem:[#allocation4 + $0x7a4] sm:$0xf]  ;;  %v17633_v51 = vld [vmem:[#allocation4 + $0x1dc] sm:$0xf0] }
  0xb0   :  { %v12024_v61 = vor.u32 %v17633_v51, %v12023_v48  ;;  %v17713_v28 = vld [vmem:[#allocation4 + $0x45c] sm:$0xf0]  ;;  %v17833_v51 = vld [vmem:[#allocation4 + $0x824] sm:$0xf] }
  0xb1   :  { %2174 = vmatpush.bf16.msrb.mxu3 %v12464_v32  ;;  %2200 = vmatpush.bf16.msrb.mxu1 %v11956_v3  ;;  %v12152_v32 = vor.u32 %v17665_v23, %v12151_v22  ;;  %v17745_v3 = vld [vmem:[#allocation4 + $0x55c] sm:$0xf0]  ;;  %v12601_v22 = vld [vmem:[#allocation4 + $0x660] sm:$0xf0]  ;;  %v12344_v41 = vor.u32 %v17713_v28, %v12343_v27 }
  0xb2   :  { %2164 = vmatmul.bf16.vlgmr.msra.gmra.mxu0 %v19390_v56  ;;  %v11831_v23 = vld [vmem:[#allocation4 + $0x20] sm:$0xf] }
  0xb3   :  { %2227 = vmatpush.bf16.msrb.mxu0 %v12916_v46  ;;  %2215 = vmatpush.bf16.msrb.mxu2 %v12340_v4  ;;  %v12088_v46 = vor.u32 %v17649_v35, %v12087_v34  ;;  %v12732_v4 = vor.u32 %v17801_v58, %v12729_v59  ;;  %v17849_v34 = vld [vmem:[#allocation4 + $0x8a4] sm:$0xf]  ;;  %v11832_v40 = vor.u32 %v17585_v26, %v11831_v23  ;;  %v12863_v58 = vld [vmem:[#allocation4 + $0x828] sm:$0xf] }
  0xb4   :  { %v12921_v35 = vld [vmem:[#allocation4 + $0x8e0] sm:$0xf0]  ;;  %v12095_v26 = vld [vmem:[#allocation4 + $0x228] sm:$0xf] }
  0xb5   :  { %2175 = vmatpush.bf16.msrb.mxu3 %v12400_v45  ;;  %2201 = vmatpush.bf16.msrb.mxu1 %v11892_v17  ;;  %v12793_v45 = vld [vmem:[#allocation4 + $0x7e0] sm:$0xf0]  ;;  %v12668_v17 = vor.u32 %v17785_v8, %v12665_v9 }
  0xb6   :  { %2216 = vmatmul.bf16.vlgmr.msrb.gmra.mxu2 %v19392_v60  ;;  %v12796_v54 = vor.u32 %v17817_v44, %v12793_v45  ;;  %v12924_v45 = vor.u32 %v17849_v34, %v12921_v35  ;;  %v17721_v8 = vld [vmem:[#allocation4 + $0x4a4] sm:$0xf]  ;;  %v17690_v34 = vld [vmem:[#allocation4 + $0x3ac] sm:$0xf] }
  0xb7   :  { %2228 = vmatpush.bf16.msrb.mxu0 %v12852_v0  ;;  %2273 = vmatpush.bf16.msra.mxu2 %v12284_v11  ;;  %v12028_v0 = vor.u32 %v17625_v55, %v12025_v57  ;;  %v12472_v11 = vor.u32 %v17745_v3, %v12471_v2  ;;  %v12223_v55 = vld [vmem:[#allocation4 + $0x328] sm:$0xf]  ;;  %v12860_v2 = vor.u32 %v17833_v51, %v12857_v52  ;;  %v17818_v3 = vld [vmem:[#allocation4 + $0x7ac] sm:$0xf] }
  0xb8   :  { %v17682_v57 = vld [vmem:[#allocation4 + $0x364] sm:$0xf0]  ;;  %v12289_v35 = vld [vmem:[#allocation4 + $0x3e8] sm:$0xf0] }
  0xb9   :  { %2176 = vmatpush.bf16.msrb.mxu3 %v12336_v63  ;;  %2202 = vmatpush.bf16.msrb.mxu1 %v11828_v31  ;;  %v11959_v63 = vld [vmem:[#allocation4 + $0x120] sm:$0xf]  ;;  %v11833_v31 = vld [vmem:[#allocation4 + $0x60] sm:$0xf0]  ;;  %v17674_v51 = vld [vmem:[#allocation4 + $0x32c] sm:$0xf] }
  0xba   :  { %v11960_v10 = vor.u32 %v17617_v1, %v11959_v63  ;;  %v11836_v44 = vor.u32 %v17577_v30, %v11833_v31  ;;  %v17826_v63 = vld [vmem:[#allocation4 + $0x7e4] sm:$0xf0]  ;;  %v12225_v52 = vld [vmem:[#allocation4 + $0x368] sm:$0xf0] }
  0xbb   :  { %2247 = vmatpush.bf16.msra.mxu0 %v12792_v7  ;;  %2274 = vmatpush.bf16.msra.mxu2 %v12220_v24  ;;  %v11961_v7 = vld [vmem:[#allocation4 + $0x160] sm:$0xf0]  ;;  %v11896_v24 = vor.u32 %v17601_v14, %v11895_v12  ;;  %v17666_v14 = vld [vmem:[#allocation4 + $0x2e4] sm:$0xf0] }
  0xbc   :  { %2177 = vmatmul.bf16.vlgmr.msrb.gmra.mxu3 %v19392_v60  ;;  %2203 = vmatmul.bf16.vlgmr.msrb.gmra.mxu1 %v19390_v56  ;;  %v12409_v12 = vld [vmem:[#allocation4 + $0x4e0] sm:$0xf0]  ;;  %v12671_v30 = vld [vmem:[#allocation4 + $0x6a8] sm:$0xf] }
  0xbd   :  { %2234 = vmatpush.bf16.msra.mxu3 %v12280_v6  ;;  %2266 = vmatpush.bf16.msra.mxu1 %v12920_v36  ;;  %v17609_v6 = vld [vmem:[#allocation4 + $0x124] sm:$0xf]  ;;  %v17794_v31 = vld [vmem:[#allocation4 + $0x6e4] sm:$0xf0] }
  0xbe   :  { %v11964_v13 = vor.u32 %v17609_v6, %v11961_v7  ;;  %v19426_v36 = vld [vmem:[#allocation6] sm:$0xff]  ;;  %v12224_v7 = vor.u32 %v17682_v57, %v12223_v55 }
  0xbf   :  { %2248 = vmatpush.bf16.msra.mxu0 %v12728_v20  ;;  %2275 = vmatpush.bf16.msra.mxu2 %v12156_v37  ;;  %v19424_v20 = vpop.f32.mrf.mxu3  ;;  %v12537_v37 = vld [vmem:[#allocation4 + $0x5e0] sm:$0xf0] }
  0xc1   :  { %2235 = vmatpush.bf16.msra.mxu3 %v12216_v19  ;;  %2267 = vmatpush.bf16.msra.mxu1 %v12856_v49  ;;  %v11897_v19 = vld [vmem:[#allocation4 + $0xe0] sm:$0xf0]  ;;  %v12288_v49 = vor.u32 %v17698_v39, %v12287_v38  ;;  %v17786_v38 = vld [vmem:[#allocation4 + $0x6ac] sm:$0xf] }
  0xc2   :  { %12956 = vmatmul.msk.bf16.vlgmr.msrb.gmra.mxu0 %vm1918_vm0, %v19386_v5  ;;  %v11900_v29 = vor.u32 %v17593_v18, %v11897_v19  ;;  %v17802_v19 = vld [vmem:[#allocation4 + $0x72c] sm:$0xf] }
  0xc3   :  { %2249 = vmatpush.bf16.msra.mxu0 %v12664_v33  ;;  %2276 = vmatpush.bf16.msra.mxu2 %v12092_v50  ;;  %v12604_v33 = vor.u32 %v17769_v21, %v12601_v22  ;;  %v12473_v50 = vld [vmem:[#allocation4 + $0x560] sm:$0xf0]  ;;  %v12737_v21 = vld [vmem:[#allocation4 + $0x768] sm:$0xf0]  ;;  %v12412_v22 = vor.u32 %v17721_v8, %v12409_v12 }
  0xc4   :  { %v12673_v39 = vld [vmem:[#allocation4 + $0x6e8] sm:$0xf0] }
  0xc5   :  { %2236 = vmatpush.bf16.msra.mxu3 %v12152_v32  ;;  %2286 = vmatpush.bf16.msrb.mxu1 %v12796_v54  ;;  %v17753_v32 = vld [vmem:[#allocation4 + $0x5a4] sm:$0xf]  ;;  %v12928_v54 = vor.u32 %v17858_v43, %v12927_v42  ;;  %v12672_v43 = vor.u32 %v17794_v31, %v12671_v30  ;;  %v12545_v8 = vld [vmem:[#allocation4 + $0x5e8] sm:$0xf0]  ;;  %v12415_v30 = vld [vmem:[#allocation4 + $0x4a8] sm:$0xf] }
  0xc6   :  { %v12540_v48 = vor.u32 %v17753_v32, %v12537_v37  ;;  %v17730_v31 = vld [vmem:[#allocation4 + $0x4e4] sm:$0xf0] }
  0xc7   :  { %2250 = vmatpush.bf16.msra.mxu0 %v12600_v47  ;;  %2277 = vmatpush.bf16.msra.mxu2 %v12028_v0  ;;  %v17737_v47 = vld [vmem:[#allocation4 + $0x524] sm:$0xf]  ;;  %v1959_v53 = vpop.f32.mrf.mxu3  ;;  %v1931_v59 = vpop.f32.mrf.mxu0 }
  0xc8   :  { %v12476_v6 = vor.u32 %v17737_v47, %v12473_v50  ;;  %v12607_v47 = vld [vmem:[#allocation4 + $0x628] sm:$0xf]  ;;  %v17770_v53 = vld [vmem:[#allocation4 + $0x62c] sm:$0xf] }
  0xc9   :  { %2237 = vmatpush.bf16.msra.mxu3 %v12088_v46  ;;  %2287 = vmatpush.bf16.msrb.mxu1 %v12732_v4  ;;  %v446_v46 = vperm.slane %v19426_v36, 0  ;;  %v1944_v0 = vpop.f32.mrf.mxu1  ;;  %v12801_v4 = vld [vmem:[#allocation4 + $0x7e8] sm:$0xf0]  ;;  %v1983_v27 = vpop.f32.mrf.mxu2  ;;  %v17778_v50 = vld [vmem:[#allocation4 + $0x664] sm:$0xf0] }
  0xca   :  { %v12804_v15 = vor.u32 %v17818_v3, %v12801_v4  ;;  %v17658_v3 = vld [vmem:[#allocation4 + $0x2ac] sm:$0xf] }
  0xcb   :  { %2251 = vmatpush.bf16.msra.mxu0 %v12536_v62  ;;  %2278 = vmatpush.bf16.msra.mxu2 %v11964_v13  ;;  %v12799_v62 = vld [vmem:[#allocation4 + $0x7a8] sm:$0xf]  ;;  %v1932_v1 = vadd.f32 %v1931_v59, %v446_v46  ;;  %v12608_v59 = vor.u32 %v17778_v50, %v12607_v47  ;;  %v12161_v4 = vld [vmem:[#allocation4 + $0x2e8] sm:$0xf0] }
  0xcc   :  { %12957 = vmatmul.msk.bf16.vlgmr.msra.gmra.mxu1 %vm1918_vm0, %v19386_v5  ;;  %v12159_v13 = vld [vmem:[#allocation4 + $0x2a8] sm:$0xf]  ;;  %v12164_v12 = vor.u32 %v17658_v3, %v12161_v4 }
  0xcd   :  { %2238 = vmatpush.bf16.msra.mxu3 %v12024_v61  ;;  %2288 = vmatpush.bf16.msrb.mxu1 %v12668_v17  ;;  %v17842_v61 = vld [vmem:[#allocation4 + $0x864] sm:$0xf0]  ;;  %v12160_v23 = vor.u32 %v17666_v14, %v12159_v13 }
  0xce   :  { %v12864_v9 = vor.u32 %v17842_v61, %v12863_v58  ;;  %v17810_v17 = vld [vmem:[#allocation4 + $0x764] sm:$0xf0]  ;;  %v12228_v61 = vor.u32 %v17674_v51, %v12225_v52  ;;  %v11969_v51 = vld [vmem:[#allocation4 + $0x168] sm:$0xf0] }
  0xcf   :  { %2252 = vmatpush.bf16.msra.mxu0 %v12472_v11  ;;  %2279 = vmatpush.bf16.msra.mxu2 %v11900_v29  ;;  %v1945_v11 = vadd.f32 %v1944_v0, %v1932_v1  ;;  %v12736_v28 = vor.u32 %v17810_v17, %v12735_v16  ;;  %v17650_v29 = vld [vmem:[#allocation4 + $0x264] sm:$0xf0]  ;;  %v1933_v32 = vpop.f32.mrf.mxu0  ;;  %v17706_v52 = vld [vmem:[#allocation4 + $0x42c] sm:$0xf] }
  0xd0   :  { %v17634_v46 = vld [vmem:[#allocation4 + $0x1e4] sm:$0xf0] }
  0xd1   :  { %2239 = vmatpush.bf16.msra.mxu3 %v11960_v10  ;;  %2289 = vmatpush.bf16.msrb.mxu1 %v12604_v33  ;;  %v12800_v10 = vor.u32 %v17826_v63, %v12799_v62  ;;  %v19435_v18 = vadd.f32 %v19424_v20, %v1945_v11  ;;  %v12740_v20 = vor.u32 %v17802_v19, %v12737_v21  ;;  %v447_v33 = vperm.slane %v19426_v36, 1  ;;  %v1946_v37 = vpop.f32.mrf.mxu1  ;;  %v1985_v58 = vpop.f32.mrf.mxu2  ;;  %v11967_v62 = vld [vmem:[#allocation4 + $0x128] sm:$0xf]  ;;  %v17642_v21 = vld [vmem:[#allocation4 + $0x22c] sm:$0xf] }
  0xd2   :  { %v17618_v63 = vld [vmem:[#allocation4 + $0x164] sm:$0xf0]  ;;  %v12417_v37 = vld [vmem:[#allocation4 + $0x4e8] sm:$0xf0] }
  0xd3   :  { %2253 = vmatpush.bf16.msra.mxu0 %v12408_v25  ;;  %2280 = vmatpush.bf16.msra.mxu2 %v11836_v44  ;;  %v12345_v25 = vld [vmem:[#allocation4 + $0x460] sm:$0xf0]  ;;  %v12292_v44 = vor.u32 %v17690_v34, %v12289_v35  ;;  %v12543_v0 = vld [vmem:[#allocation4 + $0x5a8] sm:$0xf]  ;;  %19026 = vtanh.f32 %v19435_v18  ;;  %v17738_v18 = vld [vmem:[#allocation4 + $0x52c] sm:$0xf] }
  0xd4   :  { %v11903_v13 = vld [vmem:[#allocation4 + $0xa8] sm:$0xf]  ;;  %v17722_v34 = vld [vmem:[#allocation4 + $0x4ac] sm:$0xf] }
  0xd5   :  { %2240 = vmatpush.bf16.msra.mxu3 %v11896_v24  ;;  %2290 = vmatpush.bf16.msrb.mxu1 %v12540_v48  ;;  %v17705_v24 = vld [vmem:[#allocation4 + $0x424] sm:$0xf]  ;;  %v17602_v14 = vld [vmem:[#allocation4 + $0xe4] sm:$0xf0] }
  0xd6   :  { %2281 = vmatmul.bf16.vlgmr.msra.gmra.mxu2 %v19390_v56  ;;  %v17746_v19 = vld [vmem:[#allocation4 + $0x564] sm:$0xf0] }
  0xd7   :  { %2254 = vmatpush.bf16.msra.mxu0 %v12344_v41  ;;  %2344 = vmatpush.bf16.msrb.mxu2 %v12928_v54  ;;  %v12096_v41 = vor.u32 %v17650_v29, %v12095_v26  ;;  %v1970_v42 = vpop.f32.mrf.mxu3  ;;  %v12609_v54 = vld [vmem:[#allocation4 + $0x668] sm:$0xf0]  ;;  %v17586_v29 = vld [vmem:[#allocation4 + $0x64] sm:$0xf0] }
  0xd8   :  { %v1971_v48 = vadd.f32 %v1970_v42, %v447_v33  ;;  %v12612_v1 = vor.u32 %v17770_v53, %v12609_v54  ;;  %v12033_v33 = vld [vmem:[#allocation4 + $0x1e8] sm:$0xf0]  ;;  %v17714_v47 = vld [vmem:[#allocation4 + $0x464] sm:$0xf0] }
  0xd9   :  { %2241 = vmatpush.bf16.msra.mxu3 %v11832_v40  ;;  %2291 = vmatpush.bf16.msrb.mxu1 %v12476_v6  ;;  %v12348_v40 = vor.u32 %v17705_v24, %v12345_v25  ;;  %v1996_v6 = vpop.f32.mrf.mxu0  ;;  %v11904_v24 = vor.u32 %v17602_v14, %v11903_v13  ;;  %v11839_v25 = vld [vmem:[#allocation4 + $0x28] sm:$0xf]  ;;  %v19027_v35 = vpop.eup %19026  ;;  %v12353_v53 = vld [vmem:[#allocation4 + $0x468] sm:$0xf0]  ;;  %v17683_v13 = vld [vmem:[#allocation4 + $0x36c] sm:$0xf0] }
  0xda   :  { %2255 = vmatmul.bf16.vlgmr.msra.gmra.mxu0 %v19392_v60  ;;  %v1984_v57 = vadd.f32 %v1983_v27, %v1971_v48  ;;  %v11840_v42 = vor.u32 %v17586_v29, %v11839_v25  ;;  %v17610_v48 = vld [vmem:[#allocation4 + $0x12c] sm:$0xf]  ;;  %v12356_v4 = vor.u32 %v17706_v52, %v12353_v53  ;;  %v12743_v14 = vld [vmem:[#allocation4 + $0x730] sm:$0xf] }
  0xdb   :  { %2312 = vmatpush.bf16.msrb.mxu0 %v12288_v49  ;;  %2345 = vmatpush.bf16.msrb.mxu2 %v12864_v9  ;;  %v12676_v49 = vor.u32 %v17786_v38, %v12673_v39  ;;  %v17850_v38 = vld [vmem:[#allocation4 + $0x8ac] sm:$0xf]  ;;  %v12935_v29 = vld [vmem:[#allocation4 + $0x8b0] sm:$0xf] }
  0xdc   :  { %2242 = vmatmul.bf16.vlgmr.msra.gmra.mxu3 %v19390_v56  ;;  %v1997_v9 = vadd.f32 %v1996_v6, %v1984_v57  ;;  %v12929_v39 = vld [vmem:[#allocation4 + $0x8e8] sm:$0xf0]  ;;  %v12295_v57 = vld [vmem:[#allocation4 + $0x3b0] sm:$0xf] }
  0xdd   :  { %2305 = vmatpush.bf16.msrb.mxu3 %v12924_v45  ;;  %2292 = vmatpush.bf16.msrb.mxu1 %v12412_v22  ;;  %v12031_v45 = vld [vmem:[#allocation4 + $0x1a8] sm:$0xf]  ;;  %v12097_v22 = vld [vmem:[#allocation4 + $0x268] sm:$0xf0]  ;;  %v12932_v50 = vor.u32 %v17850_v38, %v12929_v39  ;;  %v17659_v38 = vld [vmem:[#allocation4 + $0x2b4] sm:$0xf] }
  0xde   :  { %v12032_v55 = vor.u32 %v17634_v46, %v12031_v45  ;;  %19028 = vtanh.f32 %v1997_v9  ;;  %v12100_v27 = vor.u32 %v17642_v21, %v12097_v22  ;;  %v12351_v46 = vld [vmem:[#allocation4 + $0x428] sm:$0xf]  ;;  %v17834_v54 = vld [vmem:[#allocation4 + $0x82c] sm:$0xf]  ;;  %v12233_v21 = vld [vmem:[#allocation4 + $0x370] sm:$0xf0] }
  0xdf   :  { %2313 = vmatpush.bf16.msrb.mxu0 %v12224_v7  ;;  %2364 = vmatpush.bf16.msra.mxu2 %v12804_v15  ;;  %v17754_v7 = vld [vmem:[#allocation4 + $0x5ac] sm:$0xf]  ;;  %v12479_v15 = vld [vmem:[#allocation4 + $0x528] sm:$0xf]  ;;  %v1972_v16 = vpop.f32.mrf.mxu3  ;;  %v449_v22 = vperm.slane %v19426_v36, 3 }
  0xe0   :  { %v12548_v17 = vor.u32 %v17754_v7, %v12545_v8  ;;  %v12480_v26 = vor.u32 %v17746_v19, %v12479_v15  ;;  %v17594_v7 = vld [vmem:[#allocation4 + $0xac] sm:$0xf]  ;;  %v17811_v15 = vld [vmem:[#allocation4 + $0x76c] sm:$0xf0]  ;;  %v17675_v19 = vld [vmem:[#allocation4 + $0x334] sm:$0xf] }
  0xe1   :  { %2306 = vmatpush.bf16.msrb.mxu3 %v12860_v2  ;;  %2293 = vmatpush.bf16.msrb.mxu1 %v12348_v40  ;;  %v17762_v2 = vld [vmem:[#allocation4 + $0x5e4] sm:$0xf0]  ;;  %v1998_v40 = vpop.f32.mrf.mxu0  ;;  %v11905_v8 = vld [vmem:[#allocation4 + $0xe8] sm:$0xf0]  ;;  %v12169_v39 = vld [vmem:[#allocation4 + $0x2f0] sm:$0xf0] }
  0xe2   :  { %v12544_v11 = vor.u32 %v17762_v2, %v12543_v0  ;;  %v11972_v0 = vor.u32 %v17610_v48, %v11969_v51  ;;  %v12297_v2 = vld [vmem:[#allocation4 + $0x3f0] sm:$0xf0]  ;;  %v12871_v48 = vld [vmem:[#allocation4 + $0x830] sm:$0xf]  ;;  %v12172_v51 = vor.u32 %v17659_v38, %v12169_v39 }
  0xe3   :  { %2314 = vmatpush.bf16.msrb.mxu0 %v12160_v23  ;;  %2365 = vmatpush.bf16.msra.mxu2 %v12740_v20  ;;  %v12481_v23 = vld [vmem:[#allocation4 + $0x568] sm:$0xf0]  ;;  %v12615_v53 = vld [vmem:[#allocation4 + $0x630] sm:$0xf] }
  0xe4   :  { %2294 = vmatmul.bf16.vlgmr.msrb.gmra.mxu1 %v19392_v60  ;;  %v12484_v32 = vor.u32 %v17738_v18, %v12481_v23  ;;  %v17626_v20 = vld [vmem:[#allocation4 + $0x1ac] sm:$0xf]  ;;  %v448_v18 = vperm.slane %v19426_v36, 2  ;;  %v12423_v39 = vld [vmem:[#allocation4 + $0x4b0] sm:$0xf] }
  0xe5   :  { %2325 = vmatpush.bf16.msra.mxu3 %v12800_v10  ;;  %2351 = vmatpush.bf16.msra.mxu1 %v12292_v44  ;;  %v11968_v10 = vor.u32 %v17618_v63, %v11967_v62  ;;  %v12416_v44 = vor.u32 %v17730_v31, %v12415_v30  ;;  %v12036_v45 = vor.u32 %v17626_v20, %v12033_v33  ;;  %v17827_v62 = vld [vmem:[#allocation4 + $0x7ec] sm:$0xf0]  ;;  %v17578_v23 = vld [vmem:[#allocation4 + $0x2c] sm:$0xf] }
  0xe6   :  { %12959 = vmatmul.msk.bf16.vlgmr.msrb.gmra.mxu2 %vm1918_vm0, %v19386_v5  ;;  %v12352_v63 = vor.u32 %v17714_v47, %v12351_v46  ;;  %v17859_v30 = vld [vmem:[#allocation4 + $0x8ec] sm:$0xf0] }
  0xe7   :  { %2315 = vmatpush.bf16.msrb.mxu0 %v12096_v41  ;;  %2366 = vmatpush.bf16.msra.mxu2 %v12676_v49  ;;  %v19029_v41 = vpop.eup %19028  ;;  %v12420_v49 = vor.u32 %v17722_v34, %v12417_v37  ;;  %v17667_v20 = vld [vmem:[#allocation4 + $0x2ec] sm:$0xf0] }
  0xe8   :  { %v12679_v33 = vld [vmem:[#allocation4 + $0x6b0] sm:$0xf] }
  0xe9   :  { %2326 = vmatpush.bf16.msra.mxu3 %v12736_v28  ;;  %2352 = vmatpush.bf16.msra.mxu1 %v12228_v61  ;;  %v19444_v28 = vpop.f32.mrf.mxu2  ;;  %v2009_v58 = vpop.f32.mrf.mxu1  ;;  %v12807_v61 = vld [vmem:[#allocation4 + $0x7b0] sm:$0xf] }
  0xea   :  { %v17795_v34 = vld [vmem:[#allocation4 + $0x6ec] sm:$0xf0]  ;;  %v2010_v40 = vadd.f32 %v2009_v58, %v448_v18 }
  0xeb   :  { %2316 = vmatpush.bf16.msrb.mxu0 %v12032_v55  ;;  %2367 = vmatpush.bf16.msra.mxu2 %v12612_v1  ;;  %v12865_v55 = vld [vmem:[#allocation4 + $0x868] sm:$0xf0]  ;;  %v17691_v1 = vld [vmem:[#allocation4 + $0x3b4] sm:$0xf]  ;;  %v12680_v46 = vor.u32 %v17795_v34, %v12679_v33  ;;  %v17651_v47 = vld [vmem:[#allocation4 + $0x26c] sm:$0xf0] }
  0xec   :  { %12958 = vmatmul.msk.bf16.vlgmr.msrb.gmra.mxu3 %vm1918_vm0, %v19386_v5  ;;  %v12868_v6 = vor.u32 %v17834_v54, %v12865_v55  ;;  %v17779_v54 = vld [vmem:[#allocation4 + $0x66c] sm:$0xf0]  ;;  %v17643_v55 = vld [vmem:[#allocation4 + $0x234] sm:$0xf] }
  0xed   :  { %2327 = vmatpush.bf16.msra.mxu3 %v12672_v43  ;;  %2353 = vmatpush.bf16.msra.mxu1 %v12164_v12  ;;  %v19446_v43 = vpack.c.bf16 %v19029_v41, %v19027_v35  ;;  %v12300_v12 = vor.u32 %v17691_v1, %v12297_v2  ;;  %v12936_v41 = vor.u32 %v17859_v30, %v12935_v29  ;;  %v17787_v29 = vld [vmem:[#allocation4 + $0x6b4] sm:$0xf]  ;;  %v17603_v33 = vld [vmem:[#allocation4 + $0xec] sm:$0xf0] }
  0xee   :  { %v12616_v2 = vor.u32 %v17779_v54, %v12615_v53  ;;  %v12681_v30 = vld [vmem:[#allocation4 + $0x6f0] sm:$0xf0] }
  0xef   :  { %2317 = vmatpush.bf16.msrb.mxu0 %v11968_v10  ;;  %2368 = vmatpush.bf16.msra.mxu2 %v12548_v17  ;;  %v12808_v10 = vor.u32 %v17827_v62, %v12807_v61  ;;  %v2048_v16 = vpop.f32.mrf.mxu0  ;;  %v11908_v17 = vor.u32 %v17594_v7, %v11905_v8  ;;  %v17819_v61 = vld [vmem:[#allocation4 + $0x7b4] sm:$0xf]  ;;  %v12684_v38 = vor.u32 %v17787_v29, %v12681_v30  ;;  %v450_v30 = vperm.slane %v19426_v36, 4 }
  0xf0   :  { %v2049_v37 = vadd.f32 %v2048_v16, %v449_v22  ;;  %v12809_v62 = vld [vmem:[#allocation4 + $0x7f0] sm:$0xf0] }
  0xf1   :  { %2328 = vmatpush.bf16.msra.mxu3 %v12608_v59  ;;  %2354 = vmatpush.bf16.msra.mxu1 %v12100_v27  ;;  %v17699_v59 = vld [vmem:[#allocation4 + $0x3ec] sm:$0xf0]  ;;  %v2037_v3 = vpop.f32.mrf.mxu2  ;;  %v2011_v31 = vpop.f32.mrf.mxu1  ;;  %v12812_v8 = vor.u32 %v17819_v61, %v12809_v62  ;;  %v12553_v61 = vld [vmem:[#allocation4 + $0x5f0] sm:$0xf0] }
  0xf2   :  { %v12296_v9 = vor.u32 %v17699_v59, %v12295_v57  ;;  %v12167_v27 = vld [vmem:[#allocation4 + $0x2b0] sm:$0xf]  ;;  %v12105_v59 = vld [vmem:[#allocation4 + $0x270] sm:$0xf0] }
  0xf3   :  { %2318 = vmatpush.bf16.msrb.mxu0 %v11904_v24  ;;  %2369 = vmatpush.bf16.msra.mxu2 %v12484_v32  ;;  %v11841_v24 = vld [vmem:[#allocation4 + $0x68] sm:$0xf0]  ;;  %v12236_v32 = vor.u32 %v17675_v19, %v12233_v21  ;;  %v12039_v3 = vld [vmem:[#allocation4 + $0x1b0] sm:$0xf]  ;;  %v12108_v7 = vor.u32 %v17643_v55, %v12105_v59  ;;  %v17755_v59 = vld [vmem:[#allocation4 + $0x5b4] sm:$0xf] }
  0xf4   :  { %v11844_v35 = vor.u32 %v17578_v23, %v11841_v24  ;;  %v17619_v19 = vld [vmem:[#allocation4 + $0x16c] sm:$0xf0]  ;;  %v17851_v62 = vld [vmem:[#allocation4 + $0x8b4] sm:$0xf] }
  0xf5   :  { %2329 = vmatpush.bf16.msra.mxu3 %v12544_v11  ;;  %2355 = vmatpush.bf16.msra.mxu1 %v12036_v45  ;;  %v12231_v11 = vld [vmem:[#allocation4 + $0x330] sm:$0xf]  ;;  %v12168_v45 = vor.u32 %v17667_v20, %v12167_v27  ;;  %v11977_v27 = vld [vmem:[#allocation4 + $0x170] sm:$0xf0] }
  0xf6   :  { %v12232_v25 = vor.u32 %v17683_v13, %v12231_v11  ;;  %v17627_v11 = vld [vmem:[#allocation4 + $0x1b4] sm:$0xf]  ;;  %v12487_v23 = vld [vmem:[#allocation4 + $0x530] sm:$0xf] }
  0xf7   :  { %2319 = vmatpush.bf16.msrb.mxu0 %v11840_v42  ;;  %2370 = vmatpush.bf16.msra.mxu2 %v12420_v49  ;;  %v12103_v42 = vld [vmem:[#allocation4 + $0x230] sm:$0xf]  ;;  %v2050_v57 = vpop.f32.mrf.mxu0  ;;  %v12041_v13 = vld [vmem:[#allocation4 + $0x1f0] sm:$0xf0] }
  0xf8   :  { %v17843_v49 = vld [vmem:[#allocation4 + $0x86c] sm:$0xf0]  ;;  %v12104_v1 = vor.u32 %v17651_v47, %v12103_v42  ;;  %v12044_v22 = vor.u32 %v17627_v11, %v12041_v13  ;;  %v17579_v57 = vld [vmem:[#allocation4 + $0x34] sm:$0xf] }
  0xf9   :  { %2330 = vmatpush.bf16.msra.mxu3 %v12480_v26  ;;  %2356 = vmatpush.bf16.msra.mxu1 %v11972_v0  ;;  %v12744_v26 = vor.u32 %v17811_v15, %v12743_v14  ;;  %v2061_v52 = vpop.f32.mrf.mxu2  ;;  %v12872_v0 = vor.u32 %v17843_v49, %v12871_v48  ;;  %v12745_v14 = vld [vmem:[#allocation4 + $0x770] sm:$0xf0]  ;;  %v17747_v24 = vld [vmem:[#allocation4 + $0x56c] sm:$0xf0] }
  0xfa   :  { %2320 = vmatmul.bf16.vlgmr.msrb.gmra.mxu0 %v19390_v56  ;;  %v2062_v58 = vadd.f32 %v2061_v52, %v2049_v37  ;;  %v11911_v20 = vld [vmem:[#allocation4 + $0xb0] sm:$0xf]  ;;  %v17835_v13 = vld [vmem:[#allocation4 + $0x834] sm:$0xf] }
  0xfb   :  { %2383 = vmatpush.bf16.msra.mxu0 %v12932_v50  ;;  %2371 = vmatpush.bf16.msra.mxu2 %v12356_v4  ;;  %v17635_v4 = vld [vmem:[#allocation4 + $0x1ec] sm:$0xf0]  ;;  %v11912_v48 = vor.u32 %v17603_v33, %v11911_v20 }
  0xfc   :  { %v12040_v15 = vor.u32 %v17635_v4, %v12039_v3  ;;  %v12359_v52 = vld [vmem:[#allocation4 + $0x430] sm:$0xf]  ;;  %v12943_v4 = vld [vmem:[#allocation4 + $0x8b8] sm:$0xf] }
  0xfd   :  { %2331 = vmatpush.bf16.msra.mxu3 %v12416_v44  ;;  %2357 = vmatpush.bf16.msra.mxu1 %v11908_v17  ;;  %v2022_v44 = vpop.f32.mrf.mxu3  ;;  %v11975_v17 = vld [vmem:[#allocation4 + $0x130] sm:$0xf] }
  0xfe   :  { %2372 = vmatmul.bf16.vlgmr.msra.gmra.mxu2 %v19392_v60  ;;  %v2023_v50 = vadd.f32 %v2022_v44, %v2010_v40  ;;  %v11976_v31 = vor.u32 %v17619_v19, %v11975_v17  ;;  %v17731_v40 = vld [vmem:[#allocation4 + $0x4ec] sm:$0xf0]  ;;  %v11913_v44 = vld [vmem:[#allocation4 + $0xf0] sm:$0xf0]  ;;  %v12239_v17 = vld [vmem:[#allocation4 + $0x338] sm:$0xf] }
  0xff   :  { %2384 = vmatpush.bf16.msra.mxu0 %v12868_v6  ;;  %2429 = vmatpush.bf16.msrb.mxu2 %v12300_v12  ;;  %v2074_v6 = vpop.f32.mrf.mxu1  ;;  %v12424_v49 = vor.u32 %v17731_v40, %v12423_v39  ;;  %v17715_v55 = vld [vmem:[#allocation4 + $0x46c] sm:$0xf0]  ;;  %v17684_v19 = vld [vmem:[#allocation4 + $0x374] sm:$0xf0] }
 0x100   :  { %v2075_v12 = vadd.f32 %v2074_v6, %v2062_v58  ;;  %v11849_v58 = vld [vmem:[#allocation4 + $0x70] sm:$0xf0]  ;;  %v12360_v3 = vor.u32 %v17715_v55, %v12359_v52  ;;  %v17860_v6 = vld [vmem:[#allocation4 + $0x8f4] sm:$0xf0]  ;;  %v12240_v29 = vor.u32 %v17684_v19, %v12239_v17  ;;  %v17772_v17 = vld [vmem:[#allocation4 + $0x63c] sm:$0xf] }
 0x101   :  { %2332 = vmatpush.bf16.msra.mxu3 %v12352_v63  ;;  %2358 = vmatpush.bf16.msra.mxu1 %v11844_v35  ;;  %v2036_v63 = vadd.f32 %v19444_v28, %v2023_v50  ;;  %v17803_v28 = vld [vmem:[#allocation4 + $0x734] sm:$0xf]  ;;  %v11847_v50 = vld [vmem:[#allocation4 + $0x30] sm:$0xf]  ;;  %v17812_v39 = vld [vmem:[#allocation4 + $0x774] sm:$0xf0] }
 0x102   :  { %v12748_v18 = vor.u32 %v17803_v28, %v12745_v14  ;;  %v12873_v28 = vld [vmem:[#allocation4 + $0x870] sm:$0xf0]  ;;  %v17652_v55 = vld [vmem:[#allocation4 + $0x274] sm:$0xf0]  ;;  %v12625_v19 = vld [vmem:[#allocation4 + $0x678] sm:$0xf0] }
 0x103   :  { %2403 = vmatpush.bf16.msrb.mxu0 %v12808_v10  ;;  %2430 = vmatpush.bf16.msrb.mxu2 %v12236_v32  ;;  %v17763_v10 = vld [vmem:[#allocation4 + $0x5ec] sm:$0xf0]  ;;  %19030 = vtanh.f32 %v2036_v63  ;;  %v12488_v32 = vor.u32 %v17747_v24, %v12487_v23  ;;  %v12937_v63 = vld [vmem:[#allocation4 + $0x8f0] sm:$0xf0]  ;;  %v17828_v23 = vld [vmem:[#allocation4 + $0x7f4] sm:$0xf0] }
 0x104   :  { %2333 = vmatmul.bf16.vlgmr.msra.gmra.mxu3 %v19392_v60  ;;  %2359 = vmatmul.bf16.vlgmr.msra.gmra.mxu1 %v19390_v56  ;;  %19032 = vtanh.f32 %v2075_v12  ;;  %v12489_v12 = vld [vmem:[#allocation4 + $0x570] sm:$0xf0] }
 0x105   :  { %2390 = vmatpush.bf16.msrb.mxu3 %v12296_v9  ;;  %2422 = vmatpush.bf16.msrb.mxu1 %v12936_v41  ;;  %v12551_v9 = vld [vmem:[#allocation4 + $0x5b0] sm:$0xf]  ;;  %v2024_v21 = vpop.f32.mrf.mxu3  ;;  %v17595_v41 = vld [vmem:[#allocation4 + $0xb4] sm:$0xf] }
 0x106   :  { %v12552_v16 = vor.u32 %v17763_v10, %v12551_v9  ;;  %v11916_v53 = vor.u32 %v17595_v41, %v11913_v44  ;;  %v17739_v9 = vld [vmem:[#allocation4 + $0x534] sm:$0xf]  ;;  %v12940_v10 = vor.u32 %v17851_v62, %v12937_v63  ;;  %v12879_v21 = vld [vmem:[#allocation4 + $0x838] sm:$0xf]  ;;  %v12753_v44 = vld [vmem:[#allocation4 + $0x778] sm:$0xf0] }
 0x107   :  { %2404 = vmatpush.bf16.msrb.mxu0 %v12744_v26  ;;  %2431 = vmatpush.bf16.msrb.mxu2 %v12172_v51  ;;  %v2063_v26 = vpop.f32.mrf.mxu2  ;;  %v2076_v35 = vpop.f32.mrf.mxu1  ;;  %v17587_v51 = vld [vmem:[#allocation4 + $0x6c] sm:$0xf0]  ;;  %v12492_v24 = vor.u32 %v17739_v9, %v12489_v12  ;;  %v12687_v62 = vld [vmem:[#allocation4 + $0x6b8] sm:$0xf] }
 0x108   :  { %v12817_v26 = vld [vmem:[#allocation4 + $0x7f8] sm:$0xf0]  ;;  %v17668_v35 = vld [vmem:[#allocation4 + $0x2f4] sm:$0xf0] }
 0x109   :  { %2391 = vmatpush.bf16.msrb.mxu3 %v12232_v25  ;;  %2423 = vmatpush.bf16.msrb.mxu1 %v12872_v0  ;;  %v17611_v25 = vld [vmem:[#allocation4 + $0x134] sm:$0xf]  ;;  %v19031_v34 = vpop.eup %19030  ;;  %v12303_v0 = vld [vmem:[#allocation4 + $0x3b8] sm:$0xf] }
 0x10a   :  { %12960 = vmatmul.msk.bf16.vlgmr.msra.gmra.mxu0 %vm1918_vm0, %v19386_v5  ;;  %v11980_v37 = vor.u32 %v17611_v25, %v11977_v27  ;;  %v19033_v42 = vpop.eup %19032  ;;  %v17820_v25 = vld [vmem:[#allocation4 + $0x7bc] sm:$0xf]  ;;  %v12876_v27 = vor.u32 %v17835_v13, %v12873_v28  ;;  %v17796_v63 = vld [vmem:[#allocation4 + $0x6f4] sm:$0xf0] }
 0x10b   :  { %2405 = vmatpush.bf16.msrb.mxu0 %v12680_v46  ;;  %2432 = vmatpush.bf16.msrb.mxu2 %v12108_v7  ;;  %v12617_v46 = vld [vmem:[#allocation4 + $0x670] sm:$0xf0]  ;;  %v19457_v47 = vpack.c.bf16 %v19033_v42, %v19031_v34  ;;  %v11852_v7 = vor.u32 %v17579_v57, %v11849_v58  ;;  %v12175_v34 = vld [vmem:[#allocation4 + $0x2b8] sm:$0xf]  ;;  %v17804_v42 = vld [vmem:[#allocation4 + $0x73c] sm:$0xf] }
 0x10c   :  { %v17692_v57 = vld [vmem:[#allocation4 + $0x3bc] sm:$0xf]  ;;  %v17636_v9 = vld [vmem:[#allocation4 + $0x1f4] sm:$0xf0] }
 0x10d   :  { %2392 = vmatpush.bf16.msrb.mxu3 %v12168_v45  ;;  %2442 = vmatpush.bf16.msra.mxu1 %v12812_v8  ;;  %v17771_v45 = vld [vmem:[#allocation4 + $0x634] sm:$0xf]  ;;  %v12556_v8 = vor.u32 %v17755_v59, %v12553_v61  ;;  %v12305_v58 = vld [vmem:[#allocation4 + $0x3f8] sm:$0xf0]  ;;  %v12756_v59 = vor.u32 %v17804_v42, %v12753_v44  ;;  %v12623_v13 = vld [vmem:[#allocation4 + $0x638] sm:$0xf] }
 0x10e   :  { %v12620_v54 = vor.u32 %v17771_v45, %v12617_v46  ;;  %v17780_v28 = vld [vmem:[#allocation4 + $0x674] sm:$0xf0] }
 0x10f   :  { %2406 = vmatpush.bf16.msrb.mxu0 %v12616_v2  ;;  %2433 = vmatpush.bf16.msrb.mxu2 %v12044_v22  ;;  %v11848_v2 = vor.u32 %v17587_v51, %v11847_v50  ;;  %v2100_v14 = vpop.f32.mrf.mxu0  ;;  %v17844_v22 = vld [vmem:[#allocation4 + $0x874] sm:$0xf0]  ;;  %v12361_v50 = vld [vmem:[#allocation4 + $0x470] sm:$0xf0] }
 0x110   :  { %v12880_v20 = vor.u32 %v17844_v22, %v12879_v21  ;;  %v12111_v51 = vld [vmem:[#allocation4 + $0x238] sm:$0xf] }
 0x111   :  { %2393 = vmatpush.bf16.msrb.mxu3 %v12104_v1  ;;  %2443 = vmatpush.bf16.msra.mxu1 %v12748_v18  ;;  %v17700_v1 = vld [vmem:[#allocation4 + $0x3f4] sm:$0xf0]  ;;  %v2126_v46 = vpop.f32.mrf.mxu2 }
 0x112   :  { %v12304_v11 = vor.u32 %v17700_v1, %v12303_v0  ;;  %v12815_v18 = vld [vmem:[#allocation4 + $0x7b8] sm:$0xf]  ;;  %v17788_v1 = vld [vmem:[#allocation4 + $0x6bc] sm:$0xf] }
 0x113   :  { %2407 = vmatpush.bf16.msrb.mxu0 %v12552_v16  ;;  %2434 = vmatpush.bf16.msrb.mxu2 %v11980_v37  ;;  %v19461_v16 = vpop.f32.mrf.mxu1  ;;  %v12816_v33 = vor.u32 %v17828_v23, %v12815_v18  ;;  %v12820_v37 = vor.u32 %v17820_v25, %v12817_v26  ;;  %v11983_v18 = vld [vmem:[#allocation4 + $0x138] sm:$0xf]  ;;  %v12624_v23 = vor.u32 %v17780_v28, %v12623_v13  ;;  %v17660_v25 = vld [vmem:[#allocation4 + $0x2bc] sm:$0xf] }
 0x114   :  { %12961 = vmatmul.msk.bf16.vlgmr.msrb.gmra.mxu1 %vm1918_vm0, %v19386_v5  ;;  %v12177_v26 = vld [vmem:[#allocation4 + $0x2f8] sm:$0xf0]  ;;  %v12495_v42 = vld [vmem:[#allocation4 + $0x538] sm:$0xf] }
 0x115   :  { %2394 = vmatpush.bf16.msrb.mxu3 %v12040_v15  ;;  %2444 = vmatpush.bf16.msra.mxu1 %v12684_v38  ;;  %v12944_v15 = vor.u32 %v17860_v6, %v12943_v4  ;;  %v12751_v38 = vld [vmem:[#allocation4 + $0x738] sm:$0xf]  ;;  %v12112_v4 = vor.u32 %v17652_v55, %v12111_v51  ;;  %v12308_v6 = vor.u32 %v17692_v57, %v12305_v58  ;;  %v17612_v13 = vld [vmem:[#allocation4 + $0x13c] sm:$0xf] }
 0x116   :  { %v17748_v44 = vld [vmem:[#allocation4 + $0x574] sm:$0xf0]  ;;  %v17708_v28 = vld [vmem:[#allocation4 + $0x43c] sm:$0xf] }
 0x117   :  { %2408 = vmatpush.bf16.msrb.mxu0 %v12488_v32  ;;  %2435 = vmatpush.bf16.msrb.mxu2 %v11916_v53  ;;  %v12425_v32 = vld [vmem:[#allocation4 + $0x4f0] sm:$0xf0]  ;;  %v2087_v40 = vpop.f32.mrf.mxu3  ;;  %v2102_v52 = vpop.f32.mrf.mxu0  ;;  %v12752_v53 = vor.u32 %v17812_v39, %v12751_v38  ;;  %v17604_v38 = vld [vmem:[#allocation4 + $0xf4] sm:$0xf0]  ;;  %v17644_v39 = vld [vmem:[#allocation4 + $0x23c] sm:$0xf]  ;;  %v12496_v55 = vor.u32 %v17748_v44, %v12495_v42 }
 0x118   :  { %v2088_v45 = vadd.f32 %v2087_v40, %v450_v30  ;;  %v17764_v30 = vld [vmem:[#allocation4 + $0x5f4] sm:$0xf0]  ;;  %v12113_v40 = vld [vmem:[#allocation4 + $0x278] sm:$0xf0]  ;;  %v13415_v42 = vld [vmem:[#allocation7 + $0x380] sm:$0xf] }
 0x119   :  { %2395 = vmatpush.bf16.msrb.mxu3 %v11976_v31  ;;  %2445 = vmatpush.bf16.msra.mxu1 %v12620_v54  ;;  %v17723_v31 = vld [vmem:[#allocation4 + $0x4b4] sm:$0xf]  ;;  %v12116_v51 = vor.u32 %v17644_v39, %v12113_v40  ;;  %v11855_v52 = vld [vmem:[#allocation4 + $0x38] sm:$0xf]  ;;  %v13159_v40 = vld [vmem:[#allocation7 + $0x180] sm:$0xf] }
 0x11a   :  { %v12428_v41 = vor.u32 %v17723_v31, %v12425_v32  ;;  %v2101_v61 = vadd.f32 %v2100_v14, %v2088_v45  ;;  %v451_v14 = vperm.slane %v19426_v36, 5  ;;  %v12559_v36 = vld [vmem:[#allocation4 + $0x5b8] sm:$0xf]  ;;  %v17756_v32 = vld [vmem:[#allocation4 + $0x5bc] sm:$0xf] }
 0x11b   :  { %2409 = vmatpush.bf16.msrb.mxu0 %v12424_v49  ;;  %2436 = vmatpush.bf16.msrb.mxu2 %v11852_v7  ;;  %v17707_v49 = vld [vmem:[#allocation4 + $0x434] sm:$0xf]  ;;  %v2115_v54 = vpop.f32.mrf.mxu1  ;;  %v12047_v7 = vld [vmem:[#allocation4 + $0x1b8] sm:$0xf] }
 0x11c   :  { %v12364_v0 = vor.u32 %v17707_v49, %v12361_v50  ;;  %v12048_v21 = vor.u32 %v17636_v9, %v12047_v7  ;;  %v2127_v31 = vadd.f32 %v2126_v46, %v451_v14  ;;  %v17740_v46 = vld [vmem:[#allocation4 + $0x53c] sm:$0xf]  ;;  %v12431_v58 = vld [vmem:[#allocation4 + $0x4b8] sm:$0xf] }
 0x11d   :  { %2396 = vmatpush.bf16.msrb.mxu3 %v11912_v48  ;;  %2446 = vmatpush.bf16.msra.mxu1 %v12556_v8  ;;  %v12176_v48 = vor.u32 %v17668_v35, %v12175_v34  ;;  %v12688_v8 = vor.u32 %v17796_v63, %v12687_v62  ;;  %v12180_v34 = vor.u32 %v17660_v25, %v12177_v26  ;;  %v11919_v35 = vld [vmem:[#allocation4 + $0xb8] sm:$0xf]  ;;  %v17985_v25 = vld [vmem:[#allocation7 + $0x3dc] sm:$0xf0] }
 0x11e   :  { %2437 = vmatmul.bf16.vlgmr.msrb.gmra.mxu2 %v19390_v56  ;;  %v11920_v50 = vor.u32 %v17604_v38, %v11919_v35  ;;  %v17732_v63 = vld [vmem:[#allocation4 + $0x4f4] sm:$0xf0]  ;;  %v13959_v26 = vld [vmem:[#allocation7 + $0x7c0] sm:$0xf] }
 0x11f   :  { %2410 = vmatpush.bf16.msrb.mxu0 %v12360_v3  ;;  %2500 = vmatpush.bf16.msra.mxu2 %v12944_v15  ;;  %v19468_v3 = vadd.f32 %v19461_v16, %v2101_v61  ;;  %v2089_v15 = vpop.f32.mrf.mxu3  ;;  %v2128_v16 = vpop.f32.mrf.mxu2  ;;  %v12049_v61 = vld [vmem:[#allocation4 + $0x1f8] sm:$0xf0]  ;;  %v12367_v9 = vld [vmem:[#allocation4 + $0x438] sm:$0xf] }
 0x120   :  { %v12881_v16 = vld [vmem:[#allocation4 + $0x878] sm:$0xf0] }
 0x121   :  { %2397 = vmatpush.bf16.msrb.mxu3 %v11848_v2  ;;  %2447 = vmatpush.bf16.msra.mxu1 %v12492_v24  ;;  %v12689_v2 = vld [vmem:[#allocation4 + $0x6f8] sm:$0xf0]  ;;  %v17620_v24 = vld [vmem:[#allocation4 + $0x174] sm:$0xf0]  ;;  %19034 = vtanh.f32 %v19468_v3 }
 0x122   :  { %2411 = vmatmul.bf16.vlgmr.msrb.gmra.mxu0 %v19392_v60  ;;  %v12692_v12 = vor.u32 %v17788_v1, %v12689_v2  ;;  %v12945_v1 = vld [vmem:[#allocation4 + $0x8f8] sm:$0xf0] }
 0x123   :  { %2468 = vmatpush.bf16.msra.mxu0 %v12304_v11  ;;  %2501 = vmatpush.bf16.msra.mxu2 %v12880_v20  ;;  %v12241_v11 = vld [vmem:[#allocation4 + $0x378] sm:$0xf0] }
 0x124   :  { %2398 = vmatmul.bf16.vlgmr.msrb.gmra.mxu3 %v19390_v56  ;;  %v12561_v20 = vld [vmem:[#allocation4 + $0x5f8] sm:$0xf0] }
 0x125   :  { %2461 = vmatpush.bf16.msra.mxu3 %v12940_v10  ;;  %2448 = vmatpush.bf16.msra.mxu1 %v12428_v41  ;;  %v17676_v10 = vld [vmem:[#allocation4 + $0x33c] sm:$0xf]  ;;  %v12564_v41 = vor.u32 %v17756_v32, %v12561_v20 }
 0x126   :  { %v12244_v22 = vor.u32 %v17676_v10, %v12241_v11  ;;  %v17716_v10 = vld [vmem:[#allocation4 + $0x474] sm:$0xf0]  ;;  %v12432_v11 = vor.u32 %v17732_v63, %v12431_v58  ;;  %v11985_v3 = vld [vmem:[#allocation4 + $0x178] sm:$0xf0] }
 0x127   :  { %2469 = vmatpush.bf16.msra.mxu0 %v12240_v29  ;;  %2520 = vmatpush.bf16.msrb.mxu2 %v12820_v37  ;;  %v2139_v29 = vpop.f32.mrf.mxu1  ;;  %v12560_v37 = vor.u32 %v17764_v30, %v12559_v36  ;;  %v2152_v49 = vpop.f32.mrf.mxu3  ;;  %v12368_v30 = vor.u32 %v17716_v10, %v12367_v9  ;;  %v17596_v20 = vld [vmem:[#allocation4 + $0xbc] sm:$0xf]  ;;  %v13671_v9 = vld [vmem:[#allocation7 + $0x580] sm:$0xf] }
 0x128   :  { %v2140_v45 = vadd.f32 %v2139_v29, %v2127_v31  ;;  %v19476_v57 = vpop.f32.mrf.mxu2  ;;  %v18041_v10 = vld [vmem:[#allocation7 + $0x59c] sm:$0xf0] }
 0x129   :  { %2462 = vmatpush.bf16.msra.mxu3 %v12876_v27  ;;  %2449 = vmatpush.bf16.msra.mxu1 %v12364_v0  ;;  %v12628_v27 = vor.u32 %v17772_v17, %v12625_v19  ;;  %v17852_v0 = vld [vmem:[#allocation4 + $0x8bc] sm:$0xf] }
 0x12a   :  { %v2153_v54 = vadd.f32 %v2152_v49, %v2140_v45  ;;  %v12369_v17 = vld [vmem:[#allocation4 + $0x478] sm:$0xf0]  ;;  %v17977_v45 = vld [vmem:[#allocation7 + $0x39c] sm:$0xf0] }
 0x12b   :  { %2470 = vmatpush.bf16.msra.mxu0 %v12176_v48  ;;  %2521 = vmatpush.bf16.msrb.mxu2 %v12756_v59  ;;  %v12497_v48 = vld [vmem:[#allocation4 + $0x578] sm:$0xf0]  ;;  %v12372_v35 = vor.u32 %v17708_v28, %v12369_v17  ;;  %v13351_v28 = vld [vmem:[#allocation7 + $0x300] sm:$0xf] }
 0x12c   :  { %2450 = vmatmul.bf16.vlgmr.msra.gmra.mxu1 %v19392_v60  ;;  %v17628_v59 = vld [vmem:[#allocation4 + $0x1bc] sm:$0xf]  ;;  %v12500_v62 = vor.u32 %v17740_v46, %v12497_v48  ;;  %19036 = vtanh.f32 %v2153_v54  ;;  %v13927_v46 = vld [vmem:[#allocation7 + $0x780] sm:$0xf] }
 0x12d   :  { %2481 = vmatpush.bf16.msrb.mxu3 %v12816_v33  ;;  %2507 = vmatpush.bf16.msrb.mxu1 %v12308_v6  ;;  %v11984_v33 = vor.u32 %v17620_v24, %v11983_v18  ;;  %v12433_v6 = vld [vmem:[#allocation4 + $0x4f8] sm:$0xf0]  ;;  %v13447_v18 = vld [vmem:[#allocation7 + $0x3c0] sm:$0xf]  ;;  %v11988_v24 = vor.u32 %v17612_v13, %v11985_v3 }
 0x12e   :  { %12963 = vmatmul.msk.bf16.vlgmr.msra.gmra.mxu2 %vm1918_vm0, %v19386_v5  ;;  %v17836_v19 = vld [vmem:[#allocation4 + $0x83c] sm:$0xf]  ;;  %v13448_v38 = vor.u32 %v17985_v25, %v13447_v18  ;;  %v18105_v48 = vld [vmem:[#allocation7 + $0x79c] sm:$0xf0] }
 0x12f   :  { %2471 = vmatpush.bf16.msra.mxu0 %v12112_v4  ;;  %2522 = vmatpush.bf16.msrb.mxu2 %v12692_v12  ;;  %v2141_v2 = vpop.f32.mrf.mxu1  ;;  %v17724_v4 = vld [vmem:[#allocation4 + $0x4bc] sm:$0xf]  ;;  %v12948_v12 = vor.u32 %v17852_v0, %v12945_v1  ;;  %v19479_v15 = vpop.f32.mrf.mxu0  ;;  %v12884_v31 = vor.u32 %v17836_v19, %v12881_v16  ;;  %v18049_v54 = vld [vmem:[#allocation7 + $0x5dc] sm:$0xf0]  ;;  %v13928_v58 = vor.u32 %v18105_v48, %v13927_v46 }
 0x130   :  { %v12436_v14 = vor.u32 %v17724_v4, %v12433_v6  ;;  %v2154_v29 = vpop.f32.mrf.mxu3  ;;  %v2193_v32 = vpop.f32.mrf.mxu2  ;;  %v17580_v49 = vld [vmem:[#allocation4 + $0x3c] sm:$0xf]  ;;  %v17969_v0 = vld [vmem:[#allocation7 + $0x35c] sm:$0xf0]  ;;  %v13672_v16 = vor.u32 %v18041_v10, %v13671_v9 }
 0x131   :  { %2482 = vmatpush.bf16.msrb.mxu3 %v12752_v53  ;;  %2508 = vmatpush.bf16.msrb.mxu1 %v12244_v22  ;;  %v17588_v53 = vld [vmem:[#allocation4 + $0x74] sm:$0xf0]  ;;  %v17921_v22 = vld [vmem:[#allocation7 + $0x1dc] sm:$0xf0] }
 0x132   :  { %v11856_v7 = vor.u32 %v17588_v53, %v11855_v52  ;;  %v13703_v53 = vld [vmem:[#allocation7 + $0x5c0] sm:$0xf] }
 0x133   :  { %2472 = vmatpush.bf16.msra.mxu0 %v12048_v21  ;;  %2523 = vmatpush.bf16.msrb.mxu2 %v12628_v27  ;;  %v13191_v21 = vld [vmem:[#allocation7 + $0x1c0] sm:$0xf]  ;;  %v13704_v4 = vor.u32 %v18049_v54, %v13703_v53 }
 0x134   :  { %12962 = vmatmul.msk.bf16.vlgmr.msra.gmra.mxu3 %vm1918_vm0, %v19386_v5  ;;  %v18113_v27 = vld [vmem:[#allocation7 + $0x7dc] sm:$0xf0] }
 0x135   :  { %2483 = vmatpush.bf16.msrb.mxu3 %v12688_v8  ;;  %2509 = vmatpush.bf16.msrb.mxu1 %v12180_v34  ;;  %v12052_v8 = vor.u32 %v17628_v59, %v12049_v61  ;;  %v13960_v39 = vor.u32 %v18113_v27, %v13959_v26  ;;  %v13127_v59 = vld [vmem:[#allocation7 + $0x140] sm:$0xf] }
 0x136   :  { %v17905_v61 = vld [vmem:[#allocation7 + $0x15c] sm:$0xf0] }
 0x137   :  { %2473 = vmatpush.bf16.msra.mxu0 %v11984_v33  ;;  %2524 = vmatpush.bf16.msrb.mxu2 %v12564_v41  ;;  %v11921_v33 = vld [vmem:[#allocation4 + $0xf8] sm:$0xf0]  ;;  %v17913_v41 = vld [vmem:[#allocation7 + $0x19c] sm:$0xf0]  ;;  %v2167_v52 = vpop.f32.mrf.mxu0 }
 0x138   :  { %v11924_v44 = vor.u32 %v17596_v20, %v11921_v33  ;;  %v13895_v1 = vld [vmem:[#allocation7 + $0x740] sm:$0xf] }
 0x139   :  { %2484 = vmatpush.bf16.msrb.mxu3 %v12624_v23  ;;  %2510 = vmatpush.bf16.msrb.mxu1 %v12116_v51  ;;  %v19035_v23 = vpop.eup %19034  ;;  %v13160_v51 = vor.u32 %v17913_v41, %v13159_v40  ;;  %v18097_v2 = vld [vmem:[#allocation7 + $0x75c] sm:$0xf0] }
 0x13a   :  { %v19037_v36 = vpop.eup %19036  ;;  %v13095_v13 = vld [vmem:[#allocation7 + $0x100] sm:$0xf] }
 0x13b   :  { %2474 = vmatpush.bf16.msra.mxu0 %v11920_v50  ;;  %2525 = vmatpush.bf16.msrb.mxu2 %v12500_v62  ;;  %v19481_v34 = vpack.c.bf16 %v19037_v36, %v19035_v23  ;;  %v11857_v50 = vld [vmem:[#allocation4 + $0x78] sm:$0xf0]  ;;  %v13383_v62 = vld [vmem:[#allocation7 + $0x340] sm:$0xf] }
 0x13c   :  { %v11860_v63 = vor.u32 %v17580_v49, %v11857_v50  ;;  %v17897_v3 = vld [vmem:[#allocation7 + $0x11c] sm:$0xf0] }
 0x13d   :  { %2485 = vmatpush.bf16.msrb.mxu3 %v12560_v37  ;;  %2511 = vmatpush.bf16.msrb.mxu1 %v12052_v8  ;;  %v13192_v37 = vor.u32 %v17921_v22, %v13191_v21  ;;  %v19488_v8 = vpop.f32.mrf.mxu2  ;;  %v13863_v17 = vld [vmem:[#allocation7 + $0x700] sm:$0xf]  ;;  %v13096_v21 = vor.u32 %v17897_v3, %v13095_v13 }
 0x13e   :  { %v18089_v19 = vld [vmem:[#allocation7 + $0x71c] sm:$0xf0] }
 0x13f   :  { %2475 = vmatpush.bf16.msra.mxu0 %v11856_v7  ;;  %2526 = vmatpush.bf16.msrb.mxu2 %v12436_v14  ;;  %v19486_v6 = vpop.f32.mrf.mxu3  ;;  %v13128_v7 = vor.u32 %v17905_v61, %v13127_v59  ;;  %v19490_v14 = vpop.f32.mrf.mxu1  ;;  %v13639_v22 = vld [vmem:[#allocation7 + $0x540] sm:$0xf] }
 0x140   :  { %v18033_v18 = vld [vmem:[#allocation7 + $0x55c] sm:$0xf0]  ;;  %v19493_v29 = vpop.f32.mrf.mxu0 }
 0x141   :  { %2486 = vmatpush.bf16.msrb.mxu3 %v12496_v55  ;;  %2512 = vmatpush.bf16.msrb.mxu1 %v11988_v24  ;;  %v13416_v55 = vor.u32 %v17977_v45, %v13415_v42  ;;  %v13864_v24 = vor.u32 %v18089_v19, %v13863_v17  ;;  %v13063_v25 = vld [vmem:[#allocation7 + $0xc0] sm:$0xf]  ;;  %v13640_v32 = vor.u32 %v18033_v18, %v13639_v22  ;;  %v3104_v18 = vunpack.c.l.b16 %v19446_v43 }
 0x142   :  { %2476 = vmatmul.bf16.vlgmr.msra.gmra.mxu0 %v19390_v56  ;;  %v17889_v26 = vld [vmem:[#allocation7 + $0xdc] sm:$0xf0] }
 0x143   :  { %2539 = vmatpush.bf16.msrb.mxu0 %v12948_v12  ;;  %2527 = vmatpush.bf16.msrb.mxu2 %v12372_v35  ;;  %v13896_v12 = vor.u32 %v18097_v2, %v13895_v1  ;;  %v13319_v27 = vld [vmem:[#allocation7 + $0x2c0] sm:$0xf]  ;;  %v13064_v33 = vor.u32 %v17889_v26, %v13063_v25  ;;  %v3105_v26 = vunpack.c.h.b16 %v19446_v43  ;;  %v19502_v43 = vld [vmem:[#allocation6 + $0x8] sm:$0xff] }
 0x144   :  { %v17953_v36 = vld [vmem:[#allocation7 + $0x2dc] sm:$0xf0] }
 0x145   :  { %2487 = vmatpush.bf16.msrb.mxu3 %v12432_v11  ;;  %2513 = vmatpush.bf16.msrb.mxu1 %v11924_v44  ;;  %v13384_v11 = vor.u32 %v17969_v0, %v13383_v62  ;;  %v13607_v35 = vld [vmem:[#allocation7 + $0x500] sm:$0xf] }
 0x146   :  { %2528 = vmatmul.bf16.vlgmr.msrb.gmra.mxu2 %v19392_v60  ;;  %v13031_v41 = vld [vmem:[#allocation7 + $0x80] sm:$0xf] }
 0x147   :  { %2540 = vmatpush.bf16.msrb.mxu0 %v12884_v31  ;;  %5727 = vmatpush.bf16.msra.mxu2 %v13960_v39  ;;  %v18081_v31 = vld [vmem:[#allocation7 + $0x6dc] sm:$0xf0]  ;;  %v2180_v20 = vpop.f32.mrf.mxu3  ;;  %v13320_v39 = vor.u32 %v17953_v36, %v13319_v27  ;;  %v2206_v44 = vpop.f32.mrf.mxu1  ;;  %v19090_v27 = vld [vmem:[#allocation6] sm:$0xff] }
 0x148   :  { %v17881_v42 = vld [vmem:[#allocation7 + $0x9c] sm:$0xf0]  ;;  %v453_v36 = vperm.slane %v19090_v27, 7  ;;  %v3107_v20 = vunpack.c.h.b16 %v19457_v47  ;;  %v19504_v44 = vpack.c.b16 %v3104_v18, %v3104_v18 }
 0x149   :  { %2488 = vmatpush.bf16.msrb.mxu3 %v12368_v30  ;;  %2514 = vmatpush.bf16.msrb.mxu1 %v11860_v63  ;;  %v13831_v30 = vld [vmem:[#allocation7 + $0x6c0] sm:$0xf]  ;;  %v13032_v50 = vor.u32 %v17881_v42, %v13031_v41  ;;  %v2232_v63 = vpop.f32.mrf.mxu0 }
 0x14a   :  { %v13832_v40 = vor.u32 %v18081_v31, %v13831_v30  ;;  %v17945_v45 = vld [vmem:[#allocation7 + $0x29c] sm:$0xf0] }
 0x14b   :  { %5701 = vmatpush.bf16.msra.mxu0 %v13448_v38  ;;  %5728 = vmatpush.bf16.msra.mxu2 %v13928_v58  ;;  %v2219_v38 = vpop.f32.mrf.mxu2  ;;  %v13799_v46 = vld [vmem:[#allocation7 + $0x680] sm:$0xf] }
 0x14c   :  { %2489 = vmatmul.bf16.vlgmr.msrb.gmra.mxu3 %v19392_v60  ;;  %v17961_v60 = vld [vmem:[#allocation7 + $0x31c] sm:$0xf0]  ;;  %2515 = vmatmul.bf16.vlgmr.msrb.gmra.mxu1 %v19390_v56 }
 0x14d   :  { %5688 = vmatpush.bf16.msra.mxu3 %v13192_v37  ;;  %5714 = vmatpush.bf16.msra.mxu1 %v13704_v4  ;;  %v13352_v23 = vor.u32 %v17961_v60, %v13351_v28  ;;  %v18025_v37 = vld [vmem:[#allocation7 + $0x51c] sm:$0xf0] }
 0x14e   :  { %v13287_v56 = vld [vmem:[#allocation7 + $0x280] sm:$0xf]  ;;  %v13608_v49 = vor.u32 %v18025_v37, %v13607_v35 }
 0x14f   :  { %5702 = vmatpush.bf16.msra.mxu0 %v13416_v55  ;;  %5729 = vmatpush.bf16.msra.mxu2 %v13896_v12  ;;  %v18073_v48 = vld [vmem:[#allocation7 + $0x69c] sm:$0xf0]  ;;  %v13288_v53 = vor.u32 %v17945_v45, %v13287_v56  ;;  %v19497_v22 = vpop.f32.mrf.mxu1 }
 0x150   :  { %v18017_v52 = vld [vmem:[#allocation7 + $0x4dc] sm:$0xf0]  ;;  %v13800_v54 = vor.u32 %v18073_v48, %v13799_v46 }
 0x151   :  { %5689 = vmatpush.bf16.msra.mxu3 %v13160_v51  ;;  %5715 = vmatpush.bf16.msra.mxu1 %v13672_v16  ;;  %v13575_v51 = vld [vmem:[#allocation7 + $0x4c0] sm:$0xf] }
 0x152   :  { %12964 = vmatmul.msk.bf16.vlgmr.msrb.gmra.mxu0 %vm1918_vm0, %v19386_v5  ;;  %v12999_v55 = vld [vmem:[#allocation7 + $0x40] sm:$0xf]  ;;  %v13576_v0 = vor.u32 %v18017_v52, %v13575_v51 }
 0x153   :  { %5703 = vmatpush.bf16.msra.mxu0 %v13384_v11  ;;  %5730 = vmatpush.bf16.msra.mxu2 %v13864_v24  ;;  %v17873_v58 = vld [vmem:[#allocation7 + $0x5c] sm:$0xf0] }
 0x154   :  { %v13255_v59 = vld [vmem:[#allocation7 + $0x240] sm:$0xf]  ;;  %v13000_v1 = vor.u32 %v17873_v58, %v12999_v55 }
 0x155   :  { %5690 = vmatpush.bf16.msra.mxu3 %v13128_v7  ;;  %5716 = vmatpush.bf16.msra.mxu1 %v13640_v32  ;;  %v17937_v61 = vld [vmem:[#allocation7 + $0x25c] sm:$0xf0] }
 0x156   :  { %v13767_v62 = vld [vmem:[#allocation7 + $0x640] sm:$0xf]  ;;  %v13256_v9 = vor.u32 %v17937_v61, %v13255_v59  ;;  %v454_v59 = vperm.slane %v19502_v43, 0 }
 0x157   :  { %5704 = vmatpush.bf16.msra.mxu0 %v13352_v23  ;;  %5731 = vmatpush.bf16.msra.mxu2 %v13832_v40  ;;  %v18065_v5 = vld [vmem:[#allocation7 + $0x65c] sm:$0xf0]  ;;  %v452_v40 = vperm.slane %v19090_v27, 6  ;;  %v2256_v48 = vpop.f32.mrf.mxu0 }
 0x158   :  { %v12967_v2 = vld [vmem:[#allocation7] sm:$0xf]  ;;  %v13768_v10 = vor.u32 %v18065_v5, %v13767_v62 }
 0x159   :  { %5691 = vmatpush.bf16.msra.mxu3 %v13096_v21  ;;  %5717 = vmatpush.bf16.msra.mxu1 %v13608_v49  ;;  %v13543_v4 = vld [vmem:[#allocation7 + $0x480] sm:$0xf]  ;;  %v19506_v49 = vpack.c.b16 %v3105_v26, %v3105_v26  ;;  %v2166_v5 = vadd.f32 %v19479_v15, %v452_v40 }
 0x15a   :  { %v18009_v7 = vld [vmem:[#allocation7 + $0x49c] sm:$0xf0] }
 0x15b   :  { %5705 = vmatpush.bf16.msra.mxu0 %v13320_v39  ;;  %5732 = vmatpush.bf16.msra.mxu2 %v13800_v54  ;;  %v17865_v11 = vld [vmem:[#allocation7 + $0x1c] sm:$0xf0]  ;;  %v13544_v17 = vor.u32 %v18009_v7, %v13543_v4  ;;  %v19509_v54 = vpack.c.b16 %v3107_v20, %v3107_v20 }
 0x15c   :  { %v13223_v12 = vld [vmem:[#allocation7 + $0x200] sm:$0xf]  ;;  %v12968_v23 = vor.u32 %v17865_v11, %v12967_v2  ;;  %v2271_v2 = vpop.f32.mrf.mxu1 }
 0x15d   :  { %5692 = vmatpush.bf16.msra.mxu3 %v13064_v33  ;;  %v17929_v13 = vld [vmem:[#allocation7 + $0x21c] sm:$0xf0]  ;;  %5718 = vmatpush.bf16.msra.mxu1 %v13576_v0 }
 0x15e   :  { %v13735_v3 = vld [vmem:[#allocation7 + $0x600] sm:$0xf]  ;;  %v13224_v30 = vor.u32 %v17929_v13, %v13223_v12 }
 0x15f   :  { %5706 = vmatpush.bf16.msra.mxu0 %v13288_v53  ;;  %v18057_v28 = vld [vmem:[#allocation7 + $0x61c] sm:$0xf0]  ;;  %5733 = vmatpush.bf16.msra.mxu2 %v13768_v10  ;;  %v3106_v10 = vunpack.c.l.b16 %v19457_v47  ;;  %v2243_v15 = vpop.f32.mrf.mxu3 }
 0x160   :  { %v14215_v60 = vld [vmem:[#allocation7 + $0x9c0] sm:$0xf]  ;;  %v13736_v31 = vor.u32 %v18057_v28, %v13735_v3  ;;  %v2244_v13 = vadd.f32 %v2243_v15, %v454_v59  ;;  %v455_v3 = vperm.slane %v19502_v43, 1  ;;  %v2282_v28 = vpop.f32.mrf.mxu2 }
 0x161   :  { %5693 = vmatpush.bf16.msra.mxu3 %v13032_v50  ;;  %v18177_v19 = vld [vmem:[#allocation7 + $0x9dc] sm:$0xf0]  ;;  %5719 = vmatpush.bf16.msra.mxu1 %v13544_v17  ;;  %v2205_v50 = vadd.f32 %v19490_v14, %v453_v36 }
 0x162   :  { %v14471_v16 = vld [vmem:[#allocation7 + $0xbc0] sm:$0xf]  ;;  %v14216_v33 = vor.u32 %v18177_v19, %v14215_v60 }
 0x163   :  { %v18241_v21 = vld [vmem:[#allocation7 + $0xbdc] sm:$0xf0]  ;;  %5707 = vmatpush.bf16.msra.mxu0 %v13256_v9  ;;  %5734 = vmatpush.bf16.msra.mxu2 %v13736_v31  ;;  %v2218_v11 = vadd.f32 %v19488_v8, %v2205_v50  ;;  %v19520_v31 = vpack.c.b16 %v3106_v10, %v3106_v10 }
 0x164   :  { %v14983_v24 = vld [vmem:[#allocation7 + $0xfc0] sm:$0xf]  ;;  %v14472_v35 = vor.u32 %v18241_v21, %v14471_v16  ;;  %v2179_v21 = vadd.f32 %v19486_v6, %v2166_v5  ;;  %v2295_v50 = vpop.f32.mrf.mxu1 }
 0x165   :  { %5694 = vmatpush.bf16.msra.mxu3 %v13000_v1  ;;  %v18369_v25 = vld [vmem:[#allocation7 + $0xfdc] sm:$0xf0] }
 0x166   :  { %v13511_v32 = vld [vmem:[#allocation7 + $0x440] sm:$0xf]  ;;  %v14984_v41 = vor.u32 %v18369_v25, %v14983_v24  ;;  %5735 = vmatmul.bf16.vlgmr.msra.gmra.mxu2 %v19509_v54  ;;  %v2257_v25 = vadd.f32 %v2256_v48, %v2244_v13 }
 0x167   :  { %v18001_v37 = vld [vmem:[#allocation7 + $0x45c] sm:$0xf0]  ;;  %5708 = vmatpush.bf16.msra.mxu0 %v13224_v30  ;;  %v2258_v30 = vpop.f32.mrf.mxu0 }
 0x168   :  { %v14183_v38 = vld [vmem:[#allocation7 + $0x980] sm:$0xf]  ;;  %v13512_v51 = vor.u32 %v18001_v37, %v13511_v32  ;;  %5779 = vmatpush.bf16.msrb.mxu2 %v14984_v41  ;;  %v2231_v32 = vadd.f32 %v19493_v29, %v2218_v11  ;;  %v19524_v6 = vadd.f32 %v19497_v22, %v2257_v25  ;;  %v2245_v22 = vpop.f32.mrf.mxu3 }
 0x169   :  { %v18169_v39 = vld [vmem:[#allocation7 + $0x99c] sm:$0xf0]  ;;  %5695 = vmatpush.bf16.msra.mxu3 %v12968_v23 }
 0x16a   :  { %v14439_v42 = vld [vmem:[#allocation7 + $0xb80] sm:$0xf]  ;;  %v14184_v55 = vor.u32 %v18169_v39, %v14183_v38  ;;  %5709 = vmatmul.bf16.vlgmr.msra.gmra.mxu0 %v19506_v49  ;;  %5720 = vmatpush.bf16.msra.mxu1 %v13512_v51  ;;  %v2192_v39 = vadd.f32 %v19476_v57, %v2179_v21  ;;  %19038 = vtanh.f32 %v2231_v32  ;;  %v2284_v51 = vpop.f32.mrf.mxu2 }
 0x16b   :  { %v18233_v56 = vld [vmem:[#allocation7 + $0xb9c] sm:$0xf0]  ;;  %5753 = vmatpush.bf16.msrb.mxu0 %v14472_v35 }
 0x16c   :  { %v14951_v45 = vld [vmem:[#allocation7 + $0xf80] sm:$0xf]  ;;  %v14440_v58 = vor.u32 %v18233_v56, %v14439_v42  ;;  %5696 = vmatmul.bf16.vlgmr.msra.gmra.mxu3 %v19504_v44  ;;  %19040 = vtanh.f32 %v2192_v39  ;;  %v13193_v39 = vld [vmem:[#allocation7 + $0x1e0] sm:$0xf0] }
 0x16d   :  { %v18361_v46 = vld [vmem:[#allocation7 + $0xf9c] sm:$0xf0]  ;;  %5740 = vmatpush.bf16.msrb.mxu3 %v14216_v33  ;;  %v2283_v33 = vadd.f32 %v2282_v28, %v455_v3  ;;  %19042 = vtanh.f32 %v19524_v6 }
 0x16e   :  { %v13479_v52 = vld [vmem:[#allocation7 + $0x400] sm:$0xf]  ;;  %v14952_v14 = vor.u32 %v18361_v46, %v14951_v45 }
 0x16f   :  { %v17993_v53 = vld [vmem:[#allocation7 + $0x41c] sm:$0xf0]  ;;  %5754 = vmatpush.bf16.msrb.mxu0 %v14440_v58 }
 0x170   :  { %v14151_v61 = vld [vmem:[#allocation7 + $0x940] sm:$0xf]  ;;  %v13480_v12 = vor.u32 %v17993_v53, %v13479_v52  ;;  %5780 = vmatpush.bf16.msrb.mxu2 %v14952_v14  ;;  %v2296_v53 = vadd.f32 %v2295_v50, %v2283_v33  ;;  %v19039_v10 = vpop.eup %19038 }
 0x171   :  { %v18161_v62 = vld [vmem:[#allocation7 + $0x95c] sm:$0xf0]  ;;  %5741 = vmatpush.bf16.msrb.mxu3 %v14184_v55 }
 0x172   :  { %v14407_v63 = vld [vmem:[#allocation7 + $0xb40] sm:$0xf]  ;;  %v14152_v60 = vor.u32 %v18161_v62, %v14151_v61  ;;  %5721 = vmatpush.bf16.msra.mxu1 %v13480_v12  ;;  %v19530_v33 = vpop.f32.mrf.mxu2 }
 0x173   :  { %v18225_v0 = vld [vmem:[#allocation7 + $0xb5c] sm:$0xf0] }
 0x174   :  { %v14727_v1 = vld [vmem:[#allocation7 + $0xdc0] sm:$0xf]  ;;  %v14408_v17 = vor.u32 %v18225_v0, %v14407_v63 }
 0x175   :  { %v18305_v4 = vld [vmem:[#allocation7 + $0xddc] sm:$0xf0]  ;;  %5742 = vmatpush.bf16.msrb.mxu3 %v14152_v60  ;;  %5722 = vmatmul.bf16.vlgmr.msra.gmra.mxu1 %v19520_v31 }
 0x176   :  { %v14919_v7 = vld [vmem:[#allocation7 + $0xf40] sm:$0xf]  ;;  %v14728_v18 = vor.u32 %v18305_v4, %v14727_v1  ;;  %5755 = vmatpush.bf16.msrb.mxu0 %v14408_v17 }
 0x177   :  { %v18353_v9 = vld [vmem:[#allocation7 + $0xf5c] sm:$0xf0] }
 0x178   :  { %v14119_v19 = vld [vmem:[#allocation7 + $0x900] sm:$0xf]  ;;  %v14920_v47 = vor.u32 %v18353_v9, %v14919_v7  ;;  %5766 = vmatpush.bf16.msrb.mxu1 %v14728_v18  ;;  %v2308_v18 = vpop.f32.mrf.mxu3 }
 0x179   :  { %v18153_v16 = vld [vmem:[#allocation7 + $0x91c] sm:$0xf0] }
 0x17a   :  { %v14375_v23 = vld [vmem:[#allocation7 + $0xb00] sm:$0xf]  ;;  %v14120_v20 = vor.u32 %v18153_v16, %v14119_v19  ;;  %5781 = vmatpush.bf16.msrb.mxu2 %v14920_v47  ;;  %v19041_v19 = vpop.eup %19040  ;;  %v2297_v16 = vpop.f32.mrf.mxu1 }
 0x17b   :  { %v18217_v8 = vld [vmem:[#allocation7 + $0xb1c] sm:$0xf0]  ;;  %v19528_v21 = vpack.c.bf16 %v19039_v10, %v19041_v19  ;;  %v17965_v16 = vld [vmem:[#allocation7 + $0x344] sm:$0xf] }
 0x17c   :  { %v14695_v24 = vld [vmem:[#allocation7 + $0xd80] sm:$0xf]  ;;  %v14376_v35 = vor.u32 %v18217_v8, %v14375_v23  ;;  %5743 = vmatpush.bf16.msrb.mxu3 %v14120_v20 }
 0x17d   :  { %v18297_v26 = vld [vmem:[#allocation7 + $0xd9c] sm:$0xf0]  ;;  %v3111_v22 = vunpack.c.h.b16 %v19528_v21 }
 0x17e   :  { %v14887_v27 = vld [vmem:[#allocation7 + $0xf00] sm:$0xf]  ;;  %v14696_v40 = vor.u32 %v18297_v26, %v14695_v24  ;;  %5756 = vmatpush.bf16.msrb.mxu0 %v14376_v35  ;;  %v2309_v26 = vadd.f32 %v2308_v18, %v2296_v53  ;;  %v13385_v18 = vld [vmem:[#allocation7 + $0x360] sm:$0xf0] }
 0x17f   :  { %v18345_v36 = vld [vmem:[#allocation7 + $0xf1c] sm:$0xf0] }
 0x180   :  { %v14087_v37 = vld [vmem:[#allocation7 + $0x8c0] sm:$0xf]  ;;  %v14888_v41 = vor.u32 %v18345_v36, %v14887_v27  ;;  %5767 = vmatpush.bf16.msrb.mxu1 %v14696_v40  ;;  %19044 = vtanh.f32 %v2309_v26  ;;  %v17981_v40 = vld [vmem:[#allocation7 + $0x3c4] sm:$0xf]  ;;  %v3110_v26 = vunpack.c.l.b16 %v19528_v21  ;;  %v457_v21 = vperm.slane %v19502_v43, 3 }
 0x181   :  { %v18145_v38 = vld [vmem:[#allocation7 + $0x8dc] sm:$0xf0] }
 0x182   :  { %v14343_v42 = vld [vmem:[#allocation7 + $0xac0] sm:$0xf]  ;;  %v14088_v52 = vor.u32 %v18145_v38, %v14087_v37  ;;  %5782 = vmatpush.bf16.msrb.mxu2 %v14888_v41  ;;  %v17917_v38 = vld [vmem:[#allocation7 + $0x1c4] sm:$0xf] }
 0x183   :  { %v18209_v56 = vld [vmem:[#allocation7 + $0xadc] sm:$0xf0]  ;;  %v13449_v41 = vld [vmem:[#allocation7 + $0x3e0] sm:$0xf0]  ;;  %v13196_v51 = vor.u32 %v17917_v38, %v13193_v39 }
 0x184   :  { %v14663_v29 = vld [vmem:[#allocation7 + $0xd40] sm:$0xf]  ;;  %v14344_v57 = vor.u32 %v18209_v56, %v14343_v42  ;;  %5744 = vmatpush.bf16.msrb.mxu3 %v14088_v52  ;;  %v3108_v42 = vunpack.c.l.b16 %v19481_v34  ;;  %v13452_v52 = vor.u32 %v17981_v40, %v13449_v41  ;;  %v17957_v39 = vld [vmem:[#allocation7 + $0x304] sm:$0xf] }
 0x185   :  { %v18289_v45 = vld [vmem:[#allocation7 + $0xd5c] sm:$0xf0]  ;;  %v13353_v40 = vld [vmem:[#allocation7 + $0x320] sm:$0xf0] }
 0x186   :  { %v14855_v46 = vld [vmem:[#allocation7 + $0xec0] sm:$0xf]  ;;  %v14664_v59 = vor.u32 %v18289_v45, %v14663_v29  ;;  %5757 = vmatpush.bf16.msrb.mxu0 %v14344_v57  ;;  %v18109_v45 = vld [vmem:[#allocation7 + $0x7c4] sm:$0xf] }
 0x187   :  { %v18337_v48 = vld [vmem:[#allocation7 + $0xedc] sm:$0xf0]  ;;  %v18037_v41 = vld [vmem:[#allocation7 + $0x584] sm:$0xf] }
 0x188   :  { %v14055_v55 = vld [vmem:[#allocation7 + $0x880] sm:$0xf]  ;;  %v14856_v61 = vor.u32 %v18337_v48, %v14855_v46  ;;  %5768 = vmatpush.bf16.msrb.mxu1 %v14664_v59  ;;  %v13961_v46 = vld [vmem:[#allocation7 + $0x7e0] sm:$0xf0]  ;;  %v3109_v48 = vunpack.c.h.b16 %v19481_v34  ;;  %v2321_v59 = vpop.f32.mrf.mxu0 }
 0x189   :  { %v18137_v58 = vld [vmem:[#allocation7 + $0x89c] sm:$0xf0]  ;;  %v18101_v34 = vld [vmem:[#allocation7 + $0x784] sm:$0xf] }
 0x18a   :  { %v14311_v62 = vld [vmem:[#allocation7 + $0xa80] sm:$0xf]  ;;  %v14056_v2 = vor.u32 %v18137_v58, %v14055_v55  ;;  %5783 = vmatpush.bf16.msrb.mxu2 %v14856_v61  ;;  %v17909_v55 = vld [vmem:[#allocation7 + $0x184] sm:$0xf]  ;;  %v13964_v58 = vor.u32 %v18109_v45, %v13961_v46  ;;  %v19550_v45 = vpack.c.b16 %v3110_v26, %v3110_v26 }
 0x18b   :  { %v18201_v5 = vld [vmem:[#allocation7 + $0xa9c] sm:$0xf0]  ;;  %v13161_v61 = vld [vmem:[#allocation7 + $0x1a0] sm:$0xf0] }
 0x18c   :  { %v14631_v14 = vld [vmem:[#allocation7 + $0xd00] sm:$0xf]  ;;  %v14312_v4 = vor.u32 %v18201_v5, %v14311_v62  ;;  %5745 = vmatpush.bf16.msrb.mxu3 %v14056_v2  ;;  %v17973_v62 = vld [vmem:[#allocation7 + $0x384] sm:$0xf] }
 0x18d   :  { %v18281_v63 = vld [vmem:[#allocation7 + $0xd1c] sm:$0xf0]  ;;  %v13417_v5 = vld [vmem:[#allocation7 + $0x3a0] sm:$0xf0] }
 0x18e   :  { %v14823_v0 = vld [vmem:[#allocation7 + $0xe80] sm:$0xf]  ;;  %v14632_v11 = vor.u32 %v18281_v63, %v14631_v14  ;;  %5758 = vmatpush.bf16.msrb.mxu0 %v14312_v4  ;;  %v19043_v14 = vpop.eup %19042  ;;  %v19536_v63 = vpack.c.b16 %v3108_v42, %v3108_v42  ;;  %v19538_v4 = vpack.c.b16 %v3109_v48, %v3109_v48  ;;  %v13673_v42 = vld [vmem:[#allocation7 + $0x5a0] sm:$0xf0]  ;;  %v13356_v48 = vor.u32 %v17957_v39, %v13353_v40 }
 0x18f   :  { %v18329_v1 = vld [vmem:[#allocation7 + $0xe9c] sm:$0xf0]  ;;  %v19045_v2 = vpop.eup %19044  ;;  %v13769_v39 = vld [vmem:[#allocation7 + $0x660] sm:$0xf0] }
 0x190   :  { %v14023_v7 = vld [vmem:[#allocation7 + $0x840] sm:$0xf]  ;;  %v14824_v15 = vor.u32 %v18329_v1, %v14823_v0  ;;  %5769 = vmatpush.bf16.msrb.mxu1 %v14632_v11  ;;  %v13929_v0 = vld [vmem:[#allocation7 + $0x7a0] sm:$0xf0]  ;;  %v2310_v1 = vpop.f32.mrf.mxu3  ;;  %v2323_v38 = vpop.f32.mrf.mxu0 }
 0x191   :  { %v18129_v9 = vld [vmem:[#allocation7 + $0x85c] sm:$0xf0]  ;;  %v13932_v19 = vor.u32 %v18101_v34, %v13929_v0  ;;  %v18061_v38 = vld [vmem:[#allocation7 + $0x644] sm:$0xf] }
 0x192   :  { %v14279_v12 = vld [vmem:[#allocation7 + $0xa40] sm:$0xf]  ;;  %v14024_v47 = vor.u32 %v18129_v9, %v14023_v7  ;;  %5784 = vmatpush.bf16.msrb.mxu2 %v14824_v15  ;;  %v19540_v7 = vpack.c.b16 %v3111_v22, %v3111_v22  ;;  %v456_v9 = vperm.slane %v19502_v43, 2  ;;  %v2349_v15 = vpop.f32.mrf.mxu2 }
 0x193   :  { %v18193_v13 = vld [vmem:[#allocation7 + $0xa5c] sm:$0xf0] }
 0x194   :  { %v14599_v3 = vld [vmem:[#allocation7 + $0xcc0] sm:$0xf]  ;;  %v14280_v23 = vor.u32 %v18193_v13, %v14279_v12  ;;  %5746 = vmatpush.bf16.msrb.mxu3 %v14024_v47  ;;  %v19543_v12 = vpack.c.bf16 %v19045_v2, %v19043_v14  ;;  %v13164_v13 = vor.u32 %v17909_v55, %v13161_v61  ;;  %v18045_v47 = vld [vmem:[#allocation7 + $0x5c4] sm:$0xf]  ;;  %v2360_v61 = vpop.f32.mrf.mxu1 }
 0x195   :  { %v18273_v28 = vld [vmem:[#allocation7 + $0xcdc] sm:$0xf0]  ;;  %v17949_v55 = vld [vmem:[#allocation7 + $0x2c4] sm:$0xf]  ;;  %v2361_v0 = vadd.f32 %v2360_v61, %v457_v21 }
 0x196   :  { %v14791_v60 = vld [vmem:[#allocation7 + $0xe40] sm:$0xf]  ;;  %v14600_v27 = vor.u32 %v18273_v28, %v14599_v3  ;;  %5759 = vmatpush.bf16.msrb.mxu0 %v14280_v23  ;;  %v13420_v3 = vor.u32 %v17973_v62, %v13417_v5  ;;  %v13705_v23 = vld [vmem:[#allocation7 + $0x5e0] sm:$0xf0] }
 0x197   :  { %v18321_v17 = vld [vmem:[#allocation7 + $0xe5c] sm:$0xf0]  ;;  %v13641_v62 = vld [vmem:[#allocation7 + $0x560] sm:$0xf0] }
 0x198   :  { %v13991_v8 = vld [vmem:[#allocation7 + $0x800] sm:$0xf]  ;;  %v14792_v36 = vor.u32 %v18321_v17, %v14791_v60  ;;  %5770 = vmatpush.bf16.msrb.mxu1 %v14600_v27  ;;  %v17901_v60 = vld [vmem:[#allocation7 + $0x144] sm:$0xf]  ;;  %v2334_v22 = vpop.f32.mrf.mxu3 }
 0x199   :  { %v18121_v24 = vld [vmem:[#allocation7 + $0x81c] sm:$0xf0]  ;;  %v13129_v17 = vld [vmem:[#allocation7 + $0x160] sm:$0xf0] }
 0x19a   :  { %v14247_v25 = vld [vmem:[#allocation7 + $0xa00] sm:$0xf]  ;;  %v13992_v56 = vor.u32 %v18121_v24, %v13991_v8  ;;  %5785 = vmatpush.bf16.msrb.mxu2 %v14792_v36  ;;  %v18093_v8 = vld [vmem:[#allocation7 + $0x744] sm:$0xf]  ;;  %v13132_v27 = vor.u32 %v17901_v60, %v13129_v17  ;;  %v13388_v36 = vor.u32 %v17965_v16, %v13385_v18  ;;  %v2386_v18 = vpop.f32.mrf.mxu0 }
 0x19b   :  { %v18185_v30 = vld [vmem:[#allocation7 + $0xa1c] sm:$0xf0]  ;;  %v13897_v24 = vld [vmem:[#allocation7 + $0x760] sm:$0xf0] }
 0x19c   :  { %v14567_v32 = vld [vmem:[#allocation7 + $0xc80] sm:$0xf]  ;;  %v14248_v29 = vor.u32 %v18185_v30, %v14247_v25  ;;  %5747 = vmatpush.bf16.msrb.mxu3 %v13992_v56  ;;  %v17893_v30 = vld [vmem:[#allocation7 + $0x104] sm:$0xf] }
 0x19d   :  { %v18265_v20 = vld [vmem:[#allocation7 + $0xc9c] sm:$0xf0]  ;;  %v18085_v56 = vld [vmem:[#allocation7 + $0x704] sm:$0xf] }
 0x19e   :  { %v14759_v35 = vld [vmem:[#allocation7 + $0xe00] sm:$0xf]  ;;  %v14568_v6 = vor.u32 %v18265_v20, %v14567_v32  ;;  %5760 = vmatpush.bf16.msrb.mxu0 %v14248_v29  ;;  %v13097_v32 = vld [vmem:[#allocation7 + $0x120] sm:$0xf0]  ;;  %v2322_v20 = vadd.f32 %v2321_v59, %v456_v9 }
 0x19f   :  { %v18313_v37 = vld [vmem:[#allocation7 + $0xe1c] sm:$0xf0]  ;;  %5748 = vmatmul.bf16.vlgmr.msrb.gmra.mxu3 %v19536_v63  ;;  %v13865_v29 = vld [vmem:[#allocation7 + $0x720] sm:$0xf0]  ;;  %v13100_v46 = vor.u32 %v17893_v30, %v13097_v32 }
 0x1a0   :  { %v14760_v50 = vor.u32 %v18313_v37, %v14759_v35  ;;  %v14535_v57 = vld [vmem:[#allocation7 + $0xc40] sm:$0xf]  ;;  %5771 = vmatpush.bf16.msrb.mxu1 %v14568_v6  ;;  %5792 = vmatpush.bf16.msra.mxu3 %v13196_v51  ;;  %v13708_v35 = vor.u32 %v18045_v47, %v13705_v23  ;;  %v13900_v37 = vor.u32 %v18093_v8, %v13897_v24  ;;  %v17885_v6 = vld [vmem:[#allocation7 + $0xc4] sm:$0xf] }
 0x1a1   :  { %v18257_v53 = vld [vmem:[#allocation7 + $0xc5c] sm:$0xf0]  ;;  %5761 = vmatmul.bf16.vlgmr.msrb.gmra.mxu0 %v19538_v4  ;;  %v13676_v51 = vor.u32 %v18037_v41, %v13673_v42  ;;  %v18029_v59 = vld [vmem:[#allocation7 + $0x544] sm:$0xf] }
 0x1a2   :  { %5786 = vmatpush.bf16.msrb.mxu2 %v14760_v50  ;;  %v14536_v10 = vor.u32 %v18257_v53, %v14535_v57  ;;  %v14503_v11 = vld [vmem:[#allocation7 + $0xc00] sm:$0xf]  ;;  %5805 = vmatpush.bf16.msra.mxu0 %v13452_v52  ;;  %v13065_v50 = vld [vmem:[#allocation7 + $0xe0] sm:$0xf0]  ;;  %v13868_v52 = vor.u32 %v18085_v56, %v13865_v29  ;;  %v2335_v57 = vadd.f32 %v2334_v22, %v2322_v20  ;;  %v2373_v53 = vpop.f32.mrf.mxu2 }
 0x1a3   :  { %v18249_v28 = vld [vmem:[#allocation7 + $0xc1c] sm:$0xf0]  ;;  %v18077_v5 = vld [vmem:[#allocation7 + $0x6c4] sm:$0xf]  ;;  %v13068_v1 = vor.u32 %v17885_v6, %v13065_v50  ;;  %v13644_v15 = vor.u32 %v18029_v59, %v13641_v62  ;;  %v2388_v59 = vpop.f32.mrf.mxu0 }
 0x1a4   :  { %5772 = vmatpush.bf16.msrb.mxu1 %v14536_v10  ;;  %v14504_v25 = vor.u32 %v18249_v28, %v14503_v11  ;;  %5793 = vmatpush.bf16.msra.mxu3 %v13164_v13  ;;  %v13833_v14 = vld [vmem:[#allocation7 + $0x6e0] sm:$0xf0]  ;;  %v2348_v34 = vadd.f32 %v19530_v33, %v2335_v57  ;;  %v2374_v11 = vadd.f32 %v2373_v53, %v2361_v0  ;;  %v459_v59 = vperm.slane %v19502_v43, 5 }
 0x1a5   :  { %5787 = vmatmul.bf16.vlgmr.msrb.gmra.mxu2 %v19540_v7  ;;  %v17877_v9 = vld [vmem:[#allocation7 + $0x84] sm:$0xf]  ;;  %v13836_v13 = vor.u32 %v18077_v5, %v13833_v14 }
 0x1a6   :  { %5831 = vmatpush.bf16.msra.mxu2 %v13964_v58  ;;  %5806 = vmatpush.bf16.msra.mxu0 %v13420_v3  ;;  %v13321_v58 = vld [vmem:[#allocation7 + $0x2e0] sm:$0xf0]  ;;  %v2387_v33 = vadd.f32 %v2386_v18, %v2374_v11  ;;  %19046 = vtanh.f32 %v2348_v34 }
 0x1a7   :  { %v13324_v2 = vor.u32 %v17949_v55, %v13321_v58  ;;  %v13033_v10 = vld [vmem:[#allocation7 + $0xa0] sm:$0xf0] }
 0x1a8   :  { %5773 = vmatpush.bf16.msrb.mxu1 %v14504_v25  ;;  %5794 = vmatpush.bf16.msra.mxu3 %v13132_v27  ;;  %v17941_v3 = vld [vmem:[#allocation7 + $0x284] sm:$0xf]  ;;  %v13036_v47 = vor.u32 %v17877_v9, %v13033_v10  ;;  %v2336_v25 = vpop.f32.mrf.mxu3  ;;  %19048 = vtanh.f32 %v2387_v33 }
 0x1a9   :  { %v13289_v28 = vld [vmem:[#allocation7 + $0x2a0] sm:$0xf0] }
 0x1aa   :  { %5832 = vmatpush.bf16.msra.mxu2 %v13932_v19  ;;  %5807 = vmatpush.bf16.msra.mxu0 %v13388_v36  ;;  %v18021_v60 = vld [vmem:[#allocation7 + $0x504] sm:$0xf]  ;;  %v13292_v23 = vor.u32 %v17941_v3, %v13289_v28  ;;  %v2375_v20 = vpop.f32.mrf.mxu2 }
 0x1ab   :  { %5774 = vmatmul.bf16.vlgmr.msrb.gmra.mxu1 %v19550_v45  ;;  %v13609_v17 = vld [vmem:[#allocation7 + $0x520] sm:$0xf0] }
 0x1ac   :  { %5818 = vmatpush.bf16.msra.mxu1 %v13708_v35  ;;  %5795 = vmatpush.bf16.msra.mxu3 %v13100_v46  ;;  %v18069_v19 = vld [vmem:[#allocation7 + $0x684] sm:$0xf]  ;;  %v13612_v26 = vor.u32 %v18021_v60, %v13609_v17  ;;  %v2362_v35 = vpop.f32.mrf.mxu1  ;;  %v13772_v46 = vor.u32 %v18061_v38, %v13769_v39  ;;  %v19047_v57 = vpop.eup %19046 }
 0x1ad   :  { %v13801_v16 = vld [vmem:[#allocation7 + $0x6a0] sm:$0xf0]  ;;  %v2412_v39 = vpop.f32.mrf.mxu0 }
 0x1ae   :  { %5833 = vmatpush.bf16.msra.mxu2 %v13900_v37  ;;  %5808 = vmatpush.bf16.msra.mxu0 %v13356_v48  ;;  %v17869_v8 = vld [vmem:[#allocation7 + $0x44] sm:$0xf]  ;;  %v13804_v27 = vor.u32 %v18069_v19, %v13801_v16  ;;  %v19049_v61 = vpop.eup %19048 }
 0x1af   :  { %v13001_v24 = vld [vmem:[#allocation7 + $0x60] sm:$0xf0]  ;;  %v19554_v0 = vpack.c.bf16 %v19049_v61, %v19047_v57 }
 0x1b0   :  { %5819 = vmatpush.bf16.msra.mxu1 %v13676_v51  ;;  %5796 = vmatpush.bf16.msra.mxu3 %v13068_v1  ;;  %v17933_v36 = vld [vmem:[#allocation7 + $0x244] sm:$0xf]  ;;  %v13004_v40 = vor.u32 %v17869_v8, %v13001_v24 }
 0x1b1   :  { %v13257_v30 = vld [vmem:[#allocation7 + $0x260] sm:$0xf0] }
 0x1b2   :  { %5834 = vmatpush.bf16.msra.mxu2 %v13868_v52  ;;  %5809 = vmatpush.bf16.msra.mxu0 %v13324_v2  ;;  %v18013_v32 = vld [vmem:[#allocation7 + $0x4c4] sm:$0xf]  ;;  %v13260_v41 = vor.u32 %v17933_v36, %v13257_v30 }
 0x1b3   :  { %v13577_v37 = vld [vmem:[#allocation7 + $0x4e0] sm:$0xf0] }
 0x1b4   :  { %5820 = vmatpush.bf16.msra.mxu1 %v13644_v15  ;;  %5797 = vmatpush.bf16.msra.mxu3 %v13036_v47  ;;  %v17861_v42 = vld [vmem:[#allocation7 + $0x4] sm:$0xf]  ;;  %v13580_v21 = vor.u32 %v18013_v32, %v13577_v37  ;;  %v19556_v19 = vpop.f32.mrf.mxu1 }
 0x1b5   :  { %v12969_v56 = vld [vmem:[#allocation7 + $0x20] sm:$0xf0] }
 0x1b6   :  { %5835 = vmatpush.bf16.msra.mxu2 %v13836_v13  ;;  %5810 = vmatpush.bf16.msra.mxu0 %v13292_v23  ;;  %v17925_v29 = vld [vmem:[#allocation7 + $0x204] sm:$0xf]  ;;  %v12972_v62 = vor.u32 %v17861_v42, %v12969_v56  ;;  %v458_v42 = vperm.slane %v19502_v43, 4 }
 0x1b7   :  { %v13225_v48 = vld [vmem:[#allocation7 + $0x220] sm:$0xf0] }
 0x1b8   :  { %5821 = vmatpush.bf16.msra.mxu1 %v13612_v26  ;;  %v18005_v22 = vld [vmem:[#allocation7 + $0x484] sm:$0xf]  ;;  %5798 = vmatpush.bf16.msra.mxu3 %v13004_v40  ;;  %v13228_v5 = vor.u32 %v17925_v29, %v13225_v48 }
 0x1b9   :  { %v13545_v6 = vld [vmem:[#allocation7 + $0x4a0] sm:$0xf0] }
 0x1ba   :  { %5836 = vmatpush.bf16.msra.mxu2 %v13804_v27  ;;  %v18053_v50 = vld [vmem:[#allocation7 + $0x604] sm:$0xf]  ;;  %5811 = vmatpush.bf16.msra.mxu0 %v13260_v41  ;;  %v13548_v1 = vor.u32 %v18005_v22, %v13545_v6 }
 0x1bb   :  { %v13737_v51 = vld [vmem:[#allocation7 + $0x620] sm:$0xf0] }
 0x1bc   :  { %v18173_v52 = vld [vmem:[#allocation7 + $0x9c4] sm:$0xf]  ;;  %5822 = vmatpush.bf16.msra.mxu1 %v13580_v21  ;;  %v13740_v2 = vor.u32 %v18053_v50, %v13737_v51  ;;  %5799 = vmatpush.bf16.msra.mxu3 %v12972_v62  ;;  %v2427_v50 = vpop.f32.mrf.mxu1 }
 0x1bd   :  { %v14217_v53 = vld [vmem:[#allocation7 + $0x9e0] sm:$0xf0] }
 0x1be   :  { %v18237_v55 = vld [vmem:[#allocation7 + $0xbc4] sm:$0xf]  ;;  %5837 = vmatpush.bf16.msra.mxu2 %v13772_v46  ;;  %v14220_v9 = vor.u32 %v18173_v52, %v14217_v53  ;;  %5812 = vmatpush.bf16.msra.mxu0 %v13228_v5  ;;  %v2399_v53 = vpop.f32.mrf.mxu3 }
 0x1bf   :  { %v14473_v58 = vld [vmem:[#allocation7 + $0xbe0] sm:$0xf0]  ;;  %5800 = vmatmul.bf16.vlgmr.msra.gmra.mxu3 %v19504_v44  ;;  %v2400_v5 = vadd.f32 %v2399_v53, %v458_v42 }
 0x1c0   :  { %v18365_v14 = vld [vmem:[#allocation7 + $0xfc4] sm:$0xf]  ;;  %v14476_v10 = vor.u32 %v18237_v55, %v14473_v58  ;;  %5823 = vmatpush.bf16.msra.mxu1 %v13548_v1  ;;  %5844 = vmatpush.bf16.msrb.mxu3 %v14220_v9  ;;  %v2438_v1 = vpop.f32.mrf.mxu2 }
 0x1c1   :  { %v14985_v34 = vld [vmem:[#allocation7 + $0xfe0] sm:$0xf0]  ;;  %5813 = vmatmul.bf16.vlgmr.msra.gmra.mxu0 %v19506_v49  ;;  %v2439_v43 = vadd.f32 %v2438_v1, %v459_v59  ;;  %v17986_v1 = vld [vmem:[#allocation7 + $0x3e4] sm:$0xf0] }
 0x1c2   :  { %v17997_v11 = vld [vmem:[#allocation7 + $0x444] sm:$0xf]  ;;  %v14988_v3 = vor.u32 %v18365_v14, %v14985_v34  ;;  %5838 = vmatpush.bf16.msra.mxu2 %v13740_v2  ;;  %5857 = vmatpush.bf16.msrb.mxu0 %v14476_v10 }
 0x1c3   :  { %v13513_v15 = vld [vmem:[#allocation7 + $0x460] sm:$0xf0] }
 0x1c4   :  { %v18165_v13 = vld [vmem:[#allocation7 + $0x984] sm:$0xf]  ;;  %v13516_v33 = vor.u32 %v17997_v11, %v13513_v15 }
 0x1c5   :  { %v14185_v28 = vld [vmem:[#allocation7 + $0x9a0] sm:$0xf0]  ;;  %5839 = vmatmul.bf16.vlgmr.msra.gmra.mxu2 %v19509_v54 }
 0x1c6   :  { %v18229_v60 = vld [vmem:[#allocation7 + $0xb84] sm:$0xf]  ;;  %v14188_v23 = vor.u32 %v18165_v13, %v14185_v28  ;;  %5883 = vmatpush.bf16.msrb.mxu2 %v14988_v3  ;;  %5824 = vmatpush.bf16.msra.mxu1 %v13516_v33  ;;  %v2413_v3 = vadd.f32 %v2412_v39, %v2400_v5  ;;  %v2414_v28 = vpop.f32.mrf.mxu0  ;;  %v13199_v5 = vld [vmem:[#allocation7 + $0x1c8] sm:$0xf] }
 0x1c7   :  { %v14441_v17 = vld [vmem:[#allocation7 + $0xba0] sm:$0xf0] }
 0x1c8   :  { %v18357_v16 = vld [vmem:[#allocation7 + $0xf84] sm:$0xf]  ;;  %v14444_v8 = vor.u32 %v18229_v60, %v14441_v17  ;;  %5845 = vmatpush.bf16.msrb.mxu3 %v14188_v23  ;;  %v19565_v23 = vadd.f32 %v19556_v19, %v2413_v3 }
 0x1c9   :  { %v14953_v18 = vld [vmem:[#allocation7 + $0xfa0] sm:$0xf0] }
 0x1ca   :  { %v17989_v47 = vld [vmem:[#allocation7 + $0x404] sm:$0xf]  ;;  %v14956_v27 = vor.u32 %v18357_v16, %v14953_v18  ;;  %5858 = vmatpush.bf16.msrb.mxu0 %v14444_v8  ;;  %19050 = vtanh.f32 %v19565_v23  ;;  %v17906_v23 = vld [vmem:[#allocation7 + $0x164] sm:$0xf0] }
 0x1cb   :  { %v13481_v24 = vld [vmem:[#allocation7 + $0x420] sm:$0xf0] }
 0x1cc   :  { %v18157_v25 = vld [vmem:[#allocation7 + $0x944] sm:$0xf]  ;;  %v13484_v38 = vor.u32 %v17989_v47, %v13481_v24  ;;  %5884 = vmatpush.bf16.msrb.mxu2 %v14956_v27 }
 0x1cd   :  { %v14153_v26 = vld [vmem:[#allocation7 + $0x960] sm:$0xf0] }
 0x1ce   :  { %v18221_v36 = vld [vmem:[#allocation7 + $0xb44] sm:$0xf]  ;;  %v14156_v40 = vor.u32 %v18157_v25, %v14153_v26  ;;  %5825 = vmatpush.bf16.msra.mxu1 %v13484_v38 }
 0x1cf   :  { %v14409_v30 = vld [vmem:[#allocation7 + $0xb60] sm:$0xf0] }
 0x1d0   :  { %v18301_v32 = vld [vmem:[#allocation7 + $0xdc4] sm:$0xf]  ;;  %v14412_v41 = vor.u32 %v18221_v36, %v14409_v30  ;;  %5846 = vmatpush.bf16.msrb.mxu3 %v14156_v40  ;;  %v2451_v30 = vpop.f32.mrf.mxu1 }
 0x1d1   :  { %v14729_v20 = vld [vmem:[#allocation7 + $0xde0] sm:$0xf0]  ;;  %5826 = vmatmul.bf16.vlgmr.msra.gmra.mxu1 %v19520_v31 }
 0x1d2   :  { %v18349_v35 = vld [vmem:[#allocation7 + $0xf44] sm:$0xf]  ;;  %v14732_v21 = vor.u32 %v18301_v32, %v14729_v20  ;;  %5859 = vmatpush.bf16.msrb.mxu0 %v14412_v41  ;;  %v2401_v32 = vpop.f32.mrf.mxu3  ;;  %v2440_v41 = vpop.f32.mrf.mxu2 }
 0x1d3   :  { %v14921_v37 = vld [vmem:[#allocation7 + $0xf60] sm:$0xf0]  ;;  %v13711_v41 = vld [vmem:[#allocation7 + $0x5c8] sm:$0xf] }
 0x1d4   :  { %v18149_v56 = vld [vmem:[#allocation7 + $0x904] sm:$0xf]  ;;  %v14924_v46 = vor.u32 %v18349_v35, %v14921_v37  ;;  %5870 = vmatpush.bf16.msrb.mxu1 %v14732_v21  ;;  %v2452_v37 = vadd.f32 %v2451_v30, %v2439_v43 }
 0x1d5   :  { %v14121_v29 = vld [vmem:[#allocation7 + $0x920] sm:$0xf0] }
 0x1d6   :  { %v18213_v48 = vld [vmem:[#allocation7 + $0xb04] sm:$0xf]  ;;  %v14124_v55 = vor.u32 %v18149_v56, %v14121_v29  ;;  %5885 = vmatpush.bf16.msrb.mxu2 %v14924_v46 }
 0x1d7   :  { %v14377_v22 = vld [vmem:[#allocation7 + $0xb20] sm:$0xf0] }
 0x1d8   :  { %v18293_v6 = vld [vmem:[#allocation7 + $0xd84] sm:$0xf]  ;;  %v14380_v58 = vor.u32 %v18213_v48, %v14377_v22  ;;  %5847 = vmatpush.bf16.msrb.mxu3 %v14124_v55 }
 0x1d9   :  { %v14697_v51 = vld [vmem:[#allocation7 + $0xda0] sm:$0xf0] }
 0x1da   :  { %v18341_v52 = vld [vmem:[#allocation7 + $0xf04] sm:$0xf]  ;;  %v14700_v14 = vor.u32 %v18293_v6, %v14697_v51  ;;  %5860 = vmatpush.bf16.msrb.mxu0 %v14380_v58 }
 0x1db   :  { %v14889_v57 = vld [vmem:[#allocation7 + $0xf20] sm:$0xf0] }
 0x1dc   :  { %v18141_v61 = vld [vmem:[#allocation7 + $0x8c4] sm:$0xf]  ;;  %v14892_v34 = vor.u32 %v18341_v52, %v14889_v57  ;;  %5871 = vmatpush.bf16.msrb.mxu1 %v14700_v14  ;;  %v17922_v14 = vld [vmem:[#allocation7 + $0x1e4] sm:$0xf0] }
 0x1dd   :  { %v14089_v62 = vld [vmem:[#allocation7 + $0x8e0] sm:$0xf0] }
 0x1de   :  { %v18205_v2 = vld [vmem:[#allocation7 + $0xac4] sm:$0xf]  ;;  %v14092_v60 = vor.u32 %v18141_v61, %v14089_v62  ;;  %5886 = vmatpush.bf16.msrb.mxu2 %v14892_v34  ;;  %v13455_v34 = vld [vmem:[#allocation7 + $0x3c8] sm:$0xf] }
 0x1df   :  { %v14345_v9 = vld [vmem:[#allocation7 + $0xae0] sm:$0xf0] }
 0x1e0   :  { %v18285_v10 = vld [vmem:[#allocation7 + $0xd44] sm:$0xf]  ;;  %v14348_v17 = vor.u32 %v18205_v2, %v14345_v9  ;;  %5848 = vmatpush.bf16.msrb.mxu3 %v14092_v60  ;;  %v2453_v2 = vpop.f32.mrf.mxu1  ;;  %v13200_v60 = vor.u32 %v17922_v14, %v13199_v5  ;;  %v13359_v5 = vld [vmem:[#allocation7 + $0x308] sm:$0xf] }
 0x1e1   :  { %v14665_v11 = vld [vmem:[#allocation7 + $0xd60] sm:$0xf0]  ;;  %v17962_v14 = vld [vmem:[#allocation7 + $0x324] sm:$0xf0] }
 0x1e2   :  { %v18333_v15 = vld [vmem:[#allocation7 + $0xec4] sm:$0xf]  ;;  %v14668_v33 = vor.u32 %v18285_v10, %v14665_v11  ;;  %5861 = vmatpush.bf16.msrb.mxu0 %v14348_v17  ;;  %v13967_v11 = vld [vmem:[#allocation7 + $0x7c8] sm:$0xf]  ;;  %v13456_v17 = vor.u32 %v17986_v1, %v13455_v34 }
 0x1e3   :  { %v14857_v13 = vld [vmem:[#allocation7 + $0xee0] sm:$0xf0]  ;;  %v13679_v34 = vld [vmem:[#allocation7 + $0x588] sm:$0xf] }
 0x1e4   :  { %v18133_v16 = vld [vmem:[#allocation7 + $0x884] sm:$0xf]  ;;  %v14860_v47 = vor.u32 %v18333_v15, %v14857_v13  ;;  %5872 = vmatpush.bf16.msrb.mxu1 %v14668_v33  ;;  %v18114_v15 = vld [vmem:[#allocation7 + $0x7e4] sm:$0xf0]  ;;  %v2464_v13 = vpop.f32.mrf.mxu3 }
 0x1e5   :  { %v14057_v18 = vld [vmem:[#allocation7 + $0x8a0] sm:$0xf0]  ;;  %v2465_v43 = vadd.f32 %v2464_v13, %v2452_v37  ;;  %v13167_v33 = vld [vmem:[#allocation7 + $0x188] sm:$0xf] }
 0x1e6   :  { %v18197_v8 = vld [vmem:[#allocation7 + $0xa84] sm:$0xf]  ;;  %v14060_v20 = vor.u32 %v18133_v16, %v14057_v18  ;;  %5887 = vmatpush.bf16.msrb.mxu2 %v14860_v47  ;;  %v19567_v47 = vpop.f32.mrf.mxu2  ;;  %v18042_v1 = vld [vmem:[#allocation7 + $0x5a4] sm:$0xf0] }
 0x1e7   :  { %v14313_v24 = vld [vmem:[#allocation7 + $0xaa0] sm:$0xf0]  ;;  %19052 = vtanh.f32 %v2465_v43  ;;  %v13871_v2 = vld [vmem:[#allocation7 + $0x708] sm:$0xf] }
 0x1e8   :  { %v18277_v25 = vld [vmem:[#allocation7 + $0xd04] sm:$0xf]  ;;  %v14316_v35 = vor.u32 %v18197_v8, %v14313_v24  ;;  %5849 = vmatpush.bf16.msrb.mxu3 %v14060_v20  ;;  %v13968_v8 = vor.u32 %v18114_v15, %v13967_v11  ;;  %v17914_v24 = vld [vmem:[#allocation7 + $0x1a4] sm:$0xf0]  ;;  %v13360_v11 = vor.u32 %v17962_v14, %v13359_v5 }
 0x1e9   :  { %v14633_v26 = vld [vmem:[#allocation7 + $0xd20] sm:$0xf0]  ;;  %v13168_v20 = vor.u32 %v17914_v24, %v13167_v33  ;;  %v13071_v15 = vld [vmem:[#allocation7 + $0xc8] sm:$0xf] }
 0x1ea   :  { %v18325_v27 = vld [vmem:[#allocation7 + $0xe84] sm:$0xf]  ;;  %v14636_v40 = vor.u32 %v18277_v25, %v14633_v26  ;;  %5862 = vmatpush.bf16.msrb.mxu0 %v14316_v35  ;;  %v13423_v25 = vld [vmem:[#allocation7 + $0x388] sm:$0xf] }
 0x1eb   :  { %v14825_v36 = vld [vmem:[#allocation7 + $0xea0] sm:$0xf0]  ;;  %v17978_v26 = vld [vmem:[#allocation7 + $0x3a4] sm:$0xf0] }
 0x1ec   :  { %v18125_v38 = vld [vmem:[#allocation7 + $0x844] sm:$0xf]  ;;  %v14828_v19 = vor.u32 %v18325_v27, %v14825_v36  ;;  %5873 = vmatpush.bf16.msrb.mxu1 %v14636_v40  ;;  %v13935_v27 = vld [vmem:[#allocation7 + $0x788] sm:$0xf]  ;;  %v13424_v35 = vor.u32 %v17978_v26, %v13423_v25 }
 0x1ed   :  { %v14025_v39 = vld [vmem:[#allocation7 + $0x860] sm:$0xf0]  ;;  %v18106_v36 = vld [vmem:[#allocation7 + $0x7a4] sm:$0xf0] }
 0x1ee   :  { %v18189_v42 = vld [vmem:[#allocation7 + $0xa44] sm:$0xf]  ;;  %v14028_v22 = vor.u32 %v18125_v38, %v14025_v39  ;;  %5888 = vmatpush.bf16.msrb.mxu2 %v14828_v19  ;;  %v13135_v38 = vld [vmem:[#allocation7 + $0x148] sm:$0xf]  ;;  %v13936_v39 = vor.u32 %v18106_v36, %v13935_v27 }
 0x1ef   :  { %v14281_v56 = vld [vmem:[#allocation7 + $0xa60] sm:$0xf0]  ;;  %v13391_v40 = vld [vmem:[#allocation7 + $0x348] sm:$0xf] }
 0x1f0   :  { %v18269_v29 = vld [vmem:[#allocation7 + $0xcc4] sm:$0xf]  ;;  %v14284_v6 = vor.u32 %v18189_v42, %v14281_v56  ;;  %5850 = vmatpush.bf16.msrb.mxu3 %v14028_v22  ;;  %v17970_v19 = vld [vmem:[#allocation7 + $0x364] sm:$0xf0]  ;;  %v2477_v42 = vpop.f32.mrf.mxu0  ;;  %v2466_v22 = vpop.f32.mrf.mxu3 }
 0x1f1   :  { %v14601_v21 = vld [vmem:[#allocation7 + $0xce0] sm:$0xf0]  ;;  %v18050_v56 = vld [vmem:[#allocation7 + $0x5e4] sm:$0xf0] }
 0x1f2   :  { %v18317_v46 = vld [vmem:[#allocation7 + $0xe44] sm:$0xf]  ;;  %v14604_v57 = vor.u32 %v18269_v29, %v14601_v21  ;;  %5863 = vmatpush.bf16.msrb.mxu0 %v14284_v6  ;;  %v13903_v29 = vld [vmem:[#allocation7 + $0x748] sm:$0xf] }
 0x1f3   :  { %v14793_v48 = vld [vmem:[#allocation7 + $0xe60] sm:$0xf0]  ;;  %v18098_v21 = vld [vmem:[#allocation7 + $0x764] sm:$0xf0] }
 0x1f4   :  { %v18117_v50 = vld [vmem:[#allocation7 + $0x804] sm:$0xf]  ;;  %v14796_v53 = vor.u32 %v18317_v46, %v14793_v48  ;;  %5874 = vmatpush.bf16.msrb.mxu1 %v14604_v57  ;;  %v19051_v46 = vpop.eup %19050  ;;  %v13392_v57 = vor.u32 %v17970_v19, %v13391_v40  ;;  %v17890_v13 = vld [vmem:[#allocation7 + $0xe4] sm:$0xf0] }
 0x1f5   :  { %v13993_v51 = vld [vmem:[#allocation7 + $0x820] sm:$0xf0]  ;;  %v19053_v6 = vpop.eup %19052  ;;  %v13327_v43 = vld [vmem:[#allocation7 + $0x2c8] sm:$0xf]  ;;  %v13072_v25 = vor.u32 %v17890_v13, %v13071_v15 }
 0x1f6   :  { %v18181_v52 = vld [vmem:[#allocation7 + $0xa04] sm:$0xf]  ;;  %v13996_v9 = vor.u32 %v18117_v50, %v13993_v51  ;;  %5889 = vmatpush.bf16.msrb.mxu2 %v14796_v53  ;;  %v19573_v50 = vld [vmem:[#allocation6 + $0x8] sm:$0xff]  ;;  %v13103_v53 = vld [vmem:[#allocation7 + $0x108] sm:$0xf] }
 0x1f7   :  { %v14249_v55 = vld [vmem:[#allocation7 + $0xa20] sm:$0xf0]  ;;  %v460_v51 = vperm.slane %v19573_v50, 6  ;;  %v18034_v33 = vld [vmem:[#allocation7 + $0x564] sm:$0xf0]  ;;  %v461_v27 = vperm.slane %v19573_v50, 7 }
 0x1f8   :  { %v18261_v58 = vld [vmem:[#allocation7 + $0xc84] sm:$0xf]  ;;  %v14252_v10 = vor.u32 %v18181_v52, %v14249_v55  ;;  %5851 = vmatpush.bf16.msrb.mxu3 %v13996_v9  ;;  %v13136_v52 = vor.u32 %v17906_v23, %v13135_v38  ;;  %v17898_v55 = vld [vmem:[#allocation7 + $0x124] sm:$0xf0] }
 0x1f9   :  { %v14569_v59 = vld [vmem:[#allocation7 + $0xca0] sm:$0xf0]  ;;  %v18090_v9 = vld [vmem:[#allocation7 + $0x724] sm:$0xf0] }
 0x1fa   :  { %v18309_v61 = vld [vmem:[#allocation7 + $0xe04] sm:$0xf]  ;;  %v14572_v3 = vor.u32 %v18261_v58, %v14569_v59  ;;  %5864 = vmatpush.bf16.msrb.mxu0 %v14252_v10  ;;  %v2505_v58 = vpop.f32.mrf.mxu2  ;;  %v19576_v59 = vpack.c.bf16 %v19053_v6, %v19051_v46  ;;  %v13104_v10 = vor.u32 %v17898_v55, %v13103_v53  ;;  %v18082_v24 = vld [vmem:[#allocation7 + $0x6e4] sm:$0xf0] }
 0x1fb   :  { %v14761_v62 = vld [vmem:[#allocation7 + $0xe20] sm:$0xf0]  ;;  %5852 = vmatmul.bf16.vlgmr.msrb.gmra.mxu3 %v19536_v63  ;;  %v13039_v36 = vld [vmem:[#allocation7 + $0x88] sm:$0xf] }
 0x1fc   :  { %v14764_v28 = vor.u32 %v18309_v61, %v14761_v62  ;;  %v18253_v16 = vld [vmem:[#allocation7 + $0xc44] sm:$0xf]  ;;  %5875 = vmatpush.bf16.msrb.mxu1 %v14572_v3  ;;  %5896 = vmatpush.bf16.msra.mxu3 %v13200_v60  ;;  %v13712_v61 = vor.u32 %v18050_v56, %v13711_v41  ;;  %v13904_v62 = vor.u32 %v18098_v21, %v13903_v29  ;;  %v17954_v60 = vld [vmem:[#allocation7 + $0x2e4] sm:$0xf0]  ;;  %v2516_v56 = vpop.f32.mrf.mxu1 }
 0x1fd   :  { %v14537_v18 = vld [vmem:[#allocation7 + $0xc60] sm:$0xf0]  ;;  %5865 = vmatmul.bf16.vlgmr.msrb.gmra.mxu0 %v19538_v4  ;;  %v13680_v3 = vor.u32 %v18042_v1, %v13679_v34  ;;  %v13328_v26 = vor.u32 %v17954_v60, %v13327_v43  ;;  %v17946_v38 = vld [vmem:[#allocation7 + $0x2a4] sm:$0xf0]  ;;  %v2517_v46 = vadd.f32 %v2516_v56, %v461_v27 }
 0x1fe   :  { %5890 = vmatpush.bf16.msrb.mxu2 %v14764_v28  ;;  %v14540_v30 = vor.u32 %v18253_v16, %v14537_v18  ;;  %v18245_v32 = vld [vmem:[#allocation7 + $0xc04] sm:$0xf]  ;;  %5909 = vmatpush.bf16.msra.mxu0 %v13456_v17  ;;  %v13872_v28 = vor.u32 %v18090_v9, %v13871_v2  ;;  %v13647_v17 = vld [vmem:[#allocation7 + $0x548] sm:$0xf]  ;;  %v2478_v16 = vadd.f32 %v2477_v42, %v460_v51  ;;  %v2479_v18 = vpop.f32.mrf.mxu0 }
 0x1ff   :  { %v14505_v37 = vld [vmem:[#allocation7 + $0xc20] sm:$0xf0]  ;;  %v13615_v23 = vld [vmem:[#allocation7 + $0x508] sm:$0xf] }
 0x200   :  { %5876 = vmatpush.bf16.msrb.mxu1 %v14540_v30  ;;  %v14508_v48 = vor.u32 %v18245_v32, %v14505_v37  ;;  %5897 = vmatpush.bf16.msra.mxu3 %v13168_v20  ;;  %v17882_v30 = vld [vmem:[#allocation7 + $0xa4] sm:$0xf0]  ;;  %v13648_v32 = vor.u32 %v18034_v33, %v13647_v17 }
 0x201   :  { %5891 = vmatmul.bf16.vlgmr.msrb.gmra.mxu2 %v19540_v7  ;;  %v13295_v37 = vld [vmem:[#allocation7 + $0x288] sm:$0xf]  ;;  %v13040_v29 = vor.u32 %v17882_v30, %v13039_v36 }
 0x202   :  { %5935 = vmatpush.bf16.msra.mxu2 %v13968_v8  ;;  %5910 = vmatpush.bf16.msra.mxu0 %v13424_v35  ;;  %v13839_v8 = vld [vmem:[#allocation7 + $0x6c8] sm:$0xf]  ;;  %v2490_v35 = vpop.f32.mrf.mxu3  ;;  %v2529_v42 = vpop.f32.mrf.mxu2 }
 0x203   :  { %v13840_v20 = vor.u32 %v18082_v24, %v13839_v8  ;;  %v18026_v40 = vld [vmem:[#allocation7 + $0x524] sm:$0xf0]  ;;  %v2530_v55 = vadd.f32 %v2529_v42, %v2517_v46 }
 0x204   :  { %5877 = vmatpush.bf16.msrb.mxu1 %v14508_v48  ;;  %5898 = vmatpush.bf16.msra.mxu3 %v13136_v52  ;;  %v13807_v19 = vld [vmem:[#allocation7 + $0x688] sm:$0xf]  ;;  %v13296_v48 = vor.u32 %v17946_v38, %v13295_v37  ;;  %v13616_v50 = vor.u32 %v18026_v40, %v13615_v23  ;;  %v2518_v24 = vpop.f32.mrf.mxu1 }
 0x205   :  { %v18074_v41 = vld [vmem:[#allocation7 + $0x6a4] sm:$0xf0] }
 0x206   :  { %5936 = vmatpush.bf16.msra.mxu2 %v13936_v39  ;;  %5911 = vmatpush.bf16.msra.mxu0 %v13392_v57  ;;  %v2491_v39 = vadd.f32 %v2490_v35, %v2478_v16  ;;  %v13007_v22 = vld [vmem:[#allocation7 + $0x48] sm:$0xf]  ;;  %v13808_v51 = vor.u32 %v18074_v41, %v13807_v19  ;;  %v2542_v5 = vpop.f32.mrf.mxu0 }
 0x207   :  { %5878 = vmatmul.bf16.vlgmr.msrb.gmra.mxu1 %v19550_v45  ;;  %v17874_v6 = vld [vmem:[#allocation7 + $0x64] sm:$0xf0]  ;;  %v2543_v14 = vadd.f32 %v2542_v5, %v2530_v55 }
 0x208   :  { %5922 = vmatpush.bf16.msra.mxu1 %v13712_v61  ;;  %5899 = vmatpush.bf16.msra.mxu3 %v13104_v10  ;;  %v2504_v21 = vadd.f32 %v19567_v47, %v2491_v39  ;;  %v13263_v52 = vld [vmem:[#allocation7 + $0x248] sm:$0xf]  ;;  %v13008_v47 = vor.u32 %v17874_v6, %v13007_v22 }
 0x209   :  { %v17938_v57 = vld [vmem:[#allocation7 + $0x264] sm:$0xf0] }
 0x20a   :  { %5937 = vmatpush.bf16.msra.mxu2 %v13904_v62  ;;  %5912 = vmatpush.bf16.msra.mxu0 %v13360_v11  ;;  %v13583_v53 = vld [vmem:[#allocation7 + $0x4c8] sm:$0xf]  ;;  %v13264_v34 = vor.u32 %v17938_v57, %v13263_v52  ;;  %19054 = vtanh.f32 %v2504_v21  ;;  %v2531_v16 = vpop.f32.mrf.mxu2 }
 0x20b   :  { %v18018_v58 = vld [vmem:[#allocation7 + $0x4e4] sm:$0xf0]  ;;  %19056 = vtanh.f32 %v2543_v14  ;;  %v19586_v16 = vld [vmem:[#allocation9] sm:$0xff] }
 0x20c   :  { %5923 = vmatpush.bf16.msra.mxu1 %v13680_v3  ;;  %5900 = vmatpush.bf16.msra.mxu3 %v13072_v25  ;;  %v13775_v61 = vld [vmem:[#allocation7 + $0x648] sm:$0xf]  ;;  %v13584_v10 = vor.u32 %v18018_v58, %v13583_v53 }
 0x20d   :  { %v18066_v62 = vld [vmem:[#allocation7 + $0x664] sm:$0xf0] }
 0x20e   :  { %5938 = vmatpush.bf16.msra.mxu2 %v13872_v28  ;;  %5913 = vmatpush.bf16.msra.mxu0 %v13328_v26  ;;  %v12975_v1 = vld [vmem:[#allocation7 + $0x8] sm:$0xf]  ;;  %v13776_v11 = vor.u32 %v18066_v62, %v13775_v61  ;;  %v2492_v28 = vpop.f32.mrf.mxu3  ;;  %v2544_v19 = vpop.f32.mrf.mxu0 }
 0x20f   :  { %v17866_v2 = vld [vmem:[#allocation7 + $0x24] sm:$0xf0] }
 0x210   :  { %5924 = vmatpush.bf16.msra.mxu1 %v13648_v32  ;;  %5901 = vmatpush.bf16.msra.mxu3 %v13040_v29  ;;  %v13231_v9 = vld [vmem:[#allocation7 + $0x208] sm:$0xf]  ;;  %v12976_v25 = vor.u32 %v17866_v2, %v12975_v1  ;;  %v19055_v39 = vpop.eup %19054 }
 0x211   :  { %v17930_v15 = vld [vmem:[#allocation7 + $0x224] sm:$0xf0]  ;;  %v19057_v29 = vpop.eup %19056 }
 0x212   :  { %5939 = vmatpush.bf16.msra.mxu2 %v13840_v20  ;;  %5914 = vmatpush.bf16.msra.mxu0 %v13296_v48  ;;  %v13551_v13 = vld [vmem:[#allocation7 + $0x488] sm:$0xf]  ;;  %v13232_v26 = vor.u32 %v17930_v15, %v13231_v9  ;;  %v19581_v48 = vpack.c.bf16 %v19057_v29, %v19055_v39 }
 0x213   :  { %v18010_v3 = vld [vmem:[#allocation7 + $0x4a4] sm:$0xf0] }
 0x214   :  { %5925 = vmatpush.bf16.msra.mxu1 %v13616_v50  ;;  %v13743_v43 = vld [vmem:[#allocation7 + $0x608] sm:$0xf]  ;;  %5902 = vmatpush.bf16.msra.mxu3 %v13008_v47  ;;  %v13552_v30 = vor.u32 %v18010_v3, %v13551_v13 }
 0x215   :  { %v18058_v60 = vld [vmem:[#allocation7 + $0x624] sm:$0xf0] }
 0x216   :  { %5940 = vmatpush.bf16.msra.mxu2 %v13808_v51  ;;  %v14223_v17 = vld [vmem:[#allocation7 + $0x9c8] sm:$0xf]  ;;  %5915 = vmatpush.bf16.msra.mxu0 %v13264_v34  ;;  %v13744_v32 = vor.u32 %v18058_v60, %v13743_v43 }
 0x217   :  { %v18178_v18 = vld [vmem:[#allocation7 + $0x9e4] sm:$0xf0] }
 0x218   :  { %v14479_v33 = vld [vmem:[#allocation7 + $0xbc8] sm:$0xf]  ;;  %5926 = vmatpush.bf16.msra.mxu1 %v13584_v10  ;;  %v14224_v20 = vor.u32 %v18178_v18, %v14223_v17  ;;  %5903 = vmatpush.bf16.msra.mxu3 %v12976_v25  ;;  %v5710_v18 = vpop.f32.mrf.mxu0 }
 0x219   :  { %v18242_v8 = vld [vmem:[#allocation7 + $0xbe4] sm:$0xf0] }
 0x21a   :  { %v14991_v27 = vld [vmem:[#allocation7 + $0xfc8] sm:$0xf]  ;;  %5941 = vmatpush.bf16.msra.mxu2 %v13776_v11  ;;  %v14480_v35 = vor.u32 %v18242_v8, %v14479_v33  ;;  %5916 = vmatpush.bf16.msra.mxu0 %v13232_v26 }
 0x21b   :  { %v18370_v36 = vld [vmem:[#allocation7 + $0xfe4] sm:$0xf0]  ;;  %5904 = vmatmul.bf16.vlgmr.msra.gmra.mxu3 %v19504_v44 }
 0x21c   :  { %v13519_v37 = vld [vmem:[#allocation7 + $0x448] sm:$0xf]  ;;  %v14992_v40 = vor.u32 %v18370_v36, %v14991_v27  ;;  %5927 = vmatpush.bf16.msra.mxu1 %v13552_v30  ;;  %5948 = vmatpush.bf16.msrb.mxu3 %v14224_v20  ;;  %v3084_v20 = vperm.slane %v19586_v16, 0 }
 0x21d   :  { %v18002_v38 = vld [vmem:[#allocation7 + $0x464] sm:$0xf0]  ;;  %5917 = vmatmul.bf16.vlgmr.msra.gmra.mxu0 %v19506_v49 }
 0x21e   :  { %v14191_v23 = vld [vmem:[#allocation7 + $0x988] sm:$0xf]  ;;  %5942 = vmatpush.bf16.msra.mxu2 %v13744_v32  ;;  %v13520_v22 = vor.u32 %v18002_v38, %v13519_v37  ;;  %5961 = vmatpush.bf16.msrb.mxu0 %v14480_v35 }
 0x21f   :  { %v18170_v41 = vld [vmem:[#allocation7 + $0x9a4] sm:$0xf0] }
 0x220   :  { %v14447_v42 = vld [vmem:[#allocation7 + $0xb88] sm:$0xf]  ;;  %v14192_v50 = vor.u32 %v18170_v41, %v14191_v23  ;;  %5928 = vmatpush.bf16.msra.mxu1 %v13520_v22 }
 0x221   :  { %v18234_v56 = vld [vmem:[#allocation7 + $0xba4] sm:$0xf0]  ;;  %5943 = vmatmul.bf16.vlgmr.msra.gmra.mxu2 %v19509_v54 }
 0x222   :  { %v14959_v21 = vld [vmem:[#allocation7 + $0xf88] sm:$0xf]  ;;  %v14448_v51 = vor.u32 %v18234_v56, %v14447_v42  ;;  %5987 = vmatpush.bf16.msrb.mxu2 %v14992_v40  ;;  %5949 = vmatpush.bf16.msrb.mxu3 %v14192_v50  ;;  %v5697_v40 = vpop.f32.mrf.mxu3 }
 0x223   :  { %v18362_v46 = vld [vmem:[#allocation7 + $0xfa4] sm:$0xf0]  ;;  %v5698_v29 = vadd.f32 %v5697_v40, %v3084_v20  ;;  %v18110_v40 = vld [vmem:[#allocation7 + $0x7cc] sm:$0xf] }
 0x224   :  { %v13487_v6 = vld [vmem:[#allocation7 + $0x408] sm:$0xf]  ;;  %v14960_v55 = vor.u32 %v18362_v46, %v14959_v21  ;;  %5962 = vmatpush.bf16.msrb.mxu0 %v14448_v51  ;;  %v5736_v21 = vpop.f32.mrf.mxu2 }
 0x225   :  { %v17994_v52 = vld [vmem:[#allocation7 + $0x424] sm:$0xf0] }
 0x226   :  { %v14159_v57 = vld [vmem:[#allocation7 + $0x948] sm:$0xf]  ;;  %v13488_v34 = vor.u32 %v17994_v52, %v13487_v6  ;;  %5988 = vmatpush.bf16.msrb.mxu2 %v14960_v55  ;;  %v5723_v55 = vpop.f32.mrf.mxu1 }
 0x227   :  { %v18162_v53 = vld [vmem:[#allocation7 + $0x964] sm:$0xf0] }
 0x228   :  { %v14415_v58 = vld [vmem:[#allocation7 + $0xb48] sm:$0xf]  ;;  %v14160_v1 = vor.u32 %v18162_v53, %v14159_v57  ;;  %5929 = vmatpush.bf16.msra.mxu1 %v13488_v34  ;;  %v5712_v57 = vpop.f32.mrf.mxu0  ;;  %v5711_v53 = vadd.f32 %v5710_v18, %v5698_v29 }
 0x229   :  { %v18226_v61 = vld [vmem:[#allocation7 + $0xb64] sm:$0xf0]  ;;  %v18102_v57 = vld [vmem:[#allocation7 + $0x78c] sm:$0xf] }
 0x22a   :  { %v14735_v62 = vld [vmem:[#allocation7 + $0xdc8] sm:$0xf]  ;;  %v14416_v2 = vor.u32 %v18226_v61, %v14415_v58  ;;  %5950 = vmatpush.bf16.msrb.mxu3 %v14160_v1 }
 0x22b   :  { %v18306_v5 = vld [vmem:[#allocation7 + $0xde4] sm:$0xf0]  ;;  %5930 = vmatmul.bf16.vlgmr.msra.gmra.mxu1 %v19520_v31 }
 0x22c   :  { %v14927_v14 = vld [vmem:[#allocation7 + $0xf48] sm:$0xf]  ;;  %v14736_v15 = vor.u32 %v18306_v5, %v14735_v62  ;;  %5963 = vmatpush.bf16.msrb.mxu0 %v14416_v2 }
 0x22d   :  { %v18354_v47 = vld [vmem:[#allocation7 + $0xf64] sm:$0xf0] }
 0x22e   :  { %v14127_v9 = vld [vmem:[#allocation7 + $0x908] sm:$0xf]  ;;  %v14928_v13 = vor.u32 %v18354_v47, %v14927_v14  ;;  %5974 = vmatpush.bf16.msrb.mxu1 %v14736_v15  ;;  %v5724_v14 = vadd.f32 %v5723_v55, %v5711_v53  ;;  %v5725_v20 = vpop.f32.mrf.mxu1  ;;  %v13937_v53 = vld [vmem:[#allocation7 + $0x7a8] sm:$0xf0] }
 0x22f   :  { %v18154_v10 = vld [vmem:[#allocation7 + $0x924] sm:$0xf0] }
 0x230   :  { %v14383_v11 = vld [vmem:[#allocation7 + $0xb08] sm:$0xf]  ;;  %v14128_v33 = vor.u32 %v18154_v10, %v14127_v9  ;;  %5989 = vmatpush.bf16.msrb.mxu2 %v14928_v13  ;;  %v19590_v13 = vadd.f32 %v5736_v21, %v5724_v14  ;;  %v17902_v14 = vld [vmem:[#allocation7 + $0x14c] sm:$0xf] }
 0x231   :  { %v18218_v3 = vld [vmem:[#allocation7 + $0xb24] sm:$0xf0] }
 0x232   :  { %v14703_v28 = vld [vmem:[#allocation7 + $0xd88] sm:$0xf]  ;;  %v14384_v8 = vor.u32 %v18218_v3, %v14383_v11  ;;  %5951 = vmatpush.bf16.msrb.mxu3 %v14128_v33 }
 0x233   :  { %v18298_v43 = vld [vmem:[#allocation7 + $0xda4] sm:$0xf0] }
 0x234   :  { %v14895_v60 = vld [vmem:[#allocation7 + $0xf08] sm:$0xf]  ;;  %v14704_v27 = vor.u32 %v18298_v43, %v14703_v28  ;;  %5964 = vmatpush.bf16.msrb.mxu0 %v14384_v8  ;;  %v5699_v43 = vpop.f32.mrf.mxu3 }
 0x235   :  { %v18346_v17 = vld [vmem:[#allocation7 + $0xf24] sm:$0xf0] }
 0x236   :  { %v14095_v24 = vld [vmem:[#allocation7 + $0x8c8] sm:$0xf]  ;;  %v14896_v36 = vor.u32 %v18346_v17, %v14895_v60  ;;  %5975 = vmatpush.bf16.msrb.mxu1 %v14704_v27 }
 0x237   :  { %v18146_v25 = vld [vmem:[#allocation7 + $0x8e4] sm:$0xf0] }
 0x238   :  { %v14351_v26 = vld [vmem:[#allocation7 + $0xac8] sm:$0xf]  ;;  %v14096_v23 = vor.u32 %v18146_v25, %v14095_v24  ;;  %5990 = vmatpush.bf16.msrb.mxu2 %v14896_v36  ;;  %v5738_v24 = vpop.f32.mrf.mxu2 }
 0x239   :  { %v18210_v30 = vld [vmem:[#allocation7 + $0xae4] sm:$0xf0]  ;;  %v13361_v24 = vld [vmem:[#allocation7 + $0x328] sm:$0xf0] }
 0x23a   :  { %v14671_v32 = vld [vmem:[#allocation7 + $0xd48] sm:$0xf]  ;;  %v14352_v39 = vor.u32 %v18210_v30, %v14351_v26  ;;  %5952 = vmatpush.bf16.msrb.mxu3 %v14096_v23 }
 0x23b   :  { %v18290_v35 = vld [vmem:[#allocation7 + $0xd64] sm:$0xf0] }
 0x23c   :  { %v14863_v37 = vld [vmem:[#allocation7 + $0xec8] sm:$0xf]  ;;  %v14672_v42 = vor.u32 %v18290_v35, %v14671_v32  ;;  %5965 = vmatpush.bf16.msrb.mxu0 %v14352_v39  ;;  %v17918_v32 = vld [vmem:[#allocation7 + $0x1cc] sm:$0xf] }
 0x23d   :  { %v18338_v38 = vld [vmem:[#allocation7 + $0xee4] sm:$0xf0]  ;;  %v13201_v35 = vld [vmem:[#allocation7 + $0x1e8] sm:$0xf0] }
 0x23e   :  { %v14063_v19 = vld [vmem:[#allocation7 + $0x888] sm:$0xf]  ;;  %v14864_v56 = vor.u32 %v18338_v38, %v14863_v37  ;;  %5976 = vmatpush.bf16.msrb.mxu1 %v14672_v42  ;;  %v17982_v37 = vld [vmem:[#allocation7 + $0x3cc] sm:$0xf] }
 0x23f   :  { %v18138_v41 = vld [vmem:[#allocation7 + $0x8a4] sm:$0xf0]  ;;  %v13457_v38 = vld [vmem:[#allocation7 + $0x3e8] sm:$0xf0] }
 0x240   :  { %v14319_v46 = vld [vmem:[#allocation7 + $0xa88] sm:$0xf]  ;;  %v14064_v58 = vor.u32 %v18138_v41, %v14063_v19  ;;  %5991 = vmatpush.bf16.msrb.mxu2 %v14864_v56  ;;  %v13969_v19 = vld [vmem:[#allocation7 + $0x7e8] sm:$0xf0]  ;;  %v13204_v56 = vor.u32 %v17918_v32, %v13201_v35  ;;  %v13460_v29 = vor.u32 %v17982_v37, %v13457_v38 }
 0x241   :  { %v18202_v22 = vld [vmem:[#allocation7 + $0xaa4] sm:$0xf0]  ;;  %v17886_v35 = vld [vmem:[#allocation7 + $0xcc] sm:$0xf] }
 0x242   :  { %v14639_v6 = vld [vmem:[#allocation7 + $0xd08] sm:$0xf]  ;;  %v14320_v61 = vor.u32 %v18202_v22, %v14319_v46  ;;  %5953 = vmatpush.bf16.msrb.mxu3 %v14064_v58  ;;  %v17910_v22 = vld [vmem:[#allocation7 + $0x18c] sm:$0xf] }
 0x243   :  { %v18282_v50 = vld [vmem:[#allocation7 + $0xd24] sm:$0xf0]  ;;  %v13073_v37 = vld [vmem:[#allocation7 + $0xe8] sm:$0xf0] }
 0x244   :  { %v14831_v51 = vld [vmem:[#allocation7 + $0xe88] sm:$0xf]  ;;  %v14640_v47 = vor.u32 %v18282_v50, %v14639_v6  ;;  %5966 = vmatpush.bf16.msrb.mxu0 %v14320_v61  ;;  %v13972_v6 = vor.u32 %v18110_v40, %v13969_v19  ;;  %v13169_v50 = vld [vmem:[#allocation7 + $0x1a8] sm:$0xf0] }
 0x245   :  { %v18330_v52 = vld [vmem:[#allocation7 + $0xea4] sm:$0xf0]  ;;  %v13172_v61 = vor.u32 %v17910_v22, %v13169_v50  ;;  %v13329_v40 = vld [vmem:[#allocation7 + $0x2e8] sm:$0xf0] }
 0x246   :  { %v14031_v62 = vld [vmem:[#allocation7 + $0x848] sm:$0xf]  ;;  %v14832_v34 = vor.u32 %v18330_v52, %v14831_v51  ;;  %5977 = vmatpush.bf16.msrb.mxu1 %v14640_v47  ;;  %v17974_v51 = vld [vmem:[#allocation7 + $0x38c] sm:$0xf] }
 0x247   :  { %v18130_v5 = vld [vmem:[#allocation7 + $0x864] sm:$0xf0]  ;;  %v13425_v52 = vld [vmem:[#allocation7 + $0x3a8] sm:$0xf0] }
 0x248   :  { %v14287_v1 = vld [vmem:[#allocation7 + $0xa48] sm:$0xf]  ;;  %v14032_v3 = vor.u32 %v18130_v5, %v14031_v62  ;;  %5992 = vmatpush.bf16.msrb.mxu2 %v14832_v34  ;;  %v13428_v62 = vor.u32 %v17974_v51, %v13425_v52  ;;  %v13137_v47 = vld [vmem:[#allocation7 + $0x168] sm:$0xf0]  ;;  %v13940_v34 = vor.u32 %v18102_v57, %v13937_v53  ;;  %v5788_v57 = vpop.f32.mrf.mxu2 }
 0x249   :  { %v18194_v2 = vld [vmem:[#allocation7 + $0xa64] sm:$0xf0]  ;;  %v18030_v19 = vld [vmem:[#allocation7 + $0x54c] sm:$0xf] }
 0x24a   :  { %v14607_v9 = vld [vmem:[#allocation7 + $0xcc8] sm:$0xf]  ;;  %v14288_v28 = vor.u32 %v18194_v2, %v14287_v1  ;;  %5954 = vmatpush.bf16.msrb.mxu3 %v14032_v3  ;;  %v17966_v1 = vld [vmem:[#allocation7 + $0x34c] sm:$0xf] }
 0x24b   :  { %v18274_v10 = vld [vmem:[#allocation7 + $0xce4] sm:$0xf0]  ;;  %v13393_v2 = vld [vmem:[#allocation7 + $0x368] sm:$0xf0] }
 0x24c   :  { %v14799_v11 = vld [vmem:[#allocation7 + $0xe48] sm:$0xf]  ;;  %v14608_v33 = vor.u32 %v18274_v10, %v14607_v9  ;;  %5967 = vmatpush.bf16.msrb.mxu0 %v14288_v28  ;;  %v18046_v9 = vld [vmem:[#allocation7 + $0x5cc] sm:$0xf]  ;;  %v13140_v28 = vor.u32 %v17902_v14, %v13137_v47  ;;  %v13396_v43 = vor.u32 %v17966_v1, %v13393_v2 }
 0x24d   :  { %v18322_v15 = vld [vmem:[#allocation7 + $0xe64] sm:$0xf0]  ;;  %v13713_v10 = vld [vmem:[#allocation7 + $0x5e8] sm:$0xf0] }
 0x24e   :  { %v13999_v60 = vld [vmem:[#allocation7 + $0x808] sm:$0xf]  ;;  %v14800_v8 = vor.u32 %v18322_v15, %v14799_v11  ;;  %5978 = vmatpush.bf16.msrb.mxu1 %v14608_v33  ;;  %v18094_v11 = vld [vmem:[#allocation7 + $0x74c] sm:$0xf] }
 0x24f   :  { %v18122_v17 = vld [vmem:[#allocation7 + $0x824] sm:$0xf0]  ;;  %v13905_v15 = vld [vmem:[#allocation7 + $0x768] sm:$0xf0] }
 0x250   :  { %v14255_v18 = vld [vmem:[#allocation7 + $0xa08] sm:$0xf]  ;;  %v14000_v23 = vor.u32 %v18122_v17, %v13999_v60  ;;  %5993 = vmatpush.bf16.msrb.mxu2 %v14800_v8  ;;  %v17894_v60 = vld [vmem:[#allocation7 + $0x10c] sm:$0xf]  ;;  %v13908_v33 = vor.u32 %v18094_v11, %v13905_v15 }
 0x251   :  { %v18186_v25 = vld [vmem:[#allocation7 + $0xa24] sm:$0xf0]  ;;  %v13105_v17 = vld [vmem:[#allocation7 + $0x128] sm:$0xf0] }
 0x252   :  { %v14575_v26 = vld [vmem:[#allocation7 + $0xc88] sm:$0xf]  ;;  %v14256_v39 = vor.u32 %v18186_v25, %v14255_v18  ;;  %5955 = vmatpush.bf16.msrb.mxu3 %v14000_v23  ;;  %v13716_v18 = vor.u32 %v18046_v9, %v13713_v10  ;;  %v17958_v8 = vld [vmem:[#allocation7 + $0x30c] sm:$0xf]  ;;  %v13108_v32 = vor.u32 %v17894_v60, %v13105_v17 }
 0x253   :  { %v18266_v27 = vld [vmem:[#allocation7 + $0xca4] sm:$0xf0]  ;;  %v18038_v25 = vld [vmem:[#allocation7 + $0x58c] sm:$0xf]  ;;  %v13364_v20 = vor.u32 %v17958_v8, %v13361_v24 }
 0x254   :  { %v14767_v36 = vld [vmem:[#allocation7 + $0xe08] sm:$0xf]  ;;  %v14576_v41 = vor.u32 %v18266_v27, %v14575_v26  ;;  %5968 = vmatpush.bf16.msrb.mxu0 %v14256_v39  ;;  %v13681_v26 = vld [vmem:[#allocation7 + $0x5a8] sm:$0xf0] }
 0x255   :  { %v18314_v30 = vld [vmem:[#allocation7 + $0xe24] sm:$0xf0]  ;;  %5956 = vmatmul.bf16.vlgmr.msrb.gmra.mxu3 %v19536_v63  ;;  %v18086_v27 = vld [vmem:[#allocation7 + $0x70c] sm:$0xf]  ;;  %v13684_v38 = vor.u32 %v18038_v25, %v13681_v26 }
 0x256   :  { %v14768_v42 = vor.u32 %v18314_v30, %v14767_v36  ;;  %v14543_v21 = vld [vmem:[#allocation7 + $0xc48] sm:$0xf]  ;;  %5979 = vmatpush.bf16.msrb.mxu1 %v14576_v41  ;;  %6000 = vmatpush.bf16.msra.mxu3 %v13204_v56  ;;  %v13873_v36 = vld [vmem:[#allocation7 + $0x728] sm:$0xf0]  ;;  %v5762_v30 = vpop.f32.mrf.mxu0 }
 0x257   :  { %v18258_v46 = vld [vmem:[#allocation7 + $0xc64] sm:$0xf0]  ;;  %5969 = vmatmul.bf16.vlgmr.msrb.gmra.mxu0 %v19538_v4  ;;  %v13876_v23 = vor.u32 %v18086_v27, %v13873_v36  ;;  %v17950_v39 = vld [vmem:[#allocation7 + $0x2cc] sm:$0xf] }
 0x258   :  { %5994 = vmatpush.bf16.msrb.mxu2 %v14768_v42  ;;  %v14544_v55 = vor.u32 %v18258_v46, %v14543_v21  ;;  %v14511_v58 = vld [vmem:[#allocation7 + $0xc08] sm:$0xf]  ;;  %6013 = vmatpush.bf16.msra.mxu0 %v13460_v29  ;;  %v13649_v41 = vld [vmem:[#allocation7 + $0x568] sm:$0xf0]  ;;  %v13076_v29 = vor.u32 %v17886_v35, %v13073_v37  ;;  %v13332_v21 = vor.u32 %v17950_v39, %v13329_v40  ;;  %v5749_v46 = vpop.f32.mrf.mxu3 }
 0x259   :  { %v18250_v5 = vld [vmem:[#allocation7 + $0xc24] sm:$0xf0]  ;;  %v18078_v42 = vld [vmem:[#allocation7 + $0x6cc] sm:$0xf]  ;;  %v13652_v50 = vor.u32 %v18030_v19, %v13649_v41  ;;  %v5750_v52 = vadd.f32 %v5749_v46, %v19590_v13 }
 0x25a   :  { %5980 = vmatpush.bf16.msrb.mxu1 %v14544_v55  ;;  %v14512_v3 = vor.u32 %v18250_v5, %v14511_v58  ;;  %6001 = vmatpush.bf16.msra.mxu3 %v13172_v61  ;;  %v13841_v56 = vld [vmem:[#allocation7 + $0x6e8] sm:$0xf0] }
 0x25b   :  { %5995 = vmatmul.bf16.vlgmr.msrb.gmra.mxu2 %v19540_v7  ;;  %v17878_v22 = vld [vmem:[#allocation7 + $0x8c] sm:$0xf]  ;;  %v13844_v51 = vor.u32 %v18078_v42, %v13841_v56  ;;  %v5763_v47 = vadd.f32 %v5762_v30, %v5750_v52 }
 0x25c   :  { %6039 = vmatpush.bf16.msra.mxu2 %v13972_v6  ;;  %6014 = vmatpush.bf16.msra.mxu0 %v13428_v62  ;;  %v13041_v6 = vld [vmem:[#allocation7 + $0xa8] sm:$0xf0] }
 0x25d   :  { %v17942_v53 = vld [vmem:[#allocation7 + $0x28c] sm:$0xf]  ;;  %v13044_v1 = vor.u32 %v17878_v22, %v13041_v6 }
 0x25e   :  { %5981 = vmatpush.bf16.msrb.mxu1 %v14512_v3  ;;  %6002 = vmatpush.bf16.msra.mxu3 %v13140_v28  ;;  %v13297_v55 = vld [vmem:[#allocation7 + $0x2a8] sm:$0xf0]  ;;  %v5764_v14 = vpop.f32.mrf.mxu0 }
 0x25f   :  { %v18022_v58 = vld [vmem:[#allocation7 + $0x50c] sm:$0xf]  ;;  %v13300_v2 = vor.u32 %v17942_v53, %v13297_v55 }
 0x260   :  { %6040 = vmatpush.bf16.msra.mxu2 %v13940_v34  ;;  %6015 = vmatpush.bf16.msra.mxu0 %v13396_v43  ;;  %v13617_v61 = vld [vmem:[#allocation7 + $0x528] sm:$0xf0]  ;;  %v5775_v34 = vpop.f32.mrf.mxu1  ;;  %v5751_v25 = vpop.f32.mrf.mxu3 }
 0x261   :  { %5982 = vmatmul.bf16.vlgmr.msrb.gmra.mxu1 %v19550_v45  ;;  %v18070_v62 = vld [vmem:[#allocation7 + $0x68c] sm:$0xf]  ;;  %v5776_v11 = vadd.f32 %v5775_v34, %v5763_v47  ;;  %v13620_v13 = vor.u32 %v18022_v58, %v13617_v61 }
 0x262   :  { %6026 = vmatpush.bf16.msra.mxu1 %v13716_v18  ;;  %6003 = vmatpush.bf16.msra.mxu3 %v13108_v32  ;;  %v13809_v5 = vld [vmem:[#allocation7 + $0x6a8] sm:$0xf0] }
 0x263   :  { %v17870_v9 = vld [vmem:[#allocation7 + $0x4c] sm:$0xf]  ;;  %v13812_v15 = vor.u32 %v18070_v62, %v13809_v5 }
 0x264   :  { %6041 = vmatpush.bf16.msra.mxu2 %v13908_v33  ;;  %6016 = vmatpush.bf16.msra.mxu0 %v13364_v20  ;;  %v13009_v10 = vld [vmem:[#allocation7 + $0x68] sm:$0xf0]  ;;  %v19597_v33 = vadd.f32 %v5788_v57, %v5776_v11  ;;  %v5790_v20 = vpop.f32.mrf.mxu2 }
 0x265   :  { %v17934_v3 = vld [vmem:[#allocation7 + $0x24c] sm:$0xf]  ;;  %v13012_v8 = vor.u32 %v17870_v9, %v13009_v10 }
 0x266   :  { %6027 = vmatpush.bf16.msra.mxu1 %v13684_v38  ;;  %6004 = vmatpush.bf16.msra.mxu3 %v13076_v29  ;;  %v13265_v28 = vld [vmem:[#allocation7 + $0x268] sm:$0xf0]  ;;  %19058 = vtanh.f32 %v19597_v33  ;;  %v14231_v33 = vld [vmem:[#allocation7 + $0x9d0] sm:$0xf] }
 0x267   :  { %v18014_v43 = vld [vmem:[#allocation7 + $0x4cc] sm:$0xf]  ;;  %v13268_v24 = vor.u32 %v17934_v3, %v13265_v28 }
 0x268   :  { %6042 = vmatpush.bf16.msra.mxu2 %v13876_v23  ;;  %6017 = vmatpush.bf16.msra.mxu0 %v13332_v21  ;;  %v13585_v60 = vld [vmem:[#allocation7 + $0x4e8] sm:$0xf0]  ;;  %v5777_v19 = vpop.f32.mrf.mxu1 }
 0x269   :  { %v18062_v17 = vld [vmem:[#allocation7 + $0x64c] sm:$0xf]  ;;  %v13588_v30 = vor.u32 %v18014_v43, %v13585_v60 }
 0x26a   :  { %6028 = vmatpush.bf16.msra.mxu1 %v13652_v50  ;;  %v13777_v18 = vld [vmem:[#allocation7 + $0x668] sm:$0xf0]  ;;  %6005 = vmatpush.bf16.msra.mxu3 %v13044_v1 }
 0x26b   :  { %v17862_v26 = vld [vmem:[#allocation7 + $0xc] sm:$0xf]  ;;  %v13780_v32 = vor.u32 %v18062_v17, %v13777_v18 }
 0x26c   :  { %6043 = vmatpush.bf16.msra.mxu2 %v13844_v51  ;;  %6018 = vmatpush.bf16.msra.mxu0 %v13300_v2  ;;  %v12977_v27 = vld [vmem:[#allocation7 + $0x28] sm:$0xf0] }
 0x26d   :  { %v17926_v36 = vld [vmem:[#allocation7 + $0x20c] sm:$0xf]  ;;  %v12980_v29 = vor.u32 %v17862_v26, %v12977_v27 }
 0x26e   :  { %6029 = vmatpush.bf16.msra.mxu1 %v13620_v13  ;;  %v13233_v35 = vld [vmem:[#allocation7 + $0x228] sm:$0xf0]  ;;  %6006 = vmatpush.bf16.msra.mxu3 %v13012_v8 }
 0x26f   :  { %v18006_v37 = vld [vmem:[#allocation7 + $0x48c] sm:$0xf]  ;;  %v13236_v21 = vor.u32 %v17926_v36, %v13233_v35 }
 0x270   :  { %6044 = vmatpush.bf16.msra.mxu2 %v13812_v15  ;;  %v13553_v38 = vld [vmem:[#allocation7 + $0x4a8] sm:$0xf0]  ;;  %6019 = vmatpush.bf16.msra.mxu0 %v13268_v24 }
 0x271   :  { %v18054_v23 = vld [vmem:[#allocation7 + $0x60c] sm:$0xf]  ;;  %v13556_v6 = vor.u32 %v18006_v37, %v13553_v38 }
 0x272   :  { %v13745_v39 = vld [vmem:[#allocation7 + $0x628] sm:$0xf0]  ;;  %6030 = vmatpush.bf16.msra.mxu1 %v13588_v30  ;;  %6007 = vmatpush.bf16.msra.mxu3 %v12980_v29 }
 0x273   :  { %v18174_v40 = vld [vmem:[#allocation7 + $0x9cc] sm:$0xf]  ;;  %v13748_v50 = vor.u32 %v18054_v23, %v13745_v39  ;;  %v5814_v39 = vpop.f32.mrf.mxu0 }
 0x274   :  { %v14225_v41 = vld [vmem:[#allocation7 + $0x9e8] sm:$0xf0]  ;;  %6045 = vmatpush.bf16.msra.mxu2 %v13780_v32  ;;  %6020 = vmatpush.bf16.msra.mxu0 %v13236_v21 }
 0x275   :  { %v18238_v42 = vld [vmem:[#allocation7 + $0xbcc] sm:$0xf]  ;;  %v14228_v51 = vor.u32 %v18174_v40, %v14225_v41  ;;  %6008 = vmatmul.bf16.vlgmr.msra.gmra.mxu3 %v19504_v44 }
 0x276   :  { %v14481_v56 = vld [vmem:[#allocation7 + $0xbe8] sm:$0xf0]  ;;  %6031 = vmatpush.bf16.msra.mxu1 %v13556_v6  ;;  %v3085_v6 = vperm.slane %v19586_v16, 1 }
 0x277   :  { %v18366_v46 = vld [vmem:[#allocation7 + $0xfcc] sm:$0xf]  ;;  %v14484_v52 = vor.u32 %v18238_v42, %v14481_v56  ;;  %6052 = vmatpush.bf16.msrb.mxu3 %v14228_v51  ;;  %6021 = vmatmul.bf16.vlgmr.msra.gmra.mxu0 %v19506_v49 }
 0x278   :  { %v14993_v22 = vld [vmem:[#allocation7 + $0xfe8] sm:$0xf0]  ;;  %6046 = vmatpush.bf16.msra.mxu2 %v13748_v50 }
 0x279   :  { %v17998_v57 = vld [vmem:[#allocation7 + $0x44c] sm:$0xf]  ;;  %v14996_v58 = vor.u32 %v18366_v46, %v14993_v22  ;;  %6065 = vmatpush.bf16.msrb.mxu0 %v14484_v52 }
 0x27a   :  { %v13521_v53 = vld [vmem:[#allocation7 + $0x468] sm:$0xf0] }
 0x27b   :  { %v18166_v55 = vld [vmem:[#allocation7 + $0x98c] sm:$0xf]  ;;  %v13524_v34 = vor.u32 %v17998_v57, %v13521_v53  ;;  %6047 = vmatmul.bf16.vlgmr.msra.gmra.mxu2 %v19509_v54 }
 0x27c   :  { %v14193_v61 = vld [vmem:[#allocation7 + $0x9a8] sm:$0xf0]  ;;  %6091 = vmatpush.bf16.msrb.mxu2 %v14996_v58 }
 0x27d   :  { %v18230_v62 = vld [vmem:[#allocation7 + $0xb8c] sm:$0xf]  ;;  %v14196_v2 = vor.u32 %v18166_v55, %v14193_v61  ;;  %6032 = vmatpush.bf16.msra.mxu1 %v13524_v34  ;;  %v5801_v55 = vpop.f32.mrf.mxu3 }
 0x27e   :  { %v14449_v5 = vld [vmem:[#allocation7 + $0xba8] sm:$0xf0] }
 0x27f   :  { %v18358_v14 = vld [vmem:[#allocation7 + $0xf8c] sm:$0xf]  ;;  %v14452_v9 = vor.u32 %v18230_v62, %v14449_v5  ;;  %6053 = vmatpush.bf16.msrb.mxu3 %v14196_v2 }
 0x280   :  { %v14961_v47 = vld [vmem:[#allocation7 + $0xfa8] sm:$0xf0] }
 0x281   :  { %v17990_v1 = vld [vmem:[#allocation7 + $0x40c] sm:$0xf]  ;;  %v14964_v15 = vor.u32 %v18358_v14, %v14961_v47  ;;  %6066 = vmatpush.bf16.msrb.mxu0 %v14452_v9  ;;  %v5802_v14 = vadd.f32 %v5801_v55, %v3085_v6  ;;  %v5840_v47 = vpop.f32.mrf.mxu2  ;;  %v13975_v55 = vld [vmem:[#allocation7 + $0x7d0] sm:$0xf] }
 0x282   :  { %v13489_v10 = vld [vmem:[#allocation7 + $0x428] sm:$0xf0] }
 0x283   :  { %v18158_v11 = vld [vmem:[#allocation7 + $0x94c] sm:$0xf]  ;;  %v13492_v8 = vor.u32 %v17990_v1, %v13489_v10  ;;  %6092 = vmatpush.bf16.msrb.mxu2 %v14964_v15  ;;  %v5827_v15 = vpop.f32.mrf.mxu1 }
 0x284   :  { %v14161_v13 = vld [vmem:[#allocation7 + $0x968] sm:$0xf0] }
 0x285   :  { %v18222_v3 = vld [vmem:[#allocation7 + $0xb4c] sm:$0xf]  ;;  %v14164_v24 = vor.u32 %v18158_v11, %v14161_v13  ;;  %6033 = vmatpush.bf16.msra.mxu1 %v13492_v8  ;;  %v5816_v11 = vpop.f32.mrf.mxu0  ;;  %v5815_v13 = vadd.f32 %v5814_v39, %v5802_v14 }
 0x286   :  { %v14417_v28 = vld [vmem:[#allocation7 + $0xb68] sm:$0xf0]  ;;  %v13943_v11 = vld [vmem:[#allocation7 + $0x790] sm:$0xf] }
 0x287   :  { %v18302_v43 = vld [vmem:[#allocation7 + $0xdcc] sm:$0xf]  ;;  %v14420_v25 = vor.u32 %v18222_v3, %v14417_v28  ;;  %6054 = vmatpush.bf16.msrb.mxu3 %v14164_v24 }
 0x288   :  { %v14737_v60 = vld [vmem:[#allocation7 + $0xde8] sm:$0xf0]  ;;  %6034 = vmatmul.bf16.vlgmr.msra.gmra.mxu1 %v19520_v31 }
 0x289   :  { %v18350_v17 = vld [vmem:[#allocation7 + $0xf4c] sm:$0xf]  ;;  %v14740_v36 = vor.u32 %v18302_v43, %v14737_v60  ;;  %6067 = vmatpush.bf16.msrb.mxu0 %v14420_v25 }
 0x28a   :  { %v14929_v18 = vld [vmem:[#allocation7 + $0xf68] sm:$0xf0] }
 0x28b   :  { %v18150_v26 = vld [vmem:[#allocation7 + $0x90c] sm:$0xf]  ;;  %v14932_v30 = vor.u32 %v18350_v17, %v14929_v18  ;;  %6078 = vmatpush.bf16.msrb.mxu1 %v14740_v36  ;;  %v5828_v17 = vadd.f32 %v5827_v15, %v5815_v13  ;;  %v5829_v6 = vpop.f32.mrf.mxu1  ;;  %v18107_v13 = vld [vmem:[#allocation7 + $0x7ac] sm:$0xf0] }
 0x28c   :  { %v14129_v27 = vld [vmem:[#allocation7 + $0x928] sm:$0xf0] }
 0x28d   :  { %v18214_v32 = vld [vmem:[#allocation7 + $0xb0c] sm:$0xf]  ;;  %v14132_v40 = vor.u32 %v18150_v26, %v14129_v27  ;;  %6093 = vmatpush.bf16.msrb.mxu2 %v14932_v30 }
 0x28e   :  { %v14385_v20 = vld [vmem:[#allocation7 + $0xb28] sm:$0xf0] }
 0x28f   :  { %v18294_v35 = vld [vmem:[#allocation7 + $0xd8c] sm:$0xf]  ;;  %v14388_v19 = vor.u32 %v18214_v32, %v14385_v20  ;;  %6055 = vmatpush.bf16.msrb.mxu3 %v14132_v40  ;;  %v19604_v32 = vadd.f32 %v5840_v47, %v5828_v17  ;;  %v13143_v17 = vld [vmem:[#allocation7 + $0x150] sm:$0xf] }
 0x290   :  { %v14705_v37 = vld [vmem:[#allocation7 + $0xda8] sm:$0xf0] }
 0x291   :  { %v18342_v38 = vld [vmem:[#allocation7 + $0xf0c] sm:$0xf]  ;;  %v14708_v29 = vor.u32 %v18294_v35, %v14705_v37  ;;  %6068 = vmatpush.bf16.msrb.mxu0 %v14388_v19  ;;  %v5803_v37 = vpop.f32.mrf.mxu3 }
 0x292   :  { %v14897_v23 = vld [vmem:[#allocation7 + $0xf28] sm:$0xf0] }
 0x293   :  { %v18142_v41 = vld [vmem:[#allocation7 + $0x8cc] sm:$0xf]  ;;  %v14900_v21 = vor.u32 %v18342_v38, %v14897_v23  ;;  %6079 = vmatpush.bf16.msrb.mxu1 %v14708_v29 }
 0x294   :  { %v14097_v42 = vld [vmem:[#allocation7 + $0x8e8] sm:$0xf0] }
 0x295   :  { %v18206_v56 = vld [vmem:[#allocation7 + $0xacc] sm:$0xf]  ;;  %v14100_v57 = vor.u32 %v18142_v41, %v14097_v42  ;;  %6094 = vmatpush.bf16.msrb.mxu2 %v14900_v21  ;;  %v5842_v41 = vpop.f32.mrf.mxu2 }
 0x296   :  { %v14353_v46 = vld [vmem:[#allocation7 + $0xae8] sm:$0xf0]  ;;  %v17963_v41 = vld [vmem:[#allocation7 + $0x32c] sm:$0xf0] }
 0x297   :  { %v18286_v22 = vld [vmem:[#allocation7 + $0xd4c] sm:$0xf]  ;;  %v14356_v53 = vor.u32 %v18206_v56, %v14353_v46  ;;  %6056 = vmatpush.bf16.msrb.mxu3 %v14100_v57 }
 0x298   :  { %v14673_v50 = vld [vmem:[#allocation7 + $0xd68] sm:$0xf0] }
 0x299   :  { %v18334_v51 = vld [vmem:[#allocation7 + $0xecc] sm:$0xf]  ;;  %v14676_v62 = vor.u32 %v18286_v22, %v14673_v50  ;;  %6069 = vmatpush.bf16.msrb.mxu0 %v14356_v53  ;;  %v13207_v22 = vld [vmem:[#allocation7 + $0x1d0] sm:$0xf] }
 0x29a   :  { %v14865_v52 = vld [vmem:[#allocation7 + $0xee8] sm:$0xf0]  ;;  %v17923_v50 = vld [vmem:[#allocation7 + $0x1ec] sm:$0xf0] }
 0x29b   :  { %v18134_v58 = vld [vmem:[#allocation7 + $0x88c] sm:$0xf]  ;;  %v14868_v5 = vor.u32 %v18334_v51, %v14865_v52  ;;  %6080 = vmatpush.bf16.msrb.mxu1 %v14676_v62  ;;  %v13463_v51 = vld [vmem:[#allocation7 + $0x3d0] sm:$0xf] }
 0x29c   :  { %v14065_v61 = vld [vmem:[#allocation7 + $0x8a8] sm:$0xf0]  ;;  %v17987_v52 = vld [vmem:[#allocation7 + $0x3ec] sm:$0xf0] }
 0x29d   :  { %v18198_v34 = vld [vmem:[#allocation7 + $0xa8c] sm:$0xf]  ;;  %v14068_v3 = vor.u32 %v18134_v58, %v14065_v61  ;;  %6095 = vmatpush.bf16.msrb.mxu2 %v14868_v5  ;;  %v18115_v58 = vld [vmem:[#allocation7 + $0x7ec] sm:$0xf0]  ;;  %v13208_v5 = vor.u32 %v17923_v50, %v13207_v22  ;;  %v13464_v14 = vor.u32 %v17987_v52, %v13463_v51 }
 0x29e   :  { %v14321_v16 = vld [vmem:[#allocation7 + $0xaa8] sm:$0xf0]  ;;  %v13079_v50 = vld [vmem:[#allocation7 + $0xd0] sm:$0xf] }
 0x29f   :  { %v18278_v1 = vld [vmem:[#allocation7 + $0xd0c] sm:$0xf]  ;;  %v14324_v28 = vor.u32 %v18198_v34, %v14321_v16  ;;  %6057 = vmatpush.bf16.msrb.mxu3 %v14068_v3  ;;  %v13175_v16 = vld [vmem:[#allocation7 + $0x190] sm:$0xf] }
 0x2a0   :  { %v14641_v2 = vld [vmem:[#allocation7 + $0xd28] sm:$0xf0]  ;;  %v17891_v51 = vld [vmem:[#allocation7 + $0xec] sm:$0xf0] }
 0x2a1   :  { %v18326_v9 = vld [vmem:[#allocation7 + $0xe8c] sm:$0xf]  ;;  %v14644_v18 = vor.u32 %v18278_v1, %v14641_v2  ;;  %6070 = vmatpush.bf16.msrb.mxu0 %v14324_v28  ;;  %v13976_v1 = vor.u32 %v18115_v58, %v13975_v55  ;;  %v17915_v2 = vld [vmem:[#allocation7 + $0x1ac] sm:$0xf0] }
 0x2a2   :  { %v14833_v10 = vld [vmem:[#allocation7 + $0xea8] sm:$0xf0]  ;;  %v13176_v28 = vor.u32 %v17915_v2, %v13175_v16  ;;  %v17955_v55 = vld [vmem:[#allocation7 + $0x2ec] sm:$0xf0] }
 0x2a3   :  { %v18126_v43 = vld [vmem:[#allocation7 + $0x84c] sm:$0xf]  ;;  %v14836_v8 = vor.u32 %v18326_v9, %v14833_v10  ;;  %6081 = vmatpush.bf16.msrb.mxu1 %v14644_v18  ;;  %v13431_v9 = vld [vmem:[#allocation7 + $0x390] sm:$0xf] }
 0x2a4   :  { %v14033_v60 = vld [vmem:[#allocation7 + $0x868] sm:$0xf0]  ;;  %v17979_v10 = vld [vmem:[#allocation7 + $0x3ac] sm:$0xf0] }
 0x2a5   :  { %v18190_v24 = vld [vmem:[#allocation7 + $0xa4c] sm:$0xf]  ;;  %v14036_v20 = vor.u32 %v18126_v43, %v14033_v60  ;;  %6096 = vmatpush.bf16.msrb.mxu2 %v14836_v8  ;;  %v13432_v43 = vor.u32 %v17979_v10, %v13431_v9  ;;  %v17907_v18 = vld [vmem:[#allocation7 + $0x16c] sm:$0xf0]  ;;  %v13944_v8 = vor.u32 %v18107_v13, %v13943_v11  ;;  %v5892_v11 = vpop.f32.mrf.mxu2 }
 0x2a6   :  { %v14289_v25 = vld [vmem:[#allocation7 + $0xa68] sm:$0xf0]  ;;  %v13655_v58 = vld [vmem:[#allocation7 + $0x550] sm:$0xf] }
 0x2a7   :  { %v18270_v26 = vld [vmem:[#allocation7 + $0xccc] sm:$0xf]  ;;  %v14292_v35 = vor.u32 %v18190_v24, %v14289_v25  ;;  %6058 = vmatpush.bf16.msrb.mxu3 %v14036_v20  ;;  %v13399_v24 = vld [vmem:[#allocation7 + $0x350] sm:$0xf] }
 0x2a8   :  { %v14609_v27 = vld [vmem:[#allocation7 + $0xce8] sm:$0xf0]  ;;  %v17971_v25 = vld [vmem:[#allocation7 + $0x36c] sm:$0xf0] }
 0x2a9   :  { %v18318_v36 = vld [vmem:[#allocation7 + $0xe4c] sm:$0xf]  ;;  %v14612_v40 = vor.u32 %v18270_v26, %v14609_v27  ;;  %6071 = vmatpush.bf16.msrb.mxu0 %v14292_v35  ;;  %v13719_v26 = vld [vmem:[#allocation7 + $0x5d0] sm:$0xf]  ;;  %v13144_v35 = vor.u32 %v17907_v18, %v13143_v17  ;;  %v13400_v37 = vor.u32 %v17971_v25, %v13399_v24 }
 0x2aa   :  { %v14801_v30 = vld [vmem:[#allocation7 + $0xe68] sm:$0xf0]  ;;  %v18051_v27 = vld [vmem:[#allocation7 + $0x5ec] sm:$0xf0] }
 0x2ab   :  { %v18118_v38 = vld [vmem:[#allocation7 + $0x80c] sm:$0xf]  ;;  %v14804_v19 = vor.u32 %v18318_v36, %v14801_v30  ;;  %6082 = vmatpush.bf16.msrb.mxu1 %v14612_v40  ;;  %v13911_v36 = vld [vmem:[#allocation7 + $0x750] sm:$0xf] }
 0x2ac   :  { %v14001_v23 = vld [vmem:[#allocation7 + $0x828] sm:$0xf0]  ;;  %v18099_v30 = vld [vmem:[#allocation7 + $0x76c] sm:$0xf0] }
 0x2ad   :  { %v18182_v39 = vld [vmem:[#allocation7 + $0xa0c] sm:$0xf]  ;;  %v14004_v57 = vor.u32 %v18118_v38, %v14001_v23  ;;  %6097 = vmatpush.bf16.msrb.mxu2 %v14804_v19  ;;  %v13111_v38 = vld [vmem:[#allocation7 + $0x110] sm:$0xf]  ;;  %v13912_v40 = vor.u32 %v18099_v30, %v13911_v36 }
 0x2ae   :  { %v14257_v42 = vld [vmem:[#allocation7 + $0xa28] sm:$0xf0]  ;;  %v17899_v23 = vld [vmem:[#allocation7 + $0x12c] sm:$0xf0] }
 0x2af   :  { %v18262_v56 = vld [vmem:[#allocation7 + $0xc8c] sm:$0xf]  ;;  %v14260_v53 = vor.u32 %v18182_v39, %v14257_v42  ;;  %6059 = vmatpush.bf16.msrb.mxu3 %v14004_v57  ;;  %v13720_v39 = vor.u32 %v18051_v27, %v13719_v26  ;;  %v13367_v19 = vld [vmem:[#allocation7 + $0x310] sm:$0xf]  ;;  %v13112_v22 = vor.u32 %v17899_v23, %v13111_v38 }
 0x2b0   :  { %v14577_v29 = vld [vmem:[#allocation7 + $0xca8] sm:$0xf0]  ;;  %v13687_v42 = vld [vmem:[#allocation7 + $0x590] sm:$0xf]  ;;  %v13368_v6 = vor.u32 %v17963_v41, %v13367_v19 }
 0x2b1   :  { %v18310_v21 = vld [vmem:[#allocation7 + $0xe0c] sm:$0xf]  ;;  %v14580_v61 = vor.u32 %v18262_v56, %v14577_v29  ;;  %6072 = vmatpush.bf16.msrb.mxu0 %v14260_v53  ;;  %v18043_v56 = vld [vmem:[#allocation7 + $0x5ac] sm:$0xf0] }
 0x2b2   :  { %v14769_v46 = vld [vmem:[#allocation7 + $0xe28] sm:$0xf0]  ;;  %6060 = vmatmul.bf16.vlgmr.msrb.gmra.mxu3 %v19536_v63  ;;  %v13879_v29 = vld [vmem:[#allocation7 + $0x710] sm:$0xf]  ;;  %v13688_v52 = vor.u32 %v18043_v56, %v13687_v42 }
 0x2b3   :  { %v14772_v62 = vor.u32 %v18310_v21, %v14769_v46  ;;  %v18254_v47 = vld [vmem:[#allocation7 + $0xc4c] sm:$0xf]  ;;  %6083 = vmatpush.bf16.msrb.mxu1 %v14580_v61  ;;  %6104 = vmatpush.bf16.msra.mxu3 %v13208_v5  ;;  %v18091_v21 = vld [vmem:[#allocation7 + $0x72c] sm:$0xf0]  ;;  %v5866_v46 = vpop.f32.mrf.mxu0 }
 0x2b4   :  { %v14545_v34 = vld [vmem:[#allocation7 + $0xc68] sm:$0xf0]  ;;  %6073 = vmatmul.bf16.vlgmr.msrb.gmra.mxu0 %v19538_v4  ;;  %v13880_v57 = vor.u32 %v18091_v21, %v13879_v29  ;;  %v13335_v53 = vld [vmem:[#allocation7 + $0x2d0] sm:$0xf] }
 0x2b5   :  { %6098 = vmatpush.bf16.msrb.mxu2 %v14772_v62  ;;  %v14548_v15 = vor.u32 %v18254_v47, %v14545_v34  ;;  %v18246_v3 = vld [vmem:[#allocation7 + $0xc0c] sm:$0xf]  ;;  %6117 = vmatpush.bf16.msra.mxu0 %v13464_v14  ;;  %v18035_v61 = vld [vmem:[#allocation7 + $0x56c] sm:$0xf0]  ;;  %v13080_v14 = vor.u32 %v17891_v51, %v13079_v50  ;;  %v13336_v47 = vor.u32 %v17955_v55, %v13335_v53  ;;  %v5853_v34 = vpop.f32.mrf.mxu3 }
 0x2b6   :  { %v14513_v60 = vld [vmem:[#allocation7 + $0xc28] sm:$0xf0]  ;;  %v13847_v62 = vld [vmem:[#allocation7 + $0x6d0] sm:$0xf]  ;;  %v13656_v2 = vor.u32 %v18035_v61, %v13655_v58  ;;  %v5854_v10 = vadd.f32 %v5853_v34, %v19604_v32 }
 0x2b7   :  { %6084 = vmatpush.bf16.msrb.mxu1 %v14548_v15  ;;  %v14516_v20 = vor.u32 %v18246_v3, %v14513_v60  ;;  %6105 = vmatpush.bf16.msra.mxu3 %v13176_v28  ;;  %v18083_v5 = vld [vmem:[#allocation7 + $0x6ec] sm:$0xf0] }
 0x2b8   :  { %6099 = vmatmul.bf16.vlgmr.msrb.gmra.mxu2 %v19540_v7  ;;  %v13047_v16 = vld [vmem:[#allocation7 + $0x90] sm:$0xf]  ;;  %v13848_v9 = vor.u32 %v18083_v5, %v13847_v62  ;;  %v5867_v18 = vadd.f32 %v5866_v46, %v5854_v10 }
 0x2b9   :  { %6143 = vmatpush.bf16.msra.mxu2 %v13976_v1  ;;  %6118 = vmatpush.bf16.msra.mxu0 %v13432_v43  ;;  %v17883_v1 = vld [vmem:[#allocation7 + $0xac] sm:$0xf0] }
 0x2ba   :  { %v13303_v13 = vld [vmem:[#allocation7 + $0x290] sm:$0xf]  ;;  %v13048_v24 = vor.u32 %v17883_v1, %v13047_v16 }
 0x2bb   :  { %6085 = vmatpush.bf16.msrb.mxu1 %v14516_v20  ;;  %6106 = vmatpush.bf16.msra.mxu3 %v13144_v35  ;;  %v17947_v15 = vld [vmem:[#allocation7 + $0x2ac] sm:$0xf0]  ;;  %v5868_v17 = vpop.f32.mrf.mxu0 }
 0x2bc   :  { %v13623_v3 = vld [vmem:[#allocation7 + $0x510] sm:$0xf]  ;;  %v13304_v25 = vor.u32 %v17947_v15, %v13303_v13 }
 0x2bd   :  { %6144 = vmatpush.bf16.msra.mxu2 %v13944_v8  ;;  %6119 = vmatpush.bf16.msra.mxu0 %v13400_v37  ;;  %v18027_v28 = vld [vmem:[#allocation7 + $0x52c] sm:$0xf0]  ;;  %v5879_v8 = vpop.f32.mrf.mxu1  ;;  %v5855_v42 = vpop.f32.mrf.mxu3 }
 0x2be   :  { %6086 = vmatmul.bf16.vlgmr.msrb.gmra.mxu1 %v19550_v45  ;;  %v13815_v43 = vld [vmem:[#allocation7 + $0x690] sm:$0xf]  ;;  %v5880_v36 = vadd.f32 %v5879_v8, %v5867_v18  ;;  %v13624_v32 = vor.u32 %v18027_v28, %v13623_v3 }
 0x2bf   :  { %6130 = vmatpush.bf16.msra.mxu1 %v13720_v39  ;;  %6107 = vmatpush.bf16.msra.mxu3 %v13112_v22  ;;  %v18075_v60 = vld [vmem:[#allocation7 + $0x6ac] sm:$0xf0] }
 0x2c0   :  { %v13015_v26 = vld [vmem:[#allocation7 + $0x50] sm:$0xf]  ;;  %v13816_v30 = vor.u32 %v18075_v60, %v13815_v43 }
 0x2c1   :  { %6145 = vmatpush.bf16.msra.mxu2 %v13912_v40  ;;  %6120 = vmatpush.bf16.msra.mxu0 %v13368_v6  ;;  %v17875_v27 = vld [vmem:[#allocation7 + $0x6c] sm:$0xf0]  ;;  %v5893_v40 = vadd.f32 %v5892_v11, %v5880_v36  ;;  %v5894_v6 = vpop.f32.mrf.mxu2 }
 0x2c2   :  { %v13271_v20 = vld [vmem:[#allocation7 + $0x250] sm:$0xf]  ;;  %v13016_v19 = vor.u32 %v17875_v27, %v13015_v26 }
 0x2c3   :  { %6131 = vmatpush.bf16.msra.mxu1 %v13688_v52  ;;  %6108 = vmatpush.bf16.msra.mxu3 %v13080_v14  ;;  %v17939_v35 = vld [vmem:[#allocation7 + $0x26c] sm:$0xf0]  ;;  %19060 = vtanh.f32 %v5893_v40 }
 0x2c4   :  { %v13591_v37 = vld [vmem:[#allocation7 + $0x4d0] sm:$0xf]  ;;  %v13272_v41 = vor.u32 %v17939_v35, %v13271_v20 }
 0x2c5   :  { %6146 = vmatpush.bf16.msra.mxu2 %v13880_v57  ;;  %6121 = vmatpush.bf16.msra.mxu0 %v13336_v47  ;;  %v18019_v38 = vld [vmem:[#allocation7 + $0x4ec] sm:$0xf0]  ;;  %v5881_v55 = vpop.f32.mrf.mxu1 }
 0x2c6   :  { %v13783_v23 = vld [vmem:[#allocation7 + $0x650] sm:$0xf]  ;;  %v13592_v46 = vor.u32 %v18019_v38, %v13591_v37 }
 0x2c7   :  { %6132 = vmatpush.bf16.msra.mxu1 %v13656_v2  ;;  %v18067_v39 = vld [vmem:[#allocation7 + $0x66c] sm:$0xf0]  ;;  %6109 = vmatpush.bf16.msra.mxu3 %v13048_v24  ;;  %v19059_v2 = vpop.eup %19058 }
 0x2c8   :  { %v12983_v56 = vld [vmem:[#allocation7 + $0x10] sm:$0xf]  ;;  %v13784_v22 = vor.u32 %v18067_v39, %v13783_v23 }
 0x2c9   :  { %6147 = vmatpush.bf16.msra.mxu2 %v13848_v9  ;;  %6122 = vmatpush.bf16.msra.mxu0 %v13304_v25  ;;  %v17867_v29 = vld [vmem:[#allocation7 + $0x2c] sm:$0xf0]  ;;  %v19061_v3 = vpop.eup %19060 }
 0x2ca   :  { %v13239_v21 = vld [vmem:[#allocation7 + $0x210] sm:$0xf]  ;;  %v12984_v5 = vor.u32 %v17867_v29, %v12983_v56  ;;  %v19612_v18 = vpack.c.bf16 %v19061_v3, %v19059_v2  ;;  %v5905_v3 = vpop.f32.mrf.mxu3 }
 0x2cb   :  { %6133 = vmatpush.bf16.msra.mxu1 %v13624_v32  ;;  %v17931_v50 = vld [vmem:[#allocation7 + $0x22c] sm:$0xf0]  ;;  %6110 = vmatpush.bf16.msra.mxu3 %v13016_v19 }
 0x2cc   :  { %v13559_v51 = vld [vmem:[#allocation7 + $0x490] sm:$0xf]  ;;  %v13240_v14 = vor.u32 %v17931_v50, %v13239_v21 }
 0x2cd   :  { %6148 = vmatpush.bf16.msra.mxu2 %v13816_v30  ;;  %v18011_v52 = vld [vmem:[#allocation7 + $0x4ac] sm:$0xf0]  ;;  %6123 = vmatpush.bf16.msra.mxu0 %v13272_v41 }
 0x2ce   :  { %v13751_v57 = vld [vmem:[#allocation7 + $0x610] sm:$0xf]  ;;  %v13560_v16 = vor.u32 %v18011_v52, %v13559_v51 }
 0x2cf   :  { %v18059_v53 = vld [vmem:[#allocation7 + $0x62c] sm:$0xf0]  ;;  %6134 = vmatpush.bf16.msra.mxu1 %v13592_v46  ;;  %6111 = vmatpush.bf16.msra.mxu3 %v12984_v5 }
 0x2d0   :  { %v18179_v58 = vld [vmem:[#allocation7 + $0x9ec] sm:$0xf0]  ;;  %v13752_v1 = vor.u32 %v18059_v53, %v13751_v57 }
 0x2d1   :  { %v14487_v61 = vld [vmem:[#allocation7 + $0xbd0] sm:$0xf]  ;;  %6149 = vmatpush.bf16.msra.mxu2 %v13784_v22  ;;  %v14232_v9 = vor.u32 %v18179_v58, %v14231_v33  ;;  %6124 = vmatpush.bf16.msra.mxu0 %v13240_v14  ;;  %v5918_v33 = vpop.f32.mrf.mxu0 }
 0x2d2   :  { %v18243_v62 = vld [vmem:[#allocation7 + $0xbec] sm:$0xf0]  ;;  %6112 = vmatmul.bf16.vlgmr.msra.gmra.mxu3 %v19504_v44 }
 0x2d3   :  { %v14999_v47 = vld [vmem:[#allocation7 + $0xfd0] sm:$0xf]  ;;  %v14488_v10 = vor.u32 %v18243_v62, %v14487_v61  ;;  %6135 = vmatpush.bf16.msra.mxu1 %v13560_v16  ;;  %6156 = vmatpush.bf16.msrb.mxu3 %v14232_v9 }
 0x2d4   :  { %v18371_v34 = vld [vmem:[#allocation7 + $0xfec] sm:$0xf0]  ;;  %6125 = vmatmul.bf16.vlgmr.msra.gmra.mxu0 %v19506_v49 }
 0x2d5   :  { %v13527_v11 = vld [vmem:[#allocation7 + $0x450] sm:$0xf]  ;;  %v15000_v28 = vor.u32 %v18371_v34, %v14999_v47  ;;  %6150 = vmatpush.bf16.msra.mxu2 %v13752_v1  ;;  %6169 = vmatpush.bf16.msrb.mxu0 %v14488_v10  ;;  %v19617_v1 = vld [vmem:[#allocation9] sm:$0xff] }
 0x2d6   :  { %v18003_v13 = vld [vmem:[#allocation7 + $0x46c] sm:$0xf0]  ;;  %v3086_v2 = vperm.slane %v19617_v1, 2 }
 0x2d7   :  { %v14199_v15 = vld [vmem:[#allocation7 + $0x990] sm:$0xf]  ;;  %v13528_v25 = vor.u32 %v18003_v13, %v13527_v11 }
 0x2d8   :  { %v18171_v43 = vld [vmem:[#allocation7 + $0x9ac] sm:$0xf0]  ;;  %6151 = vmatmul.bf16.vlgmr.msra.gmra.mxu2 %v19509_v54 }
 0x2d9   :  { %v14455_v60 = vld [vmem:[#allocation7 + $0xb90] sm:$0xf]  ;;  %v14200_v27 = vor.u32 %v18171_v43, %v14199_v15  ;;  %6195 = vmatpush.bf16.msrb.mxu2 %v15000_v28  ;;  %6136 = vmatpush.bf16.msra.mxu1 %v13528_v25 }
 0x2da   :  { %v18235_v17 = vld [vmem:[#allocation7 + $0xbac] sm:$0xf0] }
 0x2db   :  { %v14967_v8 = vld [vmem:[#allocation7 + $0xf90] sm:$0xf]  ;;  %v14456_v36 = vor.u32 %v18235_v17, %v14455_v60  ;;  %6157 = vmatpush.bf16.msrb.mxu3 %v14200_v27 }
 0x2dc   :  { %v18363_v24 = vld [vmem:[#allocation7 + $0xfac] sm:$0xf0] }
 0x2dd   :  { %v13495_v26 = vld [vmem:[#allocation7 + $0x410] sm:$0xf]  ;;  %v14968_v35 = vor.u32 %v18363_v24, %v14967_v8  ;;  %6170 = vmatpush.bf16.msrb.mxu0 %v14456_v36  ;;  %v5906_v8 = vadd.f32 %v5905_v3, %v3086_v2  ;;  %v5944_v24 = vpop.f32.mrf.mxu2  ;;  %v17919_v2 = vld [vmem:[#allocation7 + $0x1d4] sm:$0xf] }
 0x2de   :  { %v17995_v32 = vld [vmem:[#allocation7 + $0x42c] sm:$0xf0] }
 0x2df   :  { %v14167_v30 = vld [vmem:[#allocation7 + $0x950] sm:$0xf]  ;;  %v13496_v41 = vor.u32 %v17995_v32, %v13495_v26  ;;  %6196 = vmatpush.bf16.msrb.mxu2 %v14968_v35  ;;  %v5919_v35 = vadd.f32 %v5918_v33, %v5906_v8 }
 0x2e0   :  { %v18163_v20 = vld [vmem:[#allocation7 + $0x96c] sm:$0xf0] }
 0x2e1   :  { %v14423_v37 = vld [vmem:[#allocation7 + $0xb50] sm:$0xf]  ;;  %v14168_v42 = vor.u32 %v18163_v20, %v14167_v30  ;;  %6137 = vmatpush.bf16.msra.mxu1 %v13496_v41  ;;  %v5920_v20 = vpop.f32.mrf.mxu0 }
 0x2e2   :  { %v18227_v38 = vld [vmem:[#allocation7 + $0xb6c] sm:$0xf0]  ;;  %v13433_v20 = vld [vmem:[#allocation7 + $0x3b0] sm:$0xf0] }
 0x2e3   :  { %v14743_v23 = vld [vmem:[#allocation7 + $0xdd0] sm:$0xf]  ;;  %v14424_v56 = vor.u32 %v18227_v38, %v14423_v37  ;;  %6158 = vmatpush.bf16.msrb.mxu3 %v14168_v42  ;;  %v5931_v37 = vpop.f32.mrf.mxu1 }
 0x2e4   :  { %v18307_v39 = vld [vmem:[#allocation7 + $0xdec] sm:$0xf0]  ;;  %6138 = vmatmul.bf16.vlgmr.msra.gmra.mxu1 %v19520_v31 }
 0x2e5   :  { %v14935_v40 = vld [vmem:[#allocation7 + $0xf50] sm:$0xf]  ;;  %v14744_v46 = vor.u32 %v18307_v39, %v14743_v23  ;;  %6171 = vmatpush.bf16.msrb.mxu0 %v14424_v56 }
 0x2e6   :  { %v18355_v19 = vld [vmem:[#allocation7 + $0xf6c] sm:$0xf0] }
 0x2e7   :  { %v14135_v29 = vld [vmem:[#allocation7 + $0x910] sm:$0xf]  ;;  %v14936_v22 = vor.u32 %v18355_v19, %v14935_v40  ;;  %6182 = vmatpush.bf16.msrb.mxu1 %v14744_v46  ;;  %v5932_v19 = vadd.f32 %v5931_v37, %v5919_v35  ;;  %v18103_v35 = vld [vmem:[#allocation7 + $0x794] sm:$0xf] }
 0x2e8   :  { %v18155_v21 = vld [vmem:[#allocation7 + $0x92c] sm:$0xf0]  ;;  %v13945_v37 = vld [vmem:[#allocation7 + $0x7b0] sm:$0xf0] }
 0x2e9   :  { %v14391_v6 = vld [vmem:[#allocation7 + $0xb10] sm:$0xf]  ;;  %v14136_v55 = vor.u32 %v18155_v21, %v14135_v29  ;;  %6197 = vmatpush.bf16.msrb.mxu2 %v14936_v22 }
 0x2ea   :  { %v18219_v50 = vld [vmem:[#allocation7 + $0xb2c] sm:$0xf0] }
 0x2eb   :  { %v14711_v51 = vld [vmem:[#allocation7 + $0xd90] sm:$0xf]  ;;  %v14392_v58 = vor.u32 %v18219_v50, %v14391_v6  ;;  %6159 = vmatpush.bf16.msrb.mxu3 %v14136_v55  ;;  %v19621_v50 = vadd.f32 %v5944_v24, %v5932_v19 }
 0x2ec   :  { %v18299_v52 = vld [vmem:[#allocation7 + $0xdac] sm:$0xf0] }
 0x2ed   :  { %v14903_v57 = vld [vmem:[#allocation7 + $0xf10] sm:$0xf]  ;;  %v14712_v14 = vor.u32 %v18299_v52, %v14711_v51  ;;  %6172 = vmatpush.bf16.msrb.mxu0 %v14392_v58 }
 0x2ee   :  { %v18347_v53 = vld [vmem:[#allocation7 + $0xf2c] sm:$0xf0] }
 0x2ef   :  { %v14103_v61 = vld [vmem:[#allocation7 + $0x8d0] sm:$0xf]  ;;  %v14904_v47 = vor.u32 %v18347_v53, %v14903_v57  ;;  %6183 = vmatpush.bf16.msrb.mxu1 %v14712_v14  ;;  %v5907_v57 = vpop.f32.mrf.mxu3 }
 0x2f0   :  { %v18147_v62 = vld [vmem:[#allocation7 + $0x8ec] sm:$0xf0] }
 0x2f1   :  { %v14359_v5 = vld [vmem:[#allocation7 + $0xad0] sm:$0xf]  ;;  %v14104_v13 = vor.u32 %v18147_v62, %v14103_v61  ;;  %6198 = vmatpush.bf16.msrb.mxu2 %v14904_v47  ;;  %v5946_v62 = vpop.f32.mrf.mxu2 }
 0x2f2   :  { %v18211_v34 = vld [vmem:[#allocation7 + $0xaec] sm:$0xf0]  ;;  %v17959_v62 = vld [vmem:[#allocation7 + $0x314] sm:$0xf] }
 0x2f3   :  { %v14679_v16 = vld [vmem:[#allocation7 + $0xd50] sm:$0xf]  ;;  %v14360_v15 = vor.u32 %v18211_v34, %v14359_v5  ;;  %6160 = vmatpush.bf16.msrb.mxu3 %v14104_v13  ;;  %v13465_v13 = vld [vmem:[#allocation7 + $0x3f0] sm:$0xf0] }
 0x2f4   :  { %v18291_v9 = vld [vmem:[#allocation7 + $0xd6c] sm:$0xf0] }
 0x2f5   :  { %v14871_v10 = vld [vmem:[#allocation7 + $0xed0] sm:$0xf]  ;;  %v14680_v60 = vor.u32 %v18291_v9, %v14679_v16  ;;  %6173 = vmatpush.bf16.msrb.mxu0 %v14360_v15  ;;  %v5933_v9 = vpop.f32.mrf.mxu1 }
 0x2f6   :  { %v18339_v11 = vld [vmem:[#allocation7 + $0xeec] sm:$0xf0] }
 0x2f7   :  { %v14071_v28 = vld [vmem:[#allocation7 + $0x890] sm:$0xf]  ;;  %v14872_v17 = vor.u32 %v18339_v11, %v14871_v10  ;;  %6184 = vmatpush.bf16.msrb.mxu1 %v14680_v60  ;;  %v13209_v10 = vld [vmem:[#allocation7 + $0x1f0] sm:$0xf0] }
 0x2f8   :  { %v18139_v43 = vld [vmem:[#allocation7 + $0x8ac] sm:$0xf0]  ;;  %v17983_v11 = vld [vmem:[#allocation7 + $0x3d4] sm:$0xf]  ;;  %v13212_v8 = vor.u32 %v17919_v2, %v13209_v10  ;;  %v5970_v2 = vpop.f32.mrf.mxu0 }
 0x2f9   :  { %v14327_v25 = vld [vmem:[#allocation7 + $0xa90] sm:$0xf]  ;;  %v14072_v38 = vor.u32 %v18139_v43, %v14071_v28  ;;  %6199 = vmatpush.bf16.msrb.mxu2 %v14872_v17  ;;  %v18111_v28 = vld [vmem:[#allocation7 + $0x7d4] sm:$0xf]  ;;  %v13468_v24 = vor.u32 %v17983_v11, %v13465_v13 }
 0x2fa   :  { %v18203_v26 = vld [vmem:[#allocation7 + $0xaac] sm:$0xf0]  ;;  %v13977_v43 = vld [vmem:[#allocation7 + $0x7f0] sm:$0xf0] }
 0x2fb   :  { %v14647_v27 = vld [vmem:[#allocation7 + $0xd10] sm:$0xf]  ;;  %v14328_v23 = vor.u32 %v18203_v26, %v14327_v25  ;;  %6161 = vmatpush.bf16.msrb.mxu3 %v14072_v38  ;;  %v17887_v11 = vld [vmem:[#allocation7 + $0xd4] sm:$0xf] }
 0x2fc   :  { %v18283_v36 = vld [vmem:[#allocation7 + $0xd2c] sm:$0xf0]  ;;  %v13081_v13 = vld [vmem:[#allocation7 + $0xf0] sm:$0xf0] }
 0x2fd   :  { %v14839_v32 = vld [vmem:[#allocation7 + $0xe90] sm:$0xf]  ;;  %v14648_v41 = vor.u32 %v18283_v36, %v14647_v27  ;;  %6174 = vmatpush.bf16.msrb.mxu0 %v14328_v23  ;;  %v17911_v27 = vld [vmem:[#allocation7 + $0x194] sm:$0xf]  ;;  %v13980_v36 = vor.u32 %v18111_v28, %v13977_v43 }
 0x2fe   :  { %v18331_v30 = vld [vmem:[#allocation7 + $0xeac] sm:$0xf0]  ;;  %v17951_v28 = vld [vmem:[#allocation7 + $0x2d4] sm:$0xf] }
 0x2ff   :  { %v14039_v39 = vld [vmem:[#allocation7 + $0x850] sm:$0xf]  ;;  %v14840_v42 = vor.u32 %v18331_v30, %v14839_v32  ;;  %6185 = vmatpush.bf16.msrb.mxu1 %v14648_v41  ;;  %v13177_v32 = vld [vmem:[#allocation7 + $0x1b0] sm:$0xf0] }
 0x300   :  { %v18131_v40 = vld [vmem:[#allocation7 + $0x86c] sm:$0xf0]  ;;  %v17975_v30 = vld [vmem:[#allocation7 + $0x394] sm:$0xf] }
 0x301   :  { %v14295_v56 = vld [vmem:[#allocation7 + $0xa50] sm:$0xf]  ;;  %v14040_v51 = vor.u32 %v18131_v40, %v14039_v39  ;;  %6200 = vmatpush.bf16.msrb.mxu2 %v14840_v42  ;;  %v13180_v39 = vor.u32 %v17911_v27, %v13177_v32  ;;  %v13436_v40 = vor.u32 %v17975_v30, %v13433_v20  ;;  %v17903_v41 = vld [vmem:[#allocation7 + $0x154] sm:$0xf]  ;;  %v5957_v27 = vpop.f32.mrf.mxu3 }
 0x302   :  { %v18195_v29 = vld [vmem:[#allocation7 + $0xa6c] sm:$0xf0]  ;;  %v13145_v42 = vld [vmem:[#allocation7 + $0x170] sm:$0xf0] }
 0x303   :  { %v14615_v21 = vld [vmem:[#allocation7 + $0xcd0] sm:$0xf]  ;;  %v14296_v52 = vor.u32 %v18195_v29, %v14295_v56  ;;  %6162 = vmatpush.bf16.msrb.mxu3 %v14040_v51  ;;  %v13948_v56 = vor.u32 %v18103_v35, %v13945_v37  ;;  %v17967_v29 = vld [vmem:[#allocation7 + $0x354] sm:$0xf]  ;;  %v13148_v57 = vor.u32 %v17903_v41, %v13145_v42  ;;  %v5958_v35 = vadd.f32 %v5957_v27, %v19621_v50  ;;  %v5996_v37 = vpop.f32.mrf.mxu2  ;;  %v5972_v42 = vpop.f32.mrf.mxu0 }
 0x304   :  { %v18275_v46 = vld [vmem:[#allocation7 + $0xcec] sm:$0xf0]  ;;  %v13913_v51 = vld [vmem:[#allocation7 + $0x770] sm:$0xf0] }
 0x305   :  { %v14807_v22 = vld [vmem:[#allocation7 + $0xe50] sm:$0xf]  ;;  %v14616_v58 = vor.u32 %v18275_v46, %v14615_v21  ;;  %6175 = vmatpush.bf16.msrb.mxu0 %v14296_v52  ;;  %v13401_v21 = vld [vmem:[#allocation7 + $0x370] sm:$0xf0] }
 0x306   :  { %v18323_v6 = vld [vmem:[#allocation7 + $0xe6c] sm:$0xf0]  ;;  %v18047_v46 = vld [vmem:[#allocation7 + $0x5d4] sm:$0xf] }
 0x307   :  { %v14007_v53 = vld [vmem:[#allocation7 + $0x810] sm:$0xf]  ;;  %v14808_v61 = vor.u32 %v18323_v6, %v14807_v22  ;;  %6186 = vmatpush.bf16.msrb.mxu1 %v14616_v58  ;;  %v13721_v22 = vld [vmem:[#allocation7 + $0x5f0] sm:$0xf0] }
 0x308   :  { %v18123_v33 = vld [vmem:[#allocation7 + $0x82c] sm:$0xf0]  ;;  %v18095_v6 = vld [vmem:[#allocation7 + $0x754] sm:$0xf]  ;;  %v13724_v58 = vor.u32 %v18047_v46, %v13721_v22 }
 0x309   :  { %v14263_v55 = vld [vmem:[#allocation7 + $0xa10] sm:$0xf]  ;;  %v14008_v15 = vor.u32 %v18123_v33, %v14007_v53  ;;  %6201 = vmatpush.bf16.msrb.mxu2 %v14808_v61  ;;  %v13404_v53 = vor.u32 %v17967_v29, %v13401_v21  ;;  %v17895_v33 = vld [vmem:[#allocation7 + $0x114] sm:$0xf]  ;;  %v13916_v61 = vor.u32 %v18095_v6, %v13913_v51  ;;  %v5983_v29 = vpop.f32.mrf.mxu1 }
 0x30a   :  { %v18187_v5 = vld [vmem:[#allocation7 + $0xa2c] sm:$0xf0]  ;;  %v13337_v43 = vld [vmem:[#allocation7 + $0x2f0] sm:$0xf0] }
 0x30b   :  { %v14583_v14 = vld [vmem:[#allocation7 + $0xc90] sm:$0xf]  ;;  %v14264_v3 = vor.u32 %v18187_v5, %v14263_v55  ;;  %6163 = vmatpush.bf16.msrb.mxu3 %v14008_v15  ;;  %v13113_v55 = vld [vmem:[#allocation7 + $0x130] sm:$0xf0] }
 0x30c   :  { %v18267_v47 = vld [vmem:[#allocation7 + $0xcac] sm:$0xf0]  ;;  %v13369_v5 = vld [vmem:[#allocation7 + $0x330] sm:$0xf0]  ;;  %v13116_v9 = vor.u32 %v17895_v33, %v13113_v55 }
 0x30d   :  { %v14775_v34 = vld [vmem:[#allocation7 + $0xe10] sm:$0xf]  ;;  %v14584_v60 = vor.u32 %v18267_v47, %v14583_v14  ;;  %6176 = vmatpush.bf16.msrb.mxu0 %v14264_v3  ;;  %v18039_v14 = vld [vmem:[#allocation7 + $0x594] sm:$0xf]  ;;  %v13372_v10 = vor.u32 %v17959_v62, %v13369_v5 }
 0x30e   :  { %v18315_v16 = vld [vmem:[#allocation7 + $0xe2c] sm:$0xf0]  ;;  %6164 = vmatmul.bf16.vlgmr.msrb.gmra.mxu3 %v19536_v63  ;;  %v13689_v47 = vld [vmem:[#allocation7 + $0x5b0] sm:$0xf0] }
 0x30f   :  { %v14776_v17 = vor.u32 %v18315_v16, %v14775_v34  ;;  %v14551_v25 = vld [vmem:[#allocation7 + $0xc50] sm:$0xf]  ;;  %6187 = vmatpush.bf16.msrb.mxu1 %v14584_v60  ;;  %6208 = vmatpush.bf16.msra.mxu3 %v13212_v8  ;;  %v18087_v34 = vld [vmem:[#allocation7 + $0x714] sm:$0xf]  ;;  %v13692_v15 = vor.u32 %v18039_v14, %v13689_v47  ;;  %v5959_v47 = vpop.f32.mrf.mxu3 }
 0x310   :  { %v18259_v26 = vld [vmem:[#allocation7 + $0xc6c] sm:$0xf0]  ;;  %6177 = vmatmul.bf16.vlgmr.msrb.gmra.mxu0 %v19538_v4  ;;  %v13881_v16 = vld [vmem:[#allocation7 + $0x730] sm:$0xf0] }
 0x311   :  { %6202 = vmatpush.bf16.msrb.mxu2 %v14776_v17  ;;  %v14552_v38 = vor.u32 %v18259_v26, %v14551_v25  ;;  %v14519_v23 = vld [vmem:[#allocation7 + $0xc10] sm:$0xf]  ;;  %6221 = vmatpush.bf16.msra.mxu0 %v13468_v24  ;;  %v13884_v3 = vor.u32 %v18087_v34, %v13881_v16  ;;  %v18031_v60 = vld [vmem:[#allocation7 + $0x554] sm:$0xf]  ;;  %v13084_v25 = vor.u32 %v17887_v11, %v13081_v13  ;;  %v5998_v11 = vpop.f32.mrf.mxu2 }
 0x312   :  { %v18251_v19 = vld [vmem:[#allocation7 + $0xc2c] sm:$0xf0]  ;;  %v13657_v17 = vld [vmem:[#allocation7 + $0x570] sm:$0xf0]  ;;  %v13340_v26 = vor.u32 %v17951_v28, %v13337_v43 }
 0x313   :  { %6188 = vmatpush.bf16.msrb.mxu1 %v14552_v38  ;;  %v14520_v52 = vor.u32 %v18251_v19, %v14519_v23  ;;  %6209 = vmatpush.bf16.msra.mxu3 %v13180_v39  ;;  %v18079_v8 = vld [vmem:[#allocation7 + $0x6d4] sm:$0xf]  ;;  %v13660_v30 = vor.u32 %v18031_v60, %v13657_v17  ;;  %v5985_v17 = vpop.f32.mrf.mxu1 }
 0x314   :  { %6203 = vmatmul.bf16.vlgmr.msrb.gmra.mxu2 %v19540_v7  ;;  %v13849_v24 = vld [vmem:[#allocation7 + $0x6f0] sm:$0xf0] }
 0x315   :  { %6247 = vmatpush.bf16.msra.mxu2 %v13980_v36  ;;  %6222 = vmatpush.bf16.msra.mxu0 %v13436_v40  ;;  %v17879_v36 = vld [vmem:[#allocation7 + $0x94] sm:$0xf]  ;;  %v13852_v20 = vor.u32 %v18079_v8, %v13849_v24 }
 0x316   :  { %v13049_v32 = vld [vmem:[#allocation7 + $0xb0] sm:$0xf0] }
 0x317   :  { %6189 = vmatpush.bf16.msrb.mxu1 %v14520_v52  ;;  %6210 = vmatpush.bf16.msra.mxu3 %v13148_v57  ;;  %v17943_v38 = vld [vmem:[#allocation7 + $0x294] sm:$0xf]  ;;  %v13052_v21 = vor.u32 %v17879_v36, %v13049_v32 }
 0x318   :  { %v13305_v23 = vld [vmem:[#allocation7 + $0x2b0] sm:$0xf0] }
 0x319   :  { %6248 = vmatpush.bf16.msra.mxu2 %v13948_v56  ;;  %6223 = vmatpush.bf16.msra.mxu0 %v13404_v53  ;;  %v18023_v39 = vld [vmem:[#allocation7 + $0x514] sm:$0xf]  ;;  %v5971_v56 = vadd.f32 %v5970_v2, %v5958_v35  ;;  %v13308_v46 = vor.u32 %v17943_v38, %v13305_v23 }
 0x31a   :  { %6190 = vmatmul.bf16.vlgmr.msrb.gmra.mxu1 %v19550_v45  ;;  %v13625_v40 = vld [vmem:[#allocation7 + $0x530] sm:$0xf0] }
 0x31b   :  { %6234 = vmatpush.bf16.msra.mxu1 %v13724_v58  ;;  %6211 = vmatpush.bf16.msra.mxu3 %v13116_v9  ;;  %v18071_v19 = vld [vmem:[#allocation7 + $0x694] sm:$0xf]  ;;  %v5984_v51 = vadd.f32 %v5983_v29, %v5971_v56  ;;  %v13628_v50 = vor.u32 %v18023_v39, %v13625_v40 }
 0x31c   :  { %v13817_v41 = vld [vmem:[#allocation7 + $0x6b0] sm:$0xf0] }
 0x31d   :  { %6249 = vmatpush.bf16.msra.mxu2 %v13916_v61  ;;  %6224 = vmatpush.bf16.msra.mxu0 %v13372_v10  ;;  %v17871_v22 = vld [vmem:[#allocation7 + $0x54] sm:$0xf]  ;;  %v13820_v52 = vor.u32 %v18071_v19, %v13817_v41  ;;  %v19628_v62 = vadd.f32 %v5996_v37, %v5984_v51 }
 0x31e   :  { %v13017_v6 = vld [vmem:[#allocation7 + $0x70] sm:$0xf0] }
 0x31f   :  { %6235 = vmatpush.bf16.msra.mxu1 %v13692_v15  ;;  %6212 = vmatpush.bf16.msra.mxu3 %v13084_v25  ;;  %v17935_v57 = vld [vmem:[#allocation7 + $0x254] sm:$0xf]  ;;  %v13020_v5 = vor.u32 %v17871_v22, %v13017_v6  ;;  %19062 = vtanh.f32 %v19628_v62  ;;  %v14239_v62 = vld [vmem:[#allocation7 + $0x9d8] sm:$0xf] }
 0x320   :  { %v13273_v53 = vld [vmem:[#allocation7 + $0x270] sm:$0xf0] }
 0x321   :  { %6250 = vmatpush.bf16.msra.mxu2 %v13884_v3  ;;  %6225 = vmatpush.bf16.msra.mxu0 %v13340_v26  ;;  %v18015_v33 = vld [vmem:[#allocation7 + $0x4d4] sm:$0xf]  ;;  %v13276_v14 = vor.u32 %v17935_v57, %v13273_v53 }
 0x322   :  { %v13593_v55 = vld [vmem:[#allocation7 + $0x4f0] sm:$0xf0] }
 0x323   :  { %6236 = vmatpush.bf16.msra.mxu1 %v13660_v30  ;;  %v18063_v58 = vld [vmem:[#allocation7 + $0x654] sm:$0xf]  ;;  %6213 = vmatpush.bf16.msra.mxu3 %v13052_v21  ;;  %v13596_v9 = vor.u32 %v18015_v33, %v13593_v55 }
 0x324   :  { %v13785_v61 = vld [vmem:[#allocation7 + $0x670] sm:$0xf0] }
 0x325   :  { %6251 = vmatpush.bf16.msra.mxu2 %v13852_v20  ;;  %6226 = vmatpush.bf16.msra.mxu0 %v13308_v46  ;;  %v17863_v34 = vld [vmem:[#allocation7 + $0x14] sm:$0xf]  ;;  %v13788_v10 = vor.u32 %v18063_v58, %v13785_v61 }
 0x326   :  { %v12985_v16 = vld [vmem:[#allocation7 + $0x30] sm:$0xf0] }
 0x327   :  { %v17927_v2 = vld [vmem:[#allocation7 + $0x214] sm:$0xf]  ;;  %6237 = vmatpush.bf16.msra.mxu1 %v13628_v50  ;;  %6214 = vmatpush.bf16.msra.mxu3 %v13020_v5  ;;  %v12988_v26 = vor.u32 %v17863_v34, %v12985_v16 }
 0x328   :  { %v13241_v13 = vld [vmem:[#allocation7 + $0x230] sm:$0xf0] }
 0x329   :  { %6252 = vmatpush.bf16.msra.mxu2 %v13820_v52  ;;  %v18007_v15 = vld [vmem:[#allocation7 + $0x494] sm:$0xf]  ;;  %6227 = vmatpush.bf16.msra.mxu0 %v13276_v14  ;;  %v13244_v27 = vor.u32 %v17927_v2, %v13241_v13 }
 0x32a   :  { %v13561_v3 = vld [vmem:[#allocation7 + $0x4b0] sm:$0xf0] }
 0x32b   :  { %v18055_v28 = vld [vmem:[#allocation7 + $0x614] sm:$0xf]  ;;  %6238 = vmatpush.bf16.msra.mxu1 %v13596_v9  ;;  %v13564_v30 = vor.u32 %v18007_v15, %v13561_v3  ;;  %6215 = vmatpush.bf16.msra.mxu3 %v12988_v26 }
 0x32c   :  { %v13753_v43 = vld [vmem:[#allocation7 + $0x630] sm:$0xf0] }
 0x32d   :  { %v18175_v60 = vld [vmem:[#allocation7 + $0x9d4] sm:$0xf]  ;;  %6253 = vmatpush.bf16.msra.mxu2 %v13788_v10  ;;  %v13756_v20 = vor.u32 %v18055_v28, %v13753_v43  ;;  %6228 = vmatpush.bf16.msra.mxu0 %v13244_v27 }
 0x32e   :  { %v14233_v8 = vld [vmem:[#allocation7 + $0x9f0] sm:$0xf0]  ;;  %6216 = vmatmul.bf16.vlgmr.msra.gmra.mxu3 %v19504_v44 }
 0x32f   :  { %v18239_v24 = vld [vmem:[#allocation7 + $0xbd4] sm:$0xf]  ;;  %v14236_v35 = vor.u32 %v18175_v60, %v14233_v8  ;;  %6239 = vmatpush.bf16.msra.mxu1 %v13564_v30  ;;  %v6022_v60 = vpop.f32.mrf.mxu0 }
 0x330   :  { %v14489_v25 = vld [vmem:[#allocation7 + $0xbf0] sm:$0xf0]  ;;  %6229 = vmatmul.bf16.vlgmr.msra.gmra.mxu0 %v19506_v49 }
 0x331   :  { %v18367_v36 = vld [vmem:[#allocation7 + $0xfd4] sm:$0xf]  ;;  %v14492_v37 = vor.u32 %v18239_v24, %v14489_v25  ;;  %6254 = vmatpush.bf16.msra.mxu2 %v13756_v20  ;;  %6260 = vmatpush.bf16.msrb.mxu3 %v14236_v35  ;;  %v3087_v20 = vperm.slane %v19617_v1, 3 }
 0x332   :  { %v15001_v32 = vld [vmem:[#allocation7 + $0xff0] sm:$0xf0] }
 0x333   :  { %v17999_v38 = vld [vmem:[#allocation7 + $0x454] sm:$0xf]  ;;  %v15004_v40 = vor.u32 %v18367_v36, %v15001_v32  ;;  %6273 = vmatpush.bf16.msrb.mxu0 %v14492_v37 }
 0x334   :  { %v13529_v23 = vld [vmem:[#allocation7 + $0x470] sm:$0xf0]  ;;  %6255 = vmatmul.bf16.vlgmr.msra.gmra.mxu2 %v19509_v54 }
 0x335   :  { %v18167_v39 = vld [vmem:[#allocation7 + $0x994] sm:$0xf]  ;;  %v13532_v21 = vor.u32 %v17999_v38, %v13529_v23  ;;  %6299 = vmatpush.bf16.msrb.mxu2 %v15004_v40  ;;  %v6009_v40 = vpop.f32.mrf.mxu3 }
 0x336   :  { %v14201_v19 = vld [vmem:[#allocation7 + $0x9b0] sm:$0xf0] }
 0x337   :  { %v18231_v41 = vld [vmem:[#allocation7 + $0xb94] sm:$0xf]  ;;  %v14204_v22 = vor.u32 %v18167_v39, %v14201_v19  ;;  %6240 = vmatpush.bf16.msra.mxu1 %v13532_v21  ;;  %v6048_v21 = vpop.f32.mrf.mxu2 }
 0x338   :  { %v14457_v42 = vld [vmem:[#allocation7 + $0xbb0] sm:$0xf0] }
 0x339   :  { %v18359_v56 = vld [vmem:[#allocation7 + $0xf94] sm:$0xf]  ;;  %v14460_v6 = vor.u32 %v18231_v41, %v14457_v42  ;;  %6261 = vmatpush.bf16.msrb.mxu3 %v14204_v22 }
 0x33a   :  { %v14969_v29 = vld [vmem:[#allocation7 + $0xfb0] sm:$0xf0] }
 0x33b   :  { %v17991_v46 = vld [vmem:[#allocation7 + $0x414] sm:$0xf]  ;;  %v14972_v57 = vor.u32 %v18359_v56, %v14969_v29  ;;  %6274 = vmatpush.bf16.msrb.mxu0 %v14460_v6  ;;  %v6010_v29 = vadd.f32 %v6009_v40, %v3087_v20  ;;  %v13215_v20 = vld [vmem:[#allocation7 + $0x1d8] sm:$0xf] }
 0x33c   :  { %v13497_v51 = vld [vmem:[#allocation7 + $0x430] sm:$0xf0] }
 0x33d   :  { %v18159_v50 = vld [vmem:[#allocation7 + $0x954] sm:$0xf]  ;;  %v13500_v14 = vor.u32 %v17991_v46, %v13497_v51  ;;  %6300 = vmatpush.bf16.msrb.mxu2 %v14972_v57  ;;  %v6023_v57 = vadd.f32 %v6022_v60, %v6010_v29 }
 0x33e   :  { %v14169_v52 = vld [vmem:[#allocation7 + $0x970] sm:$0xf0] }
 0x33f   :  { %v18223_v53 = vld [vmem:[#allocation7 + $0xb54] sm:$0xf]  ;;  %v14172_v47 = vor.u32 %v18159_v50, %v14169_v52  ;;  %6241 = vmatpush.bf16.msra.mxu1 %v13500_v14  ;;  %v6024_v52 = vpop.f32.mrf.mxu0 }
 0x340   :  { %v14425_v33 = vld [vmem:[#allocation7 + $0xb70] sm:$0xf0]  ;;  %v17980_v52 = vld [vmem:[#allocation7 + $0x3b4] sm:$0xf0] }
 0x341   :  { %v18303_v55 = vld [vmem:[#allocation7 + $0xdd4] sm:$0xf]  ;;  %v14428_v34 = vor.u32 %v18223_v53, %v14425_v33  ;;  %6262 = vmatpush.bf16.msrb.mxu3 %v14172_v47  ;;  %v6035_v53 = vpop.f32.mrf.mxu1 }
 0x342   :  { %v14745_v58 = vld [vmem:[#allocation7 + $0xdf0] sm:$0xf0]  ;;  %6242 = vmatmul.bf16.vlgmr.msra.gmra.mxu1 %v19520_v31 }
 0x343   :  { %v18351_v61 = vld [vmem:[#allocation7 + $0xf54] sm:$0xf]  ;;  %v14748_v9 = vor.u32 %v18303_v55, %v14745_v58  ;;  %6275 = vmatpush.bf16.msrb.mxu0 %v14428_v34 }
 0x344   :  { %v14937_v5 = vld [vmem:[#allocation7 + $0xf70] sm:$0xf0] }
 0x345   :  { %v18151_v16 = vld [vmem:[#allocation7 + $0x914] sm:$0xf]  ;;  %v14940_v10 = vor.u32 %v18351_v61, %v14937_v5  ;;  %6286 = vmatpush.bf16.msrb.mxu1 %v14748_v9  ;;  %v6036_v5 = vadd.f32 %v6035_v53, %v6023_v57  ;;  %v13951_v57 = vld [vmem:[#allocation7 + $0x798] sm:$0xf] }
 0x346   :  { %v14137_v2 = vld [vmem:[#allocation7 + $0x930] sm:$0xf0]  ;;  %v18108_v53 = vld [vmem:[#allocation7 + $0x7b4] sm:$0xf0] }
 0x347   :  { %v18215_v11 = vld [vmem:[#allocation7 + $0xb14] sm:$0xf]  ;;  %v14140_v17 = vor.u32 %v18151_v16, %v14137_v2  ;;  %6301 = vmatpush.bf16.msrb.mxu2 %v14940_v10 }
 0x348   :  { %v14393_v13 = vld [vmem:[#allocation7 + $0xb30] sm:$0xf0] }
 0x349   :  { %v18295_v15 = vld [vmem:[#allocation7 + $0xd94] sm:$0xf]  ;;  %v14396_v8 = vor.u32 %v18215_v11, %v14393_v13  ;;  %6263 = vmatpush.bf16.msrb.mxu3 %v14140_v17  ;;  %v19635_v13 = vadd.f32 %v6048_v21, %v6036_v5 }
 0x34a   :  { %v14713_v3 = vld [vmem:[#allocation7 + $0xdb0] sm:$0xf0] }
 0x34b   :  { %v18343_v28 = vld [vmem:[#allocation7 + $0xf14] sm:$0xf]  ;;  %v14716_v27 = vor.u32 %v18295_v15, %v14713_v3  ;;  %6276 = vmatpush.bf16.msrb.mxu0 %v14396_v8 }
 0x34c   :  { %v14905_v43 = vld [vmem:[#allocation7 + $0xf30] sm:$0xf0] }
 0x34d   :  { %v18143_v24 = vld [vmem:[#allocation7 + $0x8d4] sm:$0xf]  ;;  %v14908_v36 = vor.u32 %v18343_v28, %v14905_v43  ;;  %6287 = vmatpush.bf16.msrb.mxu1 %v14716_v27  ;;  %v6011_v28 = vpop.f32.mrf.mxu3 }
 0x34e   :  { %v14105_v25 = vld [vmem:[#allocation7 + $0x8f0] sm:$0xf0] }
 0x34f   :  { %v18207_v26 = vld [vmem:[#allocation7 + $0xad4] sm:$0xf]  ;;  %v14108_v23 = vor.u32 %v18143_v24, %v14105_v25  ;;  %6302 = vmatpush.bf16.msrb.mxu2 %v14908_v36  ;;  %v6050_v25 = vpop.f32.mrf.mxu2 }
 0x350   :  { %v14361_v32 = vld [vmem:[#allocation7 + $0xaf0] sm:$0xf0]  ;;  %v13375_v25 = vld [vmem:[#allocation7 + $0x318] sm:$0xf] }
 0x351   :  { %v18287_v30 = vld [vmem:[#allocation7 + $0xd54] sm:$0xf]  ;;  %v14364_v39 = vor.u32 %v18207_v26, %v14361_v32  ;;  %6264 = vmatpush.bf16.msrb.mxu3 %v14108_v23  ;;  %v17988_v23 = vld [vmem:[#allocation7 + $0x3f4] sm:$0xf0] }
 0x352   :  { %v14681_v35 = vld [vmem:[#allocation7 + $0xd70] sm:$0xf0] }
 0x353   :  { %v18335_v37 = vld [vmem:[#allocation7 + $0xed4] sm:$0xf]  ;;  %v14684_v42 = vor.u32 %v18287_v30, %v14681_v35  ;;  %6277 = vmatpush.bf16.msrb.mxu0 %v14364_v39  ;;  %v6037_v35 = vpop.f32.mrf.mxu1 }
 0x354   :  { %v14873_v38 = vld [vmem:[#allocation7 + $0xef0] sm:$0xf0] }
 0x355   :  { %v18135_v19 = vld [vmem:[#allocation7 + $0x894] sm:$0xf]  ;;  %v14876_v56 = vor.u32 %v18335_v37, %v14873_v38  ;;  %6288 = vmatpush.bf16.msrb.mxu1 %v14684_v42  ;;  %v17924_v37 = vld [vmem:[#allocation7 + $0x1f4] sm:$0xf0] }
 0x356   :  { %v14073_v41 = vld [vmem:[#allocation7 + $0x8b0] sm:$0xf0]  ;;  %v13471_v38 = vld [vmem:[#allocation7 + $0x3d8] sm:$0xf]  ;;  %v13216_v29 = vor.u32 %v17924_v37, %v13215_v20  ;;  %v6074_v20 = vpop.f32.mrf.mxu0 }
 0x357   :  { %v18199_v46 = vld [vmem:[#allocation7 + $0xa94] sm:$0xf]  ;;  %v14076_v33 = vor.u32 %v18135_v19, %v14073_v41  ;;  %6303 = vmatpush.bf16.msrb.mxu2 %v14876_v56  ;;  %v13983_v19 = vld [vmem:[#allocation7 + $0x7d8] sm:$0xf]  ;;  %v13472_v21 = vor.u32 %v17988_v23, %v13471_v38 }
 0x358   :  { %v14329_v1 = vld [vmem:[#allocation7 + $0xab0] sm:$0xf0]  ;;  %v18116_v41 = vld [vmem:[#allocation7 + $0x7f4] sm:$0xf0] }
 0x359   :  { %v18279_v22 = vld [vmem:[#allocation7 + $0xd14] sm:$0xf]  ;;  %v14332_v55 = vor.u32 %v18199_v46, %v14329_v1  ;;  %6265 = vmatpush.bf16.msrb.mxu3 %v14076_v33  ;;  %v13087_v38 = vld [vmem:[#allocation7 + $0xd8] sm:$0xf] }
 0x35a   :  { %v14649_v6 = vld [vmem:[#allocation7 + $0xd30] sm:$0xf0]  ;;  %v17892_v23 = vld [vmem:[#allocation7 + $0xf4] sm:$0xf0] }
 0x35b   :  { %v18327_v51 = vld [vmem:[#allocation7 + $0xe94] sm:$0xf]  ;;  %v14652_v14 = vor.u32 %v18279_v22, %v14649_v6  ;;  %6278 = vmatpush.bf16.msrb.mxu0 %v14332_v55  ;;  %v13183_v22 = vld [vmem:[#allocation7 + $0x198] sm:$0xf]  ;;  %v13984_v6 = vor.u32 %v18116_v41, %v13983_v19 }
 0x35c   :  { %v14841_v50 = vld [vmem:[#allocation7 + $0xeb0] sm:$0xf0]  ;;  %v13343_v19 = vld [vmem:[#allocation7 + $0x2d8] sm:$0xf] }
 0x35d   :  { %v18127_v58 = vld [vmem:[#allocation7 + $0x854] sm:$0xf]  ;;  %v14844_v47 = vor.u32 %v18327_v51, %v14841_v50  ;;  %6289 = vmatpush.bf16.msrb.mxu1 %v14652_v14  ;;  %v17916_v51 = vld [vmem:[#allocation7 + $0x1b4] sm:$0xf0] }
 0x35e   :  { %v14041_v61 = vld [vmem:[#allocation7 + $0x870] sm:$0xf0]  ;;  %v13439_v50 = vld [vmem:[#allocation7 + $0x398] sm:$0xf] }
 0x35f   :  { %v18191_v34 = vld [vmem:[#allocation7 + $0xa54] sm:$0xf]  ;;  %v14044_v15 = vor.u32 %v18127_v58, %v14041_v61  ;;  %6304 = vmatpush.bf16.msrb.mxu2 %v14844_v47  ;;  %v13184_v58 = vor.u32 %v17916_v51, %v13183_v22  ;;  %v13440_v61 = vor.u32 %v17980_v52, %v13439_v50  ;;  %v13151_v14 = vld [vmem:[#allocation7 + $0x158] sm:$0xf]  ;;  %v6061_v22 = vpop.f32.mrf.mxu3 }
 0x360   :  { %v14297_v16 = vld [vmem:[#allocation7 + $0xa70] sm:$0xf0]  ;;  %v17908_v47 = vld [vmem:[#allocation7 + $0x174] sm:$0xf0] }
 0x361   :  { %v18271_v2 = vld [vmem:[#allocation7 + $0xcd4] sm:$0xf]  ;;  %v14300_v3 = vor.u32 %v18191_v34, %v14297_v16  ;;  %6266 = vmatpush.bf16.msrb.mxu3 %v14044_v15  ;;  %v13952_v34 = vor.u32 %v18108_v53, %v13951_v57  ;;  %v13407_v16 = vld [vmem:[#allocation7 + $0x358] sm:$0xf]  ;;  %v13152_v28 = vor.u32 %v17908_v47, %v13151_v14  ;;  %v6062_v57 = vadd.f32 %v6061_v22, %v19635_v13  ;;  %v6100_v53 = vpop.f32.mrf.mxu2  ;;  %v6076_v47 = vpop.f32.mrf.mxu0 }
 0x362   :  { %v14617_v9 = vld [vmem:[#allocation7 + $0xcf0] sm:$0xf0]  ;;  %v18100_v15 = vld [vmem:[#allocation7 + $0x774] sm:$0xf0] }
 0x363   :  { %v18319_v10 = vld [vmem:[#allocation7 + $0xe54] sm:$0xf]  ;;  %v14620_v8 = vor.u32 %v18271_v2, %v14617_v9  ;;  %6279 = vmatpush.bf16.msrb.mxu0 %v14300_v3  ;;  %v17972_v2 = vld [vmem:[#allocation7 + $0x374] sm:$0xf0] }
 0x364   :  { %v14809_v11 = vld [vmem:[#allocation7 + $0xe70] sm:$0xf0]  ;;  %v13727_v9 = vld [vmem:[#allocation7 + $0x5d8] sm:$0xf] }
 0x365   :  { %v18119_v43 = vld [vmem:[#allocation7 + $0x814] sm:$0xf]  ;;  %v14812_v24 = vor.u32 %v18319_v10, %v14809_v11  ;;  %6290 = vmatpush.bf16.msrb.mxu1 %v14620_v8  ;;  %v18052_v10 = vld [vmem:[#allocation7 + $0x5f4] sm:$0xf0] }
 0x366   :  { %v14009_v60 = vld [vmem:[#allocation7 + $0x830] sm:$0xf0]  ;;  %v13919_v11 = vld [vmem:[#allocation7 + $0x758] sm:$0xf]  ;;  %v13728_v8 = vor.u32 %v18052_v10, %v13727_v9 }
 0x367   :  { %v18183_v17 = vld [vmem:[#allocation7 + $0xa14] sm:$0xf]  ;;  %v14012_v39 = vor.u32 %v18119_v43, %v14009_v60  ;;  %6305 = vmatpush.bf16.msrb.mxu2 %v14812_v24  ;;  %v13408_v43 = vor.u32 %v17972_v2, %v13407_v16  ;;  %v13119_v60 = vld [vmem:[#allocation7 + $0x118] sm:$0xf]  ;;  %v13920_v24 = vor.u32 %v18100_v15, %v13919_v11  ;;  %v6087_v16 = vpop.f32.mrf.mxu1 }
 0x368   :  { %v14265_v26 = vld [vmem:[#allocation7 + $0xa30] sm:$0xf0]  ;;  %v17956_v41 = vld [vmem:[#allocation7 + $0x2f4] sm:$0xf0] }
 0x369   :  { %v18263_v27 = vld [vmem:[#allocation7 + $0xc94] sm:$0xf]  ;;  %v14268_v40 = vor.u32 %v18183_v17, %v14265_v26  ;;  %6267 = vmatpush.bf16.msrb.mxu3 %v14012_v39  ;;  %v17900_v17 = vld [vmem:[#allocation7 + $0x134] sm:$0xf0] }
 0x36a   :  { %v14585_v36 = vld [vmem:[#allocation7 + $0xcb0] sm:$0xf0]  ;;  %v17964_v26 = vld [vmem:[#allocation7 + $0x334] sm:$0xf0]  ;;  %v13120_v35 = vor.u32 %v17900_v17, %v13119_v60 }
 0x36b   :  { %v18311_v32 = vld [vmem:[#allocation7 + $0xe14] sm:$0xf]  ;;  %v14588_v42 = vor.u32 %v18263_v27, %v14585_v36  ;;  %6280 = vmatpush.bf16.msrb.mxu0 %v14268_v40  ;;  %v13695_v27 = vld [vmem:[#allocation7 + $0x598] sm:$0xf]  ;;  %v13376_v37 = vor.u32 %v17964_v26, %v13375_v25 }
 0x36c   :  { %v14777_v30 = vld [vmem:[#allocation7 + $0xe30] sm:$0xf0]  ;;  %6268 = vmatmul.bf16.vlgmr.msrb.gmra.mxu3 %v19536_v63  ;;  %v18044_v36 = vld [vmem:[#allocation7 + $0x5b4] sm:$0xf0] }
 0x36d   :  { %v14780_v56 = vor.u32 %v18311_v32, %v14777_v30  ;;  %v18255_v46 = vld [vmem:[#allocation7 + $0xc54] sm:$0xf]  ;;  %6291 = vmatpush.bf16.msrb.mxu1 %v14588_v42  ;;  %6312 = vmatpush.bf16.msra.mxu3 %v13216_v29  ;;  %v13887_v32 = vld [vmem:[#allocation7 + $0x718] sm:$0xf]  ;;  %v13696_v39 = vor.u32 %v18044_v36, %v13695_v27  ;;  %v6063_v36 = vpop.f32.mrf.mxu3 }
 0x36e   :  { %v14553_v1 = vld [vmem:[#allocation7 + $0xc70] sm:$0xf0]  ;;  %6281 = vmatmul.bf16.vlgmr.msrb.gmra.mxu0 %v19538_v4  ;;  %v18092_v30 = vld [vmem:[#allocation7 + $0x734] sm:$0xf0] }
 0x36f   :  { %6306 = vmatpush.bf16.msrb.mxu2 %v14780_v56  ;;  %v14556_v33 = vor.u32 %v18255_v46, %v14553_v1  ;;  %v18247_v55 = vld [vmem:[#allocation7 + $0xc14] sm:$0xf]  ;;  %6325 = vmatpush.bf16.msra.mxu0 %v13472_v21  ;;  %v13888_v40 = vor.u32 %v18092_v30, %v13887_v32  ;;  %v13663_v42 = vld [vmem:[#allocation7 + $0x558] sm:$0xf]  ;;  %v13088_v46 = vor.u32 %v17892_v23, %v13087_v38  ;;  %v6102_v38 = vpop.f32.mrf.mxu2 }
 0x370   :  { %v14521_v5 = vld [vmem:[#allocation7 + $0xc30] sm:$0xf0]  ;;  %v18036_v56 = vld [vmem:[#allocation7 + $0x574] sm:$0xf0]  ;;  %v13344_v1 = vor.u32 %v17956_v41, %v13343_v19 }
 0x371   :  { %6292 = vmatpush.bf16.msrb.mxu1 %v14556_v33  ;;  %v14524_v3 = vor.u32 %v18247_v55, %v14521_v5  ;;  %6313 = vmatpush.bf16.msra.mxu3 %v13184_v58  ;;  %v13855_v29 = vld [vmem:[#allocation7 + $0x6d8] sm:$0xf]  ;;  %v13664_v50 = vor.u32 %v18036_v56, %v13663_v42  ;;  %v6089_v42 = vpop.f32.mrf.mxu1 }
 0x372   :  { %6307 = vmatmul.bf16.vlgmr.msrb.gmra.mxu2 %v19540_v7  ;;  %v18084_v21 = vld [vmem:[#allocation7 + $0x6f4] sm:$0xf0]  ;;  %v6126_v42 = vpop.f32.mrf.mxu0 }
 0x373   :  { %6351 = vmatpush.bf16.msra.mxu2 %v13984_v6  ;;  %6326 = vmatpush.bf16.msra.mxu0 %v13440_v61  ;;  %v13055_v6 = vld [vmem:[#allocation7 + $0x98] sm:$0xf]  ;;  %v13856_v52 = vor.u32 %v18084_v21, %v13855_v29 }
 0x374   :  { %v17884_v51 = vld [vmem:[#allocation7 + $0xb4] sm:$0xf0] }
 0x375   :  { %6293 = vmatpush.bf16.msrb.mxu1 %v14524_v3  ;;  %6314 = vmatpush.bf16.msra.mxu3 %v13152_v28  ;;  %v13311_v33 = vld [vmem:[#allocation7 + $0x298] sm:$0xf]  ;;  %v13056_v2 = vor.u32 %v17884_v51, %v13055_v6 }
 0x376   :  { %v17948_v55 = vld [vmem:[#allocation7 + $0x2b4] sm:$0xf0] }
 0x377   :  { %6352 = vmatpush.bf16.msra.mxu2 %v13952_v34  ;;  %6327 = vmatpush.bf16.msra.mxu0 %v13408_v43  ;;  %v13631_v58 = vld [vmem:[#allocation7 + $0x518] sm:$0xf]  ;;  %v6075_v34 = vadd.f32 %v6074_v20, %v6062_v57  ;;  %v13312_v9 = vor.u32 %v17948_v55, %v13311_v33 }
 0x378   :  { %6294 = vmatmul.bf16.vlgmr.msrb.gmra.mxu1 %v19550_v45  ;;  %v18028_v61 = vld [vmem:[#allocation7 + $0x534] sm:$0xf0] }
 0x379   :  { %6338 = vmatpush.bf16.msra.mxu1 %v13728_v8  ;;  %6315 = vmatpush.bf16.msra.mxu3 %v13120_v35  ;;  %v13823_v5 = vld [vmem:[#allocation7 + $0x698] sm:$0xf]  ;;  %v6088_v15 = vadd.f32 %v6087_v16, %v6075_v34  ;;  %v13632_v13 = vor.u32 %v18028_v61, %v13631_v58 }
 0x37a   :  { %v18076_v14 = vld [vmem:[#allocation7 + $0x6b4] sm:$0xf0] }
 0x37b   :  { %6353 = vmatpush.bf16.msra.mxu2 %v13920_v24  ;;  %6328 = vmatpush.bf16.msra.mxu0 %v13376_v37  ;;  %v13023_v10 = vld [vmem:[#allocation7 + $0x58] sm:$0xf]  ;;  %v13824_v3 = vor.u32 %v18076_v14, %v13823_v5  ;;  %v6101_v25 = vadd.f32 %v6100_v53, %v6088_v15 }
 0x37c   :  { %v17876_v11 = vld [vmem:[#allocation7 + $0x74] sm:$0xf0] }
 0x37d   :  { %6339 = vmatpush.bf16.msra.mxu1 %v13696_v39  ;;  %6316 = vmatpush.bf16.msra.mxu3 %v13088_v46  ;;  %v13279_v28 = vld [vmem:[#allocation7 + $0x258] sm:$0xf]  ;;  %v13024_v26 = vor.u32 %v17876_v11, %v13023_v10  ;;  %19064 = vtanh.f32 %v6101_v25 }
 0x37e   :  { %v17940_v43 = vld [vmem:[#allocation7 + $0x274] sm:$0xf0] }
 0x37f   :  { %6354 = vmatpush.bf16.msra.mxu2 %v13888_v40  ;;  %6329 = vmatpush.bf16.msra.mxu0 %v13344_v1  ;;  %v13599_v60 = vld [vmem:[#allocation7 + $0x4d8] sm:$0xf]  ;;  %v13280_v27 = vor.u32 %v17940_v43, %v13279_v28 }
 0x380   :  { %v18020_v17 = vld [vmem:[#allocation7 + $0x4f4] sm:$0xf0] }
 0x381   :  { %6340 = vmatpush.bf16.msra.mxu1 %v13664_v50  ;;  %v13791_v8 = vld [vmem:[#allocation7 + $0x658] sm:$0xf]  ;;  %6317 = vmatpush.bf16.msra.mxu3 %v13056_v2  ;;  %v13600_v35 = vor.u32 %v18020_v17, %v13599_v60 }
 0x382   :  { %v18068_v24 = vld [vmem:[#allocation7 + $0x674] sm:$0xf0] }
 0x383   :  { %6355 = vmatpush.bf16.msra.mxu2 %v13856_v52  ;;  %6330 = vmatpush.bf16.msra.mxu0 %v13312_v9  ;;  %v12991_v32 = vld [vmem:[#allocation7 + $0x18] sm:$0xf]  ;;  %v13792_v37 = vor.u32 %v18068_v24, %v13791_v8  ;;  %v19063_v52 = vpop.eup %19062 }
 0x384   :  { %v17868_v30 = vld [vmem:[#allocation7 + $0x34] sm:$0xf0]  ;;  %v19065_v61 = vpop.eup %19064 }
 0x385   :  { %v13247_v20 = vld [vmem:[#allocation7 + $0x218] sm:$0xf]  ;;  %6341 = vmatpush.bf16.msra.mxu1 %v13632_v13  ;;  %6318 = vmatpush.bf16.msra.mxu3 %v13024_v26  ;;  %v12992_v46 = vor.u32 %v17868_v30, %v12991_v32  ;;  %v19643_v16 = vpack.c.bf16 %v19065_v61, %v19063_v52  ;;  %v19648_v52 = vld [vmem:[#allocation9] sm:$0xff] }
 0x386   :  { %v17932_v23 = vld [vmem:[#allocation7 + $0x234] sm:$0xf0] }
 0x387   :  { %6356 = vmatpush.bf16.msra.mxu2 %v13824_v3  ;;  %v13567_v39 = vld [vmem:[#allocation7 + $0x498] sm:$0xf]  ;;  %6331 = vmatpush.bf16.msra.mxu0 %v13280_v27  ;;  %v13248_v1 = vor.u32 %v17932_v23, %v13247_v20 }
 0x388   :  { %v18012_v40 = vld [vmem:[#allocation7 + $0x4b4] sm:$0xf0] }
 0x389   :  { %v13759_v19 = vld [vmem:[#allocation7 + $0x618] sm:$0xf]  ;;  %6342 = vmatpush.bf16.msra.mxu1 %v13600_v35  ;;  %v13568_v51 = vor.u32 %v18012_v40, %v13567_v39  ;;  %6319 = vmatpush.bf16.msra.mxu3 %v12992_v46 }
 0x38a   :  { %v18060_v41 = vld [vmem:[#allocation7 + $0x634] sm:$0xf0] }
 0x38b   :  { %v18180_v56 = vld [vmem:[#allocation7 + $0x9f4] sm:$0xf0]  ;;  %6357 = vmatpush.bf16.msra.mxu2 %v13792_v37  ;;  %v13760_v50 = vor.u32 %v18060_v41, %v13759_v19  ;;  %6332 = vmatpush.bf16.msra.mxu0 %v13248_v1 }
 0x38c   :  { %v14495_v29 = vld [vmem:[#allocation7 + $0xbd8] sm:$0xf]  ;;  %v14240_v57 = vor.u32 %v18180_v56, %v14239_v62  ;;  %6320 = vmatmul.bf16.vlgmr.msra.gmra.mxu3 %v19504_v44 }
 0x38d   :  { %v18244_v21 = vld [vmem:[#allocation7 + $0xbf4] sm:$0xf0]  ;;  %6343 = vmatpush.bf16.msra.mxu1 %v13568_v51 }
 0x38e   :  { %v15007_v22 = vld [vmem:[#allocation7 + $0xfd8] sm:$0xf]  ;;  %v14496_v53 = vor.u32 %v18244_v21, %v14495_v29  ;;  %6364 = vmatpush.bf16.msrb.mxu3 %v14240_v57  ;;  %6333 = vmatmul.bf16.vlgmr.msra.gmra.mxu0 %v19506_v49  ;;  %v3088_v57 = vperm.slane %v19648_v52, 4 }
 0x38f   :  { %v18372_v6 = vld [vmem:[#allocation7 + $0xff4] sm:$0xf0]  ;;  %6358 = vmatpush.bf16.msra.mxu2 %v13760_v50 }
 0x390   :  { %v13535_v33 = vld [vmem:[#allocation7 + $0x458] sm:$0xf]  ;;  %v15008_v5 = vor.u32 %v18372_v6, %v15007_v22  ;;  %6377 = vmatpush.bf16.msrb.mxu0 %v14496_v53 }
 0x391   :  { %v18004_v55 = vld [vmem:[#allocation7 + $0x474] sm:$0xf0] }
 0x392   :  { %v14207_v58 = vld [vmem:[#allocation7 + $0x998] sm:$0xf]  ;;  %v13536_v10 = vor.u32 %v18004_v55, %v13535_v33  ;;  %6359 = vmatmul.bf16.vlgmr.msra.gmra.mxu2 %v19509_v54 }
 0x393   :  { %v18172_v14 = vld [vmem:[#allocation7 + $0x9b4] sm:$0xf0]  ;;  %6403 = vmatpush.bf16.msrb.mxu2 %v15008_v5  ;;  %v6113_v5 = vpop.f32.mrf.mxu3 }
 0x394   :  { %v14463_v47 = vld [vmem:[#allocation7 + $0xb98] sm:$0xf]  ;;  %v14208_v15 = vor.u32 %v18172_v14, %v14207_v58  ;;  %6344 = vmatpush.bf16.msra.mxu1 %v13536_v10  ;;  %v6152_v10 = vpop.f32.mrf.mxu2 }
 0x395   :  { %v18236_v34 = vld [vmem:[#allocation7 + $0xbb4] sm:$0xf0] }
 0x396   :  { %v14975_v2 = vld [vmem:[#allocation7 + $0xf98] sm:$0xf]  ;;  %v14464_v13 = vor.u32 %v18236_v34, %v14463_v47  ;;  %6365 = vmatpush.bf16.msrb.mxu3 %v14208_v15 }
 0x397   :  { %v18364_v9 = vld [vmem:[#allocation7 + $0xfb4] sm:$0xf0] }
 0x398   :  { %v13503_v11 = vld [vmem:[#allocation7 + $0x418] sm:$0xf]  ;;  %v14976_v60 = vor.u32 %v18364_v9, %v14975_v2  ;;  %6378 = vmatpush.bf16.msrb.mxu0 %v14464_v13  ;;  %v6114_v9 = vadd.f32 %v6113_v5, %v3088_v57 }
 0x399   :  { %v17996_v3 = vld [vmem:[#allocation7 + $0x434] sm:$0xf0] }
 0x39a   :  { %v14175_v28 = vld [vmem:[#allocation7 + $0x958] sm:$0xf]  ;;  %v13504_v36 = vor.u32 %v17996_v3, %v13503_v11  ;;  %6404 = vmatpush.bf16.msrb.mxu2 %v14976_v60  ;;  %v6128_v60 = vpop.f32.mrf.mxu0 }
 0x39b   :  { %v18164_v43 = vld [vmem:[#allocation7 + $0x974] sm:$0xf0]  ;;  %v17976_v60 = vld [vmem:[#allocation7 + $0x39c] sm:$0xf] }
 0x39c   :  { %v14431_v17 = vld [vmem:[#allocation7 + $0xb58] sm:$0xf]  ;;  %v14176_v32 = vor.u32 %v18164_v43, %v14175_v28  ;;  %6345 = vmatpush.bf16.msra.mxu1 %v13504_v36 }
 0x39d   :  { %v18228_v8 = vld [vmem:[#allocation7 + $0xb74] sm:$0xf0] }
 0x39e   :  { %v14751_v24 = vld [vmem:[#allocation7 + $0xdd8] sm:$0xf]  ;;  %v14432_v30 = vor.u32 %v18228_v8, %v14431_v17  ;;  %6366 = vmatpush.bf16.msrb.mxu3 %v14176_v32  ;;  %v6127_v17 = vadd.f32 %v6126_v42, %v6114_v9  ;;  %v6139_v8 = vpop.f32.mrf.mxu1 }
 0x39f   :  { %v18308_v25 = vld [vmem:[#allocation7 + $0xdf4] sm:$0xf0]  ;;  %6346 = vmatmul.bf16.vlgmr.msra.gmra.mxu1 %v19520_v31 }
 0x3a0   :  { %v14943_v26 = vld [vmem:[#allocation7 + $0xf58] sm:$0xf]  ;;  %v14752_v37 = vor.u32 %v18308_v25, %v14751_v24  ;;  %6379 = vmatpush.bf16.msrb.mxu0 %v14432_v30  ;;  %v6140_v36 = vadd.f32 %v6139_v8, %v6127_v17  ;;  %v13441_v17 = vld [vmem:[#allocation7 + $0x3b8] sm:$0xf0] }
 0x3a1   :  { %v18356_v27 = vld [vmem:[#allocation7 + $0xf74] sm:$0xf0]  ;;  %v18104_v8 = vld [vmem:[#allocation7 + $0x79c] sm:$0xf] }
 0x3a2   :  { %v14143_v20 = vld [vmem:[#allocation7 + $0x918] sm:$0xf]  ;;  %v14944_v38 = vor.u32 %v18356_v27, %v14943_v26  ;;  %6390 = vmatpush.bf16.msrb.mxu1 %v14752_v37 }
 0x3a3   :  { %v18156_v35 = vld [vmem:[#allocation7 + $0x934] sm:$0xf0] }
 0x3a4   :  { %v14399_v23 = vld [vmem:[#allocation7 + $0xb18] sm:$0xf]  ;;  %v14144_v56 = vor.u32 %v18156_v35, %v14143_v20  ;;  %6405 = vmatpush.bf16.msrb.mxu2 %v14944_v38 }
 0x3a5   :  { %v18220_v39 = vld [vmem:[#allocation7 + $0xb34] sm:$0xf0] }
 0x3a6   :  { %v14719_v40 = vld [vmem:[#allocation7 + $0xd98] sm:$0xf]  ;;  %v14400_v29 = vor.u32 %v18220_v39, %v14399_v23  ;;  %6367 = vmatpush.bf16.msrb.mxu3 %v14144_v56 }
 0x3a7   :  { %v18300_v19 = vld [vmem:[#allocation7 + $0xdb4] sm:$0xf0] }
 0x3a8   :  { %v14911_v41 = vld [vmem:[#allocation7 + $0xf18] sm:$0xf]  ;;  %v14720_v22 = vor.u32 %v18300_v19, %v14719_v40  ;;  %6380 = vmatpush.bf16.msrb.mxu0 %v14400_v29  ;;  %v19652_v40 = vadd.f32 %v6152_v10, %v6140_v36  ;;  %v13444_v36 = vor.u32 %v17976_v60, %v13441_v17  ;;  %v13057_v60 = vld [vmem:[#allocation7 + $0xb8] sm:$0xf0] }
 0x3a9   :  { %v18348_v62 = vld [vmem:[#allocation7 + $0xf34] sm:$0xf0] }
 0x3aa   :  { %v14111_v21 = vld [vmem:[#allocation7 + $0x8d8] sm:$0xf]  ;;  %v14912_v6 = vor.u32 %v18348_v62, %v14911_v41  ;;  %6391 = vmatpush.bf16.msrb.mxu1 %v14720_v22  ;;  %v6115_v62 = vpop.f32.mrf.mxu3 }
 0x3ab   :  { %v18148_v46 = vld [vmem:[#allocation7 + $0x8f4] sm:$0xf0] }
 0x3ac   :  { %v14367_v1 = vld [vmem:[#allocation7 + $0xad8] sm:$0xf]  ;;  %v14112_v58 = vor.u32 %v18148_v46, %v14111_v21  ;;  %6406 = vmatpush.bf16.msrb.mxu2 %v14912_v6 }
 0x3ad   :  { %v18212_v51 = vld [vmem:[#allocation7 + $0xaf4] sm:$0xf0] }
 0x3ae   :  { %v14687_v50 = vld [vmem:[#allocation7 + $0xd58] sm:$0xf]  ;;  %v14368_v61 = vor.u32 %v18212_v51, %v14367_v1  ;;  %6368 = vmatpush.bf16.msrb.mxu3 %v14112_v58  ;;  %v6154_v1 = vpop.f32.mrf.mxu2  ;;  %v17984_v58 = vld [vmem:[#allocation7 + $0x3dc] sm:$0xf] }
 0x3af   :  { %v18292_v53 = vld [vmem:[#allocation7 + $0xd74] sm:$0xf0] }
 0x3b0   :  { %v14879_v33 = vld [vmem:[#allocation7 + $0xed8] sm:$0xf]  ;;  %v14688_v34 = vor.u32 %v18292_v53, %v14687_v50  ;;  %6381 = vmatpush.bf16.msrb.mxu0 %v14368_v61  ;;  %v17920_v53 = vld [vmem:[#allocation7 + $0x1dc] sm:$0xf] }
 0x3b1   :  { %v18340_v55 = vld [vmem:[#allocation7 + $0xef4] sm:$0xf0]  ;;  %v13473_v61 = vld [vmem:[#allocation7 + $0x3f8] sm:$0xf0] }
 0x3b2   :  { %v14079_v14 = vld [vmem:[#allocation7 + $0x898] sm:$0xf]  ;;  %v14880_v2 = vor.u32 %v18340_v55, %v14879_v33  ;;  %6392 = vmatpush.bf16.msrb.mxu1 %v14688_v34  ;;  %v6141_v33 = vpop.f32.mrf.mxu1  ;;  %v13217_v55 = vld [vmem:[#allocation7 + $0x1f8] sm:$0xf0] }
 0x3b3   :  { %v18140_v47 = vld [vmem:[#allocation7 + $0x8b4] sm:$0xf0]  ;;  %v13985_v34 = vld [vmem:[#allocation7 + $0x7f8] sm:$0xf0]  ;;  %v13220_v10 = vor.u32 %v17920_v53, %v13217_v55  ;;  %v6178_v33 = vpop.f32.mrf.mxu0 }
 0x3b4   :  { %v14335_v11 = vld [vmem:[#allocation7 + $0xa98] sm:$0xf]  ;;  %v14080_v24 = vor.u32 %v18140_v47, %v14079_v14  ;;  %6407 = vmatpush.bf16.msrb.mxu2 %v14880_v2  ;;  %v18112_v47 = vld [vmem:[#allocation7 + $0x7dc] sm:$0xf] }
 0x3b5   :  { %v18204_v15 = vld [vmem:[#allocation7 + $0xab4] sm:$0xf0]  ;;  %v13889_v53 = vld [vmem:[#allocation7 + $0x738] sm:$0xf0] }
 0x3b6   :  { %v14655_v13 = vld [vmem:[#allocation7 + $0xd18] sm:$0xf]  ;;  %v14336_v25 = vor.u32 %v18204_v15, %v14335_v11  ;;  %6369 = vmatpush.bf16.msrb.mxu3 %v14080_v24  ;;  %v13476_v11 = vor.u32 %v17984_v58, %v13473_v61  ;;  %v13953_v24 = vld [vmem:[#allocation7 + $0x7b8] sm:$0xf0] }
 0x3b7   :  { %v18284_v3 = vld [vmem:[#allocation7 + $0xd34] sm:$0xf0]  ;;  %v17888_v61 = vld [vmem:[#allocation7 + $0xdc] sm:$0xf] }
 0x3b8   :  { %v14847_v28 = vld [vmem:[#allocation7 + $0xe98] sm:$0xf]  ;;  %v14656_v32 = vor.u32 %v18284_v3, %v14655_v13  ;;  %6382 = vmatpush.bf16.msrb.mxu0 %v14336_v25  ;;  %v17912_v3 = vld [vmem:[#allocation7 + $0x19c] sm:$0xf] }
 0x3b9   :  { %v18332_v43 = vld [vmem:[#allocation7 + $0xeb4] sm:$0xf0] }
 0x3ba   :  { %v14047_v26 = vld [vmem:[#allocation7 + $0x858] sm:$0xf]  ;;  %v14848_v30 = vor.u32 %v18332_v43, %v14847_v28  ;;  %6393 = vmatpush.bf16.msrb.mxu1 %v14656_v32  ;;  %v13988_v28 = vor.u32 %v18112_v47, %v13985_v34  ;;  %v13185_v43 = vld [vmem:[#allocation7 + $0x1b8] sm:$0xf0] }
 0x3bb   :  { %v18132_v27 = vld [vmem:[#allocation7 + $0x874] sm:$0xf0]  ;;  %v17952_v34 = vld [vmem:[#allocation7 + $0x2dc] sm:$0xf] }
 0x3bc   :  { %v14303_v20 = vld [vmem:[#allocation7 + $0xa58] sm:$0xf]  ;;  %v14048_v19 = vor.u32 %v18132_v27, %v14047_v26  ;;  %6408 = vmatpush.bf16.msrb.mxu2 %v14848_v30  ;;  %v13188_v27 = vor.u32 %v17912_v3, %v13185_v43  ;;  %v17904_v30 = vld [vmem:[#allocation7 + $0x15c] sm:$0xf] }
 0x3bd   :  { %v18196_v35 = vld [vmem:[#allocation7 + $0xa74] sm:$0xf0]  ;;  %v17880_v43 = vld [vmem:[#allocation7 + $0x9c] sm:$0xf] }
 0x3be   :  { %v14623_v37 = vld [vmem:[#allocation7 + $0xcd8] sm:$0xf]  ;;  %v14304_v41 = vor.u32 %v18196_v35, %v14303_v20  ;;  %6370 = vmatpush.bf16.msrb.mxu3 %v14048_v19  ;;  %v13153_v20 = vld [vmem:[#allocation7 + $0x178] sm:$0xf0]  ;;  %v13956_v35 = vor.u32 %v18104_v8, %v13953_v24 }
 0x3bf   :  { %v18276_v38 = vld [vmem:[#allocation7 + $0xcf4] sm:$0xf0]  ;;  %v18096_v19 = vld [vmem:[#allocation7 + $0x75c] sm:$0xf] }
 0x3c0   :  { %v14815_v23 = vld [vmem:[#allocation7 + $0xe58] sm:$0xf]  ;;  %v14624_v21 = vor.u32 %v18276_v38, %v14623_v37  ;;  %6383 = vmatpush.bf16.msrb.mxu0 %v14304_v41  ;;  %v17968_v37 = vld [vmem:[#allocation7 + $0x35c] sm:$0xf] }
 0x3c1   :  { %v18324_v39 = vld [vmem:[#allocation7 + $0xe74] sm:$0xf0]  ;;  %v13409_v38 = vld [vmem:[#allocation7 + $0x378] sm:$0xf0] }
 0x3c2   :  { %v14015_v42 = vld [vmem:[#allocation7 + $0x818] sm:$0xf]  ;;  %v14816_v46 = vor.u32 %v18324_v39, %v14815_v23  ;;  %6394 = vmatpush.bf16.msrb.mxu1 %v14624_v21  ;;  %v18048_v23 = vld [vmem:[#allocation7 + $0x5dc] sm:$0xf] }
 0x3c3   :  { %v18124_v56 = vld [vmem:[#allocation7 + $0x834] sm:$0xf0]  ;;  %v13729_v39 = vld [vmem:[#allocation7 + $0x5f8] sm:$0xf0] }
 0x3c4   :  { %v14271_v29 = vld [vmem:[#allocation7 + $0xa18] sm:$0xf]  ;;  %v14016_v5 = vor.u32 %v18124_v56, %v14015_v42  ;;  %6409 = vmatpush.bf16.msrb.mxu2 %v14816_v46  ;;  %v13921_v41 = vld [vmem:[#allocation7 + $0x778] sm:$0xf0]  ;;  %v13156_v42 = vor.u32 %v17904_v30, %v13153_v20  ;;  %v13412_v56 = vor.u32 %v17968_v37, %v13409_v38  ;;  %v13732_v46 = vor.u32 %v18048_v23, %v13729_v39  ;;  %v6191_v38 = vpop.f32.mrf.mxu1 }
 0x3c5   :  { %v18188_v22 = vld [vmem:[#allocation7 + $0xa34] sm:$0xf0]  ;;  %v13121_v21 = vld [vmem:[#allocation7 + $0x138] sm:$0xf0]  ;;  %v13924_v1 = vor.u32 %v18096_v19, %v13921_v41  ;;  %v13060_v23 = vor.u32 %v17880_v43, %v13057_v60 }
 0x3c6   :  { %v14591_v6 = vld [vmem:[#allocation7 + $0xc98] sm:$0xf]  ;;  %v14272_v14 = vor.u32 %v18188_v22, %v14271_v29  ;;  %6371 = vmatpush.bf16.msrb.mxu3 %v14016_v5  ;;  %v17896_v29 = vld [vmem:[#allocation7 + $0x11c] sm:$0xf] }
 0x3c7   :  { %v18268_v51 = vld [vmem:[#allocation7 + $0xcb4] sm:$0xf0]  ;;  %v17960_v22 = vld [vmem:[#allocation7 + $0x31c] sm:$0xf]  ;;  %v13124_v55 = vor.u32 %v17896_v29, %v13121_v21 }
 0x3c8   :  { %v14783_v50 = vld [vmem:[#allocation7 + $0xe18] sm:$0xf]  ;;  %v14592_v2 = vor.u32 %v18268_v51, %v14591_v6  ;;  %6384 = vmatpush.bf16.msrb.mxu0 %v14272_v14  ;;  %v13377_v6 = vld [vmem:[#allocation7 + $0x338] sm:$0xf0] }
 0x3c9   :  { %v18316_v57 = vld [vmem:[#allocation7 + $0xe34] sm:$0xf0]  ;;  %6372 = vmatmul.bf16.vlgmr.msrb.gmra.mxu3 %v19536_v63  ;;  %v18040_v51 = vld [vmem:[#allocation7 + $0x59c] sm:$0xf]  ;;  %v13380_v58 = vor.u32 %v17960_v22, %v13377_v6 }
 0x3ca   :  { %v14784_v9 = vor.u32 %v18316_v57, %v14783_v50  ;;  %v14559_v15 = vld [vmem:[#allocation7 + $0xc58] sm:$0xf]  ;;  %6395 = vmatpush.bf16.msrb.mxu1 %v14592_v2  ;;  %6416 = vmatpush.bf16.msra.mxu3 %v13220_v10  ;;  %v13697_v50 = vld [vmem:[#allocation7 + $0x5b8] sm:$0xf0] }
 0x3cb   :  { %v18260_v13 = vld [vmem:[#allocation7 + $0xc74] sm:$0xf0]  ;;  %6385 = vmatmul.bf16.vlgmr.msrb.gmra.mxu0 %v19538_v4  ;;  %v18088_v57 = vld [vmem:[#allocation7 + $0x71c] sm:$0xf]  ;;  %v13700_v14 = vor.u32 %v18040_v51, %v13697_v50 }
 0x3cc   :  { %6410 = vmatpush.bf16.msrb.mxu2 %v14784_v9  ;;  %v14560_v25 = vor.u32 %v18260_v13, %v14559_v15  ;;  %v14527_v26 = vld [vmem:[#allocation7 + $0xc18] sm:$0xf]  ;;  %6429 = vmatpush.bf16.msra.mxu0 %v13476_v11  ;;  %v13089_v5 = vld [vmem:[#allocation7 + $0xf8] sm:$0xf0]  ;;  %v13892_v47 = vor.u32 %v18088_v57, %v13889_v53 }
 0x3cd   :  { %v18252_v32 = vld [vmem:[#allocation7 + $0xc34] sm:$0xf0]  ;;  %v13345_v2 = vld [vmem:[#allocation7 + $0x2f8] sm:$0xf0]  ;;  %v13092_v13 = vor.u32 %v17888_v61, %v13089_v5 }
 0x3ce   :  { %6396 = vmatpush.bf16.msrb.mxu1 %v14560_v25  ;;  %v14528_v62 = vor.u32 %v18252_v32, %v14527_v26  ;;  %6417 = vmatpush.bf16.msra.mxu3 %v13188_v27  ;;  %v18032_v9 = vld [vmem:[#allocation7 + $0x55c] sm:$0xf]  ;;  %v13348_v3 = vor.u32 %v17952_v34, %v13345_v2  ;;  %v6204_v25 = vpop.f32.mrf.mxu2 }
 0x3cf   :  { %6411 = vmatmul.bf16.vlgmr.msrb.gmra.mxu2 %v19540_v7  ;;  %v13665_v10 = vld [vmem:[#allocation7 + $0x578] sm:$0xf0] }
 0x3d0   :  { %6455 = vmatpush.bf16.msra.mxu2 %v13988_v28  ;;  %6430 = vmatpush.bf16.msra.mxu0 %v13444_v36  ;;  %v18080_v11 = vld [vmem:[#allocation7 + $0x6dc] sm:$0xf]  ;;  %v6165_v28 = vpop.f32.mrf.mxu3  ;;  %v13668_v17 = vor.u32 %v18032_v9, %v13665_v10 }
 0x3d1   :  { %v13857_v15 = vld [vmem:[#allocation7 + $0x6f8] sm:$0xf0]  ;;  %v6166_v24 = vadd.f32 %v6165_v28, %v19652_v40 }
 0x3d2   :  { %6397 = vmatpush.bf16.msrb.mxu1 %v14528_v62  ;;  %6418 = vmatpush.bf16.msra.mxu3 %v13156_v42  ;;  %v13860_v8 = vor.u32 %v18080_v11, %v13857_v15  ;;  %v17944_v26 = vld [vmem:[#allocation7 + $0x29c] sm:$0xf]  ;;  %v6193_v11 = vpop.f32.mrf.mxu1 }
 0x3d3   :  { %v13313_v27 = vld [vmem:[#allocation7 + $0x2b8] sm:$0xf0]  ;;  %v6179_v37 = vadd.f32 %v6178_v33, %v6166_v24 }
 0x3d4   :  { %6456 = vmatpush.bf16.msra.mxu2 %v13956_v35  ;;  %6431 = vmatpush.bf16.msra.mxu0 %v13412_v56  ;;  %v18024_v36 = vld [vmem:[#allocation7 + $0x51c] sm:$0xf]  ;;  %v6180_v35 = vpop.f32.mrf.mxu0  ;;  %v13316_v39 = vor.u32 %v17944_v26, %v13313_v27 }
 0x3d5   :  { %6398 = vmatmul.bf16.vlgmr.msrb.gmra.mxu1 %v19550_v45  ;;  %v13633_v32 = vld [vmem:[#allocation7 + $0x538] sm:$0xf0]  ;;  %v6192_v62 = vadd.f32 %v6191_v38, %v6179_v37 }
 0x3d6   :  { %6442 = vmatpush.bf16.msra.mxu1 %v13732_v46  ;;  %6419 = vmatpush.bf16.msra.mxu3 %v13124_v55  ;;  %v18072_v30 = vld [vmem:[#allocation7 + $0x69c] sm:$0xf]  ;;  %v13636_v40 = vor.u32 %v18024_v36, %v13633_v32  ;;  %v6206_v5 = vpop.f32.mrf.mxu2 }
 0x3d7   :  { %v13825_v20 = vld [vmem:[#allocation7 + $0x6b8] sm:$0xf0]  ;;  %v19659_v6 = vadd.f32 %v6204_v25, %v6192_v62 }
 0x3d8   :  { %6457 = vmatpush.bf16.msra.mxu2 %v13924_v1  ;;  %6432 = vmatpush.bf16.msra.mxu0 %v13380_v58  ;;  %v17872_v19 = vld [vmem:[#allocation7 + $0x5c] sm:$0xf]  ;;  %v13828_v42 = vor.u32 %v18072_v30, %v13825_v20  ;;  %v6167_v57 = vpop.f32.mrf.mxu3 }
 0x3d9   :  { %v13025_v41 = vld [vmem:[#allocation7 + $0x78] sm:$0xf0]  ;;  %19066 = vtanh.f32 %v19659_v6  ;;  %v16263_v6 = vld [vmem:[#allocation10 + $0x9c0] sm:$0xf] }
 0x3da   :  { %6443 = vmatpush.bf16.msra.mxu1 %v13700_v14  ;;  %6420 = vmatpush.bf16.msra.mxu3 %v13092_v13  ;;  %v17936_v56 = vld [vmem:[#allocation7 + $0x25c] sm:$0xf]  ;;  %v13028_v51 = vor.u32 %v17872_v19, %v13025_v41 }
 0x3db   :  { %v13281_v29 = vld [vmem:[#allocation7 + $0x278] sm:$0xf0] }
 0x3dc   :  { %6458 = vmatpush.bf16.msra.mxu2 %v13892_v47  ;;  %6433 = vmatpush.bf16.msra.mxu0 %v13348_v3  ;;  %v18016_v21 = vld [vmem:[#allocation7 + $0x4dc] sm:$0xf]  ;;  %v13284_v50 = vor.u32 %v17936_v56, %v13281_v29 }
 0x3dd   :  { %v13601_v46 = vld [vmem:[#allocation7 + $0x4f8] sm:$0xf0] }
 0x3de   :  { %6444 = vmatpush.bf16.msra.mxu1 %v13668_v17  ;;  %v18064_v1 = vld [vmem:[#allocation7 + $0x65c] sm:$0xf]  ;;  %6421 = vmatpush.bf16.msra.mxu3 %v13060_v23  ;;  %v13604_v58 = vor.u32 %v18016_v21, %v13601_v46 }
 0x3df   :  { %v13793_v22 = vld [vmem:[#allocation7 + $0x678] sm:$0xf0] }
 0x3e0   :  { %6459 = vmatpush.bf16.msra.mxu2 %v13860_v8  ;;  %6434 = vmatpush.bf16.msra.mxu0 %v13316_v39  ;;  %v17864_v53 = vld [vmem:[#allocation7 + $0x1c] sm:$0xf]  ;;  %v13796_v61 = vor.u32 %v18064_v1, %v13793_v22 }
 0x3e1   :  { %v12993_v33 = vld [vmem:[#allocation7 + $0x38] sm:$0xf0] }
 0x3e2   :  { %v17928_v55 = vld [vmem:[#allocation7 + $0x21c] sm:$0xf]  ;;  %6445 = vmatpush.bf16.msra.mxu1 %v13636_v40  ;;  %6422 = vmatpush.bf16.msra.mxu3 %v13028_v51  ;;  %v12996_v28 = vor.u32 %v17864_v53, %v12993_v33 }
 0x3e3   :  { %v13249_v14 = vld [vmem:[#allocation7 + $0x238] sm:$0xf0] }
 0x3e4   :  { %6460 = vmatpush.bf16.msra.mxu2 %v13828_v42  ;;  %v18008_v47 = vld [vmem:[#allocation7 + $0x49c] sm:$0xf]  ;;  %6435 = vmatpush.bf16.msra.mxu0 %v13284_v50  ;;  %v13252_v43 = vor.u32 %v17928_v55, %v13249_v14 }
 0x3e5   :  { %v13569_v34 = vld [vmem:[#allocation7 + $0x4b8] sm:$0xf0] }
 0x3e6   :  { %v18056_v2 = vld [vmem:[#allocation7 + $0x61c] sm:$0xf]  ;;  %6446 = vmatpush.bf16.msra.mxu1 %v13604_v58  ;;  %v13572_v8 = vor.u32 %v18008_v47, %v13569_v34  ;;  %6423 = vmatpush.bf16.msra.mxu3 %v12996_v28 }
 0x3e7   :  { %v13761_v9 = vld [vmem:[#allocation7 + $0x638] sm:$0xf0] }
 0x3e8   :  { %v18176_v10 = vld [vmem:[#allocation7 + $0x9dc] sm:$0xf]  ;;  %6461 = vmatpush.bf16.msra.mxu2 %v13796_v61  ;;  %v13764_v24 = vor.u32 %v18056_v2, %v13761_v9  ;;  %6436 = vmatpush.bf16.msra.mxu0 %v13252_v43  ;;  %v6230_v2 = vpop.f32.mrf.mxu0 }
 0x3e9   :  { %v14241_v15 = vld [vmem:[#allocation7 + $0x9f8] sm:$0xf0]  ;;  %6424 = vmatmul.bf16.vlgmr.msra.gmra.mxu3 %v19504_v44 }
 0x3ea   :  { %v18240_v13 = vld [vmem:[#allocation7 + $0xbdc] sm:$0xf]  ;;  %v14244_v25 = vor.u32 %v18176_v10, %v14241_v15  ;;  %6447 = vmatpush.bf16.msra.mxu1 %v13572_v8 }
 0x3eb   :  { %v14497_v3 = vld [vmem:[#allocation7 + $0xbf8] sm:$0xf0]  ;;  %6437 = vmatmul.bf16.vlgmr.msra.gmra.mxu0 %v19506_v49 }
 0x3ec   :  { %v18368_v60 = vld [vmem:[#allocation7 + $0xfdc] sm:$0xf]  ;;  %v14500_v26 = vor.u32 %v18240_v13, %v14497_v3  ;;  %6462 = vmatpush.bf16.msra.mxu2 %v13764_v24  ;;  %6468 = vmatpush.bf16.msrb.mxu3 %v14244_v25 }
 0x3ed   :  { %v15009_v17 = vld [vmem:[#allocation7 + $0xff8] sm:$0xf0] }
 0x3ee   :  { %v18000_v27 = vld [vmem:[#allocation7 + $0x45c] sm:$0xf]  ;;  %v15012_v30 = vor.u32 %v18368_v60, %v15009_v17  ;;  %6481 = vmatpush.bf16.msrb.mxu0 %v14500_v26  ;;  %v3089_v17 = vperm.slane %v19648_v52, 5 }
 0x3ef   :  { %v13537_v36 = vld [vmem:[#allocation7 + $0x478] sm:$0xf0]  ;;  %6463 = vmatmul.bf16.vlgmr.msra.gmra.mxu2 %v19509_v54 }
 0x3f0   :  { %v18168_v32 = vld [vmem:[#allocation7 + $0x99c] sm:$0xf]  ;;  %v13540_v39 = vor.u32 %v18000_v27, %v13537_v36  ;;  %6507 = vmatpush.bf16.msrb.mxu2 %v15012_v30  ;;  %v6217_v36 = vpop.f32.mrf.mxu3 }
 0x3f1   :  { %v14209_v20 = vld [vmem:[#allocation7 + $0x9b8] sm:$0xf0] }
 0x3f2   :  { %v18232_v35 = vld [vmem:[#allocation7 + $0xb9c] sm:$0xf]  ;;  %v14212_v41 = vor.u32 %v18168_v32, %v14209_v20  ;;  %6448 = vmatpush.bf16.msra.mxu1 %v13540_v39 }
 0x3f3   :  { %v14465_v37 = vld [vmem:[#allocation7 + $0xbb8] sm:$0xf0] }
 0x3f4   :  { %v18360_v38 = vld [vmem:[#allocation7 + $0xf9c] sm:$0xf]  ;;  %v14468_v62 = vor.u32 %v18232_v35, %v14465_v37  ;;  %6469 = vmatpush.bf16.msrb.mxu3 %v14212_v41  ;;  %v6218_v37 = vadd.f32 %v6217_v36, %v3089_v17  ;;  %v15495_v17 = vld [vmem:[#allocation10 + $0x3c0] sm:$0xf] }
 0x3f5   :  { %v14977_v23 = vld [vmem:[#allocation7 + $0xfb8] sm:$0xf0] }
 0x3f6   :  { %v17992_v19 = vld [vmem:[#allocation7 + $0x41c] sm:$0xf]  ;;  %v14980_v29 = vor.u32 %v18360_v38, %v14977_v23  ;;  %6482 = vmatpush.bf16.msrb.mxu0 %v14468_v62  ;;  %v6256_v38 = vpop.f32.mrf.mxu2  ;;  %v6232_v62 = vpop.f32.mrf.mxu0 }
 0x3f7   :  { %v13505_v40 = vld [vmem:[#allocation7 + $0x438] sm:$0xf0] }
 0x3f8   :  { %v18160_v42 = vld [vmem:[#allocation7 + $0x95c] sm:$0xf]  ;;  %v13508_v57 = vor.u32 %v17992_v19, %v13505_v40  ;;  %6508 = vmatpush.bf16.msrb.mxu2 %v14980_v29  ;;  %v6231_v40 = vadd.f32 %v6230_v2, %v6218_v37 }
 0x3f9   :  { %v14177_v56 = vld [vmem:[#allocation7 + $0x978] sm:$0xf0] }
 0x3fa   :  { %v18224_v21 = vld [vmem:[#allocation7 + $0xb5c] sm:$0xf]  ;;  %v14180_v53 = vor.u32 %v18160_v42, %v14177_v56  ;;  %6449 = vmatpush.bf16.msra.mxu1 %v13508_v57  ;;  %v6243_v42 = vpop.f32.mrf.mxu1 }
 0x3fb   :  { %v14433_v46 = vld [vmem:[#allocation7 + $0xb78] sm:$0xf0] }
 0x3fc   :  { %v18304_v1 = vld [vmem:[#allocation7 + $0xddc] sm:$0xf]  ;;  %v14436_v33 = vor.u32 %v18224_v21, %v14433_v46  ;;  %6470 = vmatpush.bf16.msrb.mxu3 %v14180_v53 }
 0x3fd   :  { %v14753_v22 = vld [vmem:[#allocation7 + $0xdf8] sm:$0xf0]  ;;  %6450 = vmatmul.bf16.vlgmr.msra.gmra.mxu1 %v19520_v31 }
 0x3fe   :  { %v18352_v51 = vld [vmem:[#allocation7 + $0xf5c] sm:$0xf]  ;;  %v14756_v44 = vor.u32 %v18304_v1, %v14753_v22  ;;  %6483 = vmatpush.bf16.msrb.mxu0 %v14436_v33  ;;  %v6244_v1 = vadd.f32 %v6243_v42, %v6231_v40 }
 0x3ff   :  { %v14945_v50 = vld [vmem:[#allocation7 + $0xf78] sm:$0xf0] }
 0x400   :  { %v18152_v55 = vld [vmem:[#allocation7 + $0x91c] sm:$0xf]  ;;  %v14948_v61 = vor.u32 %v18352_v51, %v14945_v50  ;;  %6494 = vmatpush.bf16.msrb.mxu1 %v14756_v44  ;;  %v19666_v44 = vadd.f32 %v6256_v38, %v6244_v1  ;;  %v15207_v38 = vld [vmem:[#allocation10 + $0x180] sm:$0xf] }
 0x401   :  { %v14145_v58 = vld [vmem:[#allocation7 + $0x938] sm:$0xf0] }
 0x402   :  { %v18216_v5 = vld [vmem:[#allocation7 + $0xb1c] sm:$0xf]  ;;  %v14148_v9 = vor.u32 %v18152_v55, %v14145_v58  ;;  %6509 = vmatpush.bf16.msrb.mxu2 %v14948_v61 }
 0x403   :  { %v14401_v14 = vld [vmem:[#allocation7 + $0xb38] sm:$0xf0] }
 0x404   :  { %v18296_v47 = vld [vmem:[#allocation7 + $0xd9c] sm:$0xf]  ;;  %v14404_v10 = vor.u32 %v18216_v5, %v14401_v14  ;;  %6471 = vmatpush.bf16.msrb.mxu3 %v14148_v9  ;;  %v6219_v14 = vpop.f32.mrf.mxu3  ;;  %v6258_v9 = vpop.f32.mrf.mxu2 }
 0x405   :  { %v14721_v49 = vld [vmem:[#allocation7 + $0xdb8] sm:$0xf0]  ;;  %v18409_v14 = vld [vmem:[#allocation10 + $0x11c] sm:$0xf0]  ;;  %v6282_v9 = vpop.f32.mrf.mxu0 }
 0x406   :  { %v18344_v34 = vld [vmem:[#allocation7 + $0xf1c] sm:$0xf]  ;;  %v14724_v3 = vor.u32 %v18296_v47, %v14721_v49  ;;  %6484 = vmatpush.bf16.msrb.mxu0 %v14404_v10 }
 0x407   :  { %v14913_v54 = vld [vmem:[#allocation7 + $0xf38] sm:$0xf0] }
 0x408   :  { %v18144_v11 = vld [vmem:[#allocation7 + $0x8dc] sm:$0xf]  ;;  %v14916_v28 = vor.u32 %v18344_v34, %v14913_v54  ;;  %6495 = vmatpush.bf16.msrb.mxu1 %v14724_v3 }
 0x409   :  { %v14113_v15 = vld [vmem:[#allocation7 + $0x8f8] sm:$0xf0] }
 0x40a   :  { %v18208_v13 = vld [vmem:[#allocation7 + $0xadc] sm:$0xf]  ;;  %v14116_v26 = vor.u32 %v18144_v11, %v14113_v15  ;;  %6510 = vmatpush.bf16.msrb.mxu2 %v14916_v28  ;;  %v15239_v28 = vld [vmem:[#allocation10 + $0x1c0] sm:$0xf] }
 0x40b   :  { %v14369_v43 = vld [vmem:[#allocation7 + $0xaf8] sm:$0xf0] }
 0x40c   :  { %v18288_v60 = vld [vmem:[#allocation7 + $0xd5c] sm:$0xf]  ;;  %v14372_v27 = vor.u32 %v18208_v13, %v14369_v43  ;;  %6472 = vmatpush.bf16.msrb.mxu3 %v14116_v26  ;;  %v6245_v43 = vpop.f32.mrf.mxu1  ;;  %v16007_v26 = vld [vmem:[#allocation10 + $0x7c0] sm:$0xf] }
 0x40d   :  { %v14689_v8 = vld [vmem:[#allocation7 + $0xd78] sm:$0xf0]  ;;  %v15367_v43 = vld [vmem:[#allocation10 + $0x2c0] sm:$0xf] }
 0x40e   :  { %v18336_v24 = vld [vmem:[#allocation7 + $0xedc] sm:$0xf]  ;;  %v14692_v20 = vor.u32 %v18288_v60, %v14689_v8  ;;  %6485 = vmatpush.bf16.msrb.mxu0 %v14372_v27  ;;  %v18433_v60 = vld [vmem:[#allocation10 + $0x1dc] sm:$0xf0] }
 0x40f   :  { %v14881_v25 = vld [vmem:[#allocation7 + $0xef8] sm:$0xf0]  ;;  %v18497_v8 = vld [vmem:[#allocation10 + $0x3dc] sm:$0xf0] }
 0x410   :  { %v18136_v32 = vld [vmem:[#allocation7 + $0x89c] sm:$0xf]  ;;  %v14884_v35 = vor.u32 %v18336_v24, %v14881_v25  ;;  %6496 = vmatpush.bf16.msrb.mxu1 %v14692_v20  ;;  %v18625_v27 = vld [vmem:[#allocation10 + $0x7dc] sm:$0xf0]  ;;  %v15496_v20 = vor.u32 %v18497_v8, %v15495_v17 }
 0x411   :  { %v14081_v30 = vld [vmem:[#allocation7 + $0x8b8] sm:$0xf0]  ;;  %v15687_v17 = vld [vmem:[#allocation10 + $0x540] sm:$0xf] }
 0x412   :  { %v18200_v23 = vld [vmem:[#allocation7 + $0xa9c] sm:$0xf]  ;;  %v14084_v56 = vor.u32 %v18136_v32, %v14081_v30  ;;  %6511 = vmatpush.bf16.msrb.mxu2 %v14884_v35  ;;  %v15240_v30 = vor.u32 %v18433_v60, %v15239_v28  ;;  %v18465_v60 = vld [vmem:[#allocation10 + $0x2dc] sm:$0xf0] }
 0x413   :  { %v14337_v52 = vld [vmem:[#allocation7 + $0xab8] sm:$0xf0]  ;;  %v18545_v8 = vld [vmem:[#allocation10 + $0x55c] sm:$0xf0] }
 0x414   :  { %v18280_v39 = vld [vmem:[#allocation7 + $0xd1c] sm:$0xf]  ;;  %v14340_v29 = vor.u32 %v18200_v23, %v14337_v52  ;;  %6473 = vmatpush.bf16.msrb.mxu3 %v14084_v56  ;;  %v16008_v23 = vor.u32 %v18625_v27, %v16007_v26  ;;  %v18425_v52 = vld [vmem:[#allocation10 + $0x19c] sm:$0xf0]  ;;  %v15368_v27 = vor.u32 %v18465_v60, %v15367_v43 }
 0x415   :  { %v14657_v31 = vld [vmem:[#allocation7 + $0xd38] sm:$0xf0]  ;;  %v15208_v42 = vor.u32 %v18425_v52, %v15207_v38  ;;  %v6308_v38 = vpop.f32.mrf.mxu2  ;;  %v18457_v52 = vld [vmem:[#allocation10 + $0x29c] sm:$0xf0] }
 0x416   :  { %v18328_v19 = vld [vmem:[#allocation7 + $0xe9c] sm:$0xf]  ;;  %v14660_v22 = vor.u32 %v18280_v39, %v14657_v31  ;;  %6486 = vmatpush.bf16.msrb.mxu0 %v14340_v29  ;;  %v15463_v39 = vld [vmem:[#allocation10 + $0x380] sm:$0xf] }
 0x417   :  { %v14849_v41 = vld [vmem:[#allocation7 + $0xeb8] sm:$0xf0]  ;;  %v18489_v31 = vld [vmem:[#allocation10 + $0x39c] sm:$0xf0] }
 0x418   :  { %v18128_v21 = vld [vmem:[#allocation7 + $0x85c] sm:$0xf]  ;;  %v14852_v51 = vor.u32 %v18328_v19, %v14849_v41  ;;  %6497 = vmatpush.bf16.msrb.mxu1 %v14660_v22  ;;  %v15975_v19 = vld [vmem:[#allocation10 + $0x780] sm:$0xf]  ;;  %v15464_v56 = vor.u32 %v18489_v31, %v15463_v39 }
 0x419   :  { %v14049_v46 = vld [vmem:[#allocation7 + $0x878] sm:$0xf0]  ;;  %v18617_v41 = vld [vmem:[#allocation10 + $0x79c] sm:$0xf0] }
 0x41a   :  { %v18192_v50 = vld [vmem:[#allocation7 + $0xa5c] sm:$0xf]  ;;  %v14052_v61 = vor.u32 %v18128_v21, %v14049_v46  ;;  %6512 = vmatpush.bf16.msrb.mxu2 %v14852_v51  ;;  %v15175_v21 = vld [vmem:[#allocation10 + $0x140] sm:$0xf]  ;;  %v15976_v1 = vor.u32 %v18617_v41, %v15975_v19  ;;  %v6284_v41 = vpop.f32.mrf.mxu0 }
 0x41b   :  { %v14305_v57 = vld [vmem:[#allocation7 + $0xa78] sm:$0xf0]  ;;  %v18417_v46 = vld [vmem:[#allocation10 + $0x15c] sm:$0xf0] }
 0x41c   :  { %v18272_v53 = vld [vmem:[#allocation7 + $0xcdc] sm:$0xf]  ;;  %v14308_v5 = vor.u32 %v18192_v50, %v14305_v57  ;;  %6474 = vmatpush.bf16.msrb.mxu3 %v14052_v61  ;;  %v15431_v22 = vld [vmem:[#allocation10 + $0x340] sm:$0xf] }
 0x41d   :  { %v14625_v33 = vld [vmem:[#allocation7 + $0xcf8] sm:$0xf0]  ;;  %v18481_v51 = vld [vmem:[#allocation10 + $0x35c] sm:$0xf0] }
 0x41e   :  { %v18320_v55 = vld [vmem:[#allocation7 + $0xe5c] sm:$0xf]  ;;  %v14628_v54 = vor.u32 %v18272_v53, %v14625_v33  ;;  %6487 = vmatpush.bf16.msrb.mxu0 %v14308_v5  ;;  %v15751_v50 = vld [vmem:[#allocation10 + $0x5c0] sm:$0xf]  ;;  %v15432_v61 = vor.u32 %v18481_v51, %v15431_v22 }
 0x41f   :  { %v14817_v58 = vld [vmem:[#allocation7 + $0xe78] sm:$0xf0]  ;;  %v18561_v57 = vld [vmem:[#allocation10 + $0x5dc] sm:$0xf0] }
 0x420   :  { %v18120_v47 = vld [vmem:[#allocation7 + $0x81c] sm:$0xf]  ;;  %v14820_v2 = vor.u32 %v18320_v55, %v14817_v58  ;;  %6498 = vmatpush.bf16.msrb.mxu1 %v14628_v54  ;;  %v15943_v53 = vld [vmem:[#allocation10 + $0x740] sm:$0xf]  ;;  %v15176_v58 = vor.u32 %v18417_v46, %v15175_v21 }
 0x421   :  { %v14017_v49 = vld [vmem:[#allocation7 + $0x838] sm:$0xf0]  ;;  %v18609_v33 = vld [vmem:[#allocation10 + $0x75c] sm:$0xf0] }
 0x422   :  { %v18184_v34 = vld [vmem:[#allocation7 + $0xa1c] sm:$0xf]  ;;  %v14020_v24 = vor.u32 %v18120_v47, %v14017_v49  ;;  %6513 = vmatpush.bf16.msrb.mxu2 %v14820_v2  ;;  %v15143_v5 = vld [vmem:[#allocation10 + $0x100] sm:$0xf]  ;;  %v15944_v47 = vor.u32 %v18609_v33, %v15943_v53 }
 0x423   :  { %v14273_v10 = vld [vmem:[#allocation7 + $0xa38] sm:$0xf0]  ;;  %v15399_v49 = vld [vmem:[#allocation10 + $0x300] sm:$0xf] }
 0x424   :  { %v18264_v11 = vld [vmem:[#allocation7 + $0xc9c] sm:$0xf]  ;;  %v14276_v25 = vor.u32 %v18184_v34, %v14273_v10  ;;  %6475 = vmatpush.bf16.msrb.mxu3 %v14020_v24  ;;  %v18473_v34 = vld [vmem:[#allocation10 + $0x31c] sm:$0xf0]  ;;  %v15144_v10 = vor.u32 %v18409_v14, %v15143_v5 }
 0x425   :  { %v14593_v15 = vld [vmem:[#allocation7 + $0xcb8] sm:$0xf0]  ;;  %v15719_v54 = vld [vmem:[#allocation10 + $0x580] sm:$0xf] }
 0x426   :  { %v18312_v13 = vld [vmem:[#allocation7 + $0xe1c] sm:$0xf]  ;;  %v14596_v36 = vor.u32 %v18264_v11, %v14593_v15  ;;  %6488 = vmatpush.bf16.msrb.mxu0 %v14276_v25  ;;  %v15911_v2 = vld [vmem:[#allocation10 + $0x700] sm:$0xf]  ;;  %v15400_v11 = vor.u32 %v18473_v34, %v15399_v49 }
 0x427   :  { %v14785_v3 = vld [vmem:[#allocation7 + $0xe38] sm:$0xf0]  ;;  %6476 = vmatmul.bf16.vlgmr.msrb.gmra.mxu3 %v19536_v63  ;;  %v15752_v63 = vor.u32 %v18561_v57, %v15751_v50  ;;  %v15111_v15 = vld [vmem:[#allocation10 + $0xc0] sm:$0xf] }
 0x428   :  { %v14788_v32 = vor.u32 %v18312_v13, %v14785_v3  ;;  %v18256_v35 = vld [vmem:[#allocation7 + $0xc5c] sm:$0xf]  ;;  %6499 = vmatpush.bf16.msrb.mxu1 %v14596_v36  ;;  %9650 = vmatpush.bf16.msra.mxu3 %v15240_v30  ;;  %v18401_v13 = vld [vmem:[#allocation10 + $0xdc] sm:$0xf0]  ;;  %v6269_v36 = vpop.f32.mrf.mxu3 }
 0x429   :  { %v14561_v37 = vld [vmem:[#allocation7 + $0xc78] sm:$0xf0]  ;;  %6489 = vmatmul.bf16.vlgmr.msrb.gmra.mxu0 %v19538_v4  ;;  %v18553_v4 = vld [vmem:[#allocation10 + $0x59c] sm:$0xf0]  ;;  %v15112_v26 = vor.u32 %v18401_v13, %v15111_v15 }
 0x42a   :  { %6514 = vmatpush.bf16.msrb.mxu2 %v14788_v32  ;;  %v14564_v62 = vor.u32 %v18256_v35, %v14561_v37  ;;  %v18248_v40 = vld [vmem:[#allocation7 + $0xc1c] sm:$0xf]  ;;  %9663 = vmatpush.bf16.msra.mxu0 %v15496_v20  ;;  %v15720_v3 = vor.u32 %v18553_v4, %v15719_v54  ;;  %v15879_v24 = vld [vmem:[#allocation10 + $0x6c0] sm:$0xf]  ;;  %v15688_v20 = vor.u32 %v18545_v8, %v15687_v17  ;;  %v6310_v54 = vpop.f32.mrf.mxu2  ;;  %v7066_v8 = vunpack.c.l.b16 %v19543_v12 }
 0x42b   :  { %v14529_v29 = vld [vmem:[#allocation7 + $0xc38] sm:$0xf0]  ;;  %v18593_v25 = vld [vmem:[#allocation10 + $0x6dc] sm:$0xf0]  ;;  %v6270_v37 = vadd.f32 %v6269_v36, %v19666_v44  ;;  %v7069_v36 = vunpack.c.h.b16 %v19554_v0 }
 0x42c   :  { %6500 = vmatpush.bf16.msrb.mxu1 %v14564_v62  ;;  %v14532_v55 = vor.u32 %v18248_v40, %v14529_v29  ;;  %9651 = vmatpush.bf16.msra.mxu3 %v15208_v42  ;;  %v15079_v32 = vld [vmem:[#allocation10 + $0x80] sm:$0xf]  ;;  %v15880_v35 = vor.u32 %v18593_v25, %v15879_v24  ;;  %v6295_v40 = vpop.f32.mrf.mxu1  ;;  %v7067_v24 = vunpack.c.h.b16 %v19543_v12  ;;  %v19679_v41 = vpack.c.b16 %v7066_v8, %v7066_v8 }
 0x42d   :  { %6515 = vmatmul.bf16.vlgmr.msrb.gmra.mxu2 %v19540_v7  ;;  %v18601_v7 = vld [vmem:[#allocation10 + $0x71c] sm:$0xf0]  ;;  %v6283_v62 = vadd.f32 %v6282_v9, %v6270_v37 }
 0x42e   :  { %9689 = vmatpush.bf16.msra.mxu2 %v16008_v23  ;;  %9664 = vmatpush.bf16.msra.mxu0 %v15464_v56  ;;  %v15912_v28 = vor.u32 %v18601_v7, %v15911_v2  ;;  %v18393_v30 = vld [vmem:[#allocation10 + $0x9c] sm:$0xf0] }
 0x42f   :  { %v15335_v23 = vld [vmem:[#allocation10 + $0x280] sm:$0xf]  ;;  %v15080_v42 = vor.u32 %v18393_v30, %v15079_v32  ;;  %v6296_v46 = vadd.f32 %v6295_v40, %v6283_v62  ;;  %v19681_v62 = vpack.c.b16 %v7067_v24, %v7067_v24  ;;  %v19691_v24 = vld [vmem:[#allocation9] sm:$0xff] }
 0x430   :  { %6501 = vmatpush.bf16.msrb.mxu1 %v14532_v55  ;;  %9652 = vmatpush.bf16.msra.mxu3 %v15176_v58  ;;  %v18537_v39 = vld [vmem:[#allocation10 + $0x51c] sm:$0xf0]  ;;  %v15336_v56 = vor.u32 %v18457_v52, %v15335_v23  ;;  %v6271_v5 = vpop.f32.mrf.mxu3 }
 0x431   :  { %v15847_v31 = vld [vmem:[#allocation10 + $0x680] sm:$0xf]  ;;  %v6309_v55 = vadd.f32 %v6308_v38, %v6296_v46 }
 0x432   :  { %9690 = vmatpush.bf16.msra.mxu2 %v15976_v1  ;;  %9665 = vmatpush.bf16.msra.mxu0 %v15432_v61  ;;  %v18585_v19 = vld [vmem:[#allocation10 + $0x69c] sm:$0xf0] }
 0x433   :  { %6502 = vmatmul.bf16.vlgmr.msrb.gmra.mxu1 %v19550_v45  ;;  %v15655_v45 = vld [vmem:[#allocation10 + $0x500] sm:$0xf]  ;;  %v15848_v1 = vor.u32 %v18585_v19, %v15847_v31  ;;  %19068 = vtanh.f32 %v6309_v55 }
 0x434   :  { %9676 = vmatpush.bf16.msra.mxu1 %v15752_v63  ;;  %9653 = vmatpush.bf16.msra.mxu3 %v15144_v10  ;;  %v15047_v29 = vld [vmem:[#allocation10 + $0x40] sm:$0xf]  ;;  %v15656_v44 = vor.u32 %v18537_v39, %v15655_v45 }
 0x435   :  { %v18385_v21 = vld [vmem:[#allocation10 + $0x5c] sm:$0xf0] }
 0x436   :  { %9691 = vmatpush.bf16.msra.mxu2 %v15944_v47  ;;  %9666 = vmatpush.bf16.msra.mxu0 %v15400_v11  ;;  %v15303_v22 = vld [vmem:[#allocation10 + $0x240] sm:$0xf]  ;;  %v15048_v58 = vor.u32 %v18385_v21, %v15047_v29  ;;  %v6297_v11 = vpop.f32.mrf.mxu1 }
 0x437   :  { %v18449_v51 = vld [vmem:[#allocation10 + $0x25c] sm:$0xf0] }
 0x438   :  { %9677 = vmatpush.bf16.msra.mxu1 %v15720_v3  ;;  %9654 = vmatpush.bf16.msra.mxu3 %v15112_v26  ;;  %v15623_v50 = vld [vmem:[#allocation10 + $0x4c0] sm:$0xf]  ;;  %v15304_v61 = vor.u32 %v18449_v51, %v15303_v22 }
 0x439   :  { %v18529_v57 = vld [vmem:[#allocation10 + $0x4dc] sm:$0xf0] }
 0x43a   :  { %9692 = vmatpush.bf16.msra.mxu2 %v15912_v28  ;;  %9667 = vmatpush.bf16.msra.mxu0 %v15368_v27  ;;  %v15815_v53 = vld [vmem:[#allocation10 + $0x640] sm:$0xf]  ;;  %v15624_v49 = vor.u32 %v18529_v57, %v15623_v50  ;;  %v19067_v27 = vpop.eup %19066 }
 0x43b   :  { %v18577_v33 = vld [vmem:[#allocation10 + $0x65c] sm:$0xf0]  ;;  %v19069_v38 = vpop.eup %19068 }
 0x43c   :  { %9678 = vmatpush.bf16.msra.mxu1 %v15688_v20  ;;  %9655 = vmatpush.bf16.msra.mxu3 %v15080_v42  ;;  %v15015_v14 = vld [vmem:[#allocation10] sm:$0xf]  ;;  %v15816_v34 = vor.u32 %v18577_v33, %v15815_v53  ;;  %v19677_v31 = vpack.c.bf16 %v19069_v38, %v19067_v27 }
 0x43d   :  { %v18377_v63 = vld [vmem:[#allocation10 + $0x1c] sm:$0xf0] }
 0x43e   :  { %9693 = vmatpush.bf16.msra.mxu2 %v15880_v35  ;;  %9668 = vmatpush.bf16.msra.mxu0 %v15336_v56  ;;  %v15271_v47 = vld [vmem:[#allocation10 + $0x200] sm:$0xf]  ;;  %v15016_v28 = vor.u32 %v18377_v63, %v15015_v14  ;;  %v19683_v56 = vpack.c.b16 %v7069_v36, %v7069_v36 }
 0x43f   :  { %v18441_v4 = vld [vmem:[#allocation10 + $0x21c] sm:$0xf0] }
 0x440   :  { %9679 = vmatpush.bf16.msra.mxu1 %v15656_v44  ;;  %v15591_v2 = vld [vmem:[#allocation10 + $0x480] sm:$0xf]  ;;  %9656 = vmatpush.bf16.msra.mxu3 %v15048_v58  ;;  %v15272_v43 = vor.u32 %v18441_v4, %v15271_v47 }
 0x441   :  { %v18521_v7 = vld [vmem:[#allocation10 + $0x49c] sm:$0xf0] }
 0x442   :  { %9694 = vmatpush.bf16.msra.mxu2 %v15848_v1  ;;  %v15783_v9 = vld [vmem:[#allocation10 + $0x600] sm:$0xf]  ;;  %9669 = vmatpush.bf16.msra.mxu0 %v15304_v61  ;;  %v15592_v25 = vor.u32 %v18521_v7, %v15591_v2  ;;  %v7068_v61 = vunpack.c.l.b16 %v19554_v0 }
 0x443   :  { %v18569_v10 = vld [vmem:[#allocation10 + $0x61c] sm:$0xf0] }
 0x444   :  { %v18689_v15 = vld [vmem:[#allocation10 + $0x9dc] sm:$0xf0]  ;;  %9680 = vmatpush.bf16.msra.mxu1 %v15624_v49  ;;  %v15784_v26 = vor.u32 %v18569_v10, %v15783_v9  ;;  %9657 = vmatpush.bf16.msra.mxu3 %v15016_v28  ;;  %v19689_v11 = vpack.c.b16 %v7068_v61, %v7068_v61 }
 0x445   :  { %v16519_v13 = vld [vmem:[#allocation10 + $0xbc0] sm:$0xf]  ;;  %v16264_v32 = vor.u32 %v18689_v15, %v16263_v6  ;;  %v6334_v6 = vpop.f32.mrf.mxu0 }
 0x446   :  { %v18753_v3 = vld [vmem:[#allocation10 + $0xbdc] sm:$0xf0]  ;;  %9695 = vmatpush.bf16.msra.mxu2 %v15816_v34  ;;  %9670 = vmatpush.bf16.msra.mxu0 %v15272_v43 }
 0x447   :  { %v17031_v60 = vld [vmem:[#allocation10 + $0xfc0] sm:$0xf]  ;;  %v16520_v30 = vor.u32 %v18753_v3, %v16519_v13  ;;  %9658 = vmatmul.bf16.vlgmr.msra.gmra.mxu3 %v19679_v41 }
 0x448   :  { %v18881_v17 = vld [vmem:[#allocation10 + $0xfdc] sm:$0xf0]  ;;  %9681 = vmatpush.bf16.msra.mxu1 %v15592_v25  ;;  %9702 = vmatpush.bf16.msrb.mxu3 %v16264_v32  ;;  %v3090_v25 = vperm.slane %v19691_v24, 6 }
 0x449   :  { %v15559_v20 = vld [vmem:[#allocation10 + $0x440] sm:$0xf]  ;;  %v17032_v23 = vor.u32 %v18881_v17, %v17031_v60  ;;  %9671 = vmatmul.bf16.vlgmr.msra.gmra.mxu0 %v19681_v62 }
 0x44a   :  { %v18513_v35 = vld [vmem:[#allocation10 + $0x45c] sm:$0xf0]  ;;  %9696 = vmatpush.bf16.msra.mxu2 %v15784_v26  ;;  %9715 = vmatpush.bf16.msrb.mxu0 %v16520_v30 }
 0x44b   :  { %v16231_v37 = vld [vmem:[#allocation10 + $0x980] sm:$0xf]  ;;  %v15560_v40 = vor.u32 %v18513_v35, %v15559_v20  ;;  %v6321_v20 = vpop.f32.mrf.mxu3 }
 0x44c   :  { %v18681_v52 = vld [vmem:[#allocation10 + $0x99c] sm:$0xf0] }
 0x44d   :  { %v16487_v45 = vld [vmem:[#allocation10 + $0xb80] sm:$0xf]  ;;  %v16232_v29 = vor.u32 %v18681_v52, %v16231_v37  ;;  %9697 = vmatmul.bf16.vlgmr.msra.gmra.mxu2 %v19683_v56  ;;  %9682 = vmatpush.bf16.msra.mxu1 %v15560_v40  ;;  %v6322_v52 = vadd.f32 %v6321_v20, %v3090_v25  ;;  %v15497_v25 = vld [vmem:[#allocation10 + $0x3e0] sm:$0xf0]  ;;  %v7071_v20 = vunpack.c.h.b16 %v19576_v59 }
 0x44e   :  { %v18745_v39 = vld [vmem:[#allocation10 + $0xb9c] sm:$0xf0]  ;;  %9741 = vmatpush.bf16.msrb.mxu2 %v17032_v23 }
 0x44f   :  { %v16999_v12 = vld [vmem:[#allocation10 + $0xf80] sm:$0xf]  ;;  %v16488_v21 = vor.u32 %v18745_v39, %v16487_v45  ;;  %9703 = vmatpush.bf16.msrb.mxu3 %v16232_v29  ;;  %v6360_v45 = vpop.f32.mrf.mxu2 }
 0x450   :  { %v18873_v19 = vld [vmem:[#allocation10 + $0xf9c] sm:$0xf0] }
 0x451   :  { %v15527_v42 = vld [vmem:[#allocation10 + $0x400] sm:$0xf]  ;;  %v17000_v22 = vor.u32 %v18873_v19, %v16999_v12  ;;  %9716 = vmatpush.bf16.msrb.mxu0 %v16488_v21  ;;  %v6336_v21 = vpop.f32.mrf.mxu0 }
 0x452   :  { %v18505_v46 = vld [vmem:[#allocation10 + $0x41c] sm:$0xf0]  ;;  %v18613_v21 = vld [vmem:[#allocation10 + $0x784] sm:$0xf] }
 0x453   :  { %v16199_v44 = vld [vmem:[#allocation10 + $0x940] sm:$0xf]  ;;  %v15528_v58 = vor.u32 %v18505_v46, %v15527_v42  ;;  %9742 = vmatpush.bf16.msrb.mxu2 %v17000_v22  ;;  %v6335_v46 = vadd.f32 %v6334_v6, %v6322_v52 }
 0x454   :  { %v18673_v1 = vld [vmem:[#allocation10 + $0x95c] sm:$0xf0] }
 0x455   :  { %v16455_v51 = vld [vmem:[#allocation10 + $0xb40] sm:$0xf]  ;;  %v16200_v5 = vor.u32 %v18673_v1, %v16199_v44  ;;  %9683 = vmatpush.bf16.msra.mxu1 %v15528_v58  ;;  %v6347_v44 = vpop.f32.mrf.mxu1 }
 0x456   :  { %v18737_v50 = vld [vmem:[#allocation10 + $0xb5c] sm:$0xf0] }
 0x457   :  { %v16775_v57 = vld [vmem:[#allocation10 + $0xdc0] sm:$0xf]  ;;  %v16456_v14 = vor.u32 %v18737_v50, %v16455_v51  ;;  %9704 = vmatpush.bf16.msrb.mxu3 %v16200_v5  ;;  %v6362_v6 = vpop.f32.mrf.mxu2 }
 0x458   :  { %v18817_v53 = vld [vmem:[#allocation10 + $0xddc] sm:$0xf0]  ;;  %9684 = vmatmul.bf16.vlgmr.msra.gmra.mxu1 %v19689_v11 }
 0x459   :  { %v16967_v33 = vld [vmem:[#allocation10 + $0xf40] sm:$0xf]  ;;  %v16776_v49 = vor.u32 %v18817_v53, %v16775_v57  ;;  %9717 = vmatpush.bf16.msrb.mxu0 %v16456_v14  ;;  %v6348_v57 = vadd.f32 %v6347_v44, %v6335_v46  ;;  %v15977_v46 = vld [vmem:[#allocation10 + $0x7a0] sm:$0xf0]  ;;  %v19702_v44 = vpack.c.b16 %v7071_v20, %v7071_v20 }
 0x45a   :  { %v18865_v55 = vld [vmem:[#allocation10 + $0xf5c] sm:$0xf0]  ;;  %v15369_v20 = vld [vmem:[#allocation10 + $0x2e0] sm:$0xf0] }
 0x45b   :  { %v16167_v63 = vld [vmem:[#allocation10 + $0x900] sm:$0xf]  ;;  %v16968_v34 = vor.u32 %v18865_v55, %v16967_v33  ;;  %9728 = vmatpush.bf16.msrb.mxu1 %v16776_v49 }
 0x45c   :  { %v18665_v47 = vld [vmem:[#allocation10 + $0x91c] sm:$0xf0] }
 0x45d   :  { %v16423_v54 = vld [vmem:[#allocation10 + $0xb00] sm:$0xf]  ;;  %v16168_v0 = vor.u32 %v18665_v47, %v16167_v63  ;;  %9743 = vmatpush.bf16.msrb.mxu2 %v16968_v34  ;;  %v19695_v47 = vadd.f32 %v6360_v45, %v6348_v57 }
 0x45e   :  { %v18729_v4 = vld [vmem:[#allocation10 + $0xb1c] sm:$0xf0] }
 0x45f   :  { %v16743_v2 = vld [vmem:[#allocation10 + $0xd80] sm:$0xf]  ;;  %v16424_v15 = vor.u32 %v18729_v4, %v16423_v54  ;;  %9705 = vmatpush.bf16.msrb.mxu3 %v16168_v0  ;;  %v6323_v54 = vpop.f32.mrf.mxu3 }
 0x460   :  { %v18809_v7 = vld [vmem:[#allocation10 + $0xd9c] sm:$0xf0] }
 0x461   :  { %v16935_v9 = vld [vmem:[#allocation10 + $0xf00] sm:$0xf]  ;;  %v16744_v43 = vor.u32 %v18809_v7, %v16743_v2  ;;  %9718 = vmatpush.bf16.msrb.mxu0 %v16424_v15 }
 0x462   :  { %v18857_v10 = vld [vmem:[#allocation10 + $0xf1c] sm:$0xf0] }
 0x463   :  { %v16135_v13 = vld [vmem:[#allocation10 + $0x8c0] sm:$0xf]  ;;  %v16936_v60 = vor.u32 %v18857_v10, %v16935_v9  ;;  %9729 = vmatpush.bf16.msrb.mxu1 %v16744_v43  ;;  %v18429_v43 = vld [vmem:[#allocation10 + $0x1c4] sm:$0xf] }
 0x464   :  { %v18657_v3 = vld [vmem:[#allocation10 + $0x8dc] sm:$0xf0] }
 0x465   :  { %v16391_v28 = vld [vmem:[#allocation10 + $0xac0] sm:$0xf]  ;;  %v16136_v32 = vor.u32 %v18657_v3, %v16135_v13  ;;  %9744 = vmatpush.bf16.msrb.mxu2 %v16936_v60  ;;  %v6349_v60 = vpop.f32.mrf.mxu1 }
 0x466   :  { %v18721_v17 = vld [vmem:[#allocation10 + $0xadc] sm:$0xf0]  ;;  %v15913_v60 = vld [vmem:[#allocation10 + $0x720] sm:$0xf0] }
 0x467   :  { %v16711_v8 = vld [vmem:[#allocation10 + $0xd40] sm:$0xf]  ;;  %v16392_v30 = vor.u32 %v18721_v17, %v16391_v28  ;;  %9706 = vmatpush.bf16.msrb.mxu3 %v16136_v32  ;;  %v15241_v17 = vld [vmem:[#allocation10 + $0x1e0] sm:$0xf0] }
 0x468   :  { %v18801_v26 = vld [vmem:[#allocation10 + $0xd5c] sm:$0xf0]  ;;  %v16009_v32 = vld [vmem:[#allocation10 + $0x7e0] sm:$0xf0] }
 0x469   :  { %v16903_v27 = vld [vmem:[#allocation10 + $0xec0] sm:$0xf]  ;;  %v16712_v38 = vor.u32 %v18801_v26, %v16711_v8  ;;  %9719 = vmatpush.bf16.msrb.mxu0 %v16392_v30  ;;  %v18493_v8 = vld [vmem:[#allocation10 + $0x3c4] sm:$0xf]  ;;  %v7070_v30 = vunpack.c.l.b16 %v19576_v59 }
 0x46a   :  { %v18849_v36 = vld [vmem:[#allocation10 + $0xedc] sm:$0xf0]  ;;  %v15500_v52 = vor.u32 %v18493_v8, %v15497_v25 }
 0x46b   :  { %v16103_v35 = vld [vmem:[#allocation10 + $0x880] sm:$0xf]  ;;  %v16904_v23 = vor.u32 %v18849_v36, %v16903_v27  ;;  %9730 = vmatpush.bf16.msrb.mxu1 %v16712_v38  ;;  %v18621_v36 = vld [vmem:[#allocation10 + $0x7c4] sm:$0xf]  ;;  %v7073_v38 = vunpack.c.h.b16 %v19581_v48  ;;  %v19700_v59 = vpack.c.b16 %v7070_v30, %v7070_v30 }
 0x46c   :  { %v18649_v37 = vld [vmem:[#allocation10 + $0x89c] sm:$0xf0]  ;;  %v18461_v30 = vld [vmem:[#allocation10 + $0x2c4] sm:$0xf] }
 0x46d   :  { %v16359_v39 = vld [vmem:[#allocation10 + $0xa80] sm:$0xf]  ;;  %v16104_v1 = vor.u32 %v18649_v37, %v16103_v35  ;;  %9745 = vmatpush.bf16.msrb.mxu2 %v16904_v23  ;;  %v15244_v23 = vor.u32 %v18429_v43, %v15241_v17  ;;  %v18597_v43 = vld [vmem:[#allocation10 + $0x704] sm:$0xf]  ;;  %v6386_v17 = vpop.f32.mrf.mxu0 }
 0x46e   :  { %v18713_v12 = vld [vmem:[#allocation10 + $0xa9c] sm:$0xf0] }
 0x46f   :  { %v16679_v19 = vld [vmem:[#allocation10 + $0xd00] sm:$0xf]  ;;  %v16360_v22 = vor.u32 %v18713_v12, %v16359_v39  ;;  %9707 = vmatpush.bf16.msrb.mxu3 %v16104_v1  ;;  %v18421_v12 = vld [vmem:[#allocation10 + $0x184] sm:$0xf] }
 0x470   :  { %v18793_v40 = vld [vmem:[#allocation10 + $0xd1c] sm:$0xf0] }
 0x471   :  { %v16871_v42 = vld [vmem:[#allocation10 + $0xe80] sm:$0xf]  ;;  %v16680_v53 = vor.u32 %v18793_v40, %v16679_v19  ;;  %9720 = vmatpush.bf16.msrb.mxu0 %v16360_v22  ;;  %v16012_v19 = vor.u32 %v18621_v36, %v16009_v32  ;;  %v15209_v40 = vld [vmem:[#allocation10 + $0x1a0] sm:$0xf0]  ;;  %v15916_v32 = vor.u32 %v18597_v43, %v15913_v60 }
 0x472   :  { %v18841_v29 = vld [vmem:[#allocation10 + $0xe9c] sm:$0xf0]  ;;  %v18437_v43 = vld [vmem:[#allocation10 + $0x204] sm:$0xf] }
 0x473   :  { %v16071_v51 = vld [vmem:[#allocation10 + $0x840] sm:$0xf]  ;;  %v16872_v33 = vor.u32 %v18841_v29, %v16871_v42  ;;  %9731 = vmatpush.bf16.msrb.mxu1 %v16680_v53  ;;  %v18485_v42 = vld [vmem:[#allocation10 + $0x384] sm:$0xf] }
 0x474   :  { %v18641_v50 = vld [vmem:[#allocation10 + $0x85c] sm:$0xf0]  ;;  %v15465_v29 = vld [vmem:[#allocation10 + $0x3a0] sm:$0xf0] }
 0x475   :  { %v16327_v55 = vld [vmem:[#allocation10 + $0xa40] sm:$0xf]  ;;  %v16072_v49 = vor.u32 %v18641_v50, %v16071_v51  ;;  %9746 = vmatpush.bf16.msrb.mxu2 %v16872_v33  ;;  %v19704_v51 = vpack.c.b16 %v7073_v38, %v7073_v38  ;;  %v15212_v50 = vor.u32 %v18421_v12, %v15209_v40  ;;  %v15468_v57 = vor.u32 %v18485_v42, %v15465_v29  ;;  %v18413_v33 = vld [vmem:[#allocation10 + $0x144] sm:$0xf] }
 0x476   :  { %v18705_v58 = vld [vmem:[#allocation10 + $0xa5c] sm:$0xf0]  ;;  %v18589_v38 = vld [vmem:[#allocation10 + $0x6c4] sm:$0xf] }
 0x477   :  { %v16647_v61 = vld [vmem:[#allocation10 + $0xcc0] sm:$0xf]  ;;  %v16328_v34 = vor.u32 %v18705_v58, %v16327_v55  ;;  %9708 = vmatpush.bf16.msrb.mxu3 %v16072_v49  ;;  %v15177_v55 = vld [vmem:[#allocation10 + $0x160] sm:$0xf0]  ;;  %v15980_v58 = vor.u32 %v18613_v21, %v15977_v46  ;;  %v6412_v21 = vpop.f32.mrf.mxu2 }
 0x478   :  { %v18785_v5 = vld [vmem:[#allocation10 + $0xcdc] sm:$0xf0]  ;;  %v18605_v49 = vld [vmem:[#allocation10 + $0x744] sm:$0xf] }
 0x479   :  { %v16839_v14 = vld [vmem:[#allocation10 + $0xe40] sm:$0xf]  ;;  %v16648_v9 = vor.u32 %v18785_v5, %v16647_v61  ;;  %9721 = vmatpush.bf16.msrb.mxu0 %v16328_v34  ;;  %v18477_v61 = vld [vmem:[#allocation10 + $0x344] sm:$0xf] }
 0x47a   :  { %v18833_v63 = vld [vmem:[#allocation10 + $0xe5c] sm:$0xf0]  ;;  %v15433_v5 = vld [vmem:[#allocation10 + $0x360] sm:$0xf0] }
 0x47b   :  { %v16039_v4 = vld [vmem:[#allocation10 + $0x800] sm:$0xf]  ;;  %v16840_v10 = vor.u32 %v18833_v63, %v16839_v14  ;;  %9732 = vmatpush.bf16.msrb.mxu1 %v16648_v9  ;;  %v18557_v14 = vld [vmem:[#allocation10 + $0x5c4] sm:$0xf] }
 0x47c   :  { %v18633_v2 = vld [vmem:[#allocation10 + $0x81c] sm:$0xf0]  ;;  %v15753_v63 = vld [vmem:[#allocation10 + $0x5e0] sm:$0xf0] }
 0x47d   :  { %v16295_v7 = vld [vmem:[#allocation10 + $0xa00] sm:$0xf]  ;;  %v16040_v26 = vor.u32 %v18633_v2, %v16039_v4  ;;  %9747 = vmatpush.bf16.msrb.mxu2 %v16840_v10  ;;  %v15945_v34 = vld [vmem:[#allocation10 + $0x760] sm:$0xf0]  ;;  %v7072_v4 = vunpack.c.l.b16 %v19581_v48  ;;  %v15180_v2 = vor.u32 %v18413_v33, %v15177_v55  ;;  %v15756_v6 = vor.u32 %v18557_v14, %v15753_v63  ;;  %v6388_v33 = vpop.f32.mrf.mxu0 }
 0x47e   :  { %v18697_v0 = vld [vmem:[#allocation10 + $0xa1c] sm:$0xf0]  ;;  %v18405_v9 = vld [vmem:[#allocation10 + $0x104] sm:$0xf] }
 0x47f   :  { %v16615_v15 = vld [vmem:[#allocation10 + $0xc80] sm:$0xf]  ;;  %v16296_v27 = vor.u32 %v18697_v0, %v16295_v7  ;;  %9709 = vmatpush.bf16.msrb.mxu3 %v16040_v26  ;;  %v15436_v7 = vor.u32 %v18477_v61, %v15433_v5  ;;  %v15145_v10 = vld [vmem:[#allocation10 + $0x120] sm:$0xf0]  ;;  %v15948_v0 = vor.u32 %v18605_v49, %v15945_v34  ;;  %v19710_v8 = vpack.c.b16 %v7072_v4, %v7072_v4 }
 0x480   :  { %v18777_v13 = vld [vmem:[#allocation10 + $0xc9c] sm:$0xf0]  ;;  %v15148_v48 = vor.u32 %v18405_v9, %v15145_v10  ;;  %v18397_v26 = vld [vmem:[#allocation10 + $0xc4] sm:$0xf] }
 0x481   :  { %v16807_v3 = vld [vmem:[#allocation10 + $0xe00] sm:$0xf]  ;;  %v16616_v35 = vor.u32 %v18777_v13, %v16615_v15  ;;  %9722 = vmatpush.bf16.msrb.mxu0 %v16296_v27  ;;  %v18469_v15 = vld [vmem:[#allocation10 + $0x304] sm:$0xf] }
 0x482   :  { %v18825_v28 = vld [vmem:[#allocation10 + $0xe1c] sm:$0xf0]  ;;  %9710 = vmatmul.bf16.vlgmr.msrb.gmra.mxu3 %v19700_v59  ;;  %v15401_v13 = vld [vmem:[#allocation10 + $0x320] sm:$0xf0] }
 0x483   :  { %v16808_v37 = vor.u32 %v18825_v28, %v16807_v3  ;;  %v16583_v45 = vld [vmem:[#allocation10 + $0xc40] sm:$0xf]  ;;  %9733 = vmatpush.bf16.msrb.mxu1 %v16616_v35  ;;  %9754 = vmatpush.bf16.msra.mxu3 %v15244_v23  ;;  %v18549_v3 = vld [vmem:[#allocation10 + $0x584] sm:$0xf]  ;;  %v15404_v25 = vor.u32 %v18469_v15, %v15401_v13 }
 0x484   :  { %v18769_v39 = vld [vmem:[#allocation10 + $0xc5c] sm:$0xf0]  ;;  %9723 = vmatmul.bf16.vlgmr.msrb.gmra.mxu0 %v19702_v44  ;;  %v15721_v28 = vld [vmem:[#allocation10 + $0x5a0] sm:$0xf0] }
 0x485   :  { %9748 = vmatpush.bf16.msrb.mxu2 %v16808_v37  ;;  %v16584_v1 = vor.u32 %v18769_v39, %v16583_v45  ;;  %v16551_v22 = vld [vmem:[#allocation10 + $0xc00] sm:$0xf]  ;;  %9767 = vmatpush.bf16.msra.mxu0 %v15500_v52  ;;  %v15113_v27 = vld [vmem:[#allocation10 + $0xe0] sm:$0xf0]  ;;  %v15724_v36 = vor.u32 %v18549_v3, %v15721_v28  ;;  %v15372_v45 = vor.u32 %v18461_v30, %v15369_v20  ;;  %v6373_v39 = vpop.f32.mrf.mxu3 }
 0x486   :  { %v18761_v53 = vld [vmem:[#allocation10 + $0xc1c] sm:$0xf0]  ;;  %v18541_v35 = vld [vmem:[#allocation10 + $0x544] sm:$0xf]  ;;  %v15116_v52 = vor.u32 %v18397_v26, %v15113_v27  ;;  %v6374_v29 = vadd.f32 %v6373_v39, %v19695_v47 }
 0x487   :  { %9734 = vmatpush.bf16.msrb.mxu1 %v16584_v1  ;;  %v16552_v54 = vor.u32 %v18761_v53, %v16551_v22  ;;  %9755 = vmatpush.bf16.msra.mxu3 %v15212_v50  ;;  %v15689_v37 = vld [vmem:[#allocation10 + $0x560] sm:$0xf0] }
 0x488   :  { %9749 = vmatmul.bf16.vlgmr.msrb.gmra.mxu2 %v19704_v51  ;;  %v15881_v23 = vld [vmem:[#allocation10 + $0x6e0] sm:$0xf0]  ;;  %v15692_v40 = vor.u32 %v18541_v35, %v15689_v37  ;;  %v6387_v55 = vadd.f32 %v6386_v17, %v6374_v29 }
 0x489   :  { %9793 = vmatpush.bf16.msra.mxu2 %v16012_v19  ;;  %9768 = vmatpush.bf16.msra.mxu0 %v15468_v57  ;;  %v18389_v12 = vld [vmem:[#allocation10 + $0x84] sm:$0xf]  ;;  %v15884_v42 = vor.u32 %v18589_v38, %v15881_v23 }
 0x48a   :  { %v15081_v19 = vld [vmem:[#allocation10 + $0xa0] sm:$0xf0] }
 0x48b   :  { %9735 = vmatpush.bf16.msrb.mxu1 %v16552_v54  ;;  %9756 = vmatpush.bf16.msra.mxu3 %v15180_v2  ;;  %v18453_v46 = vld [vmem:[#allocation10 + $0x284] sm:$0xf]  ;;  %v15084_v61 = vor.u32 %v18389_v12, %v15081_v19 }
 0x48c   :  { %v15337_v1 = vld [vmem:[#allocation10 + $0x2a0] sm:$0xf0] }
 0x48d   :  { %9794 = vmatpush.bf16.msra.mxu2 %v15980_v58  ;;  %9769 = vmatpush.bf16.msra.mxu0 %v15436_v7  ;;  %v18533_v22 = vld [vmem:[#allocation10 + $0x504] sm:$0xf]  ;;  %v6399_v58 = vpop.f32.mrf.mxu1  ;;  %v15340_v5 = vor.u32 %v18453_v46, %v15337_v1  ;;  %v6375_v13 = vpop.f32.mrf.mxu3 }
 0x48e   :  { %9736 = vmatmul.bf16.vlgmr.msrb.gmra.mxu1 %v19710_v8  ;;  %v15657_v50 = vld [vmem:[#allocation10 + $0x520] sm:$0xf0]  ;;  %v6400_v49 = vadd.f32 %v6399_v58, %v6387_v55 }
 0x48f   :  { %9780 = vmatpush.bf16.msra.mxu1 %v15756_v6  ;;  %9757 = vmatpush.bf16.msra.mxu3 %v15148_v48  ;;  %v18581_v57 = vld [vmem:[#allocation10 + $0x684] sm:$0xf]  ;;  %v15660_v47 = vor.u32 %v18533_v22, %v15657_v50  ;;  %v6414_v48 = vpop.f32.mrf.mxu2 }
 0x490   :  { %v15849_v53 = vld [vmem:[#allocation10 + $0x6a0] sm:$0xf0]  ;;  %v19714_v6 = vadd.f32 %v6412_v21, %v6400_v49 }
 0x491   :  { %9795 = vmatpush.bf16.msra.mxu2 %v15948_v0  ;;  %9770 = vmatpush.bf16.msra.mxu0 %v15404_v25  ;;  %v18381_v14 = vld [vmem:[#allocation10 + $0x44] sm:$0xf]  ;;  %v15852_v34 = vor.u32 %v18581_v57, %v15849_v53 }
 0x492   :  { %v15049_v63 = vld [vmem:[#allocation10 + $0x60] sm:$0xf0]  ;;  %19070 = vtanh.f32 %v19714_v6  ;;  %v16271_v6 = vld [vmem:[#allocation10 + $0x9c8] sm:$0xf] }
 0x493   :  { %9781 = vmatpush.bf16.msra.mxu1 %v15724_v36  ;;  %9758 = vmatpush.bf16.msra.mxu3 %v15116_v52  ;;  %v18445_v54 = vld [vmem:[#allocation10 + $0x244] sm:$0xf]  ;;  %v15052_v0 = vor.u32 %v18381_v14, %v15049_v63 }
 0x494   :  { %v15305_v4 = vld [vmem:[#allocation10 + $0x260] sm:$0xf0] }
 0x495   :  { %9796 = vmatpush.bf16.msra.mxu2 %v15916_v32  ;;  %9771 = vmatpush.bf16.msra.mxu0 %v15372_v45  ;;  %v18525_v2 = vld [vmem:[#allocation10 + $0x4c4] sm:$0xf]  ;;  %v15308_v15 = vor.u32 %v18445_v54, %v15305_v4  ;;  %v6401_v20 = vpop.f32.mrf.mxu1 }
 0x496   :  { %v15625_v7 = vld [vmem:[#allocation10 + $0x4e0] sm:$0xf0] }
 0x497   :  { %9782 = vmatpush.bf16.msra.mxu1 %v15692_v40  ;;  %v18573_v9 = vld [vmem:[#allocation10 + $0x644] sm:$0xf]  ;;  %9759 = vmatpush.bf16.msra.mxu3 %v15084_v61  ;;  %v15628_v60 = vor.u32 %v18525_v2, %v15625_v7 }
 0x498   :  { %v15817_v10 = vld [vmem:[#allocation10 + $0x660] sm:$0xf0] }
 0x499   :  { %9797 = vmatpush.bf16.msra.mxu2 %v15884_v42  ;;  %9772 = vmatpush.bf16.msra.mxu0 %v15340_v5  ;;  %v18373_v3 = vld [vmem:[#allocation10 + $0x4] sm:$0xf]  ;;  %v15820_v17 = vor.u32 %v18573_v9, %v15817_v10 }
 0x49a   :  { %v15017_v28 = vld [vmem:[#allocation10 + $0x20] sm:$0xf0] }
 0x49b   :  { %9783 = vmatpush.bf16.msra.mxu1 %v15660_v47  ;;  %v15273_v25 = vld [vmem:[#allocation10 + $0x220] sm:$0xf0]  ;;  %9760 = vmatpush.bf16.msra.mxu3 %v15052_v0  ;;  %v15020_v23 = vor.u32 %v18373_v3, %v15017_v28 }
 0x49c   :  { %v18517_v26 = vld [vmem:[#allocation10 + $0x484] sm:$0xf]  ;;  %v15276_v52 = vor.u32 %v18437_v43, %v15273_v25 }
 0x49d   :  { %9798 = vmatpush.bf16.msra.mxu2 %v15852_v34  ;;  %v15593_v27 = vld [vmem:[#allocation10 + $0x4a0] sm:$0xf0]  ;;  %9773 = vmatpush.bf16.msra.mxu0 %v15308_v15 }
 0x49e   :  { %v18565_v36 = vld [vmem:[#allocation10 + $0x604] sm:$0xf]  ;;  %v15596_v12 = vor.u32 %v18517_v26, %v15593_v27 }
 0x49f   :  { %v15785_v32 = vld [vmem:[#allocation10 + $0x620] sm:$0xf0]  ;;  %9784 = vmatpush.bf16.msra.mxu1 %v15628_v60  ;;  %9761 = vmatpush.bf16.msra.mxu3 %v15020_v23 }
 0x4a0   :  { %v18685_v30 = vld [vmem:[#allocation10 + $0x9c4] sm:$0xf]  ;;  %v15788_v19 = vor.u32 %v18565_v36, %v15785_v32  ;;  %v6438_v36 = vpop.f32.mrf.mxu0 }
 0x4a1   :  { %v16265_v35 = vld [vmem:[#allocation10 + $0x9e0] sm:$0xf0]  ;;  %9799 = vmatpush.bf16.msra.mxu2 %v15820_v17  ;;  %9774 = vmatpush.bf16.msra.mxu0 %v15276_v52 }
 0x4a2   :  { %v18749_v37 = vld [vmem:[#allocation10 + $0xbc4] sm:$0xf]  ;;  %v16268_v40 = vor.u32 %v18685_v30, %v16265_v35  ;;  %9762 = vmatmul.bf16.vlgmr.msra.gmra.mxu3 %v19679_v41 }
 0x4a3   :  { %v16521_v38 = vld [vmem:[#allocation10 + $0xbe0] sm:$0xf0]  ;;  %9785 = vmatpush.bf16.msra.mxu1 %v15596_v12 }
 0x4a4   :  { %v18877_v45 = vld [vmem:[#allocation10 + $0xfc4] sm:$0xf]  ;;  %v16524_v42 = vor.u32 %v18749_v37, %v16521_v38  ;;  %9806 = vmatpush.bf16.msrb.mxu3 %v16268_v40  ;;  %9775 = vmatmul.bf16.vlgmr.msra.gmra.mxu0 %v19681_v62 }
 0x4a5   :  { %v17033_v39 = vld [vmem:[#allocation10 + $0xfe0] sm:$0xf0]  ;;  %9800 = vmatpush.bf16.msra.mxu2 %v15788_v19 }
 0x4a6   :  { %v18509_v29 = vld [vmem:[#allocation10 + $0x444] sm:$0xf]  ;;  %v17036_v1 = vor.u32 %v18877_v45, %v17033_v39  ;;  %9819 = vmatpush.bf16.msrb.mxu0 %v16524_v42  ;;  %v3091_v39 = vperm.slane %v19691_v24, 7 }
 0x4a7   :  { %v15561_v21 = vld [vmem:[#allocation10 + $0x460] sm:$0xf0] }
 0x4a8   :  { %v18677_v46 = vld [vmem:[#allocation10 + $0x984] sm:$0xf]  ;;  %v15564_v55 = vor.u32 %v18509_v29, %v15561_v21  ;;  %9801 = vmatmul.bf16.vlgmr.msra.gmra.mxu2 %v19683_v56  ;;  %v6425_v21 = vpop.f32.mrf.mxu3 }
 0x4a9   :  { %v16233_v22 = vld [vmem:[#allocation10 + $0x9a0] sm:$0xf0]  ;;  %9845 = vmatpush.bf16.msrb.mxu2 %v17036_v1 }
 0x4aa   :  { %v18741_v50 = vld [vmem:[#allocation10 + $0xb84] sm:$0xf]  ;;  %v16236_v61 = vor.u32 %v18677_v46, %v16233_v22  ;;  %9786 = vmatpush.bf16.msra.mxu1 %v15564_v55 }
 0x4ab   :  { %v16489_v57 = vld [vmem:[#allocation10 + $0xba0] sm:$0xf0] }
 0x4ac   :  { %v18869_v53 = vld [vmem:[#allocation10 + $0xf84] sm:$0xf]  ;;  %v16492_v5 = vor.u32 %v18741_v50, %v16489_v57  ;;  %9807 = vmatpush.bf16.msrb.mxu3 %v16236_v61  ;;  %v6426_v57 = vadd.f32 %v6425_v21, %v3091_v39  ;;  %v18434_v39 = vld [vmem:[#allocation10 + $0x1e4] sm:$0xf0] }
 0x4ad   :  { %v17001_v33 = vld [vmem:[#allocation10 + $0xfa0] sm:$0xf0]  ;;  %v18626_v21 = vld [vmem:[#allocation10 + $0x7e4] sm:$0xf0] }
 0x4ae   :  { %v18501_v58 = vld [vmem:[#allocation10 + $0x404] sm:$0xf]  ;;  %v17004_v47 = vor.u32 %v18869_v53, %v17001_v33  ;;  %9820 = vmatpush.bf16.msrb.mxu0 %v16492_v5  ;;  %v6464_v53 = vpop.f32.mrf.mxu2 }
 0x4af   :  { %v15529_v14 = vld [vmem:[#allocation10 + $0x420] sm:$0xf0] }
 0x4b0   :  { %v18669_v63 = vld [vmem:[#allocation10 + $0x944] sm:$0xf]  ;;  %v15532_v10 = vor.u32 %v18501_v58, %v15529_v14  ;;  %9846 = vmatpush.bf16.msrb.mxu2 %v17004_v47  ;;  %v6440_v14 = vpop.f32.mrf.mxu0 }
 0x4b1   :  { %v16201_v49 = vld [vmem:[#allocation10 + $0x960] sm:$0xf0]  ;;  %v18618_v14 = vld [vmem:[#allocation10 + $0x7a4] sm:$0xf0] }
 0x4b2   :  { %v18733_v34 = vld [vmem:[#allocation10 + $0xb44] sm:$0xf]  ;;  %v16204_v0 = vor.u32 %v18669_v63, %v16201_v49  ;;  %9787 = vmatpush.bf16.msra.mxu1 %v15532_v10  ;;  %v6439_v63 = vadd.f32 %v6438_v36, %v6426_v57  ;;  %v6451_v49 = vpop.f32.mrf.mxu1 }
 0x4b3   :  { %v16457_v54 = vld [vmem:[#allocation10 + $0xb60] sm:$0xf0] }
 0x4b4   :  { %v18813_v4 = vld [vmem:[#allocation10 + $0xdc4] sm:$0xf]  ;;  %v16460_v15 = vor.u32 %v18733_v34, %v16457_v54  ;;  %9808 = vmatpush.bf16.msrb.mxu3 %v16204_v0 }
 0x4b5   :  { %v16777_v2 = vld [vmem:[#allocation10 + $0xde0] sm:$0xf0]  ;;  %9788 = vmatmul.bf16.vlgmr.msra.gmra.mxu1 %v19689_v11 }
 0x4b6   :  { %v18861_v7 = vld [vmem:[#allocation10 + $0xf44] sm:$0xf]  ;;  %v16780_v28 = vor.u32 %v18813_v4, %v16777_v2  ;;  %9821 = vmatpush.bf16.msrb.mxu0 %v16460_v15  ;;  %v6452_v2 = vadd.f32 %v6451_v49, %v6439_v63 }
 0x4b7   :  { %v16969_v9 = vld [vmem:[#allocation10 + $0xf60] sm:$0xf0] }
 0x4b8   :  { %v18661_v13 = vld [vmem:[#allocation10 + $0x904] sm:$0xf]  ;;  %v16972_v43 = vor.u32 %v18861_v7, %v16969_v9  ;;  %9832 = vmatpush.bf16.msrb.mxu1 %v16780_v28 }
 0x4b9   :  { %v16169_v3 = vld [vmem:[#allocation10 + $0x920] sm:$0xf0] }
 0x4ba   :  { %v18725_v60 = vld [vmem:[#allocation10 + $0xb04] sm:$0xf]  ;;  %v16172_v32 = vor.u32 %v18661_v13, %v16169_v3  ;;  %9847 = vmatpush.bf16.msrb.mxu2 %v16972_v43  ;;  %v19721_v43 = vadd.f32 %v6464_v53, %v6452_v2  ;;  %v18418_v2 = vld [vmem:[#allocation10 + $0x164] sm:$0xf0] }
 0x4bb   :  { %v16425_v17 = vld [vmem:[#allocation10 + $0xb20] sm:$0xf0] }
 0x4bc   :  { %v18805_v48 = vld [vmem:[#allocation10 + $0xd84] sm:$0xf]  ;;  %v16428_v30 = vor.u32 %v18725_v60, %v16425_v17  ;;  %9809 = vmatpush.bf16.msrb.mxu3 %v16172_v32 }
 0x4bd   :  { %v16745_v25 = vld [vmem:[#allocation10 + $0xda0] sm:$0xf0] }
 0x4be   :  { %v18853_v26 = vld [vmem:[#allocation10 + $0xf04] sm:$0xf]  ;;  %v16748_v38 = vor.u32 %v18805_v48, %v16745_v25  ;;  %9822 = vmatpush.bf16.msrb.mxu0 %v16428_v30  ;;  %v6427_v48 = vpop.f32.mrf.mxu3  ;;  %v6466_v30 = vpop.f32.mrf.mxu2 }
 0x4bf   :  { %v16937_v27 = vld [vmem:[#allocation10 + $0xf20] sm:$0xf0]  ;;  %v15151_v48 = vld [vmem:[#allocation10 + $0x108] sm:$0xf] }
 0x4c0   :  { %v18653_v20 = vld [vmem:[#allocation10 + $0x8c4] sm:$0xf]  ;;  %v16940_v23 = vor.u32 %v18853_v26, %v16937_v27  ;;  %9833 = vmatpush.bf16.msrb.mxu1 %v16748_v38  ;;  %v15727_v30 = vld [vmem:[#allocation10 + $0x588] sm:$0xf] }
 0x4c1   :  { %v16137_v35 = vld [vmem:[#allocation10 + $0x8e0] sm:$0xf0] }
 0x4c2   :  { %v18717_v37 = vld [vmem:[#allocation10 + $0xac4] sm:$0xf]  ;;  %v16140_v42 = vor.u32 %v18653_v20, %v16137_v35  ;;  %9848 = vmatpush.bf16.msrb.mxu2 %v16940_v23 }
 0x4c3   :  { %v16393_v52 = vld [vmem:[#allocation10 + $0xae0] sm:$0xf0] }
 0x4c4   :  { %v18797_v45 = vld [vmem:[#allocation10 + $0xd44] sm:$0xf]  ;;  %v16396_v29 = vor.u32 %v18717_v37, %v16393_v52  ;;  %9810 = vmatpush.bf16.msrb.mxu3 %v16140_v42  ;;  %v15247_v52 = vld [vmem:[#allocation10 + $0x1c8] sm:$0xf] }
 0x4c5   :  { %v16713_v12 = vld [vmem:[#allocation10 + $0xd60] sm:$0xf0] }
 0x4c6   :  { %v18845_v19 = vld [vmem:[#allocation10 + $0xec4] sm:$0xf]  ;;  %v16716_v22 = vor.u32 %v18797_v45, %v16713_v12  ;;  %9823 = vmatpush.bf16.msrb.mxu0 %v16396_v29  ;;  %v6453_v45 = vpop.f32.mrf.mxu1  ;;  %v15503_v12 = vld [vmem:[#allocation10 + $0x3c8] sm:$0xf] }
 0x4c7   :  { %v16905_v40 = vld [vmem:[#allocation10 + $0xee0] sm:$0xf0]  ;;  %v16015_v29 = vld [vmem:[#allocation10 + $0x7c8] sm:$0xf] }
 0x4c8   :  { %v18645_v46 = vld [vmem:[#allocation10 + $0x884] sm:$0xf]  ;;  %v16908_v50 = vor.u32 %v18845_v19, %v16905_v40  ;;  %9834 = vmatpush.bf16.msrb.mxu1 %v16716_v22  ;;  %v18498_v19 = vld [vmem:[#allocation10 + $0x3e4] sm:$0xf0]  ;;  %v15248_v22 = vor.u32 %v18434_v39, %v15247_v52 }
 0x4c9   :  { %v16105_v1 = vld [vmem:[#allocation10 + $0x8a0] sm:$0xf0]  ;;  %v15119_v45 = vld [vmem:[#allocation10 + $0xc8] sm:$0xf] }
 0x4ca   :  { %v18709_v33 = vld [vmem:[#allocation10 + $0xa84] sm:$0xf]  ;;  %v16108_v47 = vor.u32 %v18645_v46, %v16105_v1  ;;  %9849 = vmatpush.bf16.msrb.mxu2 %v16908_v50  ;;  %v15504_v50 = vor.u32 %v18498_v19, %v15503_v12  ;;  %v18402_v39 = vld [vmem:[#allocation10 + $0xe4] sm:$0xf0] }
 0x4cb   :  { %v16361_v24 = vld [vmem:[#allocation10 + $0xaa0] sm:$0xf0] }
 0x4cc   :  { %v18789_v55 = vld [vmem:[#allocation10 + $0xd04] sm:$0xf]  ;;  %v16364_v34 = vor.u32 %v18709_v33, %v16361_v24  ;;  %9811 = vmatpush.bf16.msrb.mxu3 %v16108_v47  ;;  %v15215_v33 = vld [vmem:[#allocation10 + $0x188] sm:$0xf]  ;;  %v16016_v24 = vor.u32 %v18626_v21, %v16015_v29 }
 0x4cd   :  { %v16681_v58 = vld [vmem:[#allocation10 + $0xd20] sm:$0xf0]  ;;  %v15695_v29 = vld [vmem:[#allocation10 + $0x548] sm:$0xf] }
 0x4ce   :  { %v18837_v61 = vld [vmem:[#allocation10 + $0xe84] sm:$0xf]  ;;  %v16684_v7 = vor.u32 %v18789_v55, %v16681_v58  ;;  %9824 = vmatpush.bf16.msrb.mxu0 %v16364_v34  ;;  %v18426_v55 = vld [vmem:[#allocation10 + $0x1a4] sm:$0xf0] }
 0x4cf   :  { %v16873_v5 = vld [vmem:[#allocation10 + $0xea0] sm:$0xf0]  ;;  %v15471_v58 = vld [vmem:[#allocation10 + $0x388] sm:$0xf]  ;;  %v15216_v47 = vor.u32 %v18426_v55, %v15215_v33 }
 0x4d0   :  { %v18637_v54 = vld [vmem:[#allocation10 + $0x844] sm:$0xf]  ;;  %v16876_v9 = vor.u32 %v18837_v61, %v16873_v5  ;;  %9835 = vmatpush.bf16.msrb.mxu1 %v16684_v7  ;;  %v18490_v61 = vld [vmem:[#allocation10 + $0x3a4] sm:$0xf0] }
 0x4d1   :  { %v16073_v4 = vld [vmem:[#allocation10 + $0x860] sm:$0xf0]  ;;  %v15983_v5 = vld [vmem:[#allocation10 + $0x788] sm:$0xf]  ;;  %v15472_v34 = vor.u32 %v18490_v61, %v15471_v58  ;;  %v6516_v61 = vpop.f32.mrf.mxu2 }
 0x4d2   :  { %v18701_v10 = vld [vmem:[#allocation10 + $0xa44] sm:$0xf]  ;;  %v16076_v60 = vor.u32 %v18637_v54, %v16073_v4  ;;  %9850 = vmatpush.bf16.msrb.mxu2 %v16876_v9  ;;  %v15183_v4 = vld [vmem:[#allocation10 + $0x148] sm:$0xf]  ;;  %v15984_v7 = vor.u32 %v18618_v14, %v15983_v5 }
 0x4d3   :  { %v16329_v0 = vld [vmem:[#allocation10 + $0xa60] sm:$0xf0]  ;;  %v15439_v9 = vld [vmem:[#allocation10 + $0x348] sm:$0xf] }
 0x4d4   :  { %v18781_v15 = vld [vmem:[#allocation10 + $0xcc4] sm:$0xf]  ;;  %v16332_v17 = vor.u32 %v18701_v10, %v16329_v0  ;;  %9812 = vmatpush.bf16.msrb.mxu3 %v16076_v60  ;;  %v18482_v10 = vld [vmem:[#allocation10 + $0x364] sm:$0xf0]  ;;  %v15184_v60 = vor.u32 %v18418_v2, %v15183_v4  ;;  %v6503_v2 = vpop.f32.mrf.mxu1 }
 0x4d5   :  { %v16649_v13 = vld [vmem:[#allocation10 + $0xce0] sm:$0xf0]  ;;  %v15759_v0 = vld [vmem:[#allocation10 + $0x5c8] sm:$0xf] }
 0x4d6   :  { %v18829_v3 = vld [vmem:[#allocation10 + $0xe44] sm:$0xf]  ;;  %v16652_v36 = vor.u32 %v18781_v15, %v16649_v13  ;;  %9825 = vmatpush.bf16.msrb.mxu0 %v16332_v17  ;;  %v18562_v15 = vld [vmem:[#allocation10 + $0x5e4] sm:$0xf0]  ;;  %v15440_v17 = vor.u32 %v18482_v10, %v15439_v9 }
 0x4d7   :  { %v16841_v28 = vld [vmem:[#allocation10 + $0xe60] sm:$0xf0]  ;;  %v15951_v13 = vld [vmem:[#allocation10 + $0x748] sm:$0xf] }
 0x4d8   :  { %v18629_v25 = vld [vmem:[#allocation10 + $0x804] sm:$0xf]  ;;  %v16844_v32 = vor.u32 %v18829_v3, %v16841_v28  ;;  %9836 = vmatpush.bf16.msrb.mxu1 %v16652_v36  ;;  %v18610_v3 = vld [vmem:[#allocation10 + $0x764] sm:$0xf0] }
 0x4d9   :  { %v16041_v26 = vld [vmem:[#allocation10 + $0x820] sm:$0xf0]  ;;  %v15407_v36 = vld [vmem:[#allocation10 + $0x308] sm:$0xf] }
 0x4da   :  { %v18693_v27 = vld [vmem:[#allocation10 + $0xa04] sm:$0xf]  ;;  %v16044_v40 = vor.u32 %v18629_v25, %v16041_v26  ;;  %9851 = vmatpush.bf16.msrb.mxu2 %v16844_v32  ;;  %v18410_v25 = vld [vmem:[#allocation10 + $0x124] sm:$0xf0]  ;;  %v15760_v26 = vor.u32 %v18562_v15, %v15759_v0 }
 0x4db   :  { %v16297_v20 = vld [vmem:[#allocation10 + $0xa20] sm:$0xf0]  ;;  %v18474_v32 = vld [vmem:[#allocation10 + $0x324] sm:$0xf0] }
 0x4dc   :  { %v18773_v35 = vld [vmem:[#allocation10 + $0xc84] sm:$0xf]  ;;  %v16300_v42 = vor.u32 %v18693_v27, %v16297_v20  ;;  %9813 = vmatpush.bf16.msrb.mxu3 %v16044_v40  ;;  %v15952_v27 = vor.u32 %v18610_v3, %v15951_v13  ;;  %v18554_v20 = vld [vmem:[#allocation10 + $0x5a4] sm:$0xf0]  ;;  %v15408_v52 = vor.u32 %v18474_v32, %v15407_v36 }
 0x4dd   :  { %v16617_v37 = vld [vmem:[#allocation10 + $0xca0] sm:$0xf0]  ;;  %v15728_v12 = vor.u32 %v18554_v20, %v15727_v30  ;;  %v15375_v40 = vld [vmem:[#allocation10 + $0x2c8] sm:$0xf] }
 0x4de   :  { %v18821_v38 = vld [vmem:[#allocation10 + $0xe04] sm:$0xf]  ;;  %v16620_v46 = vor.u32 %v18773_v35, %v16617_v37  ;;  %9826 = vmatpush.bf16.msrb.mxu0 %v16300_v42  ;;  %v15919_v35 = vld [vmem:[#allocation10 + $0x708] sm:$0xf] }
 0x4df   :  { %v16809_v23 = vld [vmem:[#allocation10 + $0xe20] sm:$0xf0]  ;;  %9814 = vmatmul.bf16.vlgmr.msrb.gmra.mxu3 %v19700_v59  ;;  %v18602_v37 = vld [vmem:[#allocation10 + $0x724] sm:$0xf0] }
 0x4e0   :  { %v16812_v1 = vor.u32 %v18821_v38, %v16809_v23  ;;  %v18765_v57 = vld [vmem:[#allocation10 + $0xc44] sm:$0xf]  ;;  %9837 = vmatpush.bf16.msrb.mxu1 %v16620_v46  ;;  %9858 = vmatpush.bf16.msra.mxu3 %v15248_v22  ;;  %v6490_v38 = vpop.f32.mrf.mxu0  ;;  %v15152_v23 = vor.u32 %v18410_v25, %v15151_v48  ;;  %v15920_v19 = vor.u32 %v18602_v37, %v15919_v35  ;;  %v18466_v42 = vld [vmem:[#allocation10 + $0x2e4] sm:$0xf0] }
 0x4e1   :  { %v16585_v53 = vld [vmem:[#allocation10 + $0xc60] sm:$0xf0]  ;;  %9827 = vmatmul.bf16.vlgmr.msrb.gmra.mxu0 %v19702_v44  ;;  %v18546_v21 = vld [vmem:[#allocation10 + $0x564] sm:$0xf0]  ;;  %v15120_v22 = vor.u32 %v18402_v39, %v15119_v45 }
 0x4e2   :  { %9852 = vmatpush.bf16.msrb.mxu2 %v16812_v1  ;;  %v16588_v63 = vor.u32 %v18765_v57, %v16585_v53  ;;  %v18757_v49 = vld [vmem:[#allocation10 + $0xc04] sm:$0xf]  ;;  %9871 = vmatpush.bf16.msra.mxu0 %v15504_v50  ;;  %v15887_v46 = vld [vmem:[#allocation10 + $0x6c8] sm:$0xf]  ;;  %v15376_v50 = vor.u32 %v18466_v42, %v15375_v40  ;;  %v6477_v57 = vpop.f32.mrf.mxu3  ;;  %v6505_v40 = vpop.f32.mrf.mxu1 }
 0x4e3   :  { %v16553_v54 = vld [vmem:[#allocation10 + $0xc20] sm:$0xf0]  ;;  %v18594_v1 = vld [vmem:[#allocation10 + $0x6e4] sm:$0xf0]  ;;  %v6478_v58 = vadd.f32 %v6477_v57, %v19721_v43 }
 0x4e4   :  { %9838 = vmatpush.bf16.msrb.mxu1 %v16588_v63  ;;  %v16556_v28 = vor.u32 %v18757_v49, %v16553_v54  ;;  %9859 = vmatpush.bf16.msra.mxu3 %v15216_v47  ;;  %v15087_v53 = vld [vmem:[#allocation10 + $0x88] sm:$0xf]  ;;  %v15888_v55 = vor.u32 %v18594_v1, %v15887_v46 }
 0x4e5   :  { %9853 = vmatmul.bf16.vlgmr.msrb.gmra.mxu2 %v19704_v51  ;;  %v18394_v33 = vld [vmem:[#allocation10 + $0xa4] sm:$0xf0]  ;;  %v6491_v4 = vadd.f32 %v6490_v38, %v6478_v58 }
 0x4e6   :  { %9897 = vmatpush.bf16.msra.mxu2 %v16016_v24  ;;  %9872 = vmatpush.bf16.msra.mxu0 %v15472_v34  ;;  %v15696_v24 = vor.u32 %v18546_v21, %v15695_v29  ;;  %v15343_v5 = vld [vmem:[#allocation10 + $0x288] sm:$0xf] }
 0x4e7   :  { %v18458_v14 = vld [vmem:[#allocation10 + $0x2a4] sm:$0xf0]  ;;  %v6504_v15 = vadd.f32 %v6503_v2, %v6491_v4 }
 0x4e8   :  { %9839 = vmatpush.bf16.msrb.mxu1 %v16556_v28  ;;  %9860 = vmatpush.bf16.msra.mxu3 %v15184_v60  ;;  %v15663_v63 = vld [vmem:[#allocation10 + $0x508] sm:$0xf]  ;;  %v6492_v54 = vpop.f32.mrf.mxu0  ;;  %v15344_v9 = vor.u32 %v18458_v14, %v15343_v5 }
 0x4e9   :  { %v18538_v49 = vld [vmem:[#allocation10 + $0x524] sm:$0xf0] }
 0x4ea   :  { %9898 = vmatpush.bf16.msra.mxu2 %v15984_v7  ;;  %9873 = vmatpush.bf16.msra.mxu0 %v15440_v17  ;;  %v15855_v47 = vld [vmem:[#allocation10 + $0x688] sm:$0xf]  ;;  %v15088_v7 = vor.u32 %v18394_v33, %v15087_v53  ;;  %v15664_v43 = vor.u32 %v18538_v49, %v15663_v63  ;;  %v6479_v32 = vpop.f32.mrf.mxu3  ;;  %v19071_v33 = vpop.eup %19070 }
 0x4eb   :  { %9840 = vmatmul.bf16.vlgmr.msrb.gmra.mxu1 %v19710_v8  ;;  %v18586_v34 = vld [vmem:[#allocation10 + $0x6a4] sm:$0xf0] }
 0x4ec   :  { %9884 = vmatpush.bf16.msra.mxu1 %v15760_v26  ;;  %9861 = vmatpush.bf16.msra.mxu3 %v15152_v23  ;;  %v15055_v10 = vld [vmem:[#allocation10 + $0x48] sm:$0xf]  ;;  %v15856_v13 = vor.u32 %v18586_v34, %v15855_v47  ;;  %v6517_v26 = vadd.f32 %v6516_v61, %v6504_v15  ;;  %v6518_v23 = vpop.f32.mrf.mxu2 }
 0x4ed   :  { %v18386_v0 = vld [vmem:[#allocation10 + $0x64] sm:$0xf0] }
 0x4ee   :  { %9899 = vmatpush.bf16.msra.mxu2 %v15952_v27  ;;  %9874 = vmatpush.bf16.msra.mxu0 %v15408_v52  ;;  %v15311_v3 = vld [vmem:[#allocation10 + $0x248] sm:$0xf]  ;;  %v15056_v27 = vor.u32 %v18386_v0, %v15055_v10  ;;  %19072 = vtanh.f32 %v6517_v26 }
 0x4ef   :  { %v18450_v28 = vld [vmem:[#allocation10 + $0x264] sm:$0xf0] }
 0x4f0   :  { %9885 = vmatpush.bf16.msra.mxu1 %v15728_v12  ;;  %9862 = vmatpush.bf16.msra.mxu3 %v15120_v22  ;;  %v15631_v60 = vld [vmem:[#allocation10 + $0x4c8] sm:$0xf]  ;;  %v15312_v36 = vor.u32 %v18450_v28, %v15311_v3 }
 0x4f1   :  { %v18530_v17 = vld [vmem:[#allocation10 + $0x4e4] sm:$0xf0] }
 0x4f2   :  { %9900 = vmatpush.bf16.msra.mxu2 %v15920_v19  ;;  %9875 = vmatpush.bf16.msra.mxu0 %v15376_v50  ;;  %v15823_v48 = vld [vmem:[#allocation10 + $0x648] sm:$0xf]  ;;  %v15632_v37 = vor.u32 %v18530_v17, %v15631_v60 }
 0x4f3   :  { %v18578_v25 = vld [vmem:[#allocation10 + $0x664] sm:$0xf0] }
 0x4f4   :  { %9886 = vmatpush.bf16.msra.mxu1 %v15696_v24  ;;  %9863 = vmatpush.bf16.msra.mxu3 %v15088_v7  ;;  %v15023_v30 = vld [vmem:[#allocation10 + $0x8] sm:$0xf]  ;;  %v15824_v38 = vor.u32 %v18578_v25, %v15823_v48  ;;  %v19073_v14 = vpop.eup %19072 }
 0x4f5   :  { %v18378_v20 = vld [vmem:[#allocation10 + $0x24] sm:$0xf0]  ;;  %v19729_v54 = vpack.c.bf16 %v19073_v14, %v19071_v33 }
 0x4f6   :  { %9901 = vmatpush.bf16.msra.mxu2 %v15888_v55  ;;  %9876 = vmatpush.bf16.msra.mxu0 %v15344_v9  ;;  %v15279_v35 = vld [vmem:[#allocation10 + $0x208] sm:$0xf]  ;;  %v15024_v46 = vor.u32 %v18378_v20, %v15023_v30 }
 0x4f7   :  { %v18442_v52 = vld [vmem:[#allocation10 + $0x224] sm:$0xf0] }
 0x4f8   :  { %9887 = vmatpush.bf16.msra.mxu1 %v15664_v43  ;;  %v15599_v45 = vld [vmem:[#allocation10 + $0x488] sm:$0xf]  ;;  %9864 = vmatpush.bf16.msra.mxu3 %v15056_v27  ;;  %v15280_v1 = vor.u32 %v18442_v52, %v15279_v35 }
 0x4f9   :  { %v18522_v39 = vld [vmem:[#allocation10 + $0x4a4] sm:$0xf0] }
 0x4fa   :  { %9902 = vmatpush.bf16.msra.mxu2 %v15856_v13  ;;  %v15791_v12 = vld [vmem:[#allocation10 + $0x608] sm:$0xf]  ;;  %9877 = vmatpush.bf16.msra.mxu0 %v15312_v36  ;;  %v15600_v57 = vor.u32 %v18522_v39, %v15599_v45 }
 0x4fb   :  { %v18570_v19 = vld [vmem:[#allocation10 + $0x624] sm:$0xf0] }
 0x4fc   :  { %v18690_v42 = vld [vmem:[#allocation10 + $0x9e4] sm:$0xf0]  ;;  %9888 = vmatpush.bf16.msra.mxu1 %v15632_v37  ;;  %v15792_v53 = vor.u32 %v18570_v19, %v15791_v12  ;;  %9865 = vmatpush.bf16.msra.mxu3 %v15024_v46  ;;  %v19734_v19 = vld [vmem:[#allocation12] sm:$0xff] }
 0x4fd   :  { %v16527_v29 = vld [vmem:[#allocation10 + $0xbc8] sm:$0xf]  ;;  %v16272_v24 = vor.u32 %v18690_v42, %v16271_v6  ;;  %v9672_v6 = vpop.f32.mrf.mxu0 }
 0x4fe   :  { %v18754_v21 = vld [vmem:[#allocation10 + $0xbe4] sm:$0xf0]  ;;  %9903 = vmatpush.bf16.msra.mxu2 %v15824_v38  ;;  %9878 = vmatpush.bf16.msra.mxu0 %v15280_v1 }
 0x4ff   :  { %v17039_v22 = vld [vmem:[#allocation10 + $0xfc8] sm:$0xf]  ;;  %v16528_v55 = vor.u32 %v18754_v21, %v16527_v29  ;;  %9866 = vmatmul.bf16.vlgmr.msra.gmra.mxu3 %v19679_v41 }
 0x500   :  { %v18882_v50 = vld [vmem:[#allocation10 + $0xfe4] sm:$0xf0]  ;;  %9889 = vmatpush.bf16.msra.mxu1 %v15600_v57  ;;  %9910 = vmatpush.bf16.msrb.mxu3 %v16272_v24 }
 0x501   :  { %v15567_v58 = vld [vmem:[#allocation10 + $0x448] sm:$0xf]  ;;  %v17040_v63 = vor.u32 %v18882_v50, %v17039_v22  ;;  %9879 = vmatmul.bf16.vlgmr.msra.gmra.mxu0 %v19681_v62 }
 0x502   :  { %v18514_v61 = vld [vmem:[#allocation10 + $0x464] sm:$0xf0]  ;;  %9904 = vmatpush.bf16.msra.mxu2 %v15792_v53  ;;  %9923 = vmatpush.bf16.msrb.mxu0 %v16528_v55  ;;  %v7046_v53 = vperm.slane %v19734_v19, 0 }
 0x503   :  { %v16239_v5 = vld [vmem:[#allocation10 + $0x988] sm:$0xf]  ;;  %v15568_v7 = vor.u32 %v18514_v61, %v15567_v58 }
 0x504   :  { %v18682_v49 = vld [vmem:[#allocation10 + $0x9a4] sm:$0xf0] }
 0x505   :  { %v16495_v47 = vld [vmem:[#allocation10 + $0xb88] sm:$0xf]  ;;  %v16240_v10 = vor.u32 %v18682_v49, %v16239_v5  ;;  %9905 = vmatmul.bf16.vlgmr.msra.gmra.mxu2 %v19683_v56  ;;  %9890 = vmatpush.bf16.msra.mxu1 %v15568_v7  ;;  %v9659_v5 = vpop.f32.mrf.mxu3 }
 0x506   :  { %v18746_v34 = vld [vmem:[#allocation10 + $0xba4] sm:$0xf0]  ;;  %9949 = vmatpush.bf16.msrb.mxu2 %v17040_v63 }
 0x507   :  { %v17007_v4 = vld [vmem:[#allocation10 + $0xf88] sm:$0xf]  ;;  %v16496_v0 = vor.u32 %v18746_v34, %v16495_v47  ;;  %9911 = vmatpush.bf16.msrb.mxu3 %v16240_v10  ;;  %v9660_v34 = vadd.f32 %v9659_v5, %v7046_v53  ;;  %v18622_v5 = vld [vmem:[#allocation10 + $0x7cc] sm:$0xf] }
 0x508   :  { %v18874_v2 = vld [vmem:[#allocation10 + $0xfa4] sm:$0xf0] }
 0x509   :  { %v15535_v9 = vld [vmem:[#allocation10 + $0x408] sm:$0xf]  ;;  %v17008_v3 = vor.u32 %v18874_v2, %v17007_v4  ;;  %9924 = vmatpush.bf16.msrb.mxu0 %v16496_v0  ;;  %v9698_v4 = vpop.f32.mrf.mxu2 }
 0x50a   :  { %v18506_v15 = vld [vmem:[#allocation10 + $0x424] sm:$0xf0] }
 0x50b   :  { %v16207_v43 = vld [vmem:[#allocation10 + $0x948] sm:$0xf]  ;;  %v15536_v27 = vor.u32 %v18506_v15, %v15535_v9  ;;  %9950 = vmatpush.bf16.msrb.mxu2 %v17008_v3  ;;  %v9685_v3 = vpop.f32.mrf.mxu1 }
 0x50c   :  { %v18674_v13 = vld [vmem:[#allocation10 + $0x964] sm:$0xf0] }
 0x50d   :  { %v16463_v28 = vld [vmem:[#allocation10 + $0xb48] sm:$0xf]  ;;  %v16208_v36 = vor.u32 %v18674_v13, %v16207_v43  ;;  %9891 = vmatpush.bf16.msra.mxu1 %v15536_v27  ;;  %v9674_v43 = vpop.f32.mrf.mxu0  ;;  %v9673_v13 = vadd.f32 %v9672_v6, %v9660_v34 }
 0x50e   :  { %v18738_v60 = vld [vmem:[#allocation10 + $0xb64] sm:$0xf0]  ;;  %v18614_v43 = vld [vmem:[#allocation10 + $0x78c] sm:$0xf] }
 0x50f   :  { %v16783_v17 = vld [vmem:[#allocation10 + $0xdc8] sm:$0xf]  ;;  %v16464_v32 = vor.u32 %v18738_v60, %v16463_v28  ;;  %9912 = vmatpush.bf16.msrb.mxu3 %v16208_v36 }
 0x510   :  { %v18818_v48 = vld [vmem:[#allocation10 + $0xde4] sm:$0xf0]  ;;  %9892 = vmatmul.bf16.vlgmr.msra.gmra.mxu1 %v19689_v11 }
 0x511   :  { %v16975_v25 = vld [vmem:[#allocation10 + $0xf48] sm:$0xf]  ;;  %v16784_v37 = vor.u32 %v18818_v48, %v16783_v17  ;;  %9925 = vmatpush.bf16.msrb.mxu0 %v16464_v32 }
 0x512   :  { %v18866_v26 = vld [vmem:[#allocation10 + $0xf64] sm:$0xf0] }
 0x513   :  { %v16175_v30 = vld [vmem:[#allocation10 + $0x908] sm:$0xf]  ;;  %v16976_v38 = vor.u32 %v18866_v26, %v16975_v25  ;;  %9936 = vmatpush.bf16.msrb.mxu1 %v16784_v37  ;;  %v9686_v25 = vadd.f32 %v9685_v3, %v9673_v13  ;;  %v9687_v53 = vpop.f32.mrf.mxu1  ;;  %v15985_v13 = vld [vmem:[#allocation10 + $0x7a8] sm:$0xf0] }
 0x514   :  { %v18666_v20 = vld [vmem:[#allocation10 + $0x924] sm:$0xf0] }
 0x515   :  { %v16431_v35 = vld [vmem:[#allocation10 + $0xb08] sm:$0xf]  ;;  %v16176_v40 = vor.u32 %v18666_v20, %v16175_v30  ;;  %9951 = vmatpush.bf16.msrb.mxu2 %v16976_v38  ;;  %v19738_v38 = vadd.f32 %v9698_v4, %v9686_v25  ;;  %v18414_v25 = vld [vmem:[#allocation10 + $0x14c] sm:$0xf] }
 0x516   :  { %v18730_v23 = vld [vmem:[#allocation10 + $0xb24] sm:$0xf0] }
 0x517   :  { %v16751_v52 = vld [vmem:[#allocation10 + $0xd88] sm:$0xf]  ;;  %v16432_v42 = vor.u32 %v18730_v23, %v16431_v35  ;;  %9913 = vmatpush.bf16.msrb.mxu3 %v16176_v40 }
 0x518   :  { %v18810_v45 = vld [vmem:[#allocation10 + $0xda4] sm:$0xf0] }
 0x519   :  { %v16943_v39 = vld [vmem:[#allocation10 + $0xf08] sm:$0xf]  ;;  %v16752_v1 = vor.u32 %v18810_v45, %v16751_v52  ;;  %9926 = vmatpush.bf16.msrb.mxu0 %v16432_v42  ;;  %v9661_v45 = vpop.f32.mrf.mxu3 }
 0x51a   :  { %v18858_v12 = vld [vmem:[#allocation10 + $0xf24] sm:$0xf0] }
 0x51b   :  { %v16143_v29 = vld [vmem:[#allocation10 + $0x8c8] sm:$0xf]  ;;  %v16944_v22 = vor.u32 %v18858_v12, %v16943_v39  ;;  %9937 = vmatpush.bf16.msrb.mxu1 %v16752_v1 }
 0x51c   :  { %v18658_v21 = vld [vmem:[#allocation10 + $0x8e4] sm:$0xf0] }
 0x51d   :  { %v16399_v46 = vld [vmem:[#allocation10 + $0xac8] sm:$0xf]  ;;  %v16144_v58 = vor.u32 %v18658_v21, %v16143_v29  ;;  %9952 = vmatpush.bf16.msrb.mxu2 %v16944_v22  ;;  %v9700_v29 = vpop.f32.mrf.mxu2 }
 0x51e   :  { %v18722_v50 = vld [vmem:[#allocation10 + $0xae4] sm:$0xf0]  ;;  %v15409_v29 = vld [vmem:[#allocation10 + $0x328] sm:$0xf0] }
 0x51f   :  { %v16719_v57 = vld [vmem:[#allocation10 + $0xd48] sm:$0xf]  ;;  %v16400_v61 = vor.u32 %v18722_v50, %v16399_v46  ;;  %9914 = vmatpush.bf16.msrb.mxu3 %v16144_v58 }
 0x520   :  { %v18802_v33 = vld [vmem:[#allocation10 + $0xd64] sm:$0xf0] }
 0x521   :  { %v16911_v24 = vld [vmem:[#allocation10 + $0xec8] sm:$0xf]  ;;  %v16720_v49 = vor.u32 %v18802_v33, %v16719_v57  ;;  %9927 = vmatpush.bf16.msrb.mxu0 %v16400_v61  ;;  %v18430_v57 = vld [vmem:[#allocation10 + $0x1cc] sm:$0xf] }
 0x522   :  { %v18850_v55 = vld [vmem:[#allocation10 + $0xee4] sm:$0xf0]  ;;  %v15249_v33 = vld [vmem:[#allocation10 + $0x1e8] sm:$0xf0] }
 0x523   :  { %v16111_v14 = vld [vmem:[#allocation10 + $0x888] sm:$0xf]  ;;  %v16912_v47 = vor.u32 %v18850_v55, %v16911_v24  ;;  %9938 = vmatpush.bf16.msrb.mxu1 %v16720_v49  ;;  %v18494_v24 = vld [vmem:[#allocation10 + $0x3cc] sm:$0xf] }
 0x524   :  { %v18650_v63 = vld [vmem:[#allocation10 + $0x8a4] sm:$0xf0]  ;;  %v15505_v55 = vld [vmem:[#allocation10 + $0x3e8] sm:$0xf0] }
 0x525   :  { %v16367_v2 = vld [vmem:[#allocation10 + $0xa88] sm:$0xf]  ;;  %v16112_v28 = vor.u32 %v18650_v63, %v16111_v14  ;;  %9953 = vmatpush.bf16.msrb.mxu2 %v16912_v47  ;;  %v16017_v14 = vld [vmem:[#allocation10 + $0x7e8] sm:$0xf0]  ;;  %v15252_v47 = vor.u32 %v18430_v57, %v15249_v33  ;;  %v15508_v34 = vor.u32 %v18494_v24, %v15505_v55 }
 0x526   :  { %v18714_v7 = vld [vmem:[#allocation10 + $0xaa4] sm:$0xf0]  ;;  %v18398_v33 = vld [vmem:[#allocation10 + $0xcc] sm:$0xf] }
 0x527   :  { %v16687_v9 = vld [vmem:[#allocation10 + $0xd08] sm:$0xf]  ;;  %v16368_v60 = vor.u32 %v18714_v7, %v16367_v2  ;;  %9915 = vmatpush.bf16.msrb.mxu3 %v16112_v28  ;;  %v18422_v7 = vld [vmem:[#allocation10 + $0x18c] sm:$0xf] }
 0x528   :  { %v18794_v10 = vld [vmem:[#allocation10 + $0xd24] sm:$0xf0]  ;;  %v15121_v24 = vld [vmem:[#allocation10 + $0xe8] sm:$0xf0] }
 0x529   :  { %v16879_v0 = vld [vmem:[#allocation10 + $0xe88] sm:$0xf]  ;;  %v16688_v26 = vor.u32 %v18794_v10, %v16687_v9  ;;  %9928 = vmatpush.bf16.msrb.mxu0 %v16368_v60  ;;  %v16020_v9 = vor.u32 %v18622_v5, %v16017_v14  ;;  %v15217_v10 = vld [vmem:[#allocation10 + $0x1a8] sm:$0xf0] }
 0x52a   :  { %v18842_v15 = vld [vmem:[#allocation10 + $0xea4] sm:$0xf0]  ;;  %v15220_v60 = vor.u32 %v18422_v7, %v15217_v10  ;;  %v15377_v5 = vld [vmem:[#allocation10 + $0x2e8] sm:$0xf0] }
 0x52b   :  { %v16079_v17 = vld [vmem:[#allocation10 + $0x848] sm:$0xf]  ;;  %v16880_v27 = vor.u32 %v18842_v15, %v16879_v0  ;;  %9939 = vmatpush.bf16.msrb.mxu1 %v16688_v26  ;;  %v18486_v0 = vld [vmem:[#allocation10 + $0x38c] sm:$0xf] }
 0x52c   :  { %v18642_v48 = vld [vmem:[#allocation10 + $0x864] sm:$0xf0]  ;;  %v15473_v15 = vld [vmem:[#allocation10 + $0x3a8] sm:$0xf0] }
 0x52d   :  { %v16335_v36 = vld [vmem:[#allocation10 + $0xa48] sm:$0xf]  ;;  %v16080_v23 = vor.u32 %v18642_v48, %v16079_v17  ;;  %9954 = vmatpush.bf16.msrb.mxu2 %v16880_v27  ;;  %v15476_v17 = vor.u32 %v18486_v0, %v15473_v15  ;;  %v15185_v26 = vld [vmem:[#allocation10 + $0x168] sm:$0xf0]  ;;  %v15988_v27 = vor.u32 %v18614_v43, %v15985_v13  ;;  %v9750_v43 = vpop.f32.mrf.mxu2 }
 0x52e   :  { %v18706_v32 = vld [vmem:[#allocation10 + $0xa64] sm:$0xf0]  ;;  %v18542_v14 = vld [vmem:[#allocation10 + $0x54c] sm:$0xf] }
 0x52f   :  { %v16655_v30 = vld [vmem:[#allocation10 + $0xcc8] sm:$0xf]  ;;  %v16336_v52 = vor.u32 %v18706_v32, %v16335_v36  ;;  %9916 = vmatpush.bf16.msrb.mxu3 %v16080_v23  ;;  %v18478_v36 = vld [vmem:[#allocation10 + $0x34c] sm:$0xf] }
 0x530   :  { %v18786_v20 = vld [vmem:[#allocation10 + $0xce4] sm:$0xf0]  ;;  %v15441_v32 = vld [vmem:[#allocation10 + $0x368] sm:$0xf0] }
 0x531   :  { %v16847_v35 = vld [vmem:[#allocation10 + $0xe48] sm:$0xf]  ;;  %v16656_v40 = vor.u32 %v18786_v20, %v16655_v30  ;;  %9929 = vmatpush.bf16.msrb.mxu0 %v16336_v52  ;;  %v18558_v30 = vld [vmem:[#allocation10 + $0x5cc] sm:$0xf]  ;;  %v15188_v52 = vor.u32 %v18414_v25, %v15185_v26  ;;  %v15444_v45 = vor.u32 %v18478_v36, %v15441_v32 }
 0x532   :  { %v18834_v37 = vld [vmem:[#allocation10 + $0xe64] sm:$0xf0]  ;;  %v15761_v20 = vld [vmem:[#allocation10 + $0x5e8] sm:$0xf0] }
 0x533   :  { %v16047_v39 = vld [vmem:[#allocation10 + $0x808] sm:$0xf]  ;;  %v16848_v42 = vor.u32 %v18834_v37, %v16847_v35  ;;  %9940 = vmatpush.bf16.msrb.mxu1 %v16656_v40  ;;  %v18606_v35 = vld [vmem:[#allocation10 + $0x74c] sm:$0xf] }
 0x534   :  { %v18634_v12 = vld [vmem:[#allocation10 + $0x824] sm:$0xf0]  ;;  %v15953_v37 = vld [vmem:[#allocation10 + $0x768] sm:$0xf0] }
 0x535   :  { %v16303_v6 = vld [vmem:[#allocation10 + $0xa08] sm:$0xf]  ;;  %v16048_v58 = vor.u32 %v18634_v12, %v16047_v39  ;;  %9955 = vmatpush.bf16.msrb.mxu2 %v16848_v42  ;;  %v18406_v39 = vld [vmem:[#allocation10 + $0x10c] sm:$0xf]  ;;  %v15956_v40 = vor.u32 %v18606_v35, %v15953_v37 }
 0x536   :  { %v18698_v21 = vld [vmem:[#allocation10 + $0xa24] sm:$0xf0]  ;;  %v15153_v12 = vld [vmem:[#allocation10 + $0x128] sm:$0xf0] }
 0x537   :  { %v16623_v46 = vld [vmem:[#allocation10 + $0xc88] sm:$0xf]  ;;  %v16304_v61 = vor.u32 %v18698_v21, %v16303_v6  ;;  %9917 = vmatpush.bf16.msrb.mxu3 %v16048_v58  ;;  %v15764_v6 = vor.u32 %v18558_v30, %v15761_v20  ;;  %v18470_v42 = vld [vmem:[#allocation10 + $0x30c] sm:$0xf]  ;;  %v15156_v57 = vor.u32 %v18406_v39, %v15153_v12 }
 0x538   :  { %v18778_v1 = vld [vmem:[#allocation10 + $0xca4] sm:$0xf0]  ;;  %v18550_v21 = vld [vmem:[#allocation10 + $0x58c] sm:$0xf]  ;;  %v15412_v53 = vor.u32 %v18470_v42, %v15409_v29 }
 0x539   :  { %v16815_v22 = vld [vmem:[#allocation10 + $0xe08] sm:$0xf]  ;;  %v16624_v63 = vor.u32 %v18778_v1, %v16623_v46  ;;  %9930 = vmatpush.bf16.msrb.mxu0 %v16304_v61  ;;  %v15729_v46 = vld [vmem:[#allocation10 + $0x5a8] sm:$0xf0] }
 0x53a   :  { %v18826_v50 = vld [vmem:[#allocation10 + $0xe24] sm:$0xf0]  ;;  %9918 = vmatmul.bf16.vlgmr.msrb.gmra.mxu3 %v19700_v59  ;;  %v18598_v1 = vld [vmem:[#allocation10 + $0x70c] sm:$0xf]  ;;  %v15732_v55 = vor.u32 %v18550_v21, %v15729_v46 }
 0x53b   :  { %v16816_v49 = vor.u32 %v18826_v50, %v16815_v22  ;;  %v16591_v4 = vld [vmem:[#allocation10 + $0xc48] sm:$0xf]  ;;  %9941 = vmatpush.bf16.msrb.mxu1 %v16624_v63  ;;  %9962 = vmatpush.bf16.msra.mxu3 %v15252_v47  ;;  %v15921_v22 = vld [vmem:[#allocation10 + $0x728] sm:$0xf0]  ;;  %v9724_v50 = vpop.f32.mrf.mxu0 }
 0x53c   :  { %v18770_v2 = vld [vmem:[#allocation10 + $0xc64] sm:$0xf0]  ;;  %9931 = vmatmul.bf16.vlgmr.msrb.gmra.mxu0 %v19702_v44  ;;  %v15924_v58 = vor.u32 %v18598_v1, %v15921_v22  ;;  %v18462_v61 = vld [vmem:[#allocation10 + $0x2cc] sm:$0xf] }
 0x53d   :  { %9956 = vmatpush.bf16.msrb.mxu2 %v16816_v49  ;;  %v16592_v3 = vor.u32 %v18770_v2, %v16591_v4  ;;  %v16559_v28 = vld [vmem:[#allocation10 + $0xc08] sm:$0xf]  ;;  %9975 = vmatpush.bf16.msra.mxu0 %v15508_v34  ;;  %v15697_v63 = vld [vmem:[#allocation10 + $0x568] sm:$0xf0]  ;;  %v15124_v34 = vor.u32 %v18398_v33, %v15121_v24  ;;  %v15380_v4 = vor.u32 %v18462_v61, %v15377_v5  ;;  %v9711_v2 = vpop.f32.mrf.mxu3 }
 0x53e   :  { %v18762_v48 = vld [vmem:[#allocation10 + $0xc24] sm:$0xf0]  ;;  %v18590_v49 = vld [vmem:[#allocation10 + $0x6cc] sm:$0xf]  ;;  %v15700_v10 = vor.u32 %v18542_v14, %v15697_v63  ;;  %v9712_v15 = vadd.f32 %v9711_v2, %v19738_v38 }
 0x53f   :  { %9942 = vmatpush.bf16.msrb.mxu1 %v16592_v3  ;;  %v16560_v23 = vor.u32 %v18762_v48, %v16559_v28  ;;  %9963 = vmatpush.bf16.msra.mxu3 %v15220_v60  ;;  %v15889_v47 = vld [vmem:[#allocation10 + $0x6e8] sm:$0xf0] }
 0x540   :  { %9957 = vmatmul.bf16.vlgmr.msrb.gmra.mxu2 %v19704_v51  ;;  %v18390_v7 = vld [vmem:[#allocation10 + $0x8c] sm:$0xf]  ;;  %v15892_v0 = vor.u32 %v18590_v49, %v15889_v47  ;;  %v9725_v26 = vadd.f32 %v9724_v50, %v9712_v15 }
 0x541   :  { %10001 = vmatpush.bf16.msra.mxu2 %v16020_v9  ;;  %9976 = vmatpush.bf16.msra.mxu0 %v15476_v17  ;;  %v15089_v9 = vld [vmem:[#allocation10 + $0xa8] sm:$0xf0] }
 0x542   :  { %v18454_v13 = vld [vmem:[#allocation10 + $0x28c] sm:$0xf]  ;;  %v15092_v36 = vor.u32 %v18390_v7, %v15089_v9 }
 0x543   :  { %9943 = vmatpush.bf16.msrb.mxu1 %v16560_v23  ;;  %9964 = vmatpush.bf16.msra.mxu3 %v15188_v52  ;;  %v15345_v3 = vld [vmem:[#allocation10 + $0x2a8] sm:$0xf0]  ;;  %v9726_v25 = vpop.f32.mrf.mxu0 }
 0x544   :  { %v18534_v28 = vld [vmem:[#allocation10 + $0x50c] sm:$0xf]  ;;  %v15348_v32 = vor.u32 %v18454_v13, %v15345_v3 }
 0x545   :  { %10002 = vmatpush.bf16.msra.mxu2 %v15988_v27  ;;  %9977 = vmatpush.bf16.msra.mxu0 %v15444_v45  ;;  %v15665_v60 = vld [vmem:[#allocation10 + $0x528] sm:$0xf0]  ;;  %v9737_v27 = vpop.f32.mrf.mxu1  ;;  %v9713_v21 = vpop.f32.mrf.mxu3 }
 0x546   :  { %9944 = vmatmul.bf16.vlgmr.msrb.gmra.mxu1 %v19710_v8  ;;  %v18582_v17 = vld [vmem:[#allocation10 + $0x68c] sm:$0xf]  ;;  %v9738_v35 = vadd.f32 %v9737_v27, %v9725_v26  ;;  %v15668_v38 = vor.u32 %v18534_v28, %v15665_v60 }
 0x547   :  { %9988 = vmatpush.bf16.msra.mxu1 %v15764_v6  ;;  %9965 = vmatpush.bf16.msra.mxu3 %v15156_v57  ;;  %v15857_v48 = vld [vmem:[#allocation10 + $0x6a8] sm:$0xf0] }
 0x548   :  { %v18382_v30 = vld [vmem:[#allocation10 + $0x4c] sm:$0xf]  ;;  %v15860_v37 = vor.u32 %v18582_v17, %v15857_v48 }
 0x549   :  { %10003 = vmatpush.bf16.msra.mxu2 %v15956_v40  ;;  %9978 = vmatpush.bf16.msra.mxu0 %v15412_v53  ;;  %v15057_v20 = vld [vmem:[#allocation10 + $0x68] sm:$0xf0]  ;;  %v19745_v40 = vadd.f32 %v9750_v43, %v9738_v35  ;;  %v9752_v53 = vpop.f32.mrf.mxu2 }
 0x54a   :  { %v18446_v23 = vld [vmem:[#allocation10 + $0x24c] sm:$0xf]  ;;  %v15060_v42 = vor.u32 %v18382_v30, %v15057_v20 }
 0x54b   :  { %9989 = vmatpush.bf16.msra.mxu1 %v15732_v55  ;;  %9966 = vmatpush.bf16.msra.mxu3 %v15124_v34  ;;  %v15313_v52 = vld [vmem:[#allocation10 + $0x268] sm:$0xf0]  ;;  %19074 = vtanh.f32 %v19745_v40  ;;  %v16279_v40 = vld [vmem:[#allocation10 + $0x9d0] sm:$0xf] }
 0x54c   :  { %v18526_v45 = vld [vmem:[#allocation10 + $0x4cc] sm:$0xf]  ;;  %v15316_v29 = vor.u32 %v18446_v23, %v15313_v52 }
 0x54d   :  { %10004 = vmatpush.bf16.msra.mxu2 %v15924_v58  ;;  %9979 = vmatpush.bf16.msra.mxu0 %v15380_v4  ;;  %v15633_v39 = vld [vmem:[#allocation10 + $0x4e8] sm:$0xf0]  ;;  %v9739_v14 = vpop.f32.mrf.mxu1 }
 0x54e   :  { %v18574_v12 = vld [vmem:[#allocation10 + $0x64c] sm:$0xf]  ;;  %v15636_v50 = vor.u32 %v18526_v45, %v15633_v39 }
 0x54f   :  { %9990 = vmatpush.bf16.msra.mxu1 %v15700_v10  ;;  %v15825_v6 = vld [vmem:[#allocation10 + $0x668] sm:$0xf0]  ;;  %9967 = vmatpush.bf16.msra.mxu3 %v15092_v36 }
 0x550   :  { %v18374_v46 = vld [vmem:[#allocation10 + $0xc] sm:$0xf]  ;;  %v15828_v57 = vor.u32 %v18574_v12, %v15825_v6 }
 0x551   :  { %10005 = vmatpush.bf16.msra.mxu2 %v15892_v0  ;;  %9980 = vmatpush.bf16.msra.mxu0 %v15348_v32  ;;  %v15025_v1 = vld [vmem:[#allocation10 + $0x28] sm:$0xf0] }
 0x552   :  { %v18438_v22 = vld [vmem:[#allocation10 + $0x20c] sm:$0xf]  ;;  %v15028_v34 = vor.u32 %v18374_v46, %v15025_v1 }
 0x553   :  { %9991 = vmatpush.bf16.msra.mxu1 %v15668_v38  ;;  %v15281_v33 = vld [vmem:[#allocation10 + $0x228] sm:$0xf0]  ;;  %9968 = vmatpush.bf16.msra.mxu3 %v15060_v42 }
 0x554   :  { %v18518_v24 = vld [vmem:[#allocation10 + $0x48c] sm:$0xf]  ;;  %v15284_v4 = vor.u32 %v18438_v22, %v15281_v33 }
 0x555   :  { %10006 = vmatpush.bf16.msra.mxu2 %v15860_v37  ;;  %v15601_v55 = vld [vmem:[#allocation10 + $0x4a8] sm:$0xf0]  ;;  %9981 = vmatpush.bf16.msra.mxu0 %v15316_v29 }
 0x556   :  { %v18566_v58 = vld [vmem:[#allocation10 + $0x60c] sm:$0xf]  ;;  %v15604_v9 = vor.u32 %v18518_v24, %v15601_v55 }
 0x557   :  { %v15793_v61 = vld [vmem:[#allocation10 + $0x628] sm:$0xf0]  ;;  %9992 = vmatpush.bf16.msra.mxu1 %v15636_v50  ;;  %9969 = vmatpush.bf16.msra.mxu3 %v15028_v34 }
 0x558   :  { %v18686_v5 = vld [vmem:[#allocation10 + $0x9cc] sm:$0xf]  ;;  %v15796_v10 = vor.u32 %v18566_v58, %v15793_v61  ;;  %v9776_v61 = vpop.f32.mrf.mxu0 }
 0x559   :  { %v16273_v63 = vld [vmem:[#allocation10 + $0x9e8] sm:$0xf0]  ;;  %10007 = vmatpush.bf16.msra.mxu2 %v15828_v57  ;;  %9982 = vmatpush.bf16.msra.mxu0 %v15284_v4 }
 0x55a   :  { %v18750_v49 = vld [vmem:[#allocation10 + $0xbcc] sm:$0xf]  ;;  %v16276_v0 = vor.u32 %v18686_v5, %v16273_v63  ;;  %9970 = vmatmul.bf16.vlgmr.msra.gmra.mxu3 %v19679_v41 }
 0x55b   :  { %v16529_v47 = vld [vmem:[#allocation10 + $0xbe8] sm:$0xf0]  ;;  %9993 = vmatpush.bf16.msra.mxu1 %v15604_v9  ;;  %v7047_v9 = vperm.slane %v19734_v19, 1 }
 0x55c   :  { %v18878_v2 = vld [vmem:[#allocation10 + $0xfcc] sm:$0xf]  ;;  %v16532_v15 = vor.u32 %v18750_v49, %v16529_v47  ;;  %10014 = vmatpush.bf16.msrb.mxu3 %v16276_v0  ;;  %9983 = vmatmul.bf16.vlgmr.msra.gmra.mxu0 %v19681_v62 }
 0x55d   :  { %v17041_v7 = vld [vmem:[#allocation10 + $0xfe8] sm:$0xf0]  ;;  %10008 = vmatpush.bf16.msra.mxu2 %v15796_v10 }
 0x55e   :  { %v18510_v43 = vld [vmem:[#allocation10 + $0x44c] sm:$0xf]  ;;  %v17044_v28 = vor.u32 %v18878_v2, %v17041_v7  ;;  %10027 = vmatpush.bf16.msrb.mxu0 %v16532_v15 }
 0x55f   :  { %v15569_v13 = vld [vmem:[#allocation10 + $0x468] sm:$0xf0] }
 0x560   :  { %v18678_v3 = vld [vmem:[#allocation10 + $0x98c] sm:$0xf]  ;;  %v15572_v27 = vor.u32 %v18510_v43, %v15569_v13  ;;  %10009 = vmatmul.bf16.vlgmr.msra.gmra.mxu2 %v19683_v56 }
 0x561   :  { %v16241_v60 = vld [vmem:[#allocation10 + $0x9a8] sm:$0xf0]  ;;  %10053 = vmatpush.bf16.msrb.mxu2 %v17044_v28 }
 0x562   :  { %v18742_v17 = vld [vmem:[#allocation10 + $0xb8c] sm:$0xf]  ;;  %v16244_v32 = vor.u32 %v18678_v3, %v16241_v60  ;;  %9994 = vmatpush.bf16.msra.mxu1 %v15572_v27  ;;  %v9763_v3 = vpop.f32.mrf.mxu3 }
 0x563   :  { %v16497_v48 = vld [vmem:[#allocation10 + $0xba8] sm:$0xf0] }
 0x564   :  { %v18870_v25 = vld [vmem:[#allocation10 + $0xf8c] sm:$0xf]  ;;  %v16500_v30 = vor.u32 %v18742_v17, %v16497_v48  ;;  %10015 = vmatpush.bf16.msrb.mxu3 %v16244_v32 }
 0x565   :  { %v17009_v26 = vld [vmem:[#allocation10 + $0xfa8] sm:$0xf0] }
 0x566   :  { %v18502_v36 = vld [vmem:[#allocation10 + $0x40c] sm:$0xf]  ;;  %v17012_v37 = vor.u32 %v18870_v25, %v17009_v26  ;;  %10028 = vmatpush.bf16.msrb.mxu0 %v16500_v30  ;;  %v9764_v25 = vadd.f32 %v9763_v3, %v7047_v9  ;;  %v9802_v26 = vpop.f32.mrf.mxu2  ;;  %v16023_v3 = vld [vmem:[#allocation10 + $0x7d0] sm:$0xf] }
 0x567   :  { %v15537_v20 = vld [vmem:[#allocation10 + $0x428] sm:$0xf0] }
 0x568   :  { %v18670_v35 = vld [vmem:[#allocation10 + $0x94c] sm:$0xf]  ;;  %v15540_v42 = vor.u32 %v18502_v36, %v15537_v20  ;;  %10054 = vmatpush.bf16.msrb.mxu2 %v17012_v37  ;;  %v9789_v37 = vpop.f32.mrf.mxu1 }
 0x569   :  { %v16209_v38 = vld [vmem:[#allocation10 + $0x968] sm:$0xf0] }
 0x56a   :  { %v18734_v23 = vld [vmem:[#allocation10 + $0xb4c] sm:$0xf]  ;;  %v16212_v29 = vor.u32 %v18670_v35, %v16209_v38  ;;  %9995 = vmatpush.bf16.msra.mxu1 %v15540_v42  ;;  %v9778_v35 = vpop.f32.mrf.mxu0  ;;  %v9777_v38 = vadd.f32 %v9776_v61, %v9764_v25 }
 0x56b   :  { %v16465_v52 = vld [vmem:[#allocation10 + $0xb68] sm:$0xf0]  ;;  %v15991_v35 = vld [vmem:[#allocation10 + $0x790] sm:$0xf] }
 0x56c   :  { %v18814_v45 = vld [vmem:[#allocation10 + $0xdcc] sm:$0xf]  ;;  %v16468_v21 = vor.u32 %v18734_v23, %v16465_v52  ;;  %10016 = vmatpush.bf16.msrb.mxu3 %v16212_v29 }
 0x56d   :  { %v16785_v39 = vld [vmem:[#allocation10 + $0xde8] sm:$0xf0]  ;;  %9996 = vmatmul.bf16.vlgmr.msra.gmra.mxu1 %v19689_v11 }
 0x56e   :  { %v18862_v12 = vld [vmem:[#allocation10 + $0xf4c] sm:$0xf]  ;;  %v16788_v22 = vor.u32 %v18814_v45, %v16785_v39  ;;  %10029 = vmatpush.bf16.msrb.mxu0 %v16468_v21 }
 0x56f   :  { %v16977_v6 = vld [vmem:[#allocation10 + $0xf68] sm:$0xf0] }
 0x570   :  { %v18662_v46 = vld [vmem:[#allocation10 + $0x90c] sm:$0xf]  ;;  %v16980_v50 = vor.u32 %v18862_v12, %v16977_v6  ;;  %10040 = vmatpush.bf16.msrb.mxu1 %v16788_v22  ;;  %v9790_v12 = vadd.f32 %v9789_v37, %v9777_v38  ;;  %v9791_v9 = vpop.f32.mrf.mxu1  ;;  %v18619_v38 = vld [vmem:[#allocation10 + $0x7ac] sm:$0xf0] }
 0x571   :  { %v16177_v1 = vld [vmem:[#allocation10 + $0x928] sm:$0xf0] }
 0x572   :  { %v18726_v57 = vld [vmem:[#allocation10 + $0xb0c] sm:$0xf]  ;;  %v16180_v5 = vor.u32 %v18662_v46, %v16177_v1  ;;  %10055 = vmatpush.bf16.msrb.mxu2 %v16980_v50 }
 0x573   :  { %v16433_v53 = vld [vmem:[#allocation10 + $0xb28] sm:$0xf0] }
 0x574   :  { %v18806_v33 = vld [vmem:[#allocation10 + $0xd8c] sm:$0xf]  ;;  %v16436_v14 = vor.u32 %v18726_v57, %v16433_v53  ;;  %10017 = vmatpush.bf16.msrb.mxu3 %v16180_v5  ;;  %v19752_v57 = vadd.f32 %v9802_v26, %v9790_v12  ;;  %v15191_v12 = vld [vmem:[#allocation10 + $0x150] sm:$0xf] }
 0x575   :  { %v16753_v24 = vld [vmem:[#allocation10 + $0xda8] sm:$0xf0] }
 0x576   :  { %v18854_v55 = vld [vmem:[#allocation10 + $0xf0c] sm:$0xf]  ;;  %v16756_v34 = vor.u32 %v18806_v33, %v16753_v24  ;;  %10030 = vmatpush.bf16.msrb.mxu0 %v16436_v14  ;;  %v9765_v24 = vpop.f32.mrf.mxu3 }
 0x577   :  { %v16945_v58 = vld [vmem:[#allocation10 + $0xf28] sm:$0xf0] }
 0x578   :  { %v18654_v63 = vld [vmem:[#allocation10 + $0x8cc] sm:$0xf]  ;;  %v16948_v4 = vor.u32 %v18854_v55, %v16945_v58  ;;  %10041 = vmatpush.bf16.msrb.mxu1 %v16756_v34 }
 0x579   :  { %v16145_v49 = vld [vmem:[#allocation10 + $0x8e8] sm:$0xf0] }
 0x57a   :  { %v18718_v47 = vld [vmem:[#allocation10 + $0xacc] sm:$0xf]  ;;  %v16148_v43 = vor.u32 %v18654_v63, %v16145_v49  ;;  %10056 = vmatpush.bf16.msrb.mxu2 %v16948_v4  ;;  %v9804_v63 = vpop.f32.mrf.mxu2 }
 0x57b   :  { %v16401_v2 = vld [vmem:[#allocation10 + $0xae8] sm:$0xf0]  ;;  %v18475_v63 = vld [vmem:[#allocation10 + $0x32c] sm:$0xf0] }
 0x57c   :  { %v18798_v7 = vld [vmem:[#allocation10 + $0xd4c] sm:$0xf]  ;;  %v16404_v13 = vor.u32 %v18718_v47, %v16401_v2  ;;  %10018 = vmatpush.bf16.msrb.mxu3 %v16148_v43 }
 0x57d   :  { %v16721_v10 = vld [vmem:[#allocation10 + $0xd68] sm:$0xf0] }
 0x57e   :  { %v18846_v0 = vld [vmem:[#allocation10 + $0xecc] sm:$0xf]  ;;  %v16724_v17 = vor.u32 %v18798_v7, %v16721_v10  ;;  %10031 = vmatpush.bf16.msrb.mxu0 %v16404_v13  ;;  %v15255_v7 = vld [vmem:[#allocation10 + $0x1d0] sm:$0xf] }
 0x57f   :  { %v16913_v15 = vld [vmem:[#allocation10 + $0xee8] sm:$0xf0]  ;;  %v18435_v10 = vld [vmem:[#allocation10 + $0x1ec] sm:$0xf0] }
 0x580   :  { %v18646_v28 = vld [vmem:[#allocation10 + $0x88c] sm:$0xf]  ;;  %v16916_v48 = vor.u32 %v18846_v0, %v16913_v15  ;;  %10042 = vmatpush.bf16.msrb.mxu1 %v16724_v17  ;;  %v15511_v0 = vld [vmem:[#allocation10 + $0x3d0] sm:$0xf] }
 0x581   :  { %v16113_v60 = vld [vmem:[#allocation10 + $0x8a8] sm:$0xf0]  ;;  %v18499_v15 = vld [vmem:[#allocation10 + $0x3ec] sm:$0xf0] }
 0x582   :  { %v18710_v27 = vld [vmem:[#allocation10 + $0xa8c] sm:$0xf]  ;;  %v16116_v23 = vor.u32 %v18646_v28, %v16113_v60  ;;  %10057 = vmatpush.bf16.msrb.mxu2 %v16916_v48  ;;  %v18627_v28 = vld [vmem:[#allocation10 + $0x7ec] sm:$0xf0]  ;;  %v15256_v48 = vor.u32 %v18435_v10, %v15255_v7  ;;  %v15512_v25 = vor.u32 %v18499_v15, %v15511_v0 }
 0x583   :  { %v16369_v19 = vld [vmem:[#allocation10 + $0xaa8] sm:$0xf0]  ;;  %v15127_v10 = vld [vmem:[#allocation10 + $0xd0] sm:$0xf] }
 0x584   :  { %v18790_v36 = vld [vmem:[#allocation10 + $0xd0c] sm:$0xf]  ;;  %v16372_v52 = vor.u32 %v18710_v27, %v16369_v19  ;;  %10019 = vmatpush.bf16.msrb.mxu3 %v16116_v23  ;;  %v15223_v19 = vld [vmem:[#allocation10 + $0x190] sm:$0xf] }
 0x585   :  { %v16689_v32 = vld [vmem:[#allocation10 + $0xd28] sm:$0xf0]  ;;  %v18403_v0 = vld [vmem:[#allocation10 + $0xec] sm:$0xf0] }
 0x586   :  { %v18838_v30 = vld [vmem:[#allocation10 + $0xe8c] sm:$0xf]  ;;  %v16692_v6 = vor.u32 %v18790_v36, %v16689_v32  ;;  %10032 = vmatpush.bf16.msrb.mxu0 %v16372_v52  ;;  %v16024_v36 = vor.u32 %v18627_v28, %v16023_v3  ;;  %v18427_v32 = vld [vmem:[#allocation10 + $0x1ac] sm:$0xf0] }
 0x587   :  { %v16881_v20 = vld [vmem:[#allocation10 + $0xea8] sm:$0xf0]  ;;  %v15224_v52 = vor.u32 %v18427_v32, %v15223_v19  ;;  %v18467_v3 = vld [vmem:[#allocation10 + $0x2ec] sm:$0xf0] }
 0x588   :  { %v18638_v45 = vld [vmem:[#allocation10 + $0x84c] sm:$0xf]  ;;  %v16884_v42 = vor.u32 %v18838_v30, %v16881_v20  ;;  %10043 = vmatpush.bf16.msrb.mxu1 %v16692_v6  ;;  %v15479_v30 = vld [vmem:[#allocation10 + $0x390] sm:$0xf] }
 0x589   :  { %v16081_v39 = vld [vmem:[#allocation10 + $0x868] sm:$0xf0]  ;;  %v18491_v20 = vld [vmem:[#allocation10 + $0x3ac] sm:$0xf0] }
 0x58a   :  { %v18702_v29 = vld [vmem:[#allocation10 + $0xa4c] sm:$0xf]  ;;  %v16084_v53 = vor.u32 %v18638_v45, %v16081_v39  ;;  %10058 = vmatpush.bf16.msrb.mxu2 %v16884_v42  ;;  %v15480_v45 = vor.u32 %v18491_v20, %v15479_v30  ;;  %v18419_v6 = vld [vmem:[#allocation10 + $0x16c] sm:$0xf0]  ;;  %v15992_v42 = vor.u32 %v18619_v38, %v15991_v35  ;;  %v9854_v35 = vpop.f32.mrf.mxu2 }
 0x58b   :  { %v16337_v21 = vld [vmem:[#allocation10 + $0xa68] sm:$0xf0]  ;;  %v15703_v28 = vld [vmem:[#allocation10 + $0x550] sm:$0xf] }
 0x58c   :  { %v18782_v46 = vld [vmem:[#allocation10 + $0xccc] sm:$0xf]  ;;  %v16340_v33 = vor.u32 %v18702_v29, %v16337_v21  ;;  %10020 = vmatpush.bf16.msrb.mxu3 %v16084_v53  ;;  %v15447_v29 = vld [vmem:[#allocation10 + $0x350] sm:$0xf] }
 0x58d   :  { %v16657_v1 = vld [vmem:[#allocation10 + $0xce8] sm:$0xf0]  ;;  %v18483_v21 = vld [vmem:[#allocation10 + $0x36c] sm:$0xf0] }
 0x58e   :  { %v18830_v22 = vld [vmem:[#allocation10 + $0xe4c] sm:$0xf]  ;;  %v16660_v5 = vor.u32 %v18782_v46, %v16657_v1  ;;  %10033 = vmatpush.bf16.msrb.mxu0 %v16340_v33  ;;  %v15767_v46 = vld [vmem:[#allocation10 + $0x5d0] sm:$0xf]  ;;  %v15192_v33 = vor.u32 %v18419_v6, %v15191_v12  ;;  %v15448_v24 = vor.u32 %v18483_v21, %v15447_v29 }
 0x58f   :  { %v16849_v50 = vld [vmem:[#allocation10 + $0xe68] sm:$0xf0]  ;;  %v18563_v1 = vld [vmem:[#allocation10 + $0x5ec] sm:$0xf0] }
 0x590   :  { %v18630_v55 = vld [vmem:[#allocation10 + $0x80c] sm:$0xf]  ;;  %v16852_v14 = vor.u32 %v18830_v22, %v16849_v50  ;;  %10044 = vmatpush.bf16.msrb.mxu1 %v16660_v5  ;;  %v15959_v22 = vld [vmem:[#allocation10 + $0x750] sm:$0xf] }
 0x591   :  { %v16049_v58 = vld [vmem:[#allocation10 + $0x828] sm:$0xf0]  ;;  %v18611_v50 = vld [vmem:[#allocation10 + $0x76c] sm:$0xf0] }
 0x592   :  { %v18694_v61 = vld [vmem:[#allocation10 + $0xa0c] sm:$0xf]  ;;  %v16052_v43 = vor.u32 %v18630_v55, %v16049_v58  ;;  %10059 = vmatpush.bf16.msrb.mxu2 %v16852_v14  ;;  %v15159_v55 = vld [vmem:[#allocation10 + $0x110] sm:$0xf]  ;;  %v15960_v5 = vor.u32 %v18611_v50, %v15959_v22 }
 0x593   :  { %v16305_v49 = vld [vmem:[#allocation10 + $0xa28] sm:$0xf0]  ;;  %v18411_v58 = vld [vmem:[#allocation10 + $0x12c] sm:$0xf0] }
 0x594   :  { %v18774_v47 = vld [vmem:[#allocation10 + $0xc8c] sm:$0xf]  ;;  %v16308_v13 = vor.u32 %v18694_v61, %v16305_v49  ;;  %10021 = vmatpush.bf16.msrb.mxu3 %v16052_v43  ;;  %v15768_v61 = vor.u32 %v18563_v1, %v15767_v46  ;;  %v15415_v14 = vld [vmem:[#allocation10 + $0x310] sm:$0xf]  ;;  %v15160_v7 = vor.u32 %v18411_v58, %v15159_v55 }
 0x595   :  { %v16625_v34 = vld [vmem:[#allocation10 + $0xca8] sm:$0xf0]  ;;  %v15735_v49 = vld [vmem:[#allocation10 + $0x590] sm:$0xf]  ;;  %v15416_v9 = vor.u32 %v18475_v63, %v15415_v14 }
 0x596   :  { %v18822_v4 = vld [vmem:[#allocation10 + $0xe0c] sm:$0xf]  ;;  %v16628_v60 = vor.u32 %v18774_v47, %v16625_v34  ;;  %10034 = vmatpush.bf16.msrb.mxu0 %v16308_v13  ;;  %v18555_v47 = vld [vmem:[#allocation10 + $0x5ac] sm:$0xf0] }
 0x597   :  { %v16817_v2 = vld [vmem:[#allocation10 + $0xe28] sm:$0xf0]  ;;  %10022 = vmatmul.bf16.vlgmr.msrb.gmra.mxu3 %v19700_v59  ;;  %v15927_v34 = vld [vmem:[#allocation10 + $0x710] sm:$0xf]  ;;  %v15736_v15 = vor.u32 %v18555_v47, %v15735_v49 }
 0x598   :  { %v16820_v17 = vor.u32 %v18822_v4, %v16817_v2  ;;  %v18766_v26 = vld [vmem:[#allocation10 + $0xc4c] sm:$0xf]  ;;  %10045 = vmatpush.bf16.msrb.mxu1 %v16628_v60  ;;  %10066 = vmatpush.bf16.msra.mxu3 %v15256_v48  ;;  %v18603_v4 = vld [vmem:[#allocation10 + $0x72c] sm:$0xf0]  ;;  %v9828_v2 = vpop.f32.mrf.mxu0 }
 0x599   :  { %v16593_v27 = vld [vmem:[#allocation10 + $0xc68] sm:$0xf0]  ;;  %10035 = vmatmul.bf16.vlgmr.msrb.gmra.mxu0 %v19702_v44  ;;  %v15928_v43 = vor.u32 %v18603_v4, %v15927_v34  ;;  %v15383_v13 = vld [vmem:[#allocation10 + $0x2d0] sm:$0xf] }
 0x59a   :  { %10060 = vmatpush.bf16.msrb.mxu2 %v16820_v17  ;;  %v16596_v37 = vor.u32 %v18766_v26, %v16593_v27  ;;  %v18758_v23 = vld [vmem:[#allocation10 + $0xc0c] sm:$0xf]  ;;  %10079 = vmatpush.bf16.msra.mxu0 %v15512_v25  ;;  %v18547_v60 = vld [vmem:[#allocation10 + $0x56c] sm:$0xf0]  ;;  %v15128_v25 = vor.u32 %v18403_v0, %v15127_v10  ;;  %v15384_v26 = vor.u32 %v18467_v3, %v15383_v13  ;;  %v9815_v27 = vpop.f32.mrf.mxu3 }
 0x59b   :  { %v16561_v39 = vld [vmem:[#allocation10 + $0xc28] sm:$0xf0]  ;;  %v15895_v17 = vld [vmem:[#allocation10 + $0x6d0] sm:$0xf]  ;;  %v15704_v32 = vor.u32 %v18547_v60, %v15703_v28  ;;  %v9816_v20 = vadd.f32 %v9815_v27, %v19752_v57 }
 0x59c   :  { %10046 = vmatpush.bf16.msrb.mxu1 %v16596_v37  ;;  %v16564_v53 = vor.u32 %v18758_v23, %v16561_v39  ;;  %10067 = vmatpush.bf16.msra.mxu3 %v15224_v52  ;;  %v18595_v48 = vld [vmem:[#allocation10 + $0x6ec] sm:$0xf0] }
 0x59d   :  { %10061 = vmatmul.bf16.vlgmr.msrb.gmra.mxu2 %v19704_v51  ;;  %v15095_v19 = vld [vmem:[#allocation10 + $0x90] sm:$0xf]  ;;  %v15896_v30 = vor.u32 %v18595_v48, %v15895_v17  ;;  %v9829_v6 = vadd.f32 %v9828_v2, %v9816_v20 }
 0x59e   :  { %10105 = vmatpush.bf16.msra.mxu2 %v16024_v36  ;;  %10080 = vmatpush.bf16.msra.mxu0 %v15480_v45  ;;  %v18395_v36 = vld [vmem:[#allocation10 + $0xac] sm:$0xf0] }
 0x59f   :  { %v15351_v38 = vld [vmem:[#allocation10 + $0x290] sm:$0xf]  ;;  %v15096_v29 = vor.u32 %v18395_v36, %v15095_v19 }
 0x5a0   :  { %10047 = vmatpush.bf16.msrb.mxu1 %v16564_v53  ;;  %10068 = vmatpush.bf16.msra.mxu3 %v15192_v33  ;;  %v18459_v37 = vld [vmem:[#allocation10 + $0x2ac] sm:$0xf0]  ;;  %v9830_v12 = vpop.f32.mrf.mxu0 }
 0x5a1   :  { %v15671_v23 = vld [vmem:[#allocation10 + $0x510] sm:$0xf]  ;;  %v15352_v21 = vor.u32 %v18459_v37, %v15351_v38 }
 0x5a2   :  { %10106 = vmatpush.bf16.msra.mxu2 %v15992_v42  ;;  %10081 = vmatpush.bf16.msra.mxu0 %v15448_v24  ;;  %v18539_v52 = vld [vmem:[#allocation10 + $0x52c] sm:$0xf0]  ;;  %v9841_v42 = vpop.f32.mrf.mxu1  ;;  %v9817_v49 = vpop.f32.mrf.mxu3 }
 0x5a3   :  { %10048 = vmatmul.bf16.vlgmr.msrb.gmra.mxu1 %v19710_v8  ;;  %v15863_v45 = vld [vmem:[#allocation10 + $0x690] sm:$0xf]  ;;  %v9842_v22 = vadd.f32 %v9841_v42, %v9829_v6  ;;  %v15672_v57 = vor.u32 %v18539_v52, %v15671_v23 }
 0x5a4   :  { %10092 = vmatpush.bf16.msra.mxu1 %v15768_v61  ;;  %10069 = vmatpush.bf16.msra.mxu3 %v15160_v7  ;;  %v18587_v39 = vld [vmem:[#allocation10 + $0x6ac] sm:$0xf0] }
 0x5a5   :  { %v15063_v46 = vld [vmem:[#allocation10 + $0x50] sm:$0xf]  ;;  %v15864_v50 = vor.u32 %v18587_v39, %v15863_v45 }
 0x5a6   :  { %10107 = vmatpush.bf16.msra.mxu2 %v15960_v5  ;;  %10082 = vmatpush.bf16.msra.mxu0 %v15416_v9  ;;  %v18387_v1 = vld [vmem:[#allocation10 + $0x6c] sm:$0xf0]  ;;  %v9855_v5 = vadd.f32 %v9854_v35, %v9842_v22  ;;  %v9856_v9 = vpop.f32.mrf.mxu2 }
 0x5a7   :  { %v15319_v53 = vld [vmem:[#allocation10 + $0x250] sm:$0xf]  ;;  %v15064_v14 = vor.u32 %v18387_v1, %v15063_v46 }
 0x5a8   :  { %10093 = vmatpush.bf16.msra.mxu1 %v15736_v15  ;;  %10070 = vmatpush.bf16.msra.mxu3 %v15128_v25  ;;  %v18451_v33 = vld [vmem:[#allocation10 + $0x26c] sm:$0xf0]  ;;  %19076 = vtanh.f32 %v9855_v5 }
 0x5a9   :  { %v15639_v24 = vld [vmem:[#allocation10 + $0x4d0] sm:$0xf]  ;;  %v15320_v63 = vor.u32 %v18451_v33, %v15319_v53 }
 0x5aa   :  { %10108 = vmatpush.bf16.msra.mxu2 %v15928_v43  ;;  %10083 = vmatpush.bf16.msra.mxu0 %v15384_v26  ;;  %v18531_v55 = vld [vmem:[#allocation10 + $0x4ec] sm:$0xf0]  ;;  %v9843_v3 = vpop.f32.mrf.mxu1 }
 0x5ab   :  { %v15831_v58 = vld [vmem:[#allocation10 + $0x650] sm:$0xf]  ;;  %v15640_v2 = vor.u32 %v18531_v55, %v15639_v24 }
 0x5ac   :  { %10094 = vmatpush.bf16.msra.mxu1 %v15704_v32  ;;  %v18579_v61 = vld [vmem:[#allocation10 + $0x66c] sm:$0xf0]  ;;  %10071 = vmatpush.bf16.msra.mxu3 %v15096_v29  ;;  %v19075_v32 = vpop.eup %19074 }
 0x5ad   :  { %v15031_v47 = vld [vmem:[#allocation10 + $0x10] sm:$0xf]  ;;  %v15832_v7 = vor.u32 %v18579_v61, %v15831_v58 }
 0x5ae   :  { %10109 = vmatpush.bf16.msra.mxu2 %v15896_v30  ;;  %10084 = vmatpush.bf16.msra.mxu0 %v15352_v21  ;;  %v18379_v34 = vld [vmem:[#allocation10 + $0x2c] sm:$0xf0]  ;;  %v19077_v23 = vpop.eup %19076 }
 0x5af   :  { %v15287_v4 = vld [vmem:[#allocation10 + $0x210] sm:$0xf]  ;;  %v15032_v48 = vor.u32 %v18379_v34, %v15031_v47  ;;  %v19760_v6 = vpack.c.bf16 %v19077_v23, %v19075_v32  ;;  %v9867_v23 = vpop.f32.mrf.mxu3 }
 0x5b0   :  { %10095 = vmatpush.bf16.msra.mxu1 %v15672_v57  ;;  %v18443_v10 = vld [vmem:[#allocation10 + $0x22c] sm:$0xf0]  ;;  %10072 = vmatpush.bf16.msra.mxu3 %v15064_v14 }
 0x5b1   :  { %v15607_v0 = vld [vmem:[#allocation10 + $0x490] sm:$0xf]  ;;  %v15288_v25 = vor.u32 %v18443_v10, %v15287_v4 }
 0x5b2   :  { %10110 = vmatpush.bf16.msra.mxu2 %v15864_v50  ;;  %v18523_v15 = vld [vmem:[#allocation10 + $0x4ac] sm:$0xf0]  ;;  %10085 = vmatpush.bf16.msra.mxu0 %v15320_v63 }
 0x5b3   :  { %v15799_v43 = vld [vmem:[#allocation10 + $0x610] sm:$0xf]  ;;  %v15608_v19 = vor.u32 %v18523_v15, %v15607_v0 }
 0x5b4   :  { %v18571_v13 = vld [vmem:[#allocation10 + $0x62c] sm:$0xf0]  ;;  %10096 = vmatpush.bf16.msra.mxu1 %v15640_v2  ;;  %10073 = vmatpush.bf16.msra.mxu3 %v15032_v48 }
 0x5b5   :  { %v18691_v28 = vld [vmem:[#allocation10 + $0x9ec] sm:$0xf0]  ;;  %v15800_v36 = vor.u32 %v18571_v13, %v15799_v43 }
 0x5b6   :  { %v16535_v60 = vld [vmem:[#allocation10 + $0xbd0] sm:$0xf]  ;;  %10111 = vmatpush.bf16.msra.mxu2 %v15832_v7  ;;  %v16280_v30 = vor.u32 %v18691_v28, %v16279_v40  ;;  %10086 = vmatpush.bf16.msra.mxu0 %v15288_v25  ;;  %v9880_v40 = vpop.f32.mrf.mxu0 }
 0x5b7   :  { %v18755_v17 = vld [vmem:[#allocation10 + $0xbec] sm:$0xf0]  ;;  %10074 = vmatmul.bf16.vlgmr.msra.gmra.mxu3 %v19679_v41 }
 0x5b8   :  { %v17047_v26 = vld [vmem:[#allocation10 + $0xfd0] sm:$0xf]  ;;  %v16536_v20 = vor.u32 %v18755_v17, %v16535_v60  ;;  %10097 = vmatpush.bf16.msra.mxu1 %v15608_v19  ;;  %10118 = vmatpush.bf16.msrb.mxu3 %v16280_v30 }
 0x5b9   :  { %v18883_v27 = vld [vmem:[#allocation10 + $0xfec] sm:$0xf0]  ;;  %10087 = vmatmul.bf16.vlgmr.msra.gmra.mxu0 %v19681_v62 }
 0x5ba   :  { %v15575_v35 = vld [vmem:[#allocation10 + $0x450] sm:$0xf]  ;;  %v17048_v52 = vor.u32 %v18883_v27, %v17047_v26  ;;  %10112 = vmatpush.bf16.msra.mxu2 %v15800_v36  ;;  %10131 = vmatpush.bf16.msrb.mxu0 %v16536_v20  ;;  %v19765_v36 = vld [vmem:[#allocation12] sm:$0xff] }
 0x5bb   :  { %v18515_v38 = vld [vmem:[#allocation10 + $0x46c] sm:$0xf0]  ;;  %v7048_v32 = vperm.slane %v19765_v36, 2 }
 0x5bc   :  { %v16247_v37 = vld [vmem:[#allocation10 + $0x990] sm:$0xf]  ;;  %v15576_v21 = vor.u32 %v18515_v38, %v15575_v35 }
 0x5bd   :  { %v18683_v45 = vld [vmem:[#allocation10 + $0x9ac] sm:$0xf0]  ;;  %10113 = vmatmul.bf16.vlgmr.msra.gmra.mxu2 %v19683_v56 }
 0x5be   :  { %v16503_v39 = vld [vmem:[#allocation10 + $0xb90] sm:$0xf]  ;;  %v16248_v1 = vor.u32 %v18683_v45, %v16247_v37  ;;  %10157 = vmatpush.bf16.msrb.mxu2 %v17048_v52  ;;  %10098 = vmatpush.bf16.msra.mxu1 %v15576_v21 }
 0x5bf   :  { %v18747_v12 = vld [vmem:[#allocation10 + $0xbac] sm:$0xf0] }
 0x5c0   :  { %v17015_v42 = vld [vmem:[#allocation10 + $0xf90] sm:$0xf]  ;;  %v16504_v22 = vor.u32 %v18747_v12, %v16503_v39  ;;  %10119 = vmatpush.bf16.msrb.mxu3 %v16248_v1 }
 0x5c1   :  { %v18875_v29 = vld [vmem:[#allocation10 + $0xfac] sm:$0xf0] }
 0x5c2   :  { %v15543_v46 = vld [vmem:[#allocation10 + $0x410] sm:$0xf]  ;;  %v17016_v33 = vor.u32 %v18875_v29, %v17015_v42  ;;  %10132 = vmatpush.bf16.msrb.mxu0 %v16504_v22  ;;  %v9868_v42 = vadd.f32 %v9867_v23, %v7048_v32  ;;  %v9906_v29 = vpop.f32.mrf.mxu2  ;;  %v18431_v32 = vld [vmem:[#allocation10 + $0x1d4] sm:$0xf] }
 0x5c3   :  { %v18507_v57 = vld [vmem:[#allocation10 + $0x42c] sm:$0xf0] }
 0x5c4   :  { %v16215_v50 = vld [vmem:[#allocation10 + $0x950] sm:$0xf]  ;;  %v15544_v63 = vor.u32 %v18507_v57, %v15543_v46  ;;  %10158 = vmatpush.bf16.msrb.mxu2 %v17016_v33  ;;  %v9881_v33 = vadd.f32 %v9880_v40, %v9868_v42 }
 0x5c5   :  { %v18675_v53 = vld [vmem:[#allocation10 + $0x96c] sm:$0xf0] }
 0x5c6   :  { %v16471_v24 = vld [vmem:[#allocation10 + $0xb50] sm:$0xf]  ;;  %v16216_v49 = vor.u32 %v18675_v53, %v16215_v50  ;;  %10099 = vmatpush.bf16.msra.mxu1 %v15544_v63  ;;  %v9882_v53 = vpop.f32.mrf.mxu0 }
 0x5c7   :  { %v18739_v55 = vld [vmem:[#allocation10 + $0xb6c] sm:$0xf0]  ;;  %v15481_v53 = vld [vmem:[#allocation10 + $0x3b0] sm:$0xf0] }
 0x5c8   :  { %v16791_v58 = vld [vmem:[#allocation10 + $0xdd0] sm:$0xf]  ;;  %v16472_v47 = vor.u32 %v18739_v55, %v16471_v24  ;;  %10120 = vmatpush.bf16.msrb.mxu3 %v16216_v49  ;;  %v9893_v24 = vpop.f32.mrf.mxu1 }
 0x5c9   :  { %v18819_v61 = vld [vmem:[#allocation10 + $0xdec] sm:$0xf0]  ;;  %10100 = vmatmul.bf16.vlgmr.msra.gmra.mxu1 %v19689_v11 }
 0x5ca   :  { %v16983_v5 = vld [vmem:[#allocation10 + $0xf50] sm:$0xf]  ;;  %v16792_v2 = vor.u32 %v18819_v61, %v16791_v58  ;;  %10133 = vmatpush.bf16.msrb.mxu0 %v16472_v47 }
 0x5cb   :  { %v18867_v14 = vld [vmem:[#allocation10 + $0xf6c] sm:$0xf0] }
 0x5cc   :  { %v16183_v34 = vld [vmem:[#allocation10 + $0x910] sm:$0xf]  ;;  %v16984_v7 = vor.u32 %v18867_v14, %v16983_v5  ;;  %10144 = vmatpush.bf16.msrb.mxu1 %v16792_v2  ;;  %v9894_v14 = vadd.f32 %v9893_v24, %v9881_v33  ;;  %v18615_v33 = vld [vmem:[#allocation10 + $0x794] sm:$0xf] }
 0x5cd   :  { %v18667_v4 = vld [vmem:[#allocation10 + $0x92c] sm:$0xf0]  ;;  %v15993_v24 = vld [vmem:[#allocation10 + $0x7b0] sm:$0xf0] }
 0x5ce   :  { %v16439_v9 = vld [vmem:[#allocation10 + $0xb10] sm:$0xf]  ;;  %v16184_v3 = vor.u32 %v18667_v4, %v16183_v34  ;;  %10159 = vmatpush.bf16.msrb.mxu2 %v16984_v7 }
 0x5cf   :  { %v18731_v10 = vld [vmem:[#allocation10 + $0xb2c] sm:$0xf0] }
 0x5d0   :  { %v16759_v0 = vld [vmem:[#allocation10 + $0xd90] sm:$0xf]  ;;  %v16440_v28 = vor.u32 %v18731_v10, %v16439_v9  ;;  %10121 = vmatpush.bf16.msrb.mxu3 %v16184_v3  ;;  %v19769_v10 = vadd.f32 %v9906_v29, %v9894_v14 }
 0x5d1   :  { %v18811_v15 = vld [vmem:[#allocation10 + $0xdac] sm:$0xf0] }
 0x5d2   :  { %v16951_v43 = vld [vmem:[#allocation10 + $0xf10] sm:$0xf]  ;;  %v16760_v25 = vor.u32 %v18811_v15, %v16759_v0  ;;  %10134 = vmatpush.bf16.msrb.mxu0 %v16440_v28 }
 0x5d3   :  { %v18859_v13 = vld [vmem:[#allocation10 + $0xf2c] sm:$0xf0] }
 0x5d4   :  { %v16151_v60 = vld [vmem:[#allocation10 + $0x8d0] sm:$0xf]  ;;  %v16952_v26 = vor.u32 %v18859_v13, %v16951_v43  ;;  %10145 = vmatpush.bf16.msrb.mxu1 %v16760_v25  ;;  %v9869_v43 = vpop.f32.mrf.mxu3 }
 0x5d5   :  { %v18659_v17 = vld [vmem:[#allocation10 + $0x8ec] sm:$0xf0] }
 0x5d6   :  { %v16407_v48 = vld [vmem:[#allocation10 + $0xad0] sm:$0xf]  ;;  %v16152_v38 = vor.u32 %v18659_v17, %v16151_v60  ;;  %10160 = vmatpush.bf16.msrb.mxu2 %v16952_v26  ;;  %v9908_v17 = vpop.f32.mrf.mxu2 }
 0x5d7   :  { %v18723_v27 = vld [vmem:[#allocation10 + $0xaec] sm:$0xf0]  ;;  %v18471_v17 = vld [vmem:[#allocation10 + $0x314] sm:$0xf] }
 0x5d8   :  { %v16727_v19 = vld [vmem:[#allocation10 + $0xd50] sm:$0xf]  ;;  %v16408_v37 = vor.u32 %v18723_v27, %v16407_v48  ;;  %10122 = vmatpush.bf16.msrb.mxu3 %v16152_v38  ;;  %v15513_v38 = vld [vmem:[#allocation10 + $0x3f0] sm:$0xf0] }
 0x5d9   :  { %v18803_v30 = vld [vmem:[#allocation10 + $0xd6c] sm:$0xf0] }
 0x5da   :  { %v16919_v20 = vld [vmem:[#allocation10 + $0xed0] sm:$0xf]  ;;  %v16728_v39 = vor.u32 %v18803_v30, %v16727_v19  ;;  %10135 = vmatpush.bf16.msrb.mxu0 %v16408_v37  ;;  %v9895_v30 = vpop.f32.mrf.mxu1 }
 0x5db   :  { %v18851_v35 = vld [vmem:[#allocation10 + $0xeec] sm:$0xf0] }
 0x5dc   :  { %v16119_v52 = vld [vmem:[#allocation10 + $0x890] sm:$0xf]  ;;  %v16920_v12 = vor.u32 %v18851_v35, %v16919_v20  ;;  %10146 = vmatpush.bf16.msrb.mxu1 %v16728_v39  ;;  %v15257_v20 = vld [vmem:[#allocation10 + $0x1f0] sm:$0xf0] }
 0x5dd   :  { %v18651_v45 = vld [vmem:[#allocation10 + $0x8ac] sm:$0xf0]  ;;  %v18495_v35 = vld [vmem:[#allocation10 + $0x3d4] sm:$0xf]  ;;  %v15260_v42 = vor.u32 %v18431_v32, %v15257_v20  ;;  %v9932_v32 = vpop.f32.mrf.mxu0 }
 0x5de   :  { %v16375_v21 = vld [vmem:[#allocation10 + $0xa90] sm:$0xf]  ;;  %v16120_v55 = vor.u32 %v18651_v45, %v16119_v52  ;;  %10161 = vmatpush.bf16.msrb.mxu2 %v16920_v12  ;;  %v18623_v52 = vld [vmem:[#allocation10 + $0x7d4] sm:$0xf]  ;;  %v15516_v29 = vor.u32 %v18495_v35, %v15513_v38 }
 0x5df   :  { %v18715_v46 = vld [vmem:[#allocation10 + $0xaac] sm:$0xf0]  ;;  %v16025_v45 = vld [vmem:[#allocation10 + $0x7f0] sm:$0xf0] }
 0x5e0   :  { %v16695_v1 = vld [vmem:[#allocation10 + $0xd10] sm:$0xf]  ;;  %v16376_v58 = vor.u32 %v18715_v46, %v16375_v21  ;;  %10123 = vmatpush.bf16.msrb.mxu3 %v16120_v55  ;;  %v18399_v35 = vld [vmem:[#allocation10 + $0xd4] sm:$0xf] }
 0x5e1   :  { %v18795_v22 = vld [vmem:[#allocation10 + $0xd2c] sm:$0xf0]  ;;  %v15129_v38 = vld [vmem:[#allocation10 + $0xf0] sm:$0xf0] }
 0x5e2   :  { %v16887_v57 = vld [vmem:[#allocation10 + $0xe90] sm:$0xf]  ;;  %v16696_v63 = vor.u32 %v18795_v22, %v16695_v1  ;;  %10136 = vmatpush.bf16.msrb.mxu0 %v16376_v58  ;;  %v18423_v1 = vld [vmem:[#allocation10 + $0x194] sm:$0xf]  ;;  %v16028_v22 = vor.u32 %v18623_v52, %v16025_v45 }
 0x5e3   :  { %v18843_v50 = vld [vmem:[#allocation10 + $0xeac] sm:$0xf0]  ;;  %v18463_v52 = vld [vmem:[#allocation10 + $0x2d4] sm:$0xf] }
 0x5e4   :  { %v16087_v61 = vld [vmem:[#allocation10 + $0x850] sm:$0xf]  ;;  %v16888_v49 = vor.u32 %v18843_v50, %v16887_v57  ;;  %10147 = vmatpush.bf16.msrb.mxu1 %v16696_v63  ;;  %v15225_v57 = vld [vmem:[#allocation10 + $0x1b0] sm:$0xf0] }
 0x5e5   :  { %v18643_v5 = vld [vmem:[#allocation10 + $0x86c] sm:$0xf0]  ;;  %v18487_v50 = vld [vmem:[#allocation10 + $0x394] sm:$0xf] }
 0x5e6   :  { %v16343_v47 = vld [vmem:[#allocation10 + $0xa50] sm:$0xf]  ;;  %v16088_v0 = vor.u32 %v18643_v5, %v16087_v61  ;;  %10162 = vmatpush.bf16.msrb.mxu2 %v16888_v49  ;;  %v15228_v61 = vor.u32 %v18423_v1, %v15225_v57  ;;  %v15484_v5 = vor.u32 %v18487_v50, %v15481_v53  ;;  %v18415_v63 = vld [vmem:[#allocation10 + $0x154] sm:$0xf]  ;;  %v9919_v1 = vpop.f32.mrf.mxu3 }
 0x5e7   :  { %v18707_v34 = vld [vmem:[#allocation10 + $0xa6c] sm:$0xf0]  ;;  %v15193_v49 = vld [vmem:[#allocation10 + $0x170] sm:$0xf0] }
 0x5e8   :  { %v16663_v4 = vld [vmem:[#allocation10 + $0xcd0] sm:$0xf]  ;;  %v16344_v15 = vor.u32 %v18707_v34, %v16343_v47  ;;  %10124 = vmatpush.bf16.msrb.mxu3 %v16088_v0  ;;  %v15996_v47 = vor.u32 %v18615_v33, %v15993_v24  ;;  %v18479_v34 = vld [vmem:[#allocation10 + $0x354] sm:$0xf]  ;;  %v15196_v43 = vor.u32 %v18415_v63, %v15193_v49  ;;  %v9920_v33 = vadd.f32 %v9919_v1, %v19769_v10  ;;  %v9958_v24 = vpop.f32.mrf.mxu2  ;;  %v9934_v49 = vpop.f32.mrf.mxu0 }
 0x5e9   :  { %v18787_v2 = vld [vmem:[#allocation10 + $0xcec] sm:$0xf0]  ;;  %v15961_v0 = vld [vmem:[#allocation10 + $0x770] sm:$0xf0] }
 0x5ea   :  { %v16855_v7 = vld [vmem:[#allocation10 + $0xe50] sm:$0xf]  ;;  %v16664_v28 = vor.u32 %v18787_v2, %v16663_v4  ;;  %10137 = vmatpush.bf16.msrb.mxu0 %v16344_v15  ;;  %v15449_v4 = vld [vmem:[#allocation10 + $0x370] sm:$0xf0] }
 0x5eb   :  { %v18835_v9 = vld [vmem:[#allocation10 + $0xe6c] sm:$0xf0]  ;;  %v18559_v2 = vld [vmem:[#allocation10 + $0x5d4] sm:$0xf] }
 0x5ec   :  { %v16055_v13 = vld [vmem:[#allocation10 + $0x810] sm:$0xf]  ;;  %v16856_v60 = vor.u32 %v18835_v9, %v16855_v7  ;;  %10148 = vmatpush.bf16.msrb.mxu1 %v16664_v28  ;;  %v15769_v7 = vld [vmem:[#allocation10 + $0x5f0] sm:$0xf0] }
 0x5ed   :  { %v18635_v40 = vld [vmem:[#allocation10 + $0x82c] sm:$0xf0]  ;;  %v18607_v9 = vld [vmem:[#allocation10 + $0x754] sm:$0xf]  ;;  %v15772_v28 = vor.u32 %v18559_v2, %v15769_v7 }
 0x5ee   :  { %v16311_v3 = vld [vmem:[#allocation10 + $0xa10] sm:$0xf]  ;;  %v16056_v37 = vor.u32 %v18635_v40, %v16055_v13  ;;  %10163 = vmatpush.bf16.msrb.mxu2 %v16856_v60  ;;  %v15452_v13 = vor.u32 %v18479_v34, %v15449_v4  ;;  %v18407_v40 = vld [vmem:[#allocation10 + $0x114] sm:$0xf]  ;;  %v15964_v60 = vor.u32 %v18607_v9, %v15961_v0  ;;  %v9945_v34 = vpop.f32.mrf.mxu1 }
 0x5ef   :  { %v18699_v48 = vld [vmem:[#allocation10 + $0xa2c] sm:$0xf0]  ;;  %v15385_v45 = vld [vmem:[#allocation10 + $0x2f0] sm:$0xf0] }
 0x5f0   :  { %v16631_v25 = vld [vmem:[#allocation10 + $0xc90] sm:$0xf]  ;;  %v16312_v23 = vor.u32 %v18699_v48, %v16311_v3  ;;  %10125 = vmatpush.bf16.msrb.mxu3 %v16056_v37  ;;  %v15161_v3 = vld [vmem:[#allocation10 + $0x130] sm:$0xf0] }
 0x5f1   :  { %v18779_v26 = vld [vmem:[#allocation10 + $0xcac] sm:$0xf0]  ;;  %v15417_v48 = vld [vmem:[#allocation10 + $0x330] sm:$0xf0]  ;;  %v15164_v30 = vor.u32 %v18407_v40, %v15161_v3 }
 0x5f2   :  { %v16823_v27 = vld [vmem:[#allocation10 + $0xe10] sm:$0xf]  ;;  %v16632_v39 = vor.u32 %v18779_v26, %v16631_v25  ;;  %10138 = vmatpush.bf16.msrb.mxu0 %v16312_v23  ;;  %v18551_v25 = vld [vmem:[#allocation10 + $0x594] sm:$0xf]  ;;  %v15420_v20 = vor.u32 %v18471_v17, %v15417_v48 }
 0x5f3   :  { %v18827_v19 = vld [vmem:[#allocation10 + $0xe2c] sm:$0xf0]  ;;  %10126 = vmatmul.bf16.vlgmr.msrb.gmra.mxu3 %v19700_v59  ;;  %v15737_v26 = vld [vmem:[#allocation10 + $0x5b0] sm:$0xf0] }
 0x5f4   :  { %v16824_v12 = vor.u32 %v18827_v19, %v16823_v27  ;;  %v16599_v21 = vld [vmem:[#allocation10 + $0xc50] sm:$0xf]  ;;  %10149 = vmatpush.bf16.msrb.mxu1 %v16632_v39  ;;  %10170 = vmatpush.bf16.msra.mxu3 %v15260_v42  ;;  %v18599_v27 = vld [vmem:[#allocation10 + $0x714] sm:$0xf]  ;;  %v15740_v37 = vor.u32 %v18551_v25, %v15737_v26  ;;  %v9921_v26 = vpop.f32.mrf.mxu3 }
 0x5f5   :  { %v18771_v46 = vld [vmem:[#allocation10 + $0xc6c] sm:$0xf0]  ;;  %10139 = vmatmul.bf16.vlgmr.msrb.gmra.mxu0 %v19702_v44  ;;  %v15929_v19 = vld [vmem:[#allocation10 + $0x730] sm:$0xf0] }
 0x5f6   :  { %10164 = vmatpush.bf16.msrb.mxu2 %v16824_v12  ;;  %v16600_v55 = vor.u32 %v18771_v46, %v16599_v21  ;;  %v16567_v58 = vld [vmem:[#allocation10 + $0xc10] sm:$0xf]  ;;  %10183 = vmatpush.bf16.msra.mxu0 %v15516_v29  ;;  %v15932_v23 = vor.u32 %v18599_v27, %v15929_v19  ;;  %v18543_v39 = vld [vmem:[#allocation10 + $0x554] sm:$0xf]  ;;  %v15132_v21 = vor.u32 %v18399_v35, %v15129_v38  ;;  %v9960_v35 = vpop.f32.mrf.mxu2 }
 0x5f7   :  { %v18763_v14 = vld [vmem:[#allocation10 + $0xc2c] sm:$0xf0]  ;;  %v15705_v12 = vld [vmem:[#allocation10 + $0x570] sm:$0xf0]  ;;  %v15388_v46 = vor.u32 %v18463_v52, %v15385_v45 }
 0x5f8   :  { %10150 = vmatpush.bf16.msrb.mxu1 %v16600_v55  ;;  %v16568_v15 = vor.u32 %v18763_v14, %v16567_v58  ;;  %10171 = vmatpush.bf16.msra.mxu3 %v15228_v61  ;;  %v18591_v42 = vld [vmem:[#allocation10 + $0x6d4] sm:$0xf]  ;;  %v15708_v50 = vor.u32 %v18543_v39, %v15705_v12  ;;  %v9947_v12 = vpop.f32.mrf.mxu1 }
 0x5f9   :  { %10165 = vmatmul.bf16.vlgmr.msrb.gmra.mxu2 %v19704_v51  ;;  %v15897_v29 = vld [vmem:[#allocation10 + $0x6f0] sm:$0xf0] }
 0x5fa   :  { %10209 = vmatpush.bf16.msra.mxu2 %v16028_v22  ;;  %10184 = vmatpush.bf16.msra.mxu0 %v15484_v5  ;;  %v18391_v22 = vld [vmem:[#allocation10 + $0x94] sm:$0xf]  ;;  %v15900_v53 = vor.u32 %v18591_v42, %v15897_v29 }
 0x5fb   :  { %v15097_v57 = vld [vmem:[#allocation10 + $0xb0] sm:$0xf0] }
 0x5fc   :  { %10151 = vmatpush.bf16.msrb.mxu1 %v16568_v15  ;;  %10172 = vmatpush.bf16.msra.mxu3 %v15196_v43  ;;  %v18455_v55 = vld [vmem:[#allocation10 + $0x294] sm:$0xf]  ;;  %v15100_v4 = vor.u32 %v18391_v22, %v15097_v57 }
 0x5fd   :  { %v15353_v58 = vld [vmem:[#allocation10 + $0x2b0] sm:$0xf0] }
 0x5fe   :  { %10210 = vmatpush.bf16.msra.mxu2 %v15996_v47  ;;  %10185 = vmatpush.bf16.msra.mxu0 %v15452_v13  ;;  %v18535_v61 = vld [vmem:[#allocation10 + $0x514] sm:$0xf]  ;;  %v9933_v47 = vadd.f32 %v9932_v32, %v9920_v33  ;;  %v15356_v2 = vor.u32 %v18455_v55, %v15353_v58 }
 0x5ff   :  { %10152 = vmatmul.bf16.vlgmr.msrb.gmra.mxu1 %v19710_v8  ;;  %v15673_v5 = vld [vmem:[#allocation10 + $0x530] sm:$0xf0] }
 0x600   :  { %10196 = vmatpush.bf16.msra.mxu1 %v15772_v28  ;;  %10173 = vmatpush.bf16.msra.mxu3 %v15164_v30  ;;  %v18583_v14 = vld [vmem:[#allocation10 + $0x694] sm:$0xf]  ;;  %v9946_v0 = vadd.f32 %v9945_v34, %v9933_v47  ;;  %v15676_v10 = vor.u32 %v18535_v61, %v15673_v5 }
 0x601   :  { %v15865_v63 = vld [vmem:[#allocation10 + $0x6b0] sm:$0xf0] }
 0x602   :  { %10211 = vmatpush.bf16.msra.mxu2 %v15964_v60  ;;  %10186 = vmatpush.bf16.msra.mxu0 %v15420_v20  ;;  %v18383_v7 = vld [vmem:[#allocation10 + $0x54] sm:$0xf]  ;;  %v15868_v15 = vor.u32 %v18583_v14, %v15865_v63  ;;  %v19776_v17 = vadd.f32 %v9958_v24, %v9946_v0 }
 0x603   :  { %v15065_v9 = vld [vmem:[#allocation10 + $0x70] sm:$0xf0] }
 0x604   :  { %10197 = vmatpush.bf16.msra.mxu1 %v15740_v37  ;;  %10174 = vmatpush.bf16.msra.mxu3 %v15132_v21  ;;  %v18447_v43 = vld [vmem:[#allocation10 + $0x254] sm:$0xf]  ;;  %v15068_v48 = vor.u32 %v18383_v7, %v15065_v9  ;;  %19078 = vtanh.f32 %v19776_v17  ;;  %v16287_v17 = vld [vmem:[#allocation10 + $0x9d8] sm:$0xf] }
 0x605   :  { %v15321_v13 = vld [vmem:[#allocation10 + $0x270] sm:$0xf0] }
 0x606   :  { %10212 = vmatpush.bf16.msra.mxu2 %v15932_v23  ;;  %10187 = vmatpush.bf16.msra.mxu0 %v15388_v46  ;;  %v18527_v40 = vld [vmem:[#allocation10 + $0x4d4] sm:$0xf]  ;;  %v15324_v25 = vor.u32 %v18447_v43, %v15321_v13 }
 0x607   :  { %v15641_v3 = vld [vmem:[#allocation10 + $0x4f0] sm:$0xf0] }
 0x608   :  { %10198 = vmatpush.bf16.msra.mxu1 %v15708_v50  ;;  %v18575_v28 = vld [vmem:[#allocation10 + $0x654] sm:$0xf]  ;;  %10175 = vmatpush.bf16.msra.mxu3 %v15100_v4  ;;  %v15644_v30 = vor.u32 %v18527_v40, %v15641_v3 }
 0x609   :  { %v15833_v60 = vld [vmem:[#allocation10 + $0x670] sm:$0xf0] }
 0x60a   :  { %10213 = vmatpush.bf16.msra.mxu2 %v15900_v53  ;;  %10188 = vmatpush.bf16.msra.mxu0 %v15356_v2  ;;  %v18375_v27 = vld [vmem:[#allocation10 + $0x14] sm:$0xf]  ;;  %v15836_v20 = vor.u32 %v18575_v28, %v15833_v60 }
 0x60b   :  { %v15033_v19 = vld [vmem:[#allocation10 + $0x30] sm:$0xf0] }
 0x60c   :  { %v18439_v32 = vld [vmem:[#allocation10 + $0x214] sm:$0xf]  ;;  %10199 = vmatpush.bf16.msra.mxu1 %v15676_v10  ;;  %10176 = vmatpush.bf16.msra.mxu3 %v15068_v48  ;;  %v15036_v46 = vor.u32 %v18375_v27, %v15033_v19 }
 0x60d   :  { %v15289_v38 = vld [vmem:[#allocation10 + $0x230] sm:$0xf0] }
 0x60e   :  { %10214 = vmatpush.bf16.msra.mxu2 %v15868_v15  ;;  %v18519_v37 = vld [vmem:[#allocation10 + $0x494] sm:$0xf]  ;;  %10189 = vmatpush.bf16.msra.mxu0 %v15324_v25  ;;  %v15292_v1 = vor.u32 %v18439_v32, %v15289_v38 }
 0x60f   :  { %v15609_v23 = vld [vmem:[#allocation10 + $0x4b0] sm:$0xf0] }
 0x610   :  { %v18567_v52 = vld [vmem:[#allocation10 + $0x614] sm:$0xf]  ;;  %10200 = vmatpush.bf16.msra.mxu1 %v15644_v30  ;;  %v15612_v50 = vor.u32 %v18519_v37, %v15609_v23  ;;  %10177 = vmatpush.bf16.msra.mxu3 %v15036_v46 }
 0x611   :  { %v15801_v45 = vld [vmem:[#allocation10 + $0x630] sm:$0xf0] }
 0x612   :  { %v18687_v39 = vld [vmem:[#allocation10 + $0x9d4] sm:$0xf]  ;;  %10215 = vmatpush.bf16.msra.mxu2 %v15836_v20  ;;  %v15804_v53 = vor.u32 %v18567_v52, %v15801_v45  ;;  %10190 = vmatpush.bf16.msra.mxu0 %v15292_v1 }
 0x613   :  { %v16281_v42 = vld [vmem:[#allocation10 + $0x9f0] sm:$0xf0]  ;;  %10178 = vmatmul.bf16.vlgmr.msra.gmra.mxu3 %v19679_v41 }
 0x614   :  { %v18751_v29 = vld [vmem:[#allocation10 + $0xbd4] sm:$0xf]  ;;  %v16284_v33 = vor.u32 %v18687_v39, %v16281_v42  ;;  %10201 = vmatpush.bf16.msra.mxu1 %v15612_v50  ;;  %v9984_v39 = vpop.f32.mrf.mxu0 }
 0x615   :  { %v16537_v21 = vld [vmem:[#allocation10 + $0xbf0] sm:$0xf0]  ;;  %10191 = vmatmul.bf16.vlgmr.msra.gmra.mxu0 %v19681_v62 }
 0x616   :  { %v18879_v22 = vld [vmem:[#allocation10 + $0xfd4] sm:$0xf]  ;;  %v16540_v24 = vor.u32 %v18751_v29, %v16537_v21  ;;  %10216 = vmatpush.bf16.msra.mxu2 %v15804_v53  ;;  %10222 = vmatpush.bf16.msrb.mxu3 %v16284_v33  ;;  %v7049_v53 = vperm.slane %v19765_v36, 3 }
 0x617   :  { %v17049_v57 = vld [vmem:[#allocation10 + $0xff0] sm:$0xf0] }
 0x618   :  { %v18511_v55 = vld [vmem:[#allocation10 + $0x454] sm:$0xf]  ;;  %v17052_v5 = vor.u32 %v18879_v22, %v17049_v57  ;;  %10235 = vmatpush.bf16.msrb.mxu0 %v16540_v24 }
 0x619   :  { %v15577_v58 = vld [vmem:[#allocation10 + $0x470] sm:$0xf0]  ;;  %10217 = vmatmul.bf16.vlgmr.msra.gmra.mxu2 %v19683_v56 }
 0x61a   :  { %v18679_v61 = vld [vmem:[#allocation10 + $0x994] sm:$0xf]  ;;  %v15580_v4 = vor.u32 %v18511_v55, %v15577_v58  ;;  %10261 = vmatpush.bf16.msrb.mxu2 %v17052_v5  ;;  %v9971_v5 = vpop.f32.mrf.mxu3 }
 0x61b   :  { %v16249_v14 = vld [vmem:[#allocation10 + $0x9b0] sm:$0xf0] }
 0x61c   :  { %v18743_v63 = vld [vmem:[#allocation10 + $0xb94] sm:$0xf]  ;;  %v16252_v7 = vor.u32 %v18679_v61, %v16249_v14  ;;  %10202 = vmatpush.bf16.msra.mxu1 %v15580_v4  ;;  %v10010_v4 = vpop.f32.mrf.mxu2 }
 0x61d   :  { %v16505_v49 = vld [vmem:[#allocation10 + $0xbb0] sm:$0xf0] }
 0x61e   :  { %v18871_v47 = vld [vmem:[#allocation10 + $0xf94] sm:$0xf]  ;;  %v16508_v9 = vor.u32 %v18743_v63, %v16505_v49  ;;  %10223 = vmatpush.bf16.msrb.mxu3 %v16252_v7 }
 0x61f   :  { %v17017_v34 = vld [vmem:[#allocation10 + $0xfb0] sm:$0xf0] }
 0x620   :  { %v18503_v2 = vld [vmem:[#allocation10 + $0x414] sm:$0xf]  ;;  %v17020_v43 = vor.u32 %v18871_v47, %v17017_v34  ;;  %10236 = vmatpush.bf16.msrb.mxu0 %v16508_v9  ;;  %v9972_v34 = vadd.f32 %v9971_v5, %v7049_v53  ;;  %v15263_v53 = vld [vmem:[#allocation10 + $0x1d8] sm:$0xf] }
 0x621   :  { %v15545_v0 = vld [vmem:[#allocation10 + $0x430] sm:$0xf0] }
 0x622   :  { %v18671_v10 = vld [vmem:[#allocation10 + $0x954] sm:$0xf]  ;;  %v15548_v25 = vor.u32 %v18503_v2, %v15545_v0  ;;  %10262 = vmatpush.bf16.msrb.mxu2 %v17020_v43  ;;  %v9985_v43 = vadd.f32 %v9984_v39, %v9972_v34 }
 0x623   :  { %v16217_v15 = vld [vmem:[#allocation10 + $0x970] sm:$0xf0] }
 0x624   :  { %v18735_v13 = vld [vmem:[#allocation10 + $0xb54] sm:$0xf]  ;;  %v16220_v26 = vor.u32 %v18671_v10, %v16217_v15  ;;  %10203 = vmatpush.bf16.msra.mxu1 %v15548_v25  ;;  %v9986_v15 = vpop.f32.mrf.mxu0 }
 0x625   :  { %v16473_v40 = vld [vmem:[#allocation10 + $0xb70] sm:$0xf0]  ;;  %v18492_v15 = vld [vmem:[#allocation10 + $0x3b4] sm:$0xf0] }
 0x626   :  { %v18815_v3 = vld [vmem:[#allocation10 + $0xdd4] sm:$0xf]  ;;  %v16476_v27 = vor.u32 %v18735_v13, %v16473_v40  ;;  %10224 = vmatpush.bf16.msrb.mxu3 %v16220_v26  ;;  %v9997_v13 = vpop.f32.mrf.mxu1 }
 0x627   :  { %v16793_v28 = vld [vmem:[#allocation10 + $0xdf0] sm:$0xf0]  ;;  %10204 = vmatmul.bf16.vlgmr.msra.gmra.mxu1 %v19689_v11 }
 0x628   :  { %v18863_v60 = vld [vmem:[#allocation10 + $0xf54] sm:$0xf]  ;;  %v16796_v30 = vor.u32 %v18815_v3, %v16793_v28  ;;  %10237 = vmatpush.bf16.msrb.mxu0 %v16476_v27 }
 0x629   :  { %v16985_v48 = vld [vmem:[#allocation10 + $0xf70] sm:$0xf0] }
 0x62a   :  { %v18663_v19 = vld [vmem:[#allocation10 + $0x914] sm:$0xf]  ;;  %v16988_v20 = vor.u32 %v18863_v60, %v16985_v48  ;;  %10248 = vmatpush.bf16.msrb.mxu1 %v16796_v30  ;;  %v9998_v48 = vadd.f32 %v9997_v13, %v9985_v43  ;;  %v15999_v43 = vld [vmem:[#allocation10 + $0x798] sm:$0xf] }
 0x62b   :  { %v16185_v32 = vld [vmem:[#allocation10 + $0x930] sm:$0xf0]  ;;  %v18620_v13 = vld [vmem:[#allocation10 + $0x7b4] sm:$0xf0] }
 0x62c   :  { %v18727_v35 = vld [vmem:[#allocation10 + $0xb14] sm:$0xf]  ;;  %v16188_v12 = vor.u32 %v18663_v19, %v16185_v32  ;;  %10263 = vmatpush.bf16.msrb.mxu2 %v16988_v20 }
 0x62d   :  { %v16441_v38 = vld [vmem:[#allocation10 + $0xb30] sm:$0xf0] }
 0x62e   :  { %v18807_v37 = vld [vmem:[#allocation10 + $0xd94] sm:$0xf]  ;;  %v16444_v42 = vor.u32 %v18727_v35, %v16441_v38  ;;  %10225 = vmatpush.bf16.msrb.mxu3 %v16188_v12  ;;  %v19783_v38 = vadd.f32 %v10010_v4, %v9998_v48 }
 0x62f   :  { %v16761_v23 = vld [vmem:[#allocation10 + $0xdb0] sm:$0xf0] }
 0x630   :  { %v18855_v52 = vld [vmem:[#allocation10 + $0xf14] sm:$0xf]  ;;  %v16764_v1 = vor.u32 %v18807_v37, %v16761_v23  ;;  %10238 = vmatpush.bf16.msrb.mxu0 %v16444_v42 }
 0x631   :  { %v16953_v45 = vld [vmem:[#allocation10 + $0xf30] sm:$0xf0] }
 0x632   :  { %v18655_v29 = vld [vmem:[#allocation10 + $0x8d4] sm:$0xf]  ;;  %v16956_v22 = vor.u32 %v18855_v52, %v16953_v45  ;;  %10249 = vmatpush.bf16.msrb.mxu1 %v16764_v1  ;;  %v9973_v52 = vpop.f32.mrf.mxu3 }
 0x633   :  { %v16153_v21 = vld [vmem:[#allocation10 + $0x8f0] sm:$0xf0] }
 0x634   :  { %v18719_v46 = vld [vmem:[#allocation10 + $0xad4] sm:$0xf]  ;;  %v16156_v58 = vor.u32 %v18655_v29, %v16153_v21  ;;  %10264 = vmatpush.bf16.msrb.mxu2 %v16956_v22  ;;  %v10012_v21 = vpop.f32.mrf.mxu2 }
 0x635   :  { %v16409_v57 = vld [vmem:[#allocation10 + $0xaf0] sm:$0xf0]  ;;  %v15423_v21 = vld [vmem:[#allocation10 + $0x318] sm:$0xf] }
 0x636   :  { %v18799_v50 = vld [vmem:[#allocation10 + $0xd54] sm:$0xf]  ;;  %v16412_v61 = vor.u32 %v18719_v46, %v16409_v57  ;;  %10226 = vmatpush.bf16.msrb.mxu3 %v16156_v58  ;;  %v18500_v58 = vld [vmem:[#allocation10 + $0x3f4] sm:$0xf0] }
 0x637   :  { %v16729_v33 = vld [vmem:[#allocation10 + $0xd70] sm:$0xf0] }
 0x638   :  { %v18847_v24 = vld [vmem:[#allocation10 + $0xed4] sm:$0xf]  ;;  %v16732_v49 = vor.u32 %v18799_v50, %v16729_v33  ;;  %10239 = vmatpush.bf16.msrb.mxu0 %v16412_v61  ;;  %v9999_v33 = vpop.f32.mrf.mxu1 }
 0x639   :  { %v16921_v55 = vld [vmem:[#allocation10 + $0xef0] sm:$0xf0] }
 0x63a   :  { %v18647_v14 = vld [vmem:[#allocation10 + $0x894] sm:$0xf]  ;;  %v16924_v47 = vor.u32 %v18847_v24, %v16921_v55  ;;  %10250 = vmatpush.bf16.msrb.mxu1 %v16732_v49  ;;  %v18436_v24 = vld [vmem:[#allocation10 + $0x1f4] sm:$0xf0] }
 0x63b   :  { %v16121_v63 = vld [vmem:[#allocation10 + $0x8b0] sm:$0xf0]  ;;  %v15519_v55 = vld [vmem:[#allocation10 + $0x3d8] sm:$0xf]  ;;  %v15264_v34 = vor.u32 %v18436_v24, %v15263_v53  ;;  %v10036_v53 = vpop.f32.mrf.mxu0 }
 0x63c   :  { %v18711_v2 = vld [vmem:[#allocation10 + $0xa94] sm:$0xf]  ;;  %v16124_v40 = vor.u32 %v18647_v14, %v16121_v63  ;;  %10265 = vmatpush.bf16.msrb.mxu2 %v16924_v47  ;;  %v16031_v14 = vld [vmem:[#allocation10 + $0x7d8] sm:$0xf]  ;;  %v15520_v4 = vor.u32 %v18500_v58, %v15519_v55 }
 0x63d   :  { %v16377_v36 = vld [vmem:[#allocation10 + $0xab0] sm:$0xf0]  ;;  %v18628_v63 = vld [vmem:[#allocation10 + $0x7f4] sm:$0xf0] }
 0x63e   :  { %v18791_v7 = vld [vmem:[#allocation10 + $0xd14] sm:$0xf]  ;;  %v16380_v3 = vor.u32 %v18711_v2, %v16377_v36  ;;  %10227 = vmatpush.bf16.msrb.mxu3 %v16124_v40  ;;  %v15135_v55 = vld [vmem:[#allocation10 + $0xd8] sm:$0xf] }
 0x63f   :  { %v16697_v9 = vld [vmem:[#allocation10 + $0xd30] sm:$0xf0]  ;;  %v18404_v58 = vld [vmem:[#allocation10 + $0xf4] sm:$0xf0] }
 0x640   :  { %v18839_v0 = vld [vmem:[#allocation10 + $0xe94] sm:$0xf]  ;;  %v16700_v25 = vor.u32 %v18791_v7, %v16697_v9  ;;  %10240 = vmatpush.bf16.msrb.mxu0 %v16380_v3  ;;  %v15231_v7 = vld [vmem:[#allocation10 + $0x198] sm:$0xf]  ;;  %v16032_v9 = vor.u32 %v18628_v63, %v16031_v14 }
 0x641   :  { %v16889_v10 = vld [vmem:[#allocation10 + $0xeb0] sm:$0xf0]  ;;  %v15391_v14 = vld [vmem:[#allocation10 + $0x2d8] sm:$0xf] }
 0x642   :  { %v18639_v28 = vld [vmem:[#allocation10 + $0x854] sm:$0xf]  ;;  %v16892_v26 = vor.u32 %v18839_v0, %v16889_v10  ;;  %10251 = vmatpush.bf16.msrb.mxu1 %v16700_v25  ;;  %v18428_v0 = vld [vmem:[#allocation10 + $0x1b4] sm:$0xf0] }
 0x643   :  { %v16089_v60 = vld [vmem:[#allocation10 + $0x870] sm:$0xf0]  ;;  %v15487_v10 = vld [vmem:[#allocation10 + $0x398] sm:$0xf] }
 0x644   :  { %v18703_v27 = vld [vmem:[#allocation10 + $0xa54] sm:$0xf]  ;;  %v16092_v37 = vor.u32 %v18639_v28, %v16089_v60  ;;  %10266 = vmatpush.bf16.msrb.mxu2 %v16892_v26  ;;  %v15232_v28 = vor.u32 %v18428_v0, %v15231_v7  ;;  %v15488_v60 = vor.u32 %v18492_v15, %v15487_v10  ;;  %v15199_v25 = vld [vmem:[#allocation10 + $0x158] sm:$0xf]  ;;  %v10023_v7 = vpop.f32.mrf.mxu3 }
 0x645   :  { %v16345_v19 = vld [vmem:[#allocation10 + $0xa70] sm:$0xf0]  ;;  %v18420_v26 = vld [vmem:[#allocation10 + $0x174] sm:$0xf0] }
 0x646   :  { %v18783_v32 = vld [vmem:[#allocation10 + $0xcd4] sm:$0xf]  ;;  %v16348_v23 = vor.u32 %v18703_v27, %v16345_v19  ;;  %10228 = vmatpush.bf16.msrb.mxu3 %v16092_v37  ;;  %v16000_v27 = vor.u32 %v18620_v13, %v15999_v43  ;;  %v15455_v19 = vld [vmem:[#allocation10 + $0x358] sm:$0xf]  ;;  %v15200_v52 = vor.u32 %v18420_v26, %v15199_v25  ;;  %v10024_v43 = vadd.f32 %v10023_v7, %v19783_v38  ;;  %v10062_v13 = vpop.f32.mrf.mxu2  ;;  %v10038_v26 = vpop.f32.mrf.mxu0 }
 0x647   :  { %v16665_v30 = vld [vmem:[#allocation10 + $0xcf0] sm:$0xf0]  ;;  %v18612_v37 = vld [vmem:[#allocation10 + $0x774] sm:$0xf0] }
 0x648   :  { %v18831_v20 = vld [vmem:[#allocation10 + $0xe54] sm:$0xf]  ;;  %v16668_v42 = vor.u32 %v18783_v32, %v16665_v30  ;;  %10241 = vmatpush.bf16.msrb.mxu0 %v16348_v23  ;;  %v18484_v32 = vld [vmem:[#allocation10 + $0x374] sm:$0xf0] }
 0x649   :  { %v16857_v35 = vld [vmem:[#allocation10 + $0xe70] sm:$0xf0]  ;;  %v15775_v30 = vld [vmem:[#allocation10 + $0x5d8] sm:$0xf] }
 0x64a   :  { %v18631_v45 = vld [vmem:[#allocation10 + $0x814] sm:$0xf]  ;;  %v16860_v29 = vor.u32 %v18831_v20, %v16857_v35  ;;  %10252 = vmatpush.bf16.msrb.mxu1 %v16668_v42  ;;  %v18564_v20 = vld [vmem:[#allocation10 + $0x5f4] sm:$0xf0] }
 0x64b   :  { %v16057_v39 = vld [vmem:[#allocation10 + $0x830] sm:$0xf0]  ;;  %v15967_v35 = vld [vmem:[#allocation10 + $0x758] sm:$0xf]  ;;  %v15776_v42 = vor.u32 %v18564_v20, %v15775_v30 }
 0x64c   :  { %v18695_v12 = vld [vmem:[#allocation10 + $0xa14] sm:$0xf]  ;;  %v16060_v61 = vor.u32 %v18631_v45, %v16057_v39  ;;  %10267 = vmatpush.bf16.msrb.mxu2 %v16860_v29  ;;  %v15456_v45 = vor.u32 %v18484_v32, %v15455_v19  ;;  %v15167_v39 = vld [vmem:[#allocation10 + $0x118] sm:$0xf]  ;;  %v15968_v29 = vor.u32 %v18612_v37, %v15967_v35  ;;  %v10049_v19 = vpop.f32.mrf.mxu1 }
 0x64d   :  { %v16313_v46 = vld [vmem:[#allocation10 + $0xa30] sm:$0xf0]  ;;  %v18468_v63 = vld [vmem:[#allocation10 + $0x2f4] sm:$0xf0] }
 0x64e   :  { %v18775_v1 = vld [vmem:[#allocation10 + $0xc94] sm:$0xf]  ;;  %v16316_v5 = vor.u32 %v18695_v12, %v16313_v46  ;;  %10229 = vmatpush.bf16.msrb.mxu3 %v16060_v61  ;;  %v18412_v12 = vld [vmem:[#allocation10 + $0x134] sm:$0xf0] }
 0x64f   :  { %v16633_v22 = vld [vmem:[#allocation10 + $0xcb0] sm:$0xf0]  ;;  %v18476_v46 = vld [vmem:[#allocation10 + $0x334] sm:$0xf0]  ;;  %v15168_v33 = vor.u32 %v18412_v12, %v15167_v39 }
 0x650   :  { %v18823_v57 = vld [vmem:[#allocation10 + $0xe14] sm:$0xf]  ;;  %v16636_v49 = vor.u32 %v18775_v1, %v16633_v22  ;;  %10242 = vmatpush.bf16.msrb.mxu0 %v16316_v5  ;;  %v15743_v1 = vld [vmem:[#allocation10 + $0x598] sm:$0xf]  ;;  %v15424_v24 = vor.u32 %v18476_v46, %v15423_v21 }
 0x651   :  { %v16825_v50 = vld [vmem:[#allocation10 + $0xe30] sm:$0xf0]  ;;  %10230 = vmatmul.bf16.vlgmr.msrb.gmra.mxu3 %v19700_v59  ;;  %v18556_v22 = vld [vmem:[#allocation10 + $0x5b4] sm:$0xf0] }
 0x652   :  { %v16828_v47 = vor.u32 %v18823_v57, %v16825_v50  ;;  %v18767_v2 = vld [vmem:[#allocation10 + $0xc54] sm:$0xf]  ;;  %10253 = vmatpush.bf16.msrb.mxu1 %v16636_v49  ;;  %10274 = vmatpush.bf16.msra.mxu3 %v15264_v34  ;;  %v15935_v57 = vld [vmem:[#allocation10 + $0x718] sm:$0xf]  ;;  %v15744_v61 = vor.u32 %v18556_v22, %v15743_v1  ;;  %v10025_v22 = vpop.f32.mrf.mxu3 }
 0x653   :  { %v16601_v36 = vld [vmem:[#allocation10 + $0xc70] sm:$0xf0]  ;;  %10243 = vmatmul.bf16.vlgmr.msrb.gmra.mxu0 %v19702_v44  ;;  %v18604_v50 = vld [vmem:[#allocation10 + $0x734] sm:$0xf0] }
 0x654   :  { %10268 = vmatpush.bf16.msrb.mxu2 %v16828_v47  ;;  %v16604_v40 = vor.u32 %v18767_v2, %v16601_v36  ;;  %v18759_v3 = vld [vmem:[#allocation10 + $0xc14] sm:$0xf]  ;;  %10287 = vmatpush.bf16.msra.mxu0 %v15520_v4  ;;  %v15936_v5 = vor.u32 %v18604_v50, %v15935_v57  ;;  %v15711_v49 = vld [vmem:[#allocation10 + $0x558] sm:$0xf]  ;;  %v15136_v2 = vor.u32 %v18404_v58, %v15135_v55  ;;  %v10064_v55 = vpop.f32.mrf.mxu2 }
 0x655   :  { %v16569_v48 = vld [vmem:[#allocation10 + $0xc30] sm:$0xf0]  ;;  %v18548_v47 = vld [vmem:[#allocation10 + $0x574] sm:$0xf0]  ;;  %v15392_v36 = vor.u32 %v18468_v63, %v15391_v14 }
 0x656   :  { %10254 = vmatpush.bf16.msrb.mxu1 %v16604_v40  ;;  %v16572_v23 = vor.u32 %v18759_v3, %v16569_v48  ;;  %10275 = vmatpush.bf16.msra.mxu3 %v15232_v28  ;;  %v15903_v34 = vld [vmem:[#allocation10 + $0x6d8] sm:$0xf]  ;;  %v15712_v10 = vor.u32 %v18548_v47, %v15711_v49  ;;  %v10051_v49 = vpop.f32.mrf.mxu1 }
 0x657   :  { %10269 = vmatmul.bf16.vlgmr.msrb.gmra.mxu2 %v19704_v51  ;;  %v18596_v4 = vld [vmem:[#allocation10 + $0x6f4] sm:$0xf0]  ;;  %v10088_v49 = vpop.f32.mrf.mxu0 }
 0x658   :  { %10313 = vmatpush.bf16.msra.mxu2 %v16032_v9  ;;  %10288 = vmatpush.bf16.msra.mxu0 %v15488_v60  ;;  %v15103_v9 = vld [vmem:[#allocation10 + $0x98] sm:$0xf]  ;;  %v15904_v15 = vor.u32 %v18596_v4, %v15903_v34 }
 0x659   :  { %v18396_v0 = vld [vmem:[#allocation10 + $0xb4] sm:$0xf0] }
 0x65a   :  { %10255 = vmatpush.bf16.msrb.mxu1 %v16572_v23  ;;  %10276 = vmatpush.bf16.msra.mxu3 %v15200_v52  ;;  %v15359_v40 = vld [vmem:[#allocation10 + $0x298] sm:$0xf]  ;;  %v15104_v32 = vor.u32 %v18396_v0, %v15103_v9 }
 0x65b   :  { %v18460_v3 = vld [vmem:[#allocation10 + $0x2b4] sm:$0xf0] }
 0x65c   :  { %10314 = vmatpush.bf16.msra.mxu2 %v16000_v27  ;;  %10289 = vmatpush.bf16.msra.mxu0 %v15456_v45  ;;  %v15679_v28 = vld [vmem:[#allocation10 + $0x518] sm:$0xf]  ;;  %v10037_v27 = vadd.f32 %v10036_v53, %v10024_v43  ;;  %v15360_v30 = vor.u32 %v18460_v3, %v15359_v40 }
 0x65d   :  { %10256 = vmatmul.bf16.vlgmr.msrb.gmra.mxu1 %v19710_v8  ;;  %v18540_v60 = vld [vmem:[#allocation10 + $0x534] sm:$0xf0] }
 0x65e   :  { %10300 = vmatpush.bf16.msra.mxu1 %v15776_v42  ;;  %10277 = vmatpush.bf16.msra.mxu3 %v15168_v33  ;;  %v15871_v48 = vld [vmem:[#allocation10 + $0x698] sm:$0xf]  ;;  %v10050_v37 = vadd.f32 %v10049_v19, %v10037_v27  ;;  %v15680_v38 = vor.u32 %v18540_v60, %v15679_v28 }
 0x65f   :  { %v18588_v25 = vld [vmem:[#allocation10 + $0x6b4] sm:$0xf0] }
 0x660   :  { %10315 = vmatpush.bf16.msra.mxu2 %v15968_v29  ;;  %10290 = vmatpush.bf16.msra.mxu0 %v15424_v24  ;;  %v15071_v20 = vld [vmem:[#allocation10 + $0x58] sm:$0xf]  ;;  %v15872_v23 = vor.u32 %v18588_v25, %v15871_v48  ;;  %v10063_v21 = vadd.f32 %v10062_v13, %v10050_v37 }
 0x661   :  { %v18388_v35 = vld [vmem:[#allocation10 + $0x74] sm:$0xf0] }
 0x662   :  { %10301 = vmatpush.bf16.msra.mxu1 %v15744_v61  ;;  %10278 = vmatpush.bf16.msra.mxu3 %v15136_v2  ;;  %v15327_v52 = vld [vmem:[#allocation10 + $0x258] sm:$0xf]  ;;  %v15072_v46 = vor.u32 %v18388_v35, %v15071_v20  ;;  %19080 = vtanh.f32 %v10063_v21 }
 0x663   :  { %v18452_v45 = vld [vmem:[#allocation10 + $0x274] sm:$0xf0] }
 0x664   :  { %10316 = vmatpush.bf16.msra.mxu2 %v15936_v5  ;;  %10291 = vmatpush.bf16.msra.mxu0 %v15392_v36  ;;  %v15647_v39 = vld [vmem:[#allocation10 + $0x4d8] sm:$0xf]  ;;  %v15328_v1 = vor.u32 %v18452_v45, %v15327_v52 }
 0x665   :  { %v18532_v12 = vld [vmem:[#allocation10 + $0x4f4] sm:$0xf0] }
 0x666   :  { %10302 = vmatpush.bf16.msra.mxu1 %v15712_v10  ;;  %v15839_v42 = vld [vmem:[#allocation10 + $0x658] sm:$0xf]  ;;  %10279 = vmatpush.bf16.msra.mxu3 %v15104_v32  ;;  %v15648_v33 = vor.u32 %v18532_v12, %v15647_v39 }
 0x667   :  { %v18580_v29 = vld [vmem:[#allocation10 + $0x674] sm:$0xf0] }
 0x668   :  { %10317 = vmatpush.bf16.msra.mxu2 %v15904_v15  ;;  %10292 = vmatpush.bf16.msra.mxu0 %v15360_v30  ;;  %v15039_v57 = vld [vmem:[#allocation10 + $0x18] sm:$0xf]  ;;  %v15840_v24 = vor.u32 %v18580_v29, %v15839_v42  ;;  %v19079_v15 = vpop.eup %19078 }
 0x669   :  { %v18380_v50 = vld [vmem:[#allocation10 + $0x34] sm:$0xf0]  ;;  %v19081_v60 = vpop.eup %19080 }
 0x66a   :  { %v15295_v53 = vld [vmem:[#allocation10 + $0x218] sm:$0xf]  ;;  %10303 = vmatpush.bf16.msra.mxu1 %v15680_v38  ;;  %10280 = vmatpush.bf16.msra.mxu3 %v15072_v46  ;;  %v15040_v2 = vor.u32 %v18380_v50, %v15039_v57  ;;  %v19791_v19 = vpack.c.bf16 %v19081_v60, %v19079_v15  ;;  %v19796_v15 = vld [vmem:[#allocation12] sm:$0xff] }
 0x66b   :  { %v18444_v58 = vld [vmem:[#allocation10 + $0x234] sm:$0xf0] }
 0x66c   :  { %10318 = vmatpush.bf16.msra.mxu2 %v15872_v23  ;;  %v15615_v61 = vld [vmem:[#allocation10 + $0x498] sm:$0xf]  ;;  %10293 = vmatpush.bf16.msra.mxu0 %v15328_v1  ;;  %v15296_v36 = vor.u32 %v18444_v58, %v15295_v53 }
 0x66d   :  { %v18524_v5 = vld [vmem:[#allocation10 + $0x4b4] sm:$0xf0] }
 0x66e   :  { %v15807_v14 = vld [vmem:[#allocation10 + $0x618] sm:$0xf]  ;;  %10304 = vmatpush.bf16.msra.mxu1 %v15648_v33  ;;  %v15616_v0 = vor.u32 %v18524_v5, %v15615_v61  ;;  %10281 = vmatpush.bf16.msra.mxu3 %v15040_v2 }
 0x66f   :  { %v18572_v63 = vld [vmem:[#allocation10 + $0x634] sm:$0xf0] }
 0x670   :  { %v18692_v47 = vld [vmem:[#allocation10 + $0x9f4] sm:$0xf0]  ;;  %10319 = vmatpush.bf16.msra.mxu2 %v15840_v24  ;;  %v15808_v10 = vor.u32 %v18572_v63, %v15807_v14  ;;  %10294 = vmatpush.bf16.msra.mxu0 %v15296_v36 }
 0x671   :  { %v16543_v34 = vld [vmem:[#allocation10 + $0xbd8] sm:$0xf]  ;;  %v16288_v43 = vor.u32 %v18692_v47, %v16287_v17  ;;  %10282 = vmatmul.bf16.vlgmr.msra.gmra.mxu3 %v19679_v41 }
 0x672   :  { %v18756_v4 = vld [vmem:[#allocation10 + $0xbf4] sm:$0xf0]  ;;  %10305 = vmatpush.bf16.msra.mxu1 %v15616_v0 }
 0x673   :  { %v17055_v7 = vld [vmem:[#allocation10 + $0xfd8] sm:$0xf]  ;;  %v16544_v13 = vor.u32 %v18756_v4, %v16543_v34  ;;  %10326 = vmatpush.bf16.msrb.mxu3 %v16288_v43  ;;  %10295 = vmatmul.bf16.vlgmr.msra.gmra.mxu0 %v19681_v62  ;;  %v7050_v43 = vperm.slane %v19796_v15, 4 }
 0x674   :  { %v18884_v9 = vld [vmem:[#allocation10 + $0xff4] sm:$0xf0]  ;;  %10320 = vmatpush.bf16.msra.mxu2 %v15808_v10 }
 0x675   :  { %v15583_v40 = vld [vmem:[#allocation10 + $0x458] sm:$0xf]  ;;  %v17056_v48 = vor.u32 %v18884_v9, %v17055_v7  ;;  %10339 = vmatpush.bf16.msrb.mxu0 %v16544_v13 }
 0x676   :  { %v18516_v3 = vld [vmem:[#allocation10 + $0x474] sm:$0xf0] }
 0x677   :  { %v16255_v28 = vld [vmem:[#allocation10 + $0x998] sm:$0xf]  ;;  %v15584_v20 = vor.u32 %v18516_v3, %v15583_v40  ;;  %10321 = vmatmul.bf16.vlgmr.msra.gmra.mxu2 %v19683_v56 }
 0x678   :  { %v18684_v25 = vld [vmem:[#allocation10 + $0x9b4] sm:$0xf0]  ;;  %10365 = vmatpush.bf16.msrb.mxu2 %v17056_v48  ;;  %v10075_v48 = vpop.f32.mrf.mxu3 }
 0x679   :  { %v16511_v26 = vld [vmem:[#allocation10 + $0xb98] sm:$0xf]  ;;  %v16256_v37 = vor.u32 %v18684_v25, %v16255_v28  ;;  %10306 = vmatpush.bf16.msra.mxu1 %v15584_v20  ;;  %v10114_v20 = vpop.f32.mrf.mxu2 }
 0x67a   :  { %v18748_v27 = vld [vmem:[#allocation10 + $0xbb4] sm:$0xf0] }
 0x67b   :  { %v17023_v32 = vld [vmem:[#allocation10 + $0xf98] sm:$0xf]  ;;  %v16512_v38 = vor.u32 %v18748_v27, %v16511_v26  ;;  %10327 = vmatpush.bf16.msrb.mxu3 %v16256_v37 }
 0x67c   :  { %v18876_v30 = vld [vmem:[#allocation10 + $0xfb4] sm:$0xf0] }
 0x67d   :  { %v15551_v35 = vld [vmem:[#allocation10 + $0x418] sm:$0xf]  ;;  %v17024_v39 = vor.u32 %v18876_v30, %v17023_v32  ;;  %10340 = vmatpush.bf16.msrb.mxu0 %v16512_v38  ;;  %v10076_v30 = vadd.f32 %v10075_v48, %v7050_v43 }
 0x67e   :  { %v18508_v23 = vld [vmem:[#allocation10 + $0x434] sm:$0xf0] }
 0x67f   :  { %v16223_v52 = vld [vmem:[#allocation10 + $0x958] sm:$0xf]  ;;  %v15552_v22 = vor.u32 %v18508_v23, %v15551_v35  ;;  %10366 = vmatpush.bf16.msrb.mxu2 %v17024_v39  ;;  %v10090_v39 = vpop.f32.mrf.mxu0 }
 0x680   :  { %v18676_v45 = vld [vmem:[#allocation10 + $0x974] sm:$0xf0]  ;;  %v18488_v39 = vld [vmem:[#allocation10 + $0x39c] sm:$0xf] }
 0x681   :  { %v16479_v12 = vld [vmem:[#allocation10 + $0xb58] sm:$0xf]  ;;  %v16224_v57 = vor.u32 %v18676_v45, %v16223_v52  ;;  %10307 = vmatpush.bf16.msra.mxu1 %v15552_v22 }
 0x682   :  { %v18740_v42 = vld [vmem:[#allocation10 + $0xb74] sm:$0xf0] }
 0x683   :  { %v16799_v29 = vld [vmem:[#allocation10 + $0xdd8] sm:$0xf]  ;;  %v16480_v50 = vor.u32 %v18740_v42, %v16479_v12  ;;  %10328 = vmatpush.bf16.msrb.mxu3 %v16224_v57  ;;  %v10089_v12 = vadd.f32 %v10088_v49, %v10076_v30  ;;  %v10101_v42 = vpop.f32.mrf.mxu1 }
 0x684   :  { %v18820_v21 = vld [vmem:[#allocation10 + $0xdf4] sm:$0xf0]  ;;  %10308 = vmatmul.bf16.vlgmr.msra.gmra.mxu1 %v19689_v11 }
 0x685   :  { %v16991_v46 = vld [vmem:[#allocation10 + $0xf58] sm:$0xf]  ;;  %v16800_v24 = vor.u32 %v18820_v21, %v16799_v29  ;;  %10341 = vmatpush.bf16.msrb.mxu0 %v16480_v50  ;;  %v10102_v22 = vadd.f32 %v10101_v42, %v10089_v12  ;;  %v15489_v12 = vld [vmem:[#allocation10 + $0x3b8] sm:$0xf0] }
 0x686   :  { %v18868_v1 = vld [vmem:[#allocation10 + $0xf74] sm:$0xf0]  ;;  %v18616_v42 = vld [vmem:[#allocation10 + $0x79c] sm:$0xf] }
 0x687   :  { %v16191_v53 = vld [vmem:[#allocation10 + $0x918] sm:$0xf]  ;;  %v16992_v55 = vor.u32 %v18868_v1, %v16991_v46  ;;  %10352 = vmatpush.bf16.msrb.mxu1 %v16800_v24 }
 0x688   :  { %v18668_v33 = vld [vmem:[#allocation10 + $0x934] sm:$0xf0] }
 0x689   :  { %v16447_v58 = vld [vmem:[#allocation10 + $0xb18] sm:$0xf]  ;;  %v16192_v47 = vor.u32 %v18668_v33, %v16191_v53  ;;  %10367 = vmatpush.bf16.msrb.mxu2 %v16992_v55 }
 0x68a   :  { %v18732_v61 = vld [vmem:[#allocation10 + $0xb34] sm:$0xf0] }
 0x68b   :  { %v16767_v5 = vld [vmem:[#allocation10 + $0xd98] sm:$0xf]  ;;  %v16448_v34 = vor.u32 %v18732_v61, %v16447_v58  ;;  %10329 = vmatpush.bf16.msrb.mxu3 %v16192_v47 }
 0x68c   :  { %v18812_v14 = vld [vmem:[#allocation10 + $0xdb4] sm:$0xf0] }
 0x68d   :  { %v16959_v63 = vld [vmem:[#allocation10 + $0xf18] sm:$0xf]  ;;  %v16768_v7 = vor.u32 %v18812_v14, %v16767_v5  ;;  %10342 = vmatpush.bf16.msrb.mxu0 %v16448_v34  ;;  %v19800_v5 = vadd.f32 %v10114_v20, %v10102_v22  ;;  %v15492_v22 = vor.u32 %v18488_v39, %v15489_v12  ;;  %v15105_v39 = vld [vmem:[#allocation10 + $0xb8] sm:$0xf0] }
 0x68e   :  { %v18860_v17 = vld [vmem:[#allocation10 + $0xf34] sm:$0xf0] }
 0x68f   :  { %v16159_v4 = vld [vmem:[#allocation10 + $0x8d8] sm:$0xf]  ;;  %v16960_v9 = vor.u32 %v18860_v17, %v16959_v63  ;;  %10353 = vmatpush.bf16.msrb.mxu1 %v16768_v7  ;;  %v10077_v17 = vpop.f32.mrf.mxu3 }
 0x690   :  { %v18660_v2 = vld [vmem:[#allocation10 + $0x8f4] sm:$0xf0] }
 0x691   :  { %v16415_v36 = vld [vmem:[#allocation10 + $0xad8] sm:$0xf]  ;;  %v16160_v28 = vor.u32 %v18660_v2, %v16159_v4  ;;  %10368 = vmatpush.bf16.msrb.mxu2 %v16960_v9 }
 0x692   :  { %v18724_v0 = vld [vmem:[#allocation10 + $0xaf4] sm:$0xf0] }
 0x693   :  { %v16735_v10 = vld [vmem:[#allocation10 + $0xd58] sm:$0xf]  ;;  %v16416_v60 = vor.u32 %v18724_v0, %v16415_v36  ;;  %10330 = vmatpush.bf16.msrb.mxu3 %v16160_v28  ;;  %v10116_v36 = vpop.f32.mrf.mxu2  ;;  %v18496_v28 = vld [vmem:[#allocation10 + $0x3dc] sm:$0xf] }
 0x694   :  { %v18804_v13 = vld [vmem:[#allocation10 + $0xd74] sm:$0xf0] }
 0x695   :  { %v16927_v40 = vld [vmem:[#allocation10 + $0xed8] sm:$0xf]  ;;  %v16736_v27 = vor.u32 %v18804_v13, %v16735_v10  ;;  %10343 = vmatpush.bf16.msrb.mxu0 %v16416_v60  ;;  %v18432_v13 = vld [vmem:[#allocation10 + $0x1dc] sm:$0xf] }
 0x696   :  { %v18852_v3 = vld [vmem:[#allocation10 + $0xef4] sm:$0xf0]  ;;  %v15521_v60 = vld [vmem:[#allocation10 + $0x3f8] sm:$0xf0] }
 0x697   :  { %v16127_v25 = vld [vmem:[#allocation10 + $0x898] sm:$0xf]  ;;  %v16928_v32 = vor.u32 %v18852_v3, %v16927_v40  ;;  %10354 = vmatpush.bf16.msrb.mxu1 %v16736_v27  ;;  %v10103_v40 = vpop.f32.mrf.mxu1  ;;  %v15265_v3 = vld [vmem:[#allocation10 + $0x1f8] sm:$0xf0] }
 0x698   :  { %v18652_v26 = vld [vmem:[#allocation10 + $0x8b4] sm:$0xf0]  ;;  %v16033_v27 = vld [vmem:[#allocation10 + $0x7f8] sm:$0xf0]  ;;  %v15268_v20 = vor.u32 %v18432_v13, %v15265_v3  ;;  %v10140_v40 = vpop.f32.mrf.mxu0 }
 0x699   :  { %v16383_v35 = vld [vmem:[#allocation10 + $0xa98] sm:$0xf]  ;;  %v16128_v29 = vor.u32 %v18652_v26, %v16127_v25  ;;  %10369 = vmatpush.bf16.msrb.mxu2 %v16928_v32  ;;  %v18624_v26 = vld [vmem:[#allocation10 + $0x7dc] sm:$0xf] }
 0x69a   :  { %v18716_v37 = vld [vmem:[#allocation10 + $0xab4] sm:$0xf0]  ;;  %v15937_v13 = vld [vmem:[#allocation10 + $0x738] sm:$0xf0] }
 0x69b   :  { %v16703_v38 = vld [vmem:[#allocation10 + $0xd18] sm:$0xf]  ;;  %v16384_v21 = vor.u32 %v18716_v37, %v16383_v35  ;;  %10331 = vmatpush.bf16.msrb.mxu3 %v16128_v29  ;;  %v15524_v35 = vor.u32 %v18496_v28, %v15521_v60  ;;  %v16001_v29 = vld [vmem:[#allocation10 + $0x7b8] sm:$0xf0] }
 0x69c   :  { %v18796_v23 = vld [vmem:[#allocation10 + $0xd34] sm:$0xf0]  ;;  %v18400_v60 = vld [vmem:[#allocation10 + $0xdc] sm:$0xf] }
 0x69d   :  { %v16895_v52 = vld [vmem:[#allocation10 + $0xe98] sm:$0xf]  ;;  %v16704_v57 = vor.u32 %v18796_v23, %v16703_v38  ;;  %10344 = vmatpush.bf16.msrb.mxu0 %v16384_v21  ;;  %v18424_v23 = vld [vmem:[#allocation10 + $0x19c] sm:$0xf] }
 0x69e   :  { %v18844_v45 = vld [vmem:[#allocation10 + $0xeb4] sm:$0xf0] }
 0x69f   :  { %v16095_v46 = vld [vmem:[#allocation10 + $0x858] sm:$0xf]  ;;  %v16896_v50 = vor.u32 %v18844_v45, %v16895_v52  ;;  %10355 = vmatpush.bf16.msrb.mxu1 %v16704_v57  ;;  %v16036_v52 = vor.u32 %v18624_v26, %v16033_v27  ;;  %v15233_v45 = vld [vmem:[#allocation10 + $0x1b8] sm:$0xf0] }
 0x6a0   :  { %v18644_v1 = vld [vmem:[#allocation10 + $0x874] sm:$0xf0]  ;;  %v18464_v27 = vld [vmem:[#allocation10 + $0x2dc] sm:$0xf] }
 0x6a1   :  { %v16351_v53 = vld [vmem:[#allocation10 + $0xa58] sm:$0xf]  ;;  %v16096_v14 = vor.u32 %v18644_v1, %v16095_v46  ;;  %10370 = vmatpush.bf16.msrb.mxu2 %v16896_v50  ;;  %v15236_v1 = vor.u32 %v18424_v23, %v15233_v45  ;;  %v18416_v50 = vld [vmem:[#allocation10 + $0x15c] sm:$0xf] }
 0x6a2   :  { %v18708_v33 = vld [vmem:[#allocation10 + $0xa74] sm:$0xf0]  ;;  %v18392_v45 = vld [vmem:[#allocation10 + $0x9c] sm:$0xf] }
 0x6a3   :  { %v16671_v24 = vld [vmem:[#allocation10 + $0xcd8] sm:$0xf]  ;;  %v16352_v63 = vor.u32 %v18708_v33, %v16351_v53  ;;  %10332 = vmatpush.bf16.msrb.mxu3 %v16096_v14  ;;  %v15201_v53 = vld [vmem:[#allocation10 + $0x178] sm:$0xf0]  ;;  %v16004_v33 = vor.u32 %v18616_v42, %v16001_v29 }
 0x6a4   :  { %v18788_v55 = vld [vmem:[#allocation10 + $0xcf4] sm:$0xf0]  ;;  %v18608_v14 = vld [vmem:[#allocation10 + $0x75c] sm:$0xf] }
 0x6a5   :  { %v16863_v58 = vld [vmem:[#allocation10 + $0xe58] sm:$0xf]  ;;  %v16672_v4 = vor.u32 %v18788_v55, %v16671_v24  ;;  %10345 = vmatpush.bf16.msrb.mxu0 %v16352_v63  ;;  %v18480_v24 = vld [vmem:[#allocation10 + $0x35c] sm:$0xf] }
 0x6a6   :  { %v18836_v61 = vld [vmem:[#allocation10 + $0xe74] sm:$0xf0]  ;;  %v15457_v55 = vld [vmem:[#allocation10 + $0x378] sm:$0xf0] }
 0x6a7   :  { %v16063_v49 = vld [vmem:[#allocation10 + $0x818] sm:$0xf]  ;;  %v16864_v2 = vor.u32 %v18836_v61, %v16863_v58  ;;  %10356 = vmatpush.bf16.msrb.mxu1 %v16672_v4  ;;  %v18560_v58 = vld [vmem:[#allocation10 + $0x5dc] sm:$0xf] }
 0x6a8   :  { %v18636_v47 = vld [vmem:[#allocation10 + $0x834] sm:$0xf0]  ;;  %v15777_v61 = vld [vmem:[#allocation10 + $0x5f8] sm:$0xf0] }
 0x6a9   :  { %v16319_v34 = vld [vmem:[#allocation10 + $0xa18] sm:$0xf]  ;;  %v16064_v48 = vor.u32 %v18636_v47, %v16063_v49  ;;  %10371 = vmatpush.bf16.msrb.mxu2 %v16864_v2  ;;  %v15969_v63 = vld [vmem:[#allocation10 + $0x778] sm:$0xf0]  ;;  %v15204_v49 = vor.u32 %v18416_v50, %v15201_v53  ;;  %v15460_v47 = vor.u32 %v18480_v24, %v15457_v55  ;;  %v15780_v2 = vor.u32 %v18560_v58, %v15777_v61  ;;  %v10153_v55 = vpop.f32.mrf.mxu1 }
 0x6aa   :  { %v18700_v7 = vld [vmem:[#allocation10 + $0xa34] sm:$0xf0]  ;;  %v15169_v4 = vld [vmem:[#allocation10 + $0x138] sm:$0xf0]  ;;  %v15972_v36 = vor.u32 %v18608_v14, %v15969_v63  ;;  %v15108_v58 = vor.u32 %v18392_v45, %v15105_v39 }
 0x6ab   :  { %v16639_v9 = vld [vmem:[#allocation10 + $0xc98] sm:$0xf]  ;;  %v16320_v25 = vor.u32 %v18700_v7, %v16319_v34  ;;  %10333 = vmatpush.bf16.msrb.mxu3 %v16064_v48  ;;  %v18408_v34 = vld [vmem:[#allocation10 + $0x11c] sm:$0xf] }
 0x6ac   :  { %v18780_v0 = vld [vmem:[#allocation10 + $0xcb4] sm:$0xf0]  ;;  %v18472_v7 = vld [vmem:[#allocation10 + $0x31c] sm:$0xf]  ;;  %v15172_v3 = vor.u32 %v18408_v34, %v15169_v4 }
 0x6ad   :  { %v16831_v10 = vld [vmem:[#allocation10 + $0xe18] sm:$0xf]  ;;  %v16640_v32 = vor.u32 %v18780_v0, %v16639_v9  ;;  %10346 = vmatpush.bf16.msrb.mxu0 %v16320_v25  ;;  %v15425_v9 = vld [vmem:[#allocation10 + $0x338] sm:$0xf0] }
 0x6ae   :  { %v18828_v43 = vld [vmem:[#allocation10 + $0xe34] sm:$0xf0]  ;;  %10334 = vmatmul.bf16.vlgmr.msrb.gmra.mxu3 %v19700_v59  ;;  %v18552_v0 = vld [vmem:[#allocation10 + $0x59c] sm:$0xf]  ;;  %v15428_v28 = vor.u32 %v18472_v7, %v15425_v9 }
 0x6af   :  { %v16832_v30 = vor.u32 %v18828_v43, %v16831_v10  ;;  %v16607_v37 = vld [vmem:[#allocation10 + $0xc58] sm:$0xf]  ;;  %10357 = vmatpush.bf16.msrb.mxu1 %v16640_v32  ;;  %10378 = vmatpush.bf16.msra.mxu3 %v15268_v20  ;;  %v15745_v10 = vld [vmem:[#allocation10 + $0x5b8] sm:$0xf0] }
 0x6b0   :  { %v18772_v38 = vld [vmem:[#allocation10 + $0xc74] sm:$0xf0]  ;;  %10347 = vmatmul.bf16.vlgmr.msrb.gmra.mxu0 %v19702_v44  ;;  %v18600_v43 = vld [vmem:[#allocation10 + $0x71c] sm:$0xf]  ;;  %v15748_v25 = vor.u32 %v18552_v0, %v15745_v10 }
 0x6b1   :  { %10372 = vmatpush.bf16.msrb.mxu2 %v16832_v30  ;;  %v16608_v21 = vor.u32 %v18772_v38, %v16607_v37  ;;  %v16575_v46 = vld [vmem:[#allocation10 + $0xc18] sm:$0xf]  ;;  %10391 = vmatpush.bf16.msra.mxu0 %v15524_v35  ;;  %v15137_v48 = vld [vmem:[#allocation10 + $0xf8] sm:$0xf0]  ;;  %v15940_v26 = vor.u32 %v18600_v43, %v15937_v13 }
 0x6b2   :  { %v18764_v57 = vld [vmem:[#allocation10 + $0xc34] sm:$0xf0]  ;;  %v15393_v32 = vld [vmem:[#allocation10 + $0x2f8] sm:$0xf0]  ;;  %v15140_v38 = vor.u32 %v18400_v60, %v15137_v48 }
 0x6b3   :  { %10358 = vmatpush.bf16.msrb.mxu1 %v16608_v21  ;;  %v16576_v17 = vor.u32 %v18764_v57, %v16575_v46  ;;  %10379 = vmatpush.bf16.msra.mxu3 %v15236_v1  ;;  %v18544_v30 = vld [vmem:[#allocation10 + $0x55c] sm:$0xf]  ;;  %v15396_v23 = vor.u32 %v18464_v27, %v15393_v32  ;;  %v10166_v21 = vpop.f32.mrf.mxu2 }
 0x6b4   :  { %10373 = vmatmul.bf16.vlgmr.msrb.gmra.mxu2 %v19704_v51  ;;  %v15713_v20 = vld [vmem:[#allocation10 + $0x578] sm:$0xf0] }
 0x6b5   :  { %10417 = vmatpush.bf16.msra.mxu2 %v16036_v52  ;;  %10392 = vmatpush.bf16.msra.mxu0 %v15492_v22  ;;  %v18592_v35 = vld [vmem:[#allocation10 + $0x6dc] sm:$0xf]  ;;  %v10127_v52 = vpop.f32.mrf.mxu3  ;;  %v15716_v12 = vor.u32 %v18544_v30, %v15713_v20 }
 0x6b6   :  { %v15905_v37 = vld [vmem:[#allocation10 + $0x6f8] sm:$0xf0]  ;;  %v10128_v29 = vadd.f32 %v10127_v52, %v19800_v5 }
 0x6b7   :  { %10359 = vmatpush.bf16.msrb.mxu1 %v16576_v17  ;;  %10380 = vmatpush.bf16.msra.mxu3 %v15204_v49  ;;  %v15908_v42 = vor.u32 %v18592_v35, %v15905_v37  ;;  %v18456_v46 = vld [vmem:[#allocation10 + $0x29c] sm:$0xf]  ;;  %v10155_v35 = vpop.f32.mrf.mxu1 }
 0x6b8   :  { %v15361_v1 = vld [vmem:[#allocation10 + $0x2b8] sm:$0xf0]  ;;  %v10141_v24 = vadd.f32 %v10140_v40, %v10128_v29 }
 0x6b9   :  { %10418 = vmatpush.bf16.msra.mxu2 %v16004_v33  ;;  %10393 = vmatpush.bf16.msra.mxu0 %v15460_v47  ;;  %v18536_v22 = vld [vmem:[#allocation10 + $0x51c] sm:$0xf]  ;;  %v10142_v33 = vpop.f32.mrf.mxu0  ;;  %v15364_v61 = vor.u32 %v18456_v46, %v15361_v1 }
 0x6ba   :  { %10360 = vmatmul.bf16.vlgmr.msrb.gmra.mxu1 %v19710_v8  ;;  %v15681_v57 = vld [vmem:[#allocation10 + $0x538] sm:$0xf0]  ;;  %v10154_v17 = vadd.f32 %v10153_v55, %v10141_v24 }
 0x6bb   :  { %10404 = vmatpush.bf16.msra.mxu1 %v15780_v2  ;;  %10381 = vmatpush.bf16.msra.mxu3 %v15172_v3  ;;  %v18584_v50 = vld [vmem:[#allocation10 + $0x69c] sm:$0xf]  ;;  %v15684_v5 = vor.u32 %v18536_v22, %v15681_v57  ;;  %v10168_v48 = vpop.f32.mrf.mxu2 }
 0x6bc   :  { %v15873_v53 = vld [vmem:[#allocation10 + $0x6b8] sm:$0xf0]  ;;  %v19807_v9 = vadd.f32 %v10166_v21, %v10154_v17 }
 0x6bd   :  { %10419 = vmatpush.bf16.msra.mxu2 %v15972_v36  ;;  %10394 = vmatpush.bf16.msra.mxu0 %v15428_v28  ;;  %v18384_v14 = vld [vmem:[#allocation10 + $0x5c] sm:$0xf]  ;;  %v15876_v49 = vor.u32 %v18584_v50, %v15873_v53  ;;  %v10129_v43 = vpop.f32.mrf.mxu3 }
 0x6be   :  { %v15073_v63 = vld [vmem:[#allocation10 + $0x78] sm:$0xf0]  ;;  %19082 = vtanh.f32 %v19807_v9 }
 0x6bf   :  { %10405 = vmatpush.bf16.msra.mxu1 %v15748_v25  ;;  %10382 = vmatpush.bf16.msra.mxu3 %v15140_v38  ;;  %v18448_v47 = vld [vmem:[#allocation10 + $0x25c] sm:$0xf]  ;;  %v15076_v0 = vor.u32 %v18384_v14, %v15073_v63 }
 0x6c0   :  { %v15329_v34 = vld [vmem:[#allocation10 + $0x278] sm:$0xf0] }
 0x6c1   :  { %10420 = vmatpush.bf16.msra.mxu2 %v15940_v26  ;;  %10395 = vmatpush.bf16.msra.mxu0 %v15396_v23  ;;  %v18528_v4 = vld [vmem:[#allocation10 + $0x4dc] sm:$0xf]  ;;  %v15332_v10 = vor.u32 %v18448_v47, %v15329_v34 }
 0x6c2   :  { %v15649_v2 = vld [vmem:[#allocation10 + $0x4f8] sm:$0xf0] }
 0x6c3   :  { %10406 = vmatpush.bf16.msra.mxu1 %v15716_v12  ;;  %v18576_v36 = vld [vmem:[#allocation10 + $0x65c] sm:$0xf]  ;;  %10383 = vmatpush.bf16.msra.mxu3 %v15108_v58  ;;  %v15652_v28 = vor.u32 %v18528_v4, %v15649_v2 }
 0x6c4   :  { %v15841_v7 = vld [vmem:[#allocation10 + $0x678] sm:$0xf0] }
 0x6c5   :  { %10421 = vmatpush.bf16.msra.mxu2 %v15908_v42  ;;  %10396 = vmatpush.bf16.msra.mxu0 %v15364_v61  ;;  %v18376_v13 = vld [vmem:[#allocation10 + $0x1c] sm:$0xf]  ;;  %v15844_v60 = vor.u32 %v18576_v36, %v15841_v7 }
 0x6c6   :  { %v15041_v40 = vld [vmem:[#allocation10 + $0x38] sm:$0xf0] }
 0x6c7   :  { %v18440_v3 = vld [vmem:[#allocation10 + $0x21c] sm:$0xf]  ;;  %10407 = vmatpush.bf16.msra.mxu1 %v15684_v5  ;;  %10384 = vmatpush.bf16.msra.mxu3 %v15076_v0  ;;  %v15044_v52 = vor.u32 %v18376_v13, %v15041_v40 }
 0x6c8   :  { %v15297_v25 = vld [vmem:[#allocation10 + $0x238] sm:$0xf0] }
 0x6c9   :  { %10422 = vmatpush.bf16.msra.mxu2 %v15876_v49  ;;  %v18520_v26 = vld [vmem:[#allocation10 + $0x49c] sm:$0xf]  ;;  %10397 = vmatpush.bf16.msra.mxu0 %v15332_v10  ;;  %v15300_v45 = vor.u32 %v18440_v3, %v15297_v25 }
 0x6ca   :  { %v15617_v27 = vld [vmem:[#allocation10 + $0x4b8] sm:$0xf0] }
 0x6cb   :  { %v18568_v32 = vld [vmem:[#allocation10 + $0x61c] sm:$0xf]  ;;  %10408 = vmatpush.bf16.msra.mxu1 %v15652_v28  ;;  %v15620_v42 = vor.u32 %v18520_v26, %v15617_v27  ;;  %10385 = vmatpush.bf16.msra.mxu3 %v15044_v52 }
 0x6cc   :  { %v15809_v30 = vld [vmem:[#allocation10 + $0x638] sm:$0xf0] }
 0x6cd   :  { %v18688_v20 = vld [vmem:[#allocation10 + $0x9dc] sm:$0xf]  ;;  %10423 = vmatpush.bf16.msra.mxu2 %v15844_v60  ;;  %v15812_v29 = vor.u32 %v18568_v32, %v15809_v30  ;;  %10398 = vmatpush.bf16.msra.mxu0 %v15300_v45  ;;  %v10192_v32 = vpop.f32.mrf.mxu0 }
 0x6ce   :  { %v16289_v37 = vld [vmem:[#allocation10 + $0x9f8] sm:$0xf0]  ;;  %10386 = vmatmul.bf16.vlgmr.msra.gmra.mxu3 %v19679_v41 }
 0x6cf   :  { %v18752_v38 = vld [vmem:[#allocation10 + $0xbdc] sm:$0xf]  ;;  %v16292_v21 = vor.u32 %v18688_v20, %v16289_v37  ;;  %10409 = vmatpush.bf16.msra.mxu1 %v15620_v42 }
 0x6d0   :  { %v16545_v23 = vld [vmem:[#allocation10 + $0xbf8] sm:$0xf0]  ;;  %10399 = vmatmul.bf16.vlgmr.msra.gmra.mxu0 %v19681_v62 }
 0x6d1   :  { %v18880_v39 = vld [vmem:[#allocation10 + $0xfdc] sm:$0xf]  ;;  %v16548_v46 = vor.u32 %v18752_v38, %v16545_v23  ;;  %10424 = vmatpush.bf16.msra.mxu2 %v15812_v29  ;;  %10430 = vmatpush.bf16.msrb.mxu3 %v16292_v21 }
 0x6d2   :  { %v17057_v12 = vld [vmem:[#allocation10 + $0xff8] sm:$0xf0] }
 0x6d3   :  { %v18512_v1 = vld [vmem:[#allocation10 + $0x45c] sm:$0xf]  ;;  %v17060_v50 = vor.u32 %v18880_v39, %v17057_v12  ;;  %10443 = vmatpush.bf16.msrb.mxu0 %v16548_v46  ;;  %v7051_v12 = vperm.slane %v19796_v15, 5 }
 0x6d4   :  { %v15585_v22 = vld [vmem:[#allocation10 + $0x478] sm:$0xf0]  ;;  %10425 = vmatmul.bf16.vlgmr.msra.gmra.mxu2 %v19683_v56 }
 0x6d5   :  { %v18680_v57 = vld [vmem:[#allocation10 + $0x99c] sm:$0xf]  ;;  %v15588_v61 = vor.u32 %v18512_v1, %v15585_v22  ;;  %10469 = vmatpush.bf16.msrb.mxu2 %v17060_v50  ;;  %v10179_v22 = vpop.f32.mrf.mxu3 }
 0x6d6   :  { %v16257_v53 = vld [vmem:[#allocation10 + $0x9b8] sm:$0xf0] }
 0x6d7   :  { %v18744_v33 = vld [vmem:[#allocation10 + $0xb9c] sm:$0xf]  ;;  %v16260_v63 = vor.u32 %v18680_v57, %v16257_v53  ;;  %10410 = vmatpush.bf16.msra.mxu1 %v15588_v61 }
 0x6d8   :  { %v16513_v24 = vld [vmem:[#allocation10 + $0xbb8] sm:$0xf0] }
 0x6d9   :  { %v18872_v55 = vld [vmem:[#allocation10 + $0xf9c] sm:$0xf]  ;;  %v16516_v17 = vor.u32 %v18744_v33, %v16513_v24  ;;  %10431 = vmatpush.bf16.msrb.mxu3 %v16260_v63  ;;  %v10180_v24 = vadd.f32 %v10179_v22, %v7051_v12 }
 0x6da   :  { %v17025_v58 = vld [vmem:[#allocation10 + $0xfb8] sm:$0xf0] }
 0x6db   :  { %v18504_v14 = vld [vmem:[#allocation10 + $0x41c] sm:$0xf]  ;;  %v17028_v34 = vor.u32 %v18872_v55, %v17025_v58  ;;  %10444 = vmatpush.bf16.msrb.mxu0 %v16516_v17  ;;  %v10218_v55 = vpop.f32.mrf.mxu2 }
 0x6dc   :  { %v15553_v5 = vld [vmem:[#allocation10 + $0x438] sm:$0xf0] }
 0x6dd   :  { %v18672_v49 = vld [vmem:[#allocation10 + $0x95c] sm:$0xf]  ;;  %v15556_v43 = vor.u32 %v18504_v14, %v15553_v5  ;;  %10470 = vmatpush.bf16.msrb.mxu2 %v17028_v34  ;;  %v10194_v5 = vpop.f32.mrf.mxu0 }
 0x6de   :  { %v16225_v47 = vld [vmem:[#allocation10 + $0x978] sm:$0xf0]  ;;  %v18907_v5 = vld [vmem:[%s20242_s7 + $0xb0] sm:$0xff] }
 0x6df   :  { %v18736_v4 = vld [vmem:[#allocation10 + $0xb5c] sm:$0xf]  ;;  %v16228_v13 = vor.u32 %v18672_v49, %v16225_v47  ;;  %10411 = vmatpush.bf16.msra.mxu1 %v15556_v43  ;;  %v10193_v49 = vadd.f32 %v10192_v32, %v10180_v24  ;;  %v10205_v47 = vpop.f32.mrf.mxu1 }
 0x6e0   :  { %v16481_v2 = vld [vmem:[#allocation10 + $0xb78] sm:$0xf0] }
 0x6e1   :  { %v18816_v36 = vld [vmem:[#allocation10 + $0xddc] sm:$0xf]  ;;  %v16484_v40 = vor.u32 %v18736_v4, %v16481_v2  ;;  %10432 = vmatpush.bf16.msrb.mxu3 %v16228_v13 }
 0x6e2   :  { %v16801_v7 = vld [vmem:[#allocation10 + $0xdf8] sm:$0xf0]  ;;  %10412 = vmatmul.bf16.vlgmr.msra.gmra.mxu1 %v19689_v11 }
 0x6e3   :  { %v18864_v0 = vld [vmem:[#allocation10 + $0xf5c] sm:$0xf]  ;;  %v16804_v41 = vor.u32 %v18816_v36, %v16801_v7  ;;  %10445 = vmatpush.bf16.msrb.mxu0 %v16484_v40  ;;  %v10206_v7 = vadd.f32 %v10205_v47, %v10193_v49  ;;  %v18913_v49 = vld [vmem:[%s20242_s7 + $0xe0] sm:$0xff]  ;;  %v18888_v47 = vld [vmem:[%s20242_s7 + $0x18] sm:$0xff] }
 0x6e4   :  { %v16993_v10 = vld [vmem:[#allocation10 + $0xf78] sm:$0xf0] }
 0x6e5   :  { %v18664_v3 = vld [vmem:[#allocation10 + $0x91c] sm:$0xf]  ;;  %v16996_v60 = vor.u32 %v18864_v0, %v16993_v10  ;;  %10456 = vmatpush.bf16.msrb.mxu1 %v16804_v41 }
 0x6e6   :  { %v16193_v28 = vld [vmem:[#allocation10 + $0x938] sm:$0xf0] }
 0x6e7   :  { %v18728_v48 = vld [vmem:[#allocation10 + $0xb1c] sm:$0xf]  ;;  %v16196_v30 = vor.u32 %v18664_v3, %v16193_v28  ;;  %10471 = vmatpush.bf16.msrb.mxu2 %v16996_v60  ;;  %v19814_v60 = vadd.f32 %v10218_v55, %v10206_v7 }
 0x6e8   :  { %v16449_v25 = vld [vmem:[#allocation10 + $0xb38] sm:$0xf0] }
 0x6e9   :  { %v18808_v26 = vld [vmem:[#allocation10 + $0xd9c] sm:$0xf]  ;;  %v16452_v20 = vor.u32 %v18728_v48, %v16449_v25  ;;  %10433 = vmatpush.bf16.msrb.mxu3 %v16196_v30  ;;  %v10220_v30 = vpop.f32.mrf.mxu2 }
 0x6ea   :  { %v16769_v62 = vld [vmem:[#allocation10 + $0xdb8] sm:$0xf0]  ;;  %v18893_v30 = vld [vmem:[%s20242_s7 + $0x40] sm:$0xff] }
 0x6eb   :  { %v18856_v27 = vld [vmem:[#allocation10 + $0xf1c] sm:$0xf]  ;;  %v16772_v23 = vor.u32 %v18808_v26, %v16769_v62  ;;  %10446 = vmatpush.bf16.msrb.mxu0 %v16452_v20  ;;  %v10181_v26 = vpop.f32.mrf.mxu3 }
 0x6ec   :  { %v16961_v56 = vld [vmem:[#allocation10 + $0xf38] sm:$0xf0] }
 0x6ed   :  { %v18656_v35 = vld [vmem:[#allocation10 + $0x8dc] sm:$0xf]  ;;  %v16964_v52 = vor.u32 %v18856_v27, %v16961_v56  ;;  %10457 = vmatpush.bf16.msrb.mxu1 %v16772_v23 }
 0x6ee   :  { %v16161_v37 = vld [vmem:[#allocation10 + $0x8f8] sm:$0xf0] }
 0x6ef   :  { %v18720_v38 = vld [vmem:[#allocation10 + $0xadc] sm:$0xf]  ;;  %v16164_v46 = vor.u32 %v18656_v35, %v16161_v37  ;;  %10472 = vmatpush.bf16.msrb.mxu2 %v16964_v52 }
 0x6f0   :  { %v16417_v45 = vld [vmem:[#allocation10 + $0xaf8] sm:$0xf0] }
 0x6f1   :  { %v18800_v39 = vld [vmem:[#allocation10 + $0xd5c] sm:$0xf]  ;;  %v16420_v1 = vor.u32 %v18720_v38, %v16417_v45  ;;  %10434 = vmatpush.bf16.msrb.mxu3 %v16164_v46  ;;  %v10207_v45 = vpop.f32.mrf.mxu1  ;;  %v18900_v46 = vld [vmem:[%s20242_s7 + $0x78] sm:$0xff]  ;;  %v10270_v7 = vpop.f32.mrf.mxu2 }
 0x6f2   :  { %v16737_v42 = vld [vmem:[#allocation10 + $0xd78] sm:$0xf0]  ;;  %v18924_v45 = vld [vmem:[%s20242_s7 + $0x138] sm:$0xff] }
 0x6f3   :  { %v18848_v29 = vld [vmem:[#allocation10 + $0xedc] sm:$0xf]  ;;  %v16740_v53 = vor.u32 %v18800_v39, %v16737_v42  ;;  %10447 = vmatpush.bf16.msrb.mxu0 %v16420_v1 }
 0x6f4   :  { %v16929_v21 = vld [vmem:[#allocation10 + $0xef8] sm:$0xf0] }
 0x6f5   :  { %v18648_v57 = vld [vmem:[#allocation10 + $0x89c] sm:$0xf]  ;;  %v16932_v33 = vor.u32 %v18848_v29, %v16929_v21  ;;  %10458 = vmatpush.bf16.msrb.mxu1 %v16740_v53  ;;  %v18892_v21 = vld [vmem:[%s20242_s7 + $0x38] sm:$0xff]  ;;  %v18891_v53 = vld [vmem:[%s20242_s7 + $0x30] sm:$0xff] }
 0x6f6   :  { %v16129_v50 = vld [vmem:[#allocation10 + $0x8b8] sm:$0xf0] }
 0x6f7   :  { %v18712_v58 = vld [vmem:[#allocation10 + $0xa9c] sm:$0xf]  ;;  %v16132_v34 = vor.u32 %v18648_v57, %v16129_v50  ;;  %10473 = vmatpush.bf16.msrb.mxu2 %v16932_v33  ;;  %v18916_v57 = vld [vmem:[%s20242_s7 + $0xf8] sm:$0xff]  ;;  %v18899_v33 = vld [vmem:[%s20242_s7 + $0x70] sm:$0xff] }
 0x6f8   :  { %v16385_v61 = vld [vmem:[#allocation10 + $0xab8] sm:$0xf0] }
 0x6f9   :  { %v18792_v14 = vld [vmem:[#allocation10 + $0xd1c] sm:$0xf]  ;;  %v16388_v4 = vor.u32 %v18712_v58, %v16385_v61  ;;  %10435 = vmatpush.bf16.msrb.mxu3 %v16132_v34  ;;  %v18915_v58 = vld [vmem:[%s20242_s7 + $0xf0] sm:$0xff]  ;;  %v18896_v34 = vld [vmem:[%s20242_s7 + $0x58] sm:$0xff] }
 0x6fa   :  { %v16705_v11 = vld [vmem:[#allocation10 + $0xd38] sm:$0xf0] }
 0x6fb   :  { %v18840_v63 = vld [vmem:[#allocation10 + $0xe9c] sm:$0xf]  ;;  %v16708_v0 = vor.u32 %v18792_v14, %v16705_v11  ;;  %10448 = vmatpush.bf16.msrb.mxu0 %v16388_v4  ;;  %v18908_v11 = vld [vmem:[%s20242_s7 + $0xb8] sm:$0xff]  ;;  %v10231_v4 = vpop.f32.mrf.mxu3 }
 0x6fc   :  { %v16897_v17 = vld [vmem:[#allocation10 + $0xeb8] sm:$0xf0] }
 0x6fd   :  { %v18640_v2 = vld [vmem:[#allocation10 + $0x85c] sm:$0xf]  ;;  %v16900_v10 = vor.u32 %v18840_v63, %v16897_v17  ;;  %10459 = vmatpush.bf16.msrb.mxu1 %v16708_v0  ;;  %v18889_v63 = vld [vmem:[%s20242_s7 + $0x20] sm:$0xff] }
 0x6fe   :  { %v16097_v36 = vld [vmem:[#allocation10 + $0x878] sm:$0xf0]  ;;  %v18897_v17 = vld [vmem:[%s20242_s7 + $0x60] sm:$0xff] }
 0x6ff   :  { %v18704_v43 = vld [vmem:[#allocation10 + $0xa5c] sm:$0xf]  ;;  %v16100_v48 = vor.u32 %v18640_v2, %v16097_v36  ;;  %10474 = vmatpush.bf16.msrb.mxu2 %v16900_v10  ;;  %v10232_v36 = vadd.f32 %v10231_v4, %v19814_v60 }
 0x700   :  { %v16353_v13 = vld [vmem:[#allocation10 + $0xa78] sm:$0xf0] }
 0x701   :  { %v18784_v40 = vld [vmem:[#allocation10 + $0xcdc] sm:$0xf]  ;;  %v16356_v25 = vor.u32 %v18704_v43, %v16353_v13  ;;  %10436 = vmatpush.bf16.msrb.mxu3 %v16100_v48  ;;  %v10257_v43 = vpop.f32.mrf.mxu1  ;;  %v18887_v13 = vld [vmem:[%s20242_s7 + $0x10] sm:$0xff] }
 0x702   :  { %v16673_v3 = vld [vmem:[#allocation10 + $0xcf8] sm:$0xf0] }
 0x703   :  { %v18832_v28 = vld [vmem:[#allocation10 + $0xe5c] sm:$0xf]  ;;  %v16676_v56 = vor.u32 %v18784_v40, %v16673_v3  ;;  %10449 = vmatpush.bf16.msrb.mxu0 %v16356_v25  ;;  %v18895_v40 = vld [vmem:[%s20242_s7 + $0x50] sm:$0xff]  ;;  %v10233_v26 = vpop.f32.mrf.mxu3 }
 0x704   :  { %v16865_v41 = vld [vmem:[#allocation10 + $0xe78] sm:$0xf0] }
 0x705   :  { %v18632_v62 = vld [vmem:[#allocation10 + $0x81c] sm:$0xf]  ;;  %v16868_v32 = vor.u32 %v18832_v28, %v16865_v41  ;;  %10460 = vmatpush.bf16.msrb.mxu1 %v16676_v56  ;;  %v18905_v28 = vld [vmem:[%s20242_s7 + $0xa0] sm:$0xff]  ;;  %v18911_v41 = vld [vmem:[%s20242_s7 + $0xd0] sm:$0xff] }
 0x706   :  { %v16065_v27 = vld [vmem:[#allocation10 + $0x838] sm:$0xf0] }
 0x707   :  { %v18696_v20 = vld [vmem:[#allocation10 + $0xa1c] sm:$0xf]  ;;  %v16068_v39 = vor.u32 %v18632_v62, %v16065_v27  ;;  %10475 = vmatpush.bf16.msrb.mxu2 %v16868_v32  ;;  %v18904_v62 = vld [vmem:[%s20242_s7 + $0x98] sm:$0xff]  ;;  %v10272_v27 = vpop.f32.mrf.mxu2  ;;  %v18885_v32 = vld [vmem:[%s20242_s7] sm:$0xff] }
 0x708   :  { %v16321_v35 = vld [vmem:[#allocation10 + $0xa38] sm:$0xf0]  ;;  %v10502_v27 = vunpack.c.l.b16 %v19677_v31 }
 0x709   :  { %v18776_v37 = vld [vmem:[#allocation10 + $0xc9c] sm:$0xf]  ;;  %v16324_v12 = vor.u32 %v18696_v20, %v16321_v35  ;;  %10437 = vmatpush.bf16.msrb.mxu3 %v16068_v39  ;;  %v10259_v56 = vpop.f32.mrf.mxu1  ;;  %v10498_v20 = vunpack.c.l.b16 %v19612_v18  ;;  %v18903_v35 = vld [vmem:[%s20242_s7 + $0x90] sm:$0xff]  ;;  %v18932_v39 = vld [vmem:[%s20242_s7 + $0x178] sm:$0xff] }
 0x70a   :  { %v16641_v38 = vld [vmem:[#allocation10 + $0xcb8] sm:$0xf0]  ;;  %v18935_v56 = vld [vmem:[%s20242_s7 + $0x190] sm:$0xff] }
 0x70b   :  { %v18824_v23 = vld [vmem:[#allocation10 + $0xe1c] sm:$0xf]  ;;  %v16644_v42 = vor.u32 %v18776_v37, %v16641_v38  ;;  %10450 = vmatpush.bf16.msrb.mxu0 %v16324_v12  ;;  %v18909_v37 = vld [vmem:[%s20242_s7 + $0xc0] sm:$0xff]  ;;  %v19083_v38 = vpop.eup %19082 }
 0x70c   :  { %v16833_v52 = vld [vmem:[#allocation10 + $0xe38] sm:$0xf0]  ;;  %10438 = vmatmul.bf16.vlgmr.msrb.gmra.mxu3 %v19700_v59 }
 0x70d   :  { %v16836_v29 = vor.u32 %v18824_v23, %v16833_v52  ;;  %v18768_v1 = vld [vmem:[#allocation10 + $0xc5c] sm:$0xf]  ;;  %10461 = vmatpush.bf16.msrb.mxu1 %v16644_v42  ;;  %11578 = vmatpush.bf16.msra.mxu3 %v18892_v21  ;;  %v10499_v23 = vunpack.c.h.b16 %v19612_v18  ;;  %v10501_v52 = vunpack.c.h.b16 %v19643_v16  ;;  %v18948_v42 = vld [vmem:[%s20242_s7 + $0x1f8] sm:$0xff]  ;;  %v10506_v18 = vpack.c.b16 %v10498_v20, %v10498_v20 }
 0x70e   :  { %v16609_v22 = vld [vmem:[#allocation10 + $0xc78] sm:$0xf0]  ;;  %10451 = vmatmul.bf16.vlgmr.msrb.gmra.mxu0 %v19702_v44  ;;  %v10505_v20 = vunpack.c.h.b16 %v19729_v54 }
 0x70f   :  { %10476 = vmatpush.bf16.msrb.mxu2 %v16836_v29  ;;  %v16612_v50 = vor.u32 %v18768_v1, %v16609_v22  ;;  %11591 = vmatpush.bf16.msra.mxu0 %v18900_v46  ;;  %v18760_v24 = vld [vmem:[#allocation10 + $0xc1c] sm:$0xf]  ;;  %v10507_v46 = vpack.c.b16 %v10499_v23, %v10499_v23  ;;  %v10509_v1 = vpack.c.b16 %v10501_v52, %v10501_v52  ;;  %v18923_v22 = vld [vmem:[%s20242_s7 + $0x130] sm:$0xff]  ;;  %v10322_v4 = vpop.f32.mrf.mxu2 }
 0x710   :  { %v16577_v55 = vld [vmem:[#allocation10 + $0xc38] sm:$0xf0]  ;;  %v10510_v23 = vpack.c.b16 %v10502_v27, %v10502_v27  ;;  %v19012_v27 = vld [vmem:[%s20242_s7 + $0x3f8] sm:$0xff] }
 0x711   :  { %10462 = vmatpush.bf16.msrb.mxu1 %v16612_v50  ;;  %v16580_v61 = vor.u32 %v18760_v24, %v16577_v55  ;;  %11579 = vmatpush.bf16.msra.mxu3 %v18891_v53  ;;  %v18890_v14 = vld [vmem:[%s20242_s7 + $0x28] sm:$0xff]  ;;  %v18947_v50 = vld [vmem:[%s20242_s7 + $0x1f0] sm:$0xff]  ;;  %v18901_v53 = vld [vmem:[%s20242_s7 + $0x80] sm:$0xff] }
 0x712   :  { %10477 = vmatmul.bf16.vlgmr.msrb.gmra.mxu2 %v19704_v51  ;;  %v18898_v59 = vld [vmem:[%s20242_s7 + $0x68] sm:$0xff]  ;;  %v10244_v51 = vpop.f32.mrf.mxu0 }
 0x713   :  { %11617 = vmatpush.bf16.msra.mxu2 %v18916_v57  ;;  %11592 = vmatpush.bf16.msra.mxu0 %v18899_v33  ;;  %v18914_v44 = vld [vmem:[%s20242_s7 + $0xe8] sm:$0xff]  ;;  %v10245_v10 = vadd.f32 %v10244_v51, %v10232_v36  ;;  %v18931_v57 = vld [vmem:[%s20242_s7 + $0x170] sm:$0xff]  ;;  %v10500_v33 = vunpack.c.l.b16 %v19643_v16  ;;  %v18945_v51 = vld [vmem:[%s20242_s7 + $0x1e0] sm:$0xff]  ;;  %v10309_v36 = vpop.f32.mrf.mxu1 }
 0x714   :  { %v18906_v2 = vld [vmem:[%s20242_s7 + $0xa8] sm:$0xff] }
 0x715   :  { %10463 = vmatpush.bf16.msrb.mxu1 %v16580_v61  ;;  %11580 = vmatpush.bf16.msra.mxu3 %v18890_v14  ;;  %v10258_v3 = vadd.f32 %v10257_v43, %v10245_v10  ;;  %v18886_v48 = vld [vmem:[%s20242_s7 + $0x8] sm:$0xff]  ;;  %v10508_v14 = vpack.c.b16 %v10500_v33, %v10500_v33  ;;  %v18937_v43 = vld [vmem:[%s20242_s7 + $0x1a0] sm:$0xff] }
 0x716   :  { %v18894_v25 = vld [vmem:[%s20242_s7 + $0x48] sm:$0xff]  ;;  %v18961_v33 = vld [vmem:[%s20242_s7 + $0x260] sm:$0xff] }
 0x717   :  { %11618 = vmatpush.bf16.msra.mxu2 %v18915_v58  ;;  %11593 = vmatpush.bf16.msra.mxu0 %v18898_v59  ;;  %v10271_v60 = vadd.f32 %v10270_v7, %v10258_v3  ;;  %v18910_v9 = vld [vmem:[%s20242_s7 + $0xc8] sm:$0xff]  ;;  %v18940_v58 = vld [vmem:[%s20242_s7 + $0x1b8] sm:$0xff]  ;;  %v18921_v59 = vld [vmem:[%s20242_s7 + $0x120] sm:$0xff] }
 0x718   :  { %10464 = vmatmul.bf16.vlgmr.msrb.gmra.mxu1 %v19710_v8  ;;  %v18912_v8 = vld [vmem:[%s20242_s7 + $0xd8] sm:$0xff]  ;;  %v18902_v21 = vld [vmem:[%s20242_s7 + $0x88] sm:$0xff]  ;;  %v18919_v7 = vld [vmem:[%s20242_s7 + $0x110] sm:$0xff] }
 0x719   :  { %11604 = vmatpush.bf16.msra.mxu1 %v18908_v11  ;;  %11581 = vmatpush.bf16.msra.mxu3 %v18889_v63  ;;  %19084 = vtanh.f32 %v10271_v60  ;;  %v18922_v24 = vld [vmem:[%s20242_s7 + $0x128] sm:$0xff]  ;;  %v18929_v11 = vld [vmem:[%s20242_s7 + $0x160] sm:$0xff]  ;;  %v7052_v63 = vperm.slane %v19796_v15, 6  ;;  %v18944_v15 = vld [vmem:[%s20242_s7 + $0x1d8] sm:$0xff] }
 0x71a   :  { %v10246_v0 = vpop.f32.mrf.mxu0  ;;  %v18930_v55 = vld [vmem:[%s20242_s7 + $0x168] sm:$0xff]  ;;  %v18936_v60 = vld [vmem:[%s20242_s7 + $0x198] sm:$0xff] }
 0x71b   :  { %11619 = vmatpush.bf16.msra.mxu2 %v18914_v44  ;;  %11594 = vmatpush.bf16.msra.mxu0 %v18897_v17  ;;  %v18946_v61 = vld [vmem:[%s20242_s7 + $0x1e8] sm:$0xff]  ;;  %v18939_v44 = vld [vmem:[%s20242_s7 + $0x1b0] sm:$0xff]  ;;  %v18920_v17 = vld [vmem:[%s20242_s7 + $0x118] sm:$0xff]  ;;  %v10311_v26 = vpop.f32.mrf.mxu1 }
 0x71c   :  { %v18927_v0 = vld [vmem:[%s20242_s7 + $0x150] sm:$0xff]  ;;  %v18918_v3 = vld [vmem:[%s20242_s7 + $0x108] sm:$0xff] }
 0x71d   :  { %11605 = vmatpush.bf16.msra.mxu1 %v18907_v5  ;;  %11582 = vmatpush.bf16.msra.mxu3 %v18888_v47  ;;  %v18928_v5 = vld [vmem:[%s20242_s7 + $0x158] sm:$0xff]  ;;  %v18938_v47 = vld [vmem:[%s20242_s7 + $0x1a8] sm:$0xff] }
 0x71f   :  { %11620 = vmatpush.bf16.msra.mxu2 %v18913_v49  ;;  %11595 = vmatpush.bf16.msra.mxu0 %v18896_v34  ;;  %v19085_v12 = vpop.eup %19084  ;;  %v10283_v49 = vpop.f32.mrf.mxu3 }
 0x720   :  { %v19924_v29 = vpack.c.bf16 %v19085_v12, %v19083_v38  ;;  %v10284_v34 = vadd.f32 %v10283_v49, %v7052_v63  ;;  %v18980_v38 = vld [vmem:[%s20242_s7 + $0x2f8] sm:$0xff]  ;;  %v18963_v12 = vld [vmem:[%s20242_s7 + $0x270] sm:$0xff] }
 0x721   :  { %11606 = vmatpush.bf16.msra.mxu1 %v18906_v2  ;;  %11583 = vmatpush.bf16.msra.mxu3 %v18887_v13  ;;  %v18943_v13 = vld [vmem:[%s20242_s7 + $0x1d0] sm:$0xff] }
 0x722   :  { %v10296_v16 = vpop.f32.mrf.mxu0  ;;  %v18959_v49 = vld [vmem:[%s20242_s7 + $0x250] sm:$0xff] }
 0x723   :  { %11621 = vmatpush.bf16.msra.mxu2 %v18912_v8  ;;  %11596 = vmatpush.bf16.msra.mxu0 %v18895_v40  ;;  %v10297_v8 = vadd.f32 %v10296_v16, %v10284_v34  ;;  %v18975_v34 = vld [vmem:[%s20242_s7 + $0x2d0] sm:$0xff] }
 0x725   :  { %11607 = vmatpush.bf16.msra.mxu1 %v18905_v28  ;;  %11584 = vmatpush.bf16.msra.mxu3 %v18886_v48  ;;  %v10310_v10 = vadd.f32 %v10309_v36, %v10297_v8  ;;  %v18926_v28 = vld [vmem:[%s20242_s7 + $0x148] sm:$0xff] }
 0x726   :  { %v18942_v48 = vld [vmem:[%s20242_s7 + $0x1c8] sm:$0xff] }
 0x727   :  { %11622 = vmatpush.bf16.msra.mxu2 %v18911_v41  ;;  %11597 = vmatpush.bf16.msra.mxu0 %v18894_v25  ;;  %v19991_v40 = vadd.f32 %v10322_v4, %v10310_v10  ;;  %v10285_v41 = vpop.f32.mrf.mxu3  ;;  %v10324_v25 = vpop.f32.mrf.mxu2  ;;  %v18958_v8 = vld [vmem:[%s20242_s7 + $0x248] sm:$0xff] }
 0x728   :  { %v18967_v41 = vld [vmem:[%s20242_s7 + $0x290] sm:$0xff]  ;;  %v18988_v25 = vld [vmem:[%s20242_s7 + $0x338] sm:$0xff] }
 0x729   :  { %11608 = vmatpush.bf16.msra.mxu1 %v18904_v62  ;;  %11585 = vmatpush.bf16.msra.mxu3 %v18885_v32  ;;  %v18917_v62 = vld [vmem:[%s20242_s7 + $0x100] sm:$0xff] }
 0x72a   :  { %v10298_v2 = vpop.f32.mrf.mxu0  ;;  %v18941_v32 = vld [vmem:[%s20242_s7 + $0x1c0] sm:$0xff] }
 0x72b   :  { %11623 = vmatpush.bf16.msra.mxu2 %v18910_v9  ;;  %11598 = vmatpush.bf16.msra.mxu0 %v18893_v30  ;;  %v18925_v9 = vld [vmem:[%s20242_s7 + $0x140] sm:$0xff]  ;;  %v10503_v30 = vunpack.c.h.b16 %v19677_v31  ;;  %v18934_v31 = vld [vmem:[%s20242_s7 + $0x188] sm:$0xff] }
 0x72c   :  { %11586 = vmatmul.bf16.vlgmr.msra.gmra.mxu3 %v10506_v18  ;;  %v18933_v18 = vld [vmem:[%s20242_s7 + $0x180] sm:$0xff]  ;;  %v18950_v2 = vld [vmem:[%s20242_s7 + $0x208] sm:$0xff] }
 0x72d   :  { %11609 = vmatpush.bf16.msra.mxu1 %v18903_v35  ;;  %11630 = vmatpush.bf16.msrb.mxu3 %v18924_v45  ;;  %v18956_v35 = vld [vmem:[%s20242_s7 + $0x238] sm:$0xff]  ;;  %v10511_v52 = vpack.c.b16 %v10503_v30, %v10503_v30  ;;  %v10513_v45 = vpack.c.b16 %v10505_v20, %v10505_v20  ;;  %v18995_v30 = vld [vmem:[%s20242_s7 + $0x370] sm:$0xff]  ;;  %v18965_v20 = vld [vmem:[%s20242_s7 + $0x280] sm:$0xff] }
 0x72e   :  { %11599 = vmatmul.bf16.vlgmr.msra.gmra.mxu0 %v10507_v46  ;;  %v18954_v46 = vld [vmem:[%s20242_s7 + $0x228] sm:$0xff] }
 0x72f   :  { %11624 = vmatpush.bf16.msra.mxu2 %v18909_v37  ;;  %11643 = vmatpush.bf16.msrb.mxu0 %v18932_v39  ;;  %v18964_v37 = vld [vmem:[%s20242_s7 + $0x278] sm:$0xff]  ;;  %v18955_v39 = vld [vmem:[%s20242_s7 + $0x230] sm:$0xff] }
 0x731   :  { %11610 = vmatpush.bf16.msra.mxu1 %v18902_v21  ;;  %11631 = vmatpush.bf16.msrb.mxu3 %v18923_v22  ;;  %v10504_v21 = vunpack.c.l.b16 %v19729_v54  ;;  %v18972_v22 = vld [vmem:[%s20242_s7 + $0x2b8] sm:$0xff]  ;;  %v10335_v16 = vpop.f32.mrf.mxu3 }
 0x732   :  { %11625 = vmatmul.bf16.vlgmr.msra.gmra.mxu2 %v10509_v1  ;;  %v18962_v1 = vld [vmem:[%s20242_s7 + $0x268] sm:$0xff]  ;;  %v10348_v54 = vpop.f32.mrf.mxu0 }
 0x733   :  { %11669 = vmatpush.bf16.msrb.mxu2 %v18948_v42  ;;  %11644 = vmatpush.bf16.msrb.mxu0 %v18931_v57  ;;  %v18979_v42 = vld [vmem:[%s20242_s7 + $0x2f0] sm:$0xff]  ;;  %v18978_v57 = vld [vmem:[%s20242_s7 + $0x2e8] sm:$0xff] }
 0x735   :  { %11611 = vmatpush.bf16.msra.mxu1 %v18901_v53  ;;  %11632 = vmatpush.bf16.msrb.mxu3 %v18922_v24  ;;  %v18953_v53 = vld [vmem:[%s20242_s7 + $0x220] sm:$0xff]  ;;  %v18971_v24 = vld [vmem:[%s20242_s7 + $0x2b0] sm:$0xff] }
 0x737   :  { %11670 = vmatpush.bf16.msrb.mxu2 %v18947_v50  ;;  %11645 = vmatpush.bf16.msrb.mxu0 %v18930_v55  ;;  %v10512_v50 = vpack.c.b16 %v10504_v21, %v10504_v21  ;;  %v18977_v55 = vld [vmem:[%s20242_s7 + $0x2e0] sm:$0xff]  ;;  %v18992_v21 = vld [vmem:[%s20242_s7 + $0x358] sm:$0xff] }
 0x738   :  { %11612 = vmatmul.bf16.vlgmr.msra.gmra.mxu1 %v10508_v14  ;;  %v18970_v14 = vld [vmem:[%s20242_s7 + $0x2a8] sm:$0xff] }
 0x739   :  { %11656 = vmatpush.bf16.msrb.mxu1 %v18940_v58  ;;  %11633 = vmatpush.bf16.msrb.mxu3 %v18921_v59  ;;  %v18952_v58 = vld [vmem:[%s20242_s7 + $0x218] sm:$0xff]  ;;  %v10337_v36 = vpop.f32.mrf.mxu3 }
 0x73a   :  { %v18976_v59 = vld [vmem:[%s20242_s7 + $0x2d8] sm:$0xff] }
 0x73b   :  { %11671 = vmatpush.bf16.msrb.mxu2 %v18946_v61  ;;  %11646 = vmatpush.bf16.msrb.mxu0 %v18929_v11  ;;  %v18960_v61 = vld [vmem:[%s20242_s7 + $0x258] sm:$0xff]  ;;  %v10336_v11 = vadd.f32 %v10335_v16, %v19991_v40  ;;  %v18957_v40 = vld [vmem:[%s20242_s7 + $0x240] sm:$0xff] }
 0x73d   :  { %11657 = vmatpush.bf16.msrb.mxu1 %v18939_v44  ;;  %11634 = vmatpush.bf16.msrb.mxu3 %v18920_v17  ;;  %v10374_v44 = vpop.f32.mrf.mxu2  ;;  %v10349_v63 = vadd.f32 %v10348_v54, %v10336_v11  ;;  %v10361_v17 = vpop.f32.mrf.mxu1 }
 0x73f   :  { %11672 = vmatpush.bf16.msrb.mxu2 %v18945_v51  ;;  %11647 = vmatpush.bf16.msrb.mxu0 %v18928_v5  ;;  %v10350_v51 = vpop.f32.mrf.mxu0  ;;  %v18951_v5 = vld [vmem:[%s20242_s7 + $0x210] sm:$0xff] }
 0x740   :  { %v18981_v51 = vld [vmem:[%s20242_s7 + $0x300] sm:$0xff] }
 0x741   :  { %11658 = vmatpush.bf16.msrb.mxu1 %v18938_v47  ;;  %11635 = vmatpush.bf16.msrb.mxu3 %v18919_v7  ;;  %v10362_v47 = vadd.f32 %v10361_v17, %v10349_v63  ;;  %v18968_v7 = vld [vmem:[%s20242_s7 + $0x298] sm:$0xff]  ;;  %v18989_v63 = vld [vmem:[%s20242_s7 + $0x340] sm:$0xff]  ;;  %v10530_v17 = vunpack.c.l.b16 %v19924_v29 }
 0x743   :  { %11673 = vmatpush.bf16.msrb.mxu2 %v18944_v15  ;;  %11648 = vmatpush.bf16.msrb.mxu0 %v18927_v0  ;;  %v18969_v15 = vld [vmem:[%s20242_s7 + $0x2a0] sm:$0xff]  ;;  %v20094_v4 = vadd.f32 %v10374_v44, %v10362_v47  ;;  %v18974_v0 = vld [vmem:[%s20242_s7 + $0x2c8] sm:$0xff]  ;;  %v19007_v44 = vld [vmem:[%s20242_s7 + $0x3d0] sm:$0xff] }
 0x745   :  { %11659 = vmatpush.bf16.msrb.mxu1 %v18937_v43  ;;  %11636 = vmatpush.bf16.msrb.mxu3 %v18918_v3  ;;  %v10376_v10 = vpop.f32.mrf.mxu2  ;;  %v10363_v43 = vpop.f32.mrf.mxu1  ;;  %v10526_v3 = vunpack.c.l.b16 %v19760_v6  ;;  %19086 = vtanh.f32 %v20094_v4 }
 0x746   :  { %v18997_v10 = vld [vmem:[%s20242_s7 + $0x380] sm:$0xff] }
 0x747   :  { %11674 = vmatpush.bf16.msrb.mxu2 %v18943_v13  ;;  %11649 = vmatpush.bf16.msrb.mxu0 %v18926_v28  ;;  %v18949_v13 = vld [vmem:[%s20242_s7 + $0x200] sm:$0xff]  ;;  %v10527_v28 = vunpack.c.h.b16 %v19760_v6  ;;  %v18996_v6 = vld [vmem:[%s20242_s7 + $0x378] sm:$0xff]  ;;  %v10534_v26 = vpack.c.b16 %v10526_v3, %v10526_v3 }
 0x749   :  { %11660 = vmatpush.bf16.msrb.mxu1 %v18936_v60  ;;  %11637 = vmatpush.bf16.msrb.mxu3 %v18917_v62  ;;  %v18973_v60 = vld [vmem:[%s20242_s7 + $0x2c0] sm:$0xff]  ;;  %v10535_v62 = vpack.c.b16 %v10527_v28, %v10527_v28 }
 0x74b   :  { %11675 = vmatpush.bf16.msrb.mxu2 %v18942_v48  ;;  %11650 = vmatpush.bf16.msrb.mxu0 %v18925_v9  ;;  %v10529_v48 = vunpack.c.h.b16 %v19791_v19  ;;  %v18966_v9 = vld [vmem:[%s20242_s7 + $0x288] sm:$0xff] }
 0x74c   :  { %11638 = vmatmul.bf16.vlgmr.msrb.gmra.mxu3 %v10510_v23  ;;  %v19004_v23 = vld [vmem:[%s20242_s7 + $0x3b8] sm:$0xff] }
 0x74d   :  { %11661 = vmatpush.bf16.msrb.mxu1 %v18935_v56  ;;  %11682 = vmatpush.bf16.msra.mxu3 %v18956_v35  ;;  %v10537_v56 = vpack.c.b16 %v10529_v48, %v10529_v48  ;;  %v10528_v35 = vunpack.c.l.b16 %v19791_v19  ;;  %v20157_v19 = vpop.f32.mrf.mxu0 }
 0x74e   :  { %11651 = vmatmul.bf16.vlgmr.msrb.gmra.mxu0 %v10511_v52  ;;  %v19010_v52 = vld [vmem:[%s20242_s7 + $0x3e8] sm:$0xff] }
 0x74f   :  { %11676 = vmatpush.bf16.msrb.mxu2 %v18941_v32  ;;  %11695 = vmatpush.bf16.msra.mxu0 %v18964_v37  ;;  %v18987_v32 = vld [vmem:[%s20242_s7 + $0x330] sm:$0xff]  ;;  %v18986_v37 = vld [vmem:[%s20242_s7 + $0x328] sm:$0xff] }
 0x751   :  { %11662 = vmatpush.bf16.msrb.mxu1 %v18934_v31  ;;  %11683 = vmatpush.bf16.msra.mxu3 %v18955_v39  ;;  %v19011_v31 = vld [vmem:[%s20242_s7 + $0x3f0] sm:$0xff]  ;;  %v18985_v39 = vld [vmem:[%s20242_s7 + $0x320] sm:$0xff] }
 0x752   :  { %11677 = vmatmul.bf16.vlgmr.msrb.gmra.mxu2 %v10513_v45  ;;  %v10536_v45 = vpack.c.b16 %v10528_v35, %v10528_v35 }
 0x753   :  { %11721 = vmatpush.bf16.msra.mxu2 %v18980_v38  ;;  %11696 = vmatpush.bf16.msra.mxu0 %v18963_v12  ;;  %v18994_v38 = vld [vmem:[%s20242_s7 + $0x368] sm:$0xff]  ;;  %v18993_v12 = vld [vmem:[%s20242_s7 + $0x360] sm:$0xff] }
 0x755   :  { %11663 = vmatpush.bf16.msrb.mxu1 %v18933_v18  ;;  %11684 = vmatpush.bf16.msra.mxu3 %v18954_v46  ;;  %v18984_v18 = vld [vmem:[%s20242_s7 + $0x318] sm:$0xff]  ;;  %v10387_v46 = vpop.f32.mrf.mxu3 }
 0x757   :  { %11722 = vmatpush.bf16.msra.mxu2 %v18979_v42  ;;  %11697 = vmatpush.bf16.msra.mxu0 %v18962_v1  ;;  %v19003_v42 = vld [vmem:[%s20242_s7 + $0x3b0] sm:$0xff]  ;;  %v10426_v1 = vpop.f32.mrf.mxu2 }
 0x758   :  { %11664 = vmatmul.bf16.vlgmr.msrb.gmra.mxu1 %v10512_v50  ;;  %v19009_v50 = vld [vmem:[%s20242_s7 + $0x3e0] sm:$0xff] }
 0x759   :  { %11708 = vmatpush.bf16.msra.mxu1 %v18972_v22  ;;  %11685 = vmatpush.bf16.msra.mxu3 %v18953_v53  ;;  %v19002_v22 = vld [vmem:[%s20242_s7 + $0x3a8] sm:$0xff]  ;;  %v18983_v53 = vld [vmem:[%s20242_s7 + $0x310] sm:$0xff] }
 0x75b   :  { %11723 = vmatpush.bf16.msra.mxu2 %v18978_v57  ;;  %11698 = vmatpush.bf16.msra.mxu0 %v18961_v33  ;;  %v10402_v57 = vpop.f32.mrf.mxu0  ;;  %v18991_v33 = vld [vmem:[%s20242_s7 + $0x350] sm:$0xff] }
 0x75d   :  { %11709 = vmatpush.bf16.msra.mxu1 %v18971_v24  ;;  %11686 = vmatpush.bf16.msra.mxu3 %v18952_v58  ;;  %v19001_v24 = vld [vmem:[%s20242_s7 + $0x3a0] sm:$0xff]  ;;  %v18982_v58 = vld [vmem:[%s20242_s7 + $0x308] sm:$0xff]  ;;  %v10389_v16 = vpop.f32.mrf.mxu3 }
 0x75f   :  { %11724 = vmatpush.bf16.msra.mxu2 %v18977_v55  ;;  %11699 = vmatpush.bf16.msra.mxu0 %v18960_v61  ;;  %v10413_v54 = vpop.f32.mrf.mxu1  ;;  %v19008_v55 = vld [vmem:[%s20242_s7 + $0x3d8] sm:$0xff]  ;;  %v18990_v61 = vld [vmem:[%s20242_s7 + $0x348] sm:$0xff] }
 0x761   :  { %11710 = vmatpush.bf16.msra.mxu1 %v18970_v14  ;;  %11687 = vmatpush.bf16.msra.mxu3 %v18951_v5  ;;  %v10428_v14 = vpop.f32.mrf.mxu2  ;;  %v10531_v5 = vunpack.c.h.b16 %v19924_v29  ;;  %v18998_v29 = vld [vmem:[%s20242_s7 + $0x388] sm:$0xff] }
 0x763   :  { %11725 = vmatpush.bf16.msra.mxu2 %v18976_v59  ;;  %11700 = vmatpush.bf16.msra.mxu0 %v18959_v49  ;;  %v19000_v59 = vld [vmem:[%s20242_s7 + $0x398] sm:$0xff]  ;;  %v19097_v49 = vld [vmem:[#allocation12] sm:$0xff]  ;;  %v10539_v36 = vpack.c.b16 %v10531_v5, %v10531_v5 }
 0x764   :  { %v7053_v47 = vperm.slane %v19097_v49, 7 }
 0x765   :  { %11711 = vmatpush.bf16.msra.mxu1 %v18969_v15  ;;  %11688 = vmatpush.bf16.msra.mxu3 %v18950_v2  ;;  %v18999_v15 = vld [vmem:[%s20242_s7 + $0x390] sm:$0xff] }
 0x766   :  { %v10388_v2 = vadd.f32 %v10387_v46, %v7053_v47 }
 0x767   :  { %11726 = vmatpush.bf16.msra.mxu2 %v18975_v34  ;;  %11701 = vmatpush.bf16.msra.mxu0 %v18958_v8  ;;  %v10415_v11 = vpop.f32.mrf.mxu1  ;;  %v19006_v34 = vld [vmem:[%s20242_s7 + $0x3c8] sm:$0xff]  ;;  %v10538_v8 = vpack.c.b16 %v10530_v17, %v10530_v17 }
 0x769   :  { %11712 = vmatpush.bf16.msra.mxu1 %v18968_v7  ;;  %11689 = vmatpush.bf16.msra.mxu3 %v18949_v13  ;;  %v19005_v7 = vld [vmem:[%s20242_s7 + $0x3c0] sm:$0xff] }
 0x76b   :  { %11727 = vmatpush.bf16.msra.mxu2 %v18974_v0  ;;  %11702 = vmatpush.bf16.msra.mxu0 %v18957_v40  ;;  %v10401_v0 = vadd.f32 %v20157_v19, %v10388_v2 }
 0x76c   :  { %11690 = vmatmul.bf16.vlgmr.msra.gmra.mxu3 %v10534_v26 }
 0x76d   :  { %11713 = vmatpush.bf16.msra.mxu1 %v18967_v41  ;;  %11734 = vmatpush.bf16.msrb.mxu3 %v18988_v25  ;;  %v10414_v43 = vadd.f32 %v10413_v54, %v10401_v0 }
 0x76e   :  { %11703 = vmatmul.bf16.vlgmr.msra.gmra.mxu0 %v10535_v62 }
 0x76f   :  { %11728 = vmatpush.bf16.msra.mxu2 %v18973_v60  ;;  %11747 = vmatpush.bf16.msrb.mxu0 %v18996_v6  ;;  %v10427_v40 = vadd.f32 %v10426_v1, %v10414_v43 }
 0x771   :  { %11714 = vmatpush.bf16.msra.mxu1 %v18966_v9  ;;  %11735 = vmatpush.bf16.msrb.mxu3 %v18987_v32 }
 0x772   :  { %11729 = vmatmul.bf16.vlgmr.msra.gmra.mxu2 %v10537_v56  ;;  %v19087_v56 = vpop.eup %19086 }
 0x773   :  { %11773 = vmatpush.bf16.msrb.mxu2 %v19012_v27  ;;  %11748 = vmatpush.bf16.msrb.mxu0 %v18995_v30 }
 0x775   :  { %11715 = vmatpush.bf16.msra.mxu1 %v18965_v20  ;;  %11736 = vmatpush.bf16.msrb.mxu3 %v18986_v37 }
 0x777   :  { %11774 = vmatpush.bf16.msrb.mxu2 %v19011_v31  ;;  %11749 = vmatpush.bf16.msrb.mxu0 %v18994_v38  ;;  %v19025_v31 = vld [vmem:[#allocation13] ss:$0 sm:$0xff] }
 0x778   :  { %11716 = vmatmul.bf16.vlgmr.msra.gmra.mxu1 %v10536_v45 }
 0x779   :  { %11760 = vmatpush.bf16.msrb.mxu1 %v19004_v23  ;;  %11737 = vmatpush.bf16.msrb.mxu3 %v18985_v39 }
 0x77b   :  { %11775 = vmatpush.bf16.msrb.mxu2 %v19010_v52  ;;  %11750 = vmatpush.bf16.msrb.mxu0 %v18993_v12 }
 0x77d   :  { %11761 = vmatpush.bf16.msrb.mxu1 %v19003_v42  ;;  %11738 = vmatpush.bf16.msrb.mxu3 %v18984_v18 }
 0x77f   :  { %11751 = vmatpush.bf16.msrb.mxu0 %v18992_v21  ;;  %11776 = vmatpush.bf16.msrb.mxu2 %v19009_v50 }
 0x781   :  { %11762 = vmatpush.bf16.msrb.mxu1 %v19002_v22  ;;  %11739 = vmatpush.bf16.msrb.mxu3 %v18983_v53 }
 0x783   :  { %11752 = vmatpush.bf16.msrb.mxu0 %v18991_v33  ;;  %11777 = vmatpush.bf16.msrb.mxu2 %v19008_v55 }
 0x785   :  { %11763 = vmatpush.bf16.msrb.mxu1 %v19001_v24  ;;  %11740 = vmatpush.bf16.msrb.mxu3 %v18982_v58 }
 0x787   :  { %11753 = vmatpush.bf16.msrb.mxu0 %v18990_v61  ;;  %11778 = vmatpush.bf16.msrb.mxu2 %v19007_v44 }
 0x789   :  { %11764 = vmatpush.bf16.msrb.mxu1 %v19000_v59  ;;  %11741 = vmatpush.bf16.msrb.mxu3 %v18981_v51 }
 0x78b   :  { %11754 = vmatpush.bf16.msrb.mxu0 %v18989_v63  ;;  %11779 = vmatpush.bf16.msrb.mxu2 %v19006_v34  ;;  %v10452_v13 = vpop.f32.mrf.mxu0 }
 0x78c   :  { %11742 = vmatmul.bf16.vlgmr.msrb.gmra.mxu3 %v10538_v8 }
 0x78d   :  { %11765 = vmatpush.bf16.msrb.mxu1 %v18999_v15 }
 0x78e   :  { %11755 = vmatmul.bf16.vlgmr.msrb.gmra.mxu0 %v10539_v36 }
 0x78f   :  { %11780 = vmatpush.bf16.msrb.mxu2 %v19005_v7  ;;  %v10439_v3 = vpop.f32.mrf.mxu3 }
 0x790   :  { %v10440_v28 = vadd.f32 %v10439_v3, %v10427_v40 }
 0x791   :  { %11766 = vmatpush.bf16.msrb.mxu1 %v18998_v29 }
 0x792   :  { %v10453_v48 = vadd.f32 %v10452_v13, %v10440_v28 }
 0x793   :  { %v10454_v60 = vpop.f32.mrf.mxu0 }
 0x795   :  { %11767 = vmatpush.bf16.msrb.mxu1 %v18997_v10  ;;  %v10478_v41 = vpop.f32.mrf.mxu2  ;;  %v10465_v25 = vpop.f32.mrf.mxu1 }
 0x796   :  { %v10466_v6 = vadd.f32 %v10465_v25, %v10453_v48 }
 0x797   :  { %v10441_v62 = vpop.f32.mrf.mxu3 }
 0x798   :  { %v10479_v26 = vadd.f32 %v10478_v41, %v10466_v6 }
 0x79a   :  { %19088 = vtanh.f32 %v10479_v26 }
 0x79d   :  { %v10480_v9 = vpop.f32.mrf.mxu2  ;;  %v10467_v27 = vpop.f32.mrf.mxu1 }
 0x7a0   :  { %v19089_v32 = vpop.eup %19088 }
 0x7a1   :  { %v10493_v30 = vpack.c.bf16 %v19089_v32, %v19087_v56 }
 0x7a3   :  { %v10532_v20 = vunpack.c.l.b16 %v10493_v30  ;;  %v10533_v35 = vunpack.c.h.b16 %v10493_v30 }
 0x7a5   :  { %v10540_v37 = vpack.c.b16 %v10532_v20, %v10532_v20  ;;  %v10541_v38 = vpack.c.b16 %v10533_v35, %v10533_v35 }
 0x7a7   :  { %11768 = vmatmul.bf16.vlgmr.msrb.gmra.mxu1 %v10540_v37  ;;  %11781 = vmatmul.bf16.vlgmr.msrb.gmra.mxu2 %v10541_v38 }
 0x7ab   :  { %v11600_v23 = vpop.f32.mrf.mxu0 }
 0x7af   :  { %v11587_v19 = vpop.f32.mrf.mxu3 }
 0x7b0   :  { %v11588_v52 = vadd.f32 %v19025_v31, %v11587_v19 }
 0x7b2   :  { %v11601_v4 = vadd.f32 %v11600_v23, %v11588_v52 }
 0x7b3   :  { %v11602_v39 = vpop.f32.mrf.mxu0 }
 0x7b5   :  { %v11626_v45 = vpop.f32.mrf.mxu2  ;;  %v11613_v12 = vpop.f32.mrf.mxu1 }
 0x7b6   :  { %v11614_v42 = vadd.f32 %v11613_v12, %v11601_v4 }
 0x7b7   :  { %v11589_v21 = vpop.f32.mrf.mxu3 }
 0x7b8   :  { %v11627_v18 = vadd.f32 %v11626_v45, %v11614_v42 }
 0x7bd   :  { %v11628_v46 = vpop.f32.mrf.mxu2  ;;  %v11615_v1 = vpop.f32.mrf.mxu1 }
 0x7cb   :  { %v11652_v22 = vpop.f32.mrf.mxu0 }
 0x7cf   :  { %v11639_v57 = vpop.f32.mrf.mxu3 }
 0x7d0   :  { %v11640_v54 = vadd.f32 %v11639_v57, %v11627_v18 }
 0x7d2   :  { %v11653_v33 = vadd.f32 %v11652_v22, %v11640_v54 }
 0x7d3   :  { %v11654_v53 = vpop.f32.mrf.mxu0 }
 0x7d5   :  { %v11678_v50 = vpop.f32.mrf.mxu2  ;;  %v11665_v24 = vpop.f32.mrf.mxu1 }
 0x7d6   :  { %v11666_v55 = vadd.f32 %v11665_v24, %v11653_v33 }
 0x7d7   :  { %v11641_v61 = vpop.f32.mrf.mxu3 }
 0x7d8   :  { %v11679_v58 = vadd.f32 %v11678_v50, %v11666_v55 }
 0x7dd   :  { %v11680_v16 = vpop.f32.mrf.mxu2  ;;  %v11667_v14 = vpop.f32.mrf.mxu1 }
 0x7eb   :  { %v11704_v59 = vpop.f32.mrf.mxu0 }
 0x7ef   :  { %v11691_v11 = vpop.f32.mrf.mxu3 }
 0x7f0   :  { %v11692_v8 = vadd.f32 %v11691_v11, %v11679_v58 }
 0x7f2   :  { %v11705_v36 = vadd.f32 %v11704_v59, %v11692_v8 }
 0x7f3   :  { %v11706_v51 = vpop.f32.mrf.mxu0 }
 0x7f5   :  { %v11730_v44 = vpop.f32.mrf.mxu2  ;;  %v11717_v63 = vpop.f32.mrf.mxu1 }
 0x7f6   :  { %v11718_v29 = vadd.f32 %v11717_v63, %v11705_v36 }
 0x7f7   :  { %v11693_v17 = vpop.f32.mrf.mxu3 }
 0x7f8   :  { %v11731_v7 = vadd.f32 %v11730_v44, %v11718_v29 }
 0x7fd   :  { %v11732_v5 = vpop.f32.mrf.mxu2  ;;  %v11719_v49 = vpop.f32.mrf.mxu1 }
 0x80b   :  { %v11756_v47 = vpop.f32.mrf.mxu0 }
 0x80f   :  { %v11743_v15 = vpop.f32.mrf.mxu3 }
 0x810   :  { %v11744_v0 = vadd.f32 %v11743_v15, %v11731_v7 }
 0x812   :  { %v11757_v43 = vadd.f32 %v11756_v47, %v11744_v0 }
 0x813   :  { %v11758_v34 = vpop.f32.mrf.mxu0 }
 0x817   :  { %v11745_v2 = vpop.f32.mrf.mxu3 }
 0x824   :  { %v11769_v10 = vpop.f32.mrf.mxu1 }
 0x825   :  { %v11770_v13 = vadd.f32 %v11769_v10, %v11757_v43 }
 0x82a   :  { %v11782_v40 = vpop.f32.mrf.mxu2 }
 0x82b   :  { %v11783_v3 = vadd.f32 %v11782_v40, %v11770_v13 }
 0x82c   :  { %v11771_v28 = vpop.f32.mrf.mxu1 }
 0x82d   :  { %11787 = vst.msk [vmem:[%s20244_s9] sm:$0xff] %vm11786_vm1, %v11783_v3 }
 0x832   :  { %v11784_v41 = vpop.f32.mrf.mxu2 }
 0x833   :  { %11792 = vsyncpa [#allocation3], 1 }
 0x834   :  { %11793 = vsyncpa [#allocation5], 1 }
 0x835   :  { %11794 = vsyncpa [#allocation8], 1 }
 0x836   :  { %11795 = vsyncpa [#allocation11], 1 }
 0x837   :  { %11796 = vsyncpa [#allocation14], 1 }

</bundles_post_ra>
